<compile_context>
chip_gen: v7x
topology: tpu7x:2x2x1
jax: 0.10.0
libtpu: 0.0.40
codegen_flags: <defaults>
</compile_context>

<pallas_src>
import functools

import jax
import jax.numpy as jnp
from jax.experimental import pallas as pl
from jax.experimental.pallas import tpu as pltpu

_INV_SQRT2 = 0.7071067811865476


def _ffn_kernel(x_ref, w1_ref, b1_ref, w2_ref, b2_ref, o_ref, *, approximate_gelu):
    compute_dtype = w1_ref.dtype
    # Cast the row tile to the MXU compute dtype in-kernel (VPU op, hidden under
    # the matmul) instead of a separate HBM pass in the wrapper.
    x = x_ref[...].astype(compute_dtype)
    # fc1 on the MXU: (tm, dim) @ (dim, inter), f32 accumulate; bias add in f32.
    h = jnp.dot(x, w1_ref[...], preferred_element_type=jnp.float32)
    h = h + b1_ref[...]                                   # (1, inter) broadcasts over rows
    if approximate_gelu:
        # tanh-approx GELU in bf16: transcendental goes to the EUP slot, keeps the
        # VALU slot free so the kernel stays MXU-bound on v6e/v7x.
        h = jax.nn.gelu(h.astype(compute_dtype), approximate=True)
    else:
        # Exact erf GELU in f32 (matches torch.nn.functional.gelu default); use on
        # v5e (no bf16 VPU/EUP) or when strict parity is required.
        h = (0.5 * h * (1.0 + jax.lax.erf(h * _INV_SQRT2))).astype(compute_dtype)
    # TODO(synk): dropout with p>0 would need pltpu.prng_seed/prng_random_bits;
    # the module default p=0.0 is an identity, so it is omitted here.
    # fc2 on the MXU, f32 accumulate, f32 bias add.
    o = jnp.dot(h, w2_ref[...], preferred_element_type=jnp.float32)
    o_ref[...] = (o + b2_ref[...]).astype(o_ref.dtype)


def _round_up(x, n):
    return (x + n - 1) // n * n


@functools.partial(
    jax.jit,
    static_argnames=("tm", "compute_dtype", "approximate_gelu",
                     "single_buffer_params", "out_dtype"),
)
def feed_forward(x, w1, b1, w2, b2, *, tm=256, compute_dtype=jnp.bfloat16,
                 approximate_gelu=True, single_buffer_params=True, out_dtype=None):
    """Q-Former FeedForward.

    x: (batch, seq, dim); w1: (dim, inter); b1: (inter,); w2: (inter, dim); b2: (dim,)
    Weights should already be in `compute_dtype` (cast once at init); if not, a
    one-time cast is inserted (avoid this in steady state).
    """
    batch, seq, dim = x.shape
    inter = w1.shape[1]
    out_dtype = out_dtype if out_dtype is not None else x.dtype
    m = batch * seq

    # Row tile: large enough to fill MXU rows and amortize per-step overhead,
    # clamped to a multiple of 8 for small inputs.  (For big-batch training on
    # v5e/v6e a tm of 512 is also reasonable — 128 MiB VMEM.)
    tm_eff = min(tm, _round_up(m, 8))
    # v7x has 2 TensorCores and the row axis is 'parallel' — make sure medium/large
    # M gets at least 2 grid steps so both cores have work (skip for tiny M where
    # the kernel is weight-DMA bound and splitting would double weight traffic).
    if pl.cdiv(m, tm_eff) < 2 and tm_eff >= 128:
        tm_eff = _round_up(tm_eff // 2, 8)
    grid_m = pl.cdiv(m, tm_eff)

    # No padding / slicing: Pallas masks the ragged final row block.
    x2d = x.reshape(m, dim)
    if w1.dtype != compute_dtype:
        w1 = w1.astype(compute_dtype)
    if w2.dtype != compute_dtype:
        w2 = w2.astype(compute_dtype)
    b1_2d = b1.reshape(1, inter).astype(jnp.float32)
    b2_2d = b2.reshape(1, dim).astype(jnp.float32)

    # Weights / biases have a constant index_map (DMA'd exactly once) -> single
    # buffer them to halve their VMEM residency.
    param_mode = pl.Buffered(1) if single_buffer_params else None

    def _resident(shape):
        return pl.BlockSpec(shape, lambda i: (0, 0), pipeline_mode=param_mode)

    w_bytes = jnp.dtype(compute_dtype).itemsize
    cost = pl.CostEstimate(
        flops=2 * m * dim * inter * 2,                    # two matmuls
        transcendentals=m * inter,                        # tanh / erf in the GELU
        bytes_accessed=(m * dim * x.dtype.itemsize        # x (read as-is, cast in-kernel)
                        + 2 * dim * inter * w_bytes       # W1 + W2 (bf16)
                        + (inter + dim) * 4               # biases (f32)
                        + m * dim * jnp.dtype(out_dtype).itemsize),
    )

    out2d = pl.pallas_call(
        functools.partial(_ffn_kernel, approximate_gelu=approximate_gelu),
        out_shape=jax.ShapeDtypeStruct((m, dim), out_dtype),
        grid_spec=pltpu.PrefetchScalarGridSpec(
            num_scalar_prefetch=0,
            grid=(grid_m,),
            in_specs=[
                pl.BlockSpec((tm_eff, dim), lambda i: (i, 0)),   # x row-tile
                _resident((dim, inter)),                         # W1 (resident)
                _resident((1, inter)),                           # b1
                _resident((inter, dim)),                         # W2 (resident)
                _resident((1, dim)),                             # b2
            ],
            out_specs=pl.BlockSpec((tm_eff, dim), lambda i: (i, 0)),
        ),
        compiler_params=pltpu.CompilerParams(
            dimension_semantics=("parallel",),            # row tiles shard across TCs
        ),
        cost_estimate=cost,
    )(x2d, w1, b1_2d, w2, b2_2d)

    return out2d.reshape(batch, seq, dim)


# ---------------------------------------------------------------------------
# Safety net: if the installed jax build rejects pipeline_mode=pl.Buffered(1),
# fall back to default (double-buffered) resident params so the script still runs.
_SINGLE_BUFFER_PARAMS = True


def _call_ffn(x, w1, b1, w2, b2, **kw):
    global _SINGLE_BUFFER_PARAMS
    if _SINGLE_BUFFER_PARAMS:
        try:
            out = feed_forward(x, w1, b1, w2, b2, single_buffer_params=True, **kw)
            jax.block_until_ready(out)
            return out
        except Exception:
            _SINGLE_BUFFER_PARAMS = False
    out = feed_forward(x, w1, b1, w2, b2, single_buffer_params=False, **kw)
    jax.block_until_ready(out)
    return out


def _reference(x, w1, b1, w2, b2, compute_dtype=jnp.bfloat16, approximate_gelu=True):
    """Pure-JAX reference mirroring the kernel's dtype/GELU path."""
    xc = x.astype(compute_dtype)
    w1c = w1.astype(compute_dtype)
    w2c = w2.astype(compute_dtype)
    h = jnp.dot(xc, w1c, preferred_element_type=jnp.float32) + b1
    if approximate_gelu:
        h = jax.nn.gelu(h.astype(compute_dtype), approximate=True)
    else:
        h = jax.nn.gelu(h, approximate=False).astype(compute_dtype)
    o = jnp.dot(h, w2c, preferred_element_type=jnp.float32) + b2
    return o.astype(x.dtype)


if __name__ == "__main__":
    # Shapes consistent with QFormer defaults: hidden_dim=512, mlp_ratio=4 ->
    # intermediate_dim=2048; a few query tokens.
    batch, seq, dim, inter = 2, 8, 512, 2048

    key = jax.random.PRNGKey(0)
    kx, k1, k2, k3, k4 = jax.random.split(key, 5)

    x = jax.random.normal(kx, (batch, seq, dim), dtype=jnp.float32)
    # Deterministic synthetic parameters (roughly nn.Linear init scale).
    w1 = jax.random.uniform(k1, (dim, inter), jnp.float32, -1.0, 1.0) / jnp.sqrt(dim)
    b1 = jax.random.uniform(k2, (inter,), jnp.float32, -1.0, 1.0) / jnp.sqrt(dim)
    w2 = jax.random.uniform(k3, (inter, dim), jnp.float32, -1.0, 1.0) / jnp.sqrt(inter)
    b2 = jax.random.uniform(k4, (dim,), jnp.float32, -1.0, 1.0) / jnp.sqrt(inter)

    # Cast weights to the MXU compute dtype ONCE at parameter init (outside the
    # jitted per-call wrapper) — no per-call HBM cast passes.
    w1_c = w1.astype(jnp.bfloat16)
    w2_c = w2.astype(jnp.bfloat16)

    # 1) Default fast path: bf16 MXU + tanh-approx GELU (EUP), vs mirrored reference.
    out = _call_ffn(x, w1_c, b1, w2_c, b2)
    ref = _reference(x, w1, b1, w2, b2, approximate_gelu=True)
    assert out.shape == (batch, seq, dim)
    assert jnp.allclose(out, ref, atol=1e-2, rtol=1e-2), "mismatch (approx-GELU path)"

    # 2) Torch-parity path: exact erf GELU in f32 epilogue (use this on v5e).
    out_exact = _call_ffn(x, w1_c, b1, w2_c, b2, approximate_gelu=False)
    ref_exact = _reference(x, w1, b1, w2, b2, approximate_gelu=False)
    assert jnp.allclose(out_exact, ref_exact, atol=1e-2, rtol=1e-2), "mismatch (erf path)"

    # 3) Ragged rows: m = 14 (not a multiple of 8) exercises partial-block masking
    #    (no wrapper-side pad/slice anymore).
    x_odd = jax.random.normal(kx, (batch, 7, dim), dtype=jnp.float32)
    out_odd = _call_ffn(x_odd, w1_c, b1, w2_c, b2)
    ref_odd = _reference(x_odd, w1, b1, w2, b2, approximate_gelu=True)
    assert out_odd.shape == (batch, 7, dim)
    assert jnp.allclose(out_odd, ref_odd, atol=1e-2, rtol=1e-2), "mismatch (ragged path)"

    print("KERNEL_OK")
</pallas_src>

<mosaic_0001>
module attributes {stable_mosaic.version = 11 : i64} {
  func.func @_ffn_kernel(%arg0: i32, %arg1: memref<16x512xf32, #tpu.memory_space<vmem>>, %arg2: memref<512x2048xbf16, #tpu.memory_space<vmem>>, %arg3: memref<1x2048xf32, #tpu.memory_space<vmem>>, %arg4: memref<2048x512xbf16, #tpu.memory_space<vmem>>, %arg5: memref<1x512xf32, #tpu.memory_space<vmem>>, %arg6: memref<16x512xf32, #tpu.memory_space<vmem>>) attributes {dimension_semantics = [#tpu.dimension_semantics<parallel>], iteration_bounds = array<i64: 1>, scalar_prefetch = 0 : i64, scratch_operands = 0 : i64, tpu.core_type = #tpu.core_type<tc>, window_params = [{transform_indices = @transform_0, window_bounds = array<i64: 16, 512>}, {pipeline_mode = #tpu.pipeline_mode<synchronous>, transform_indices = @transform_1, window_bounds = array<i64: 512, 2048>}, {pipeline_mode = #tpu.pipeline_mode<synchronous>, transform_indices = @transform_2, window_bounds = array<i64: 1, 2048>}, {pipeline_mode = #tpu.pipeline_mode<synchronous>, transform_indices = @transform_3, window_bounds = array<i64: 2048, 512>}, {pipeline_mode = #tpu.pipeline_mode<synchronous>, transform_indices = @transform_4, window_bounds = array<i64: 1, 512>}, {transform_indices = @transform_5, window_bounds = array<i64: 16, 512>}]} {
    %c0 = arith.constant 0 : index
    %c0_0 = arith.constant 0 : index
    %0 = vector.load %arg1[%c0, %c0_0] : memref<16x512xf32, #tpu.memory_space<vmem>>, vector<16x512xf32>
    %1 = arith.truncf %0 : vector<16x512xf32> to vector<16x512xbf16>
    %c0_1 = arith.constant 0 : index
    %c0_2 = arith.constant 0 : index
    %2 = vector.load %arg2[%c0_1, %c0_2] : memref<512x2048xbf16, #tpu.memory_space<vmem>>, vector<512x2048xbf16>
    %cst = arith.constant dense<0.000000e+00> : vector<16x2048xf32>
    %3 = tpu.matmul %1, %2, %cst {dimension_numbers = #tpu.dot_dimension_numbers<[1], [0], [0], [1], [0, 0, 1, 1], [], []>} : vector<16x512xbf16>, vector<512x2048xbf16>, vector<16x2048xf32> -> vector<16x2048xf32>
    %c0_3 = arith.constant 0 : index
    %c0_4 = arith.constant 0 : index
    %4 = vector.load %arg3[%c0_3, %c0_4] : memref<1x2048xf32, #tpu.memory_space<vmem>>, vector<1x2048xf32>
    %5 = vector.broadcast %4 : vector<1x2048xf32> to vector<16x2048xf32>
    %6 = arith.addf %3, %5 : vector<16x2048xf32>
    %7 = arith.truncf %6 : vector<16x2048xf32> to vector<16x2048xbf16>
    %8 = arith.mulf %7, %7 : vector<16x2048xbf16>
    %9 = arith.mulf %7, %8 : vector<16x2048xbf16>
    %cst_5 = arith.constant 4.467770e-02 : bf16
    %10 = vector.broadcast %cst_5 : bf16 to vector<16x2048xbf16>
    %11 = arith.mulf %10, %9 : vector<16x2048xbf16>
    %12 = arith.addf %7, %11 : vector<16x2048xbf16>
    %cst_6 = arith.constant 7.968750e-01 : bf16
    %13 = vector.broadcast %cst_6 : bf16 to vector<16x2048xbf16>
    %14 = arith.mulf %13, %12 : vector<16x2048xbf16>
    %15 = math.tanh %14 : vector<16x2048xbf16>
    %cst_7 = arith.constant 1.000000e+00 : bf16
    %16 = vector.broadcast %cst_7 : bf16 to vector<16x2048xbf16>
    %17 = arith.addf %16, %15 : vector<16x2048xbf16>
    %cst_8 = arith.constant 5.000000e-01 : bf16
    %18 = vector.broadcast %cst_8 : bf16 to vector<16x2048xbf16>
    %19 = arith.mulf %18, %17 : vector<16x2048xbf16>
    %20 = arith.mulf %7, %19 : vector<16x2048xbf16>
    %c0_9 = arith.constant 0 : index
    %c0_10 = arith.constant 0 : index
    %21 = vector.load %arg4[%c0_9, %c0_10] : memref<2048x512xbf16, #tpu.memory_space<vmem>>, vector<2048x512xbf16>
    %cst_11 = arith.constant dense<0.000000e+00> : vector<16x512xf32>
    %22 = tpu.matmul %20, %21, %cst_11 {dimension_numbers = #tpu.dot_dimension_numbers<[1], [0], [0], [1], [0, 0, 1, 1], [], []>} : vector<16x2048xbf16>, vector<2048x512xbf16>, vector<16x512xf32> -> vector<16x512xf32>
    %c0_12 = arith.constant 0 : index
    %c0_13 = arith.constant 0 : index
    %23 = vector.load %arg5[%c0_12, %c0_13] : memref<1x512xf32, #tpu.memory_space<vmem>>, vector<1x512xf32>
    %24 = vector.broadcast %23 : vector<1x512xf32> to vector<16x512xf32>
    %25 = arith.addf %22, %24 : vector<16x512xf32>
    %c0_14 = arith.constant 0 : index
    %c0_15 = arith.constant 0 : index
    %26 = vector.load %arg6[%c0_14, %c0_15] : memref<16x512xf32, #tpu.memory_space<vmem>>, vector<16x512xf32>
    tpu.vector_store %arg6[%c0_14, %c0_15], %25 {strides = array<i32>} : memref<16x512xf32, #tpu.memory_space<vmem>>, vector<16x512xf32>,
    return
  }
  func.func @transform_0(%arg0: i32) -> (i32, i32) {
    %c0_i32 = arith.constant 0 : i32
    %c0_i32_0 = arith.constant 0 : i32
    return %arg0, %c0_i32 : i32, i32
  }
  func.func @transform_1(%arg0: i32) -> (i32, i32) {
    %c0_i32 = arith.constant 0 : i32
    %c0_i32_0 = arith.constant 0 : i32
    %c0_i32_1 = arith.constant 0 : i32
    return %c0_i32, %c0_i32_0 : i32, i32
  }
  func.func @transform_2(%arg0: i32) -> (i32, i32) {
    %c0_i32 = arith.constant 0 : i32
    %c0_i32_0 = arith.constant 0 : i32
    %c0_i32_1 = arith.constant 0 : i32
    return %c0_i32, %c0_i32_0 : i32, i32
  }
  func.func @transform_3(%arg0: i32) -> (i32, i32) {
    %c0_i32 = arith.constant 0 : i32
    %c0_i32_0 = arith.constant 0 : i32
    %c0_i32_1 = arith.constant 0 : i32
    return %c0_i32, %c0_i32_0 : i32, i32
  }
  func.func @transform_4(%arg0: i32) -> (i32, i32) {
    %c0_i32 = arith.constant 0 : i32
    %c0_i32_0 = arith.constant 0 : i32
    %c0_i32_1 = arith.constant 0 : i32
    return %c0_i32, %c0_i32_0 : i32, i32
  }
  func.func @transform_5(%arg0: i32) -> (i32, i32) {
    %c0_i32 = arith.constant 0 : i32
    %c0_i32_0 = arith.constant 0 : i32
    return %arg0, %c0_i32 : i32, i32
  }
}

module attributes {stable_mosaic.version = 11 : i64} {
  func.func @_ffn_kernel(%arg0: i32, %arg1: memref<16x512xf32, #tpu.memory_space<vmem>>, %arg2: memref<512x2048xbf16, #tpu.memory_space<vmem>>, %arg3: memref<1x2048xf32, #tpu.memory_space<vmem>>, %arg4: memref<2048x512xbf16, #tpu.memory_space<vmem>>, %arg5: memref<1x512xf32, #tpu.memory_space<vmem>>, %arg6: memref<16x512xf32, #tpu.memory_space<vmem>>) attributes {dimension_semantics = [#tpu.dimension_semantics<parallel>], iteration_bounds = array<i64: 1>, scalar_prefetch = 0 : i64, scratch_operands = 0 : i64, tpu.core_type = #tpu.core_type<tc>, window_params = [{transform_indices = @transform_0, window_bounds = array<i64: 16, 512>}, {pipeline_mode = #tpu.pipeline_mode<synchronous>, transform_indices = @transform_1, window_bounds = array<i64: 512, 2048>}, {pipeline_mode = #tpu.pipeline_mode<synchronous>, transform_indices = @transform_2, window_bounds = array<i64: 1, 2048>}, {pipeline_mode = #tpu.pipeline_mode<synchronous>, transform_indices = @transform_3, window_bounds = array<i64: 2048, 512>}, {pipeline_mode = #tpu.pipeline_mode<synchronous>, transform_indices = @transform_4, window_bounds = array<i64: 1, 512>}, {transform_indices = @transform_5, window_bounds = array<i64: 16, 512>}]} {
    %c0 = arith.constant 0 : index
    %c0_0 = arith.constant 0 : index
    %0 = vector.load %arg1[%c0, %c0_0] : memref<16x512xf32, #tpu.memory_space<vmem>>, vector<16x512xf32>
    %1 = arith.truncf %0 : vector<16x512xf32> to vector<16x512xbf16>
    %c0_1 = arith.constant 0 : index
    %c0_2 = arith.constant 0 : index
    %2 = vector.load %arg2[%c0_1, %c0_2] : memref<512x2048xbf16, #tpu.memory_space<vmem>>, vector<512x2048xbf16>
    %cst = arith.constant dense<0.000000e+00> : vector<16x2048xf32>
    %3 = tpu.matmul %1, %2, %cst {dimension_numbers = #tpu.dot_dimension_numbers<[1], [0], [0], [1], [0, 0, 1, 1], [], []>} : vector<16x512xbf16>, vector<512x2048xbf16>, vector<16x2048xf32> -> vector<16x2048xf32>
    %c0_3 = arith.constant 0 : index
    %c0_4 = arith.constant 0 : index
    %4 = vector.load %arg3[%c0_3, %c0_4] : memref<1x2048xf32, #tpu.memory_space<vmem>>, vector<1x2048xf32>
    %5 = vector.broadcast %4 : vector<1x2048xf32> to vector<16x2048xf32>
    %6 = arith.addf %3, %5 : vector<16x2048xf32>
    %7 = arith.truncf %6 : vector<16x2048xf32> to vector<16x2048xbf16>
    %8 = arith.mulf %7, %7 : vector<16x2048xbf16>
    %9 = arith.mulf %7, %8 : vector<16x2048xbf16>
    %cst_5 = arith.constant 4.467770e-02 : bf16
    %10 = vector.broadcast %cst_5 : bf16 to vector<16x2048xbf16>
    %11 = arith.mulf %10, %9 : vector<16x2048xbf16>
    %12 = arith.addf %7, %11 : vector<16x2048xbf16>
    %cst_6 = arith.constant 7.968750e-01 : bf16
    %13 = vector.broadcast %cst_6 : bf16 to vector<16x2048xbf16>
    %14 = arith.mulf %13, %12 : vector<16x2048xbf16>
    %15 = math.tanh %14 : vector<16x2048xbf16>
    %cst_7 = arith.constant 1.000000e+00 : bf16
    %16 = vector.broadcast %cst_7 : bf16 to vector<16x2048xbf16>
    %17 = arith.addf %16, %15 : vector<16x2048xbf16>
    %cst_8 = arith.constant 5.000000e-01 : bf16
    %18 = vector.broadcast %cst_8 : bf16 to vector<16x2048xbf16>
    %19 = arith.mulf %18, %17 : vector<16x2048xbf16>
    %20 = arith.mulf %7, %19 : vector<16x2048xbf16>
    %c0_9 = arith.constant 0 : index
    %c0_10 = arith.constant 0 : index
    %21 = vector.load %arg4[%c0_9, %c0_10] : memref<2048x512xbf16, #tpu.memory_space<vmem>>, vector<2048x512xbf16>
    %cst_11 = arith.constant dense<0.000000e+00> : vector<16x512xf32>
    %22 = tpu.matmul %20, %21, %cst_11 {dimension_numbers = #tpu.dot_dimension_numbers<[1], [0], [0], [1], [0, 0, 1, 1], [], []>} : vector<16x2048xbf16>, vector<2048x512xbf16>, vector<16x512xf32> -> vector<16x512xf32>
    %c0_12 = arith.constant 0 : index
    %c0_13 = arith.constant 0 : index
    %23 = vector.load %arg5[%c0_12, %c0_13] : memref<1x512xf32, #tpu.memory_space<vmem>>, vector<1x512xf32>
    %24 = vector.broadcast %23 : vector<1x512xf32> to vector<16x512xf32>
    %25 = arith.addf %22, %24 : vector<16x512xf32>
    %c0_14 = arith.constant 0 : index
    %c0_15 = arith.constant 0 : index
    %26 = vector.load %arg6[%c0_14, %c0_15] : memref<16x512xf32, #tpu.memory_space<vmem>>, vector<16x512xf32>
    tpu.vector_store %arg6[%c0_14, %c0_15], %25 {strides = array<i32>} : memref<16x512xf32, #tpu.memory_space<vmem>>, vector<16x512xf32>,
    return
  }
  func.func @transform_0(%arg0: i32) -> (i32, i32) {
    %c0_i32 = arith.constant 0 : i32
    %c0_i32_0 = arith.constant 0 : i32
    return %arg0, %c0_i32 : i32, i32
  }
  func.func @transform_1(%arg0: i32) -> (i32, i32) {
    %c0_i32 = arith.constant 0 : i32
    %c0_i32_0 = arith.constant 0 : i32
    %c0_i32_1 = arith.constant 0 : i32
    return %c0_i32, %c0_i32_0 : i32, i32
  }
  func.func @transform_2(%arg0: i32) -> (i32, i32) {
    %c0_i32 = arith.constant 0 : i32
    %c0_i32_0 = arith.constant 0 : i32
    %c0_i32_1 = arith.constant 0 : i32
    return %c0_i32, %c0_i32_0 : i32, i32
  }
  func.func @transform_3(%arg0: i32) -> (i32, i32) {
    %c0_i32 = arith.constant 0 : i32
    %c0_i32_0 = arith.constant 0 : i32
    %c0_i32_1 = arith.constant 0 : i32
    return %c0_i32, %c0_i32_0 : i32, i32
  }
  func.func @transform_4(%arg0: i32) -> (i32, i32) {
    %c0_i32 = arith.constant 0 : i32
    %c0_i32_0 = arith.constant 0 : i32
    %c0_i32_1 = arith.constant 0 : i32
    return %c0_i32, %c0_i32_0 : i32, i32
  }
  func.func @transform_5(%arg0: i32) -> (i32, i32) {
    %c0_i32 = arith.constant 0 : i32
    %c0_i32_0 = arith.constant 0 : i32
    return %arg0, %c0_i32 : i32, i32
  }
}

</mosaic_0001>

<bundles_post_ra>
// kernel: feed_forward.1
= control target key start
LH: loop header
LB: loop body
LE: loop exit
PB: predicated region body
PF: predicated region fallthrough
CT: control target
= control target key end

     0   :  { %10 = vsyncpa [#allocation3], 0  ;;  %s10356_s0 = inlined_call_operand.hbm [shape: f32[16,512], index: 0, kind: input, shape index: {}]   ;;  %s10357_s1 = inlined_call_operand.hbm [shape: bf16[512,2048], index: 1, kind: input, shape index: {}]   ;;  %s10358_s2 = inlined_call_operand.hbm [shape: f32[1,2048], index: 2, kind: input, shape index: {}]   ;;  %s10359_s3 = inlined_call_operand.hbm [shape: bf16[2048,512], index: 3, kind: input, shape index: {}]   ;;  %s10360_s4 = inlined_call_operand.hbm [shape: f32[1,512], index: 4, kind: input, shape index: {}]   ;;  %s10361_s5 = inlined_call_operand.hbm [shape: f32[16,512], index: 5, kind: output, shape index: {}]  }
   0x1   :  { %11 = vsyncpa [#allocation6], 0 }
   0x2   :  { %12 = vsyncpa [#allocation9], 0 }
   0x3   :  { %13 = vsyncpa [#allocation4], 0  ;;  %s10018_s18 = smov [#allocation5]   ;;  %s9878_s22 = scalar_lea.hbm %s10357_s1, 65536 }
   0x4   :  { %s31_s19 = sshll.u32 %s10018_s18, 4  ;;  %p9879_p0 = scmp.ne.s32.totalorder %s10357_s1, %s9878_s22  ;;  %s32_s19 = int_to_ptr.vmem [resolvable:$true] %s31_s19 }
   0x5   :  { %p9882_p1 = scmp.lt.u32.totalorder %s9878_s22, %s10357_s1 }
   0x7   :  { %p9884_p2 = pnand %p9882_p1, %p9879_p0 }
   0x9   :  { %9887 = shalt.err (!%p9884_p2)
}
   0xa   :  { %s9888_s27 = scalar_lea.vmem %s32_s19, 65536  ;;  %p9893_p4 = scmp.lt.s32.totalorder %s32_s19, %s32_s19 }
   0xb   :  { %p9889_p3 = scmp.ne.s32.totalorder %s32_s19, %s9888_s27  ;;  %p9894_p5 = scmp.lt.s32.totalorder %s9888_s27, %s9888_s27 }
   0xd   :  { %p9895_p6 = por %p9894_p5, %p9893_p4 }
   0xf   :  { %p9896_p7 = pnand %p9895_p6, %p9889_p3 }
  0x11   :  { %9899 = shalt.err (!%p9896_p7)
}
  0x12   :  { %s10019_s28 = smov 1024   ;;  %s10020_s29 = smov 64  }
  0x13   :  { %37 = dma.hbm_to_vmem [thread:$0]  %s10357_s1, 65536, %s32_s19, [#allocation6], %s10019_s28, %s10019_s28, %s10020_s29  }
  0x14   :  { %s10021_s7 = smov [#allocation8]   ;;  %s9900_s11 = scalar_lea.hbm %s10359_s3, 65536 }
  0x15   :  { %s53_s8 = sshll.u32 %s10021_s7, 4  ;;  %p9901_p8 = scmp.ne.s32.totalorder %s10359_s3, %s9900_s11  ;;  %s54_s8 = int_to_ptr.vmem [resolvable:$true] %s53_s8 }
  0x16   :  { %p9904_p9 = scmp.lt.u32.totalorder %s9900_s11, %s10359_s3 }
  0x18   :  { %p9906_p10 = pnand %p9904_p9, %p9901_p8 }
  0x1a   :  { %9909 = shalt.err (!%p9906_p10)
}
  0x1b   :  { %s9910_s16 = scalar_lea.vmem %s54_s8, 65536  ;;  %p9915_p12 = scmp.lt.s32.totalorder %s54_s8, %s54_s8 }
  0x1c   :  { %p9911_p11 = scmp.ne.s32.totalorder %s54_s8, %s9910_s16  ;;  %p9916_p13 = scmp.lt.s32.totalorder %s9910_s16, %s9910_s16 }
  0x1e   :  { %p9917_p0 = por %p9916_p13, %p9915_p12 }
  0x20   :  { %p9918_p1 = pnand %p9917_p0, %p9911_p11 }
  0x22   :  { %9921 = shalt.err (!%p9918_p1)
}
  0x23   :  { %s10022_s1 = smov 256   ;;  %s10023_s17 = smov 16  }
  0x24   :  { %59 = dma.hbm_to_vmem [thread:$0]  %s10359_s3, 65536, %s54_s8, [#allocation9], %s10022_s1, %s10022_s1, %s10023_s17  }
  0x25   :  { %s10024_s20 = smov [#allocation2]   ;;  %s9922_s24 = scalar_lea.hbm %s10356_s0, 1024 }
  0x26   :  { %s19_s21 = sshll.u32 %s10024_s20, 4  ;;  %p9923_p2 = scmp.ne.s32.totalorder %s10356_s0, %s9922_s24  ;;  %s20_s21 = int_to_ptr.vmem [resolvable:$true] %s19_s21 }
  0x27   :  { %p9926_p3 = scmp.lt.u32.totalorder %s9922_s24, %s10356_s0 }
  0x29   :  { %p9928_p4 = pnand %p9926_p3, %p9923_p2 }
  0x2b   :  { %9931 = shalt.err (!%p9928_p4)
}
  0x2c   :  { %s9932_s29 = scalar_lea.vmem %s20_s21, 1024  ;;  %p9937_p6 = scmp.lt.s32.totalorder %s20_s21, %s20_s21 }
  0x2d   :  { %p9933_p5 = scmp.ne.s32.totalorder %s20_s21, %s9932_s29  ;;  %p9938_p7 = scmp.lt.s32.totalorder %s9932_s29, %s9932_s29 }
  0x2f   :  { %p9939_p8 = por %p9938_p7, %p9937_p6 }
  0x31   :  { %p9940_p9 = pnand %p9939_p8, %p9933_p5 }
  0x33   :  { %9943 = shalt.err (!%p9940_p9)
}
  0x34   :  { %s10025_s3 = smov 512   ;;  %s10026_s30 = smov 32  }
  0x35   :  { %25 = dma.hbm_to_vmem [thread:$0]  %s10356_s0, 1024, %s20_s21, [#allocation3], %s10025_s3, %s10025_s3, %s10026_s30  }
  0x36   :  { %s10027_s8 = smov [#allocation7]   ;;  %s10028_s10 = smov [#allocation10]  }
  0x37   :  { %s44_s9 = sshll.u32 %s10027_s8, 4  ;;  %s66_s11 = sshll.u32 %s10028_s10, 4  ;;  %s45_s9 = int_to_ptr.vmem [resolvable:$true] %s44_s9  ;;  %s67_s11 = int_to_ptr.vmem [resolvable:$true] %s66_s11 }
  0x38   :  { %s9944_s14 = scalar_lea.hbm %s10358_s2, 256 }
  0x39   :  { %p9945_p10 = scmp.ne.s32.totalorder %s10358_s2, %s9944_s14  ;;  %p9948_p11 = scmp.lt.u32.totalorder %s9944_s14, %s10358_s2 }
  0x3b   :  { %p9950_p12 = pnand %p9948_p11, %p9945_p10 }
  0x3d   :  { %9953 = shalt.err (!%p9950_p12)
}
  0x3e   :  { %s9954_s0 = scalar_lea.vmem %s45_s9, 256  ;;  %p9959_p0 = scmp.lt.s32.totalorder %s45_s9, %s45_s9 }
  0x3f   :  { %p9955_p13 = scmp.ne.s32.totalorder %s45_s9, %s9954_s0  ;;  %p9960_p1 = scmp.lt.s32.totalorder %s9954_s0, %s9954_s0 }
  0x41   :  { %p9961_p2 = por %p9960_p1, %p9959_p0 }
  0x43   :  { %p9962_p3 = pnand %p9961_p2, %p9955_p13 }
  0x45   :  { %9965 = shalt.err (!%p9962_p3)
}
  0x46   :  { %47 = dma.hbm_to_vmem [thread:$0]  %s10358_s2, 256, %s45_s9, [#allocation6]  }
  0x47   :  { %s9966_s22 = scalar_lea.hbm %s10360_s4, 64 }
  0x48   :  { %p9967_p4 = scmp.ne.s32.totalorder %s10360_s4, %s9966_s22  ;;  %p9970_p5 = scmp.lt.u32.totalorder %s9966_s22, %s10360_s4 }
  0x4a   :  { %p9972_p6 = pnand %p9970_p5, %p9967_p4 }
  0x4c   :  { %9975 = shalt.err (!%p9972_p6)
}
  0x4d   :  { %s9976_s27 = scalar_lea.vmem %s67_s11, 64  ;;  %p9981_p8 = scmp.lt.s32.totalorder %s67_s11, %s67_s11 }
  0x4e   :  { %p9977_p7 = scmp.ne.s32.totalorder %s67_s11, %s9976_s27  ;;  %p9982_p9 = scmp.lt.s32.totalorder %s9976_s27, %s9976_s27 }
  0x50   :  { %p9983_p10 = por %p9982_p9, %p9981_p8 }
  0x52   :  { %p9984_p11 = pnand %p9983_p10, %p9977_p7 }
  0x54   :  { %9987 = shalt.err (!%p9984_p11)
}
  0x55   :  { %69 = dma.hbm_to_vmem [thread:$0]  %s10360_s4, 64, %s67_s11, [#allocation9]  }
  0x56   :  { %10010 = dma.done.wait [#allocation3], 1024  }
  0x57   :  { %10011 = vsyncadd [#allocation3], 4294966272 }
  0x58   :  { %10012 = dma.done.wait [#allocation6], 65792  }
  0x59   :  { %10013 = vsyncadd [#allocation6], 4294901504 }
  0x5a   :  { %10014 = dma.done.wait [#allocation9], 65600  }
  0x5b   :  { %10015 = vsyncadd [#allocation9], 4294901696  ;;  %v101_v0 = vld [vmem:[#allocation5] sm:$0xff]  ;;  %v102_v2 = vld [vmem:[#allocation5 + $0x8] sm:$0xff]  ;;  %s10029_s4 = smov [#allocation11]  }
  0x5c   :  { %v109_v1 = vld [vmem:[#allocation5 + $0x40] sm:$0xff]  ;;  %v110_v4 = vld [vmem:[#allocation5 + $0x48] sm:$0xff]  ;;  %s7900_s29 = sshll.u32 %s10029_s4, 4  ;;  %s7901_s29 = int_to_ptr.vmem [resolvable:$true] %s7900_s29 }
  0x5d   :  { %v7915_v3 = vcombine.high %v101_v0, %v109_v1  ;;  %v7914_v5 = vcombine.low %v101_v0, %v109_v1  ;;  %v117_v6 = vld [vmem:[#allocation5 + $0x80] sm:$0xff]  ;;  %v7917_v8 = vcombine.high %v102_v2, %v110_v4  ;;  %v7916_v9 = vcombine.low %v102_v2, %v110_v4  ;;  %v118_v11 = vld [vmem:[#allocation5 + $0x88] sm:$0xff]  ;;  %s9988_s6 = scalar_lea.vmem %s7901_s29, 1024  ;;  %p9993_p13 = scmp.lt.s32.totalorder %s7901_s29, %s7901_s29 }
  0x5e   :  { %v125_v7 = vld [vmem:[#allocation5 + $0xc0] sm:$0xff]  ;;  %v126_v12 = vld [vmem:[#allocation5 + $0xc8] sm:$0xff]  ;;  %p9989_p12 = scmp.ne.s32.totalorder %s7901_s29, %s9988_s6  ;;  %p9994_p0 = scmp.lt.s32.totalorder %s9988_s6, %s9988_s6 }
  0x5f   :  { %v7931_v10 = vcombine.high %v117_v6, %v125_v7  ;;  %v133_v13 = vld [vmem:[#allocation5 + $0x100] sm:$0xff]  ;;  %3257 = vmatprep.subr.bf16.mxu0 %v7915_v3  ;;  %v7933_v14 = vcombine.high %v118_v11, %v126_v12  ;;  %v134_v16 = vld [vmem:[#allocation5 + $0x108] sm:$0xff]  ;;  %3343 = vmatprep.subr.bf16.mxu1 %v7917_v8  ;;  %v7930_v18 = vcombine.low %v117_v6, %v125_v7 }
  0x60   :  { %v141_v15 = vld [vmem:[#allocation5 + $0x140] sm:$0xff]  ;;  %v142_v17 = vld [vmem:[#allocation5 + $0x148] sm:$0xff]  ;;  %3258 = vmatpush1.bf16.msra.mxu0 %v7914_v5  ;;  %3344 = vmatpush1.bf16.msra.mxu1 %v7916_v9  ;;  %v7932_v19 = vcombine.low %v118_v11, %v126_v12  ;;  %p9995_p1 = por %p9994_p0, %p9993_p13 }
  0x61   :  { %3259 = vmatprep.subr.bf16.mxu0 %v7931_v10  ;;  %v7947_v20 = vcombine.high %v133_v13, %v141_v15  ;;  %3345 = vmatprep.subr.bf16.mxu1 %v7933_v14  ;;  %v7949_v21 = vcombine.high %v134_v16, %v142_v17  ;;  %v149_v22 = vld [vmem:[#allocation5 + $0x180] sm:$0xff]  ;;  %v150_v24 = vld [vmem:[#allocation5 + $0x188] sm:$0xff]  ;;  %v7946_v26 = vcombine.low %v133_v13, %v141_v15 }
  0x62   :  { %v157_v23 = vld [vmem:[#allocation5 + $0x1c0] sm:$0xff]  ;;  %v158_v25 = vld [vmem:[#allocation5 + $0x1c8] sm:$0xff]  ;;  %v7948_v27 = vcombine.low %v134_v16, %v142_v17  ;;  %p9996_p2 = pnand %p9995_p1, %p9989_p12 }
  0x63   :  { %v7963_v28 = vcombine.high %v149_v22, %v157_v23  ;;  %v7965_v29 = vcombine.high %v150_v24, %v158_v25  ;;  %v165_v30 = vld [vmem:[#allocation5 + $0x200] sm:$0xff]  ;;  %v166_v32 = vld [vmem:[#allocation5 + $0x208] sm:$0xff]  ;;  %v7962_v34 = vcombine.low %v149_v22, %v157_v23  ;;  %v7964_v35 = vcombine.low %v150_v24, %v158_v25 }
  0x64   :  { %3260 = vmatpush1.bf16.msra.mxu0 %v7930_v18  ;;  %3346 = vmatpush1.bf16.msra.mxu1 %v7932_v19  ;;  %v173_v31 = vld [vmem:[#allocation5 + $0x240] sm:$0xff]  ;;  %v174_v33 = vld [vmem:[#allocation5 + $0x248] sm:$0xff] }
  0x65   :  { %3261 = vmatprep.subr.bf16.mxu0 %v7947_v20  ;;  %3347 = vmatprep.subr.bf16.mxu1 %v7949_v21  ;;  %v7979_v36 = vcombine.high %v165_v30, %v173_v31  ;;  %v7981_v37 = vcombine.high %v166_v32, %v174_v33  ;;  %v181_v38 = vld [vmem:[#allocation5 + $0x280] sm:$0xff]  ;;  %v182_v40 = vld [vmem:[#allocation5 + $0x288] sm:$0xff]  ;;  %v7978_v42 = vcombine.low %v165_v30, %v173_v31 }
  0x66   :  { %v189_v39 = vld [vmem:[#allocation5 + $0x2c0] sm:$0xff]  ;;  %v190_v41 = vld [vmem:[#allocation5 + $0x2c8] sm:$0xff]  ;;  %v7980_v43 = vcombine.low %v166_v32, %v174_v33 }
  0x67   :  { %v7995_v44 = vcombine.high %v181_v38, %v189_v39  ;;  %v7997_v45 = vcombine.high %v182_v40, %v190_v41  ;;  %v197_v46 = vld [vmem:[#allocation5 + $0x300] sm:$0xff]  ;;  %v198_v48 = vld [vmem:[#allocation5 + $0x308] sm:$0xff]  ;;  %v7994_v50 = vcombine.low %v181_v38, %v189_v39  ;;  %v7996_v51 = vcombine.low %v182_v40, %v190_v41 }
  0x68   :  { %3262 = vmatpush1.bf16.msra.mxu0 %v7946_v26  ;;  %3348 = vmatpush1.bf16.msra.mxu1 %v7948_v27  ;;  %v205_v47 = vld [vmem:[#allocation5 + $0x340] sm:$0xff]  ;;  %v206_v49 = vld [vmem:[#allocation5 + $0x348] sm:$0xff] }
  0x69   :  { %3263 = vmatprep.subr.bf16.mxu0 %v7963_v28  ;;  %3349 = vmatprep.subr.bf16.mxu1 %v7965_v29  ;;  %v8011_v52 = vcombine.high %v197_v46, %v205_v47  ;;  %v90_v53 = vld [vmem:[#allocation2 + $0x8] sm:$0xff]  ;;  %v8013_v55 = vcombine.high %v198_v48, %v206_v49  ;;  %v213_v56 = vld [vmem:[#allocation5 + $0x380] sm:$0xff]  ;;  %v8010_v61 = vcombine.low %v197_v46, %v205_v47 }
  0x6a   :  { %v94_v54 = vld [vmem:[#allocation2 + $0x28] sm:$0xff]  ;;  %v221_v57 = vld [vmem:[#allocation5 + $0x3c0] sm:$0xff]  ;;  %v8012_v62 = vcombine.low %v198_v48, %v206_v49 }
  0x6b   :  { %v10123_v58 = vpack.c.bf16 %v94_v54, %v90_v53  ;;  %v214_v59 = vld [vmem:[#allocation5 + $0x388] sm:$0xff]  ;;  %v8027_v63 = vcombine.high %v213_v56, %v221_v57  ;;  %v229_v1 = vld [vmem:[#allocation5 + $0x400] sm:$0xff]  ;;  %v8026_v5 = vcombine.low %v213_v56, %v221_v57 }
  0x6c   :  { %3264 = vmatpush1.bf16.msra.mxu0 %v7962_v34  ;;  %3350 = vmatpush1.bf16.msra.mxu1 %v7964_v35  ;;  %v222_v60 = vld [vmem:[#allocation5 + $0x3c8] sm:$0xff]  ;;  %v237_v2 = vld [vmem:[#allocation5 + $0x440] sm:$0xff] }
  0x6d   :  { %3265 = vmatprep.subr.bf16.mxu0 %v7979_v36  ;;  %3351 = vmatprep.subr.bf16.mxu1 %v7981_v37  ;;  %v8029_v0 = vcombine.high %v214_v59, %v222_v60  ;;  %v230_v3 = vld [vmem:[#allocation5 + $0x408] sm:$0xff]  ;;  %v8028_v6 = vcombine.low %v214_v59, %v222_v60  ;;  %v8043_v7 = vcombine.high %v229_v1, %v237_v2  ;;  %v245_v9 = vld [vmem:[#allocation5 + $0x480] sm:$0xff] }
  0x6e   :  { %3289 = vmatprep.mubr.bf16.mxu0 %v10123_v58  ;;  %3375 = vmatprep.mubr.bf16.mxu1 %v10123_v58  ;;  %v238_v4 = vld [vmem:[#allocation5 + $0x448] sm:$0xff]  ;;  %v253_v10 = vld [vmem:[#allocation5 + $0x4c0] sm:$0xff]  ;;  %v8042_v13 = vcombine.low %v229_v1, %v237_v2 }
  0x6f   :  { %v8045_v8 = vcombine.high %v230_v3, %v238_v4  ;;  %v246_v11 = vld [vmem:[#allocation5 + $0x488] sm:$0xff]  ;;  %v8044_v14 = vcombine.low %v230_v3, %v238_v4  ;;  %v8059_v15 = vcombine.high %v245_v9, %v253_v10  ;;  %v261_v17 = vld [vmem:[#allocation5 + $0x500] sm:$0xff]  ;;  %v8058_v21 = vcombine.low %v245_v9, %v253_v10 }
  0x70   :  { %3266 = vmatpush1.bf16.msra.mxu0 %v7978_v42  ;;  %3352 = vmatpush1.bf16.msra.mxu1 %v7980_v43  ;;  %v254_v12 = vld [vmem:[#allocation5 + $0x4c8] sm:$0xff]  ;;  %v269_v18 = vld [vmem:[#allocation5 + $0x540] sm:$0xff] }
  0x71   :  { %3267 = vmatprep.subr.bf16.mxu0 %v7995_v44  ;;  %3353 = vmatprep.subr.bf16.mxu1 %v7997_v45  ;;  %v8061_v16 = vcombine.high %v246_v11, %v254_v12  ;;  %v262_v19 = vld [vmem:[#allocation5 + $0x508] sm:$0xff]  ;;  %v8060_v22 = vcombine.low %v246_v11, %v254_v12  ;;  %v8075_v23 = vcombine.high %v261_v17, %v269_v18  ;;  %v277_v25 = vld [vmem:[#allocation5 + $0x580] sm:$0xff] }
  0x72   :  { %v270_v20 = vld [vmem:[#allocation5 + $0x548] sm:$0xff]  ;;  %v285_v26 = vld [vmem:[#allocation5 + $0x5c0] sm:$0xff]  ;;  %v8074_v29 = vcombine.low %v261_v17, %v269_v18  ;;  %v92_v17 = vld [vmem:[#allocation2 + $0x18] sm:$0xff] }
  0x73   :  { %v8077_v24 = vcombine.high %v262_v19, %v270_v20  ;;  %v278_v27 = vld [vmem:[#allocation5 + $0x588] sm:$0xff]  ;;  %v8076_v30 = vcombine.low %v262_v19, %v270_v20  ;;  %v8091_v31 = vcombine.high %v277_v25, %v285_v26  ;;  %v293_v33 = vld [vmem:[#allocation5 + $0x600] sm:$0xff]  ;;  %v8090_v37 = vcombine.low %v277_v25, %v285_v26  ;;  %v96_v18 = vld [vmem:[#allocation2 + $0x38] sm:$0xff] }
  0x74   :  { %3268 = vmatpush1.bf16.msra.mxu0 %v7994_v50  ;;  %3354 = vmatpush1.bf16.msra.mxu1 %v7996_v51  ;;  %v286_v28 = vld [vmem:[#allocation5 + $0x5c8] sm:$0xff]  ;;  %v301_v34 = vld [vmem:[#allocation5 + $0x640] sm:$0xff]  ;;  %v10129_v25 = vpack.c.bf16 %v96_v18, %v92_v17 }
  0x75   :  { %3269 = vmatprep.subr.bf16.mxu0 %v8011_v52  ;;  %3355 = vmatprep.subr.bf16.mxu1 %v8013_v55  ;;  %v8093_v32 = vcombine.high %v278_v27, %v286_v28  ;;  %v294_v35 = vld [vmem:[#allocation5 + $0x608] sm:$0xff]  ;;  %v8092_v38 = vcombine.low %v278_v27, %v286_v28  ;;  %v8107_v39 = vcombine.high %v293_v33, %v301_v34  ;;  %v309_v41 = vld [vmem:[#allocation5 + $0x680] sm:$0xff] }
  0x76   :  { %v302_v36 = vld [vmem:[#allocation5 + $0x648] sm:$0xff]  ;;  %v317_v42 = vld [vmem:[#allocation5 + $0x6c0] sm:$0xff]  ;;  %v8106_v45 = vcombine.low %v293_v33, %v301_v34 }
  0x77   :  { %v8109_v40 = vcombine.high %v294_v35, %v302_v36  ;;  %v310_v43 = vld [vmem:[#allocation5 + $0x688] sm:$0xff]  ;;  %v8108_v46 = vcombine.low %v294_v35, %v302_v36  ;;  %v8123_v47 = vcombine.high %v309_v41, %v317_v42  ;;  %v325_v49 = vld [vmem:[#allocation5 + $0x700] sm:$0xff]  ;;  %v8122_v53 = vcombine.low %v309_v41, %v317_v42 }
  0x78   :  { %3270 = vmatpush1.bf16.msra.mxu0 %v8010_v61  ;;  %3356 = vmatpush1.bf16.msra.mxu1 %v8012_v62  ;;  %v318_v44 = vld [vmem:[#allocation5 + $0x6c8] sm:$0xff]  ;;  %v333_v50 = vld [vmem:[#allocation5 + $0x740] sm:$0xff] }
  0x79   :  { %3271 = vmatprep.subr.bf16.mxu0 %v8027_v63  ;;  %3357 = vmatprep.subr.bf16.mxu1 %v8029_v0  ;;  %v8125_v48 = vcombine.high %v310_v43, %v318_v44  ;;  %v326_v51 = vld [vmem:[#allocation5 + $0x708] sm:$0xff]  ;;  %v8124_v54 = vcombine.low %v310_v43, %v318_v44  ;;  %v8139_v55 = vcombine.high %v325_v49, %v333_v50  ;;  %v341_v57 = vld [vmem:[#allocation5 + $0x780] sm:$0xff] }
  0x7a   :  { %v334_v52 = vld [vmem:[#allocation5 + $0x748] sm:$0xff]  ;;  %v349_v59 = vld [vmem:[#allocation5 + $0x7c0] sm:$0xff]  ;;  %v8138_v62 = vcombine.low %v325_v49, %v333_v50 }
  0x7b   :  { %v8141_v56 = vcombine.high %v326_v51, %v334_v52  ;;  %v342_v60 = vld [vmem:[#allocation5 + $0x788] sm:$0xff]  ;;  %v8140_v63 = vcombine.low %v326_v51, %v334_v52  ;;  %v8155_v0 = vcombine.high %v341_v57, %v349_v59  ;;  %v357_v2 = vld [vmem:[#allocation5 + $0x800] sm:$0xff] }
  0x7c   :  { %3272 = vmatpush1.bf16.msra.mxu0 %v8026_v5  ;;  %3358 = vmatpush1.bf16.msra.mxu1 %v8028_v6  ;;  %v350_v61 = vld [vmem:[#allocation5 + $0x7c8] sm:$0xff]  ;;  %v365_v3 = vld [vmem:[#allocation5 + $0x840] sm:$0xff]  ;;  %v8154_v6 = vcombine.low %v341_v57, %v349_v59 }
  0x7d   :  { %3273 = vmatprep.subr.bf16.mxu0 %v8043_v7  ;;  %3359 = vmatprep.subr.bf16.mxu1 %v8045_v8  ;;  %v8157_v1 = vcombine.high %v342_v60, %v350_v61  ;;  %v358_v4 = vld [vmem:[#allocation5 + $0x808] sm:$0xff]  ;;  %v89_v7 = vld [vmem:[#allocation2] sm:$0xff]  ;;  %v8156_v9 = vcombine.low %v342_v60, %v350_v61  ;;  %v8171_v10 = vcombine.high %v357_v2, %v365_v3 }
  0x7e   :  { %v366_v5 = vld [vmem:[#allocation5 + $0x848] sm:$0xff]  ;;  %v93_v8 = vld [vmem:[#allocation2 + $0x20] sm:$0xff]  ;;  %v8170_v19 = vcombine.low %v357_v2, %v365_v3 }
  0x7f   :  { %v8173_v11 = vcombine.high %v358_v4, %v366_v5  ;;  %v373_v12 = vld [vmem:[#allocation5 + $0x880] sm:$0xff]  ;;  %v8172_v20 = vcombine.low %v358_v4, %v366_v5  ;;  %v390_v26 = vld [vmem:[#allocation5 + $0x908] sm:$0xff] }
  0x80   :  { %3274 = vmatpush1.bf16.msra.mxu0 %v8042_v13  ;;  %3360 = vmatpush1.bf16.msra.mxu1 %v8044_v14  ;;  %v381_v13 = vld [vmem:[#allocation5 + $0x8c0] sm:$0xff]  ;;  %v374_v14 = vld [vmem:[#allocation5 + $0x888] sm:$0xff] }
  0x81   :  { %3275 = vmatprep.subr.bf16.mxu0 %v8059_v15  ;;  %3361 = vmatprep.subr.bf16.mxu1 %v8061_v16  ;;  %v10127_v15 = vpack.c.bf16 %v93_v8, %v89_v7  ;;  %v382_v16 = vld [vmem:[#allocation5 + $0x8c8] sm:$0xff]  ;;  %v8186_v28 = vcombine.low %v373_v12, %v381_v13  ;;  %v485_v8 = vld [vmem:[#allocation5 + $0xc00] sm:$0xff] }
  0x82   :  { %v398_v27 = vld [vmem:[#allocation5 + $0x948] sm:$0xff]  ;;  %v501_v17 = vld [vmem:[#allocation5 + $0xc80] sm:$0xff] }
  0x83   :  { %v406_v33 = vld [vmem:[#allocation5 + $0x988] sm:$0xff]  ;;  %v8205_v34 = vcombine.high %v390_v26, %v398_v27  ;;  %v509_v18 = vld [vmem:[#allocation5 + $0xcc0] sm:$0xff] }
  0x84   :  { %3276 = vmatpush1.bf16.msra.mxu0 %v8058_v21  ;;  %3362 = vmatpush1.bf16.msra.mxu1 %v8060_v22  ;;  %v8187_v21 = vcombine.high %v373_v12, %v381_v13  ;;  %v8189_v22 = vcombine.high %v374_v14, %v382_v16  ;;  %v414_v35 = vld [vmem:[#allocation5 + $0x9c8] sm:$0xff] }
  0x85   :  { %3277 = vmatprep.subr.bf16.mxu0 %v8075_v23  ;;  %3363 = vmatprep.subr.bf16.mxu1 %v8077_v24  ;;  %v389_v23 = vld [vmem:[#allocation5 + $0x900] sm:$0xff]  ;;  %v422_v41 = vld [vmem:[#allocation5 + $0xa08] sm:$0xff]  ;;  %v8221_v42 = vcombine.high %v406_v33, %v414_v35 }
  0x86   :  { %v397_v24 = vld [vmem:[#allocation5 + $0x940] sm:$0xff]  ;;  %v430_v43 = vld [vmem:[#allocation5 + $0xa48] sm:$0xff] }
  0x87   :  { %v8202_v36 = vcombine.low %v389_v23, %v397_v24  ;;  %v438_v49 = vld [vmem:[#allocation5 + $0xa88] sm:$0xff]  ;;  %v8237_v50 = vcombine.high %v422_v41, %v430_v43 }
  0x88   :  { %3278 = vmatpush1.bf16.msra.mxu0 %v8074_v29  ;;  %3364 = vmatpush1.bf16.msra.mxu1 %v8076_v30  ;;  %v8188_v29 = vcombine.low %v374_v14, %v382_v16  ;;  %v8203_v30 = vcombine.high %v389_v23, %v397_v24  ;;  %v446_v51 = vld [vmem:[#allocation5 + $0xac8] sm:$0xff]  ;;  %v8315_v24 = vcombine.high %v501_v17, %v509_v18 }
  0x89   :  { %3279 = vmatprep.subr.bf16.mxu0 %v8091_v31  ;;  %3365 = vmatprep.subr.bf16.mxu1 %v8093_v32  ;;  %v405_v31 = vld [vmem:[#allocation5 + $0x980] sm:$0xff]  ;;  %v454_v57 = vld [vmem:[#allocation5 + $0xb08] sm:$0xff]  ;;  %v8253_v59 = vcombine.high %v438_v49, %v446_v51 }
  0x8a   :  { %v413_v32 = vld [vmem:[#allocation5 + $0x9c0] sm:$0xff]  ;;  %v462_v60 = vld [vmem:[#allocation5 + $0xb48] sm:$0xff] }
  0x8b   :  { %v8218_v44 = vcombine.low %v405_v31, %v413_v32  ;;  %v470_v2 = vld [vmem:[#allocation5 + $0xb88] sm:$0xff]  ;;  %v8269_v3 = vcombine.high %v454_v57, %v462_v60 }
  0x8c   :  { %3280 = vmatpush1.bf16.msra.mxu0 %v8090_v37  ;;  %3366 = vmatpush1.bf16.msra.mxu1 %v8092_v38  ;;  %v8204_v37 = vcombine.low %v390_v26, %v398_v27  ;;  %v8219_v38 = vcombine.high %v405_v31, %v413_v32  ;;  %v478_v4 = vld [vmem:[#allocation5 + $0xbc8] sm:$0xff]  ;;  %v517_v26 = vld [vmem:[#allocation5 + $0xd00] sm:$0xff]  ;;  %v8314_v31 = vcombine.low %v501_v17, %v509_v18  ;;  %v95_v17 = vld [vmem:[#allocation2 + $0x30] sm:$0xff] }
  0x8d   :  { %3281 = vmatprep.subr.bf16.mxu0 %v8107_v39  ;;  %3367 = vmatprep.subr.bf16.mxu1 %v8109_v40  ;;  %v421_v39 = vld [vmem:[#allocation5 + $0xa00] sm:$0xff]  ;;  %v494_v12 = vld [vmem:[#allocation5 + $0xc48] sm:$0xff]  ;;  %v8284_v14 = vcombine.low %v470_v2, %v478_v4  ;;  %v112_v18 = vld [vmem:[#allocation5 + $0x58] sm:$0xff] }
  0x8e   :  { %v429_v40 = vld [vmem:[#allocation5 + $0xa40] sm:$0xff] }
  0x8f   :  { %v8234_v52 = vcombine.low %v421_v39, %v429_v40  ;;  %v525_v27 = vld [vmem:[#allocation5 + $0xd40] sm:$0xff] }
  0x90   :  { %3282 = vmatpush1.bf16.msra.mxu0 %v8106_v45  ;;  %3368 = vmatpush1.bf16.msra.mxu1 %v8108_v46  ;;  %v8220_v45 = vcombine.low %v406_v33, %v414_v35  ;;  %v8235_v46 = vcombine.high %v421_v39, %v429_v40  ;;  %v8331_v33 = vcombine.high %v517_v26, %v525_v27  ;;  %v541_v35 = vld [vmem:[#allocation5 + $0xdc0] sm:$0xff] }
  0x91   :  { %3283 = vmatprep.subr.bf16.mxu0 %v8123_v47  ;;  %3369 = vmatprep.subr.bf16.mxu1 %v8125_v48  ;;  %v437_v47 = vld [vmem:[#allocation5 + $0xa80] sm:$0xff]  ;;  %v8330_v39 = vcombine.low %v517_v26, %v525_v27  ;;  %v128_v27 = vld [vmem:[#allocation5 + $0xd8] sm:$0xff] }
  0x92   :  { %v445_v48 = vld [vmem:[#allocation5 + $0xac0] sm:$0xff] }
  0x93   :  { %v8250_v61 = vcombine.low %v437_v47, %v445_v48 }
  0x94   :  { %3284 = vmatpush1.bf16.msra.mxu0 %v8122_v53  ;;  %3370 = vmatpush1.bf16.msra.mxu1 %v8124_v54  ;;  %v8236_v53 = vcombine.low %v422_v41, %v430_v43  ;;  %v8251_v54 = vcombine.high %v437_v47, %v445_v48  ;;  %v557_v43 = vld [vmem:[#allocation5 + $0xe40] sm:$0xff] }
  0x95   :  { %3285 = vmatprep.subr.bf16.mxu0 %v8139_v55  ;;  %3371 = vmatprep.subr.bf16.mxu1 %v8141_v56  ;;  %v453_v55 = vld [vmem:[#allocation5 + $0xb00] sm:$0xff] }
  0x96   :  { %v461_v56 = vld [vmem:[#allocation5 + $0xb40] sm:$0xff] }
  0x97   :  { %v8266_v5 = vcombine.low %v453_v55, %v461_v56 }
  0x98   :  { %3286 = vmatpush1.bf16.msra.mxu0 %v8138_v62  ;;  %3372 = vmatpush1.bf16.msra.mxu1 %v8140_v63  ;;  %v8252_v62 = vcombine.low %v438_v49, %v446_v51  ;;  %v8267_v63 = vcombine.high %v453_v55, %v461_v56  ;;  %v573_v51 = vld [vmem:[#allocation5 + $0xec0] sm:$0xff] }
  0x99   :  { %3287 = vmatprep.subr.bf16.mxu0 %v8155_v0  ;;  %3373 = vmatprep.subr.bf16.mxu1 %v8157_v1  ;;  %v469_v0 = vld [vmem:[#allocation5 + $0xb80] sm:$0xff] }
  0x9a   :  { %v477_v1 = vld [vmem:[#allocation5 + $0xbc0] sm:$0xff] }
  0x9b   :  { %v8283_v7 = vcombine.high %v469_v0, %v477_v1  ;;  %v8282_v13 = vcombine.low %v469_v0, %v477_v1 }
  0x9c   :  { %3288 = vmatpush1.bf16.msra.mxu0 %v8154_v6  ;;  %3374 = vmatpush1.bf16.msra.mxu1 %v8156_v9  ;;  %v8268_v6 = vcombine.low %v454_v57, %v462_v60  ;;  %v493_v9 = vld [vmem:[#allocation5 + $0xc40] sm:$0xff] }
  0x9d   :  { %3300 = vmatprep.subr.bf16.mxu0 %v8171_v10  ;;  %3386 = vmatprep.subr.bf16.mxu1 %v8173_v11  ;;  %v486_v10 = vld [vmem:[#allocation5 + $0xc08] sm:$0xff]  ;;  %v8285_v11 = vcombine.high %v470_v2, %v478_v4  ;;  %v8299_v16 = vcombine.high %v485_v8, %v493_v9  ;;  %v589_v60 = vld [vmem:[#allocation5 + $0xf40] sm:$0xff] }
  0x9e   :  { %v8300_v23 = vcombine.low %v486_v10, %v494_v12  ;;  %v605_v4 = vld [vmem:[#allocation5 + $0xfc0] sm:$0xff] }
  0x9f   :  { %3290 = vmatmul.mubr.bf16.vlgmr.msra.gmra.mrb[0].mxu0 %v10127_v15  ;;  %3376 = vmatmul.mubr.bf16.vlgmr.msra.gmra.mrb[0].mxu1 %v10127_v15 }
  0xa0   :  { %3301 = vmatpush1.bf16.msra.mxu0 %v8170_v19  ;;  %3387 = vmatpush1.bf16.msra.mxu1 %v8172_v20  ;;  %v502_v19 = vld [vmem:[#allocation5 + $0xc88] sm:$0xff]  ;;  %v8301_v20 = vcombine.high %v486_v10, %v494_v12  ;;  %v111_v12 = vld [vmem:[#allocation5 + $0x50] sm:$0xff] }
  0xa1   :  { %3302 = vmatprep.subr.bf16.mxu0 %v8187_v21  ;;  %3388 = vmatprep.subr.bf16.mxu1 %v8189_v22  ;;  %v510_v21 = vld [vmem:[#allocation5 + $0xcc8] sm:$0xff]  ;;  %v8298_v22 = vcombine.low %v485_v8, %v493_v9 }
  0xa2   :  { %3332 = vmatprep.mubr.bf16.mxu0 %v10129_v25  ;;  %3418 = vmatprep.mubr.bf16.mxu1 %v10129_v25  ;;  %v8316_v32 = vcombine.low %v502_v19, %v510_v21 }
  0xa4   :  { %3303 = vmatpush1.bf16.msra.mxu0 %v8186_v28  ;;  %3389 = vmatpush1.bf16.msra.mxu1 %v8188_v29  ;;  %v518_v28 = vld [vmem:[#allocation5 + $0xd08] sm:$0xff]  ;;  %v8317_v29 = vcombine.high %v502_v19, %v510_v21 }
  0xa5   :  { %3304 = vmatprep.subr.bf16.mxu0 %v8203_v30  ;;  %3390 = vmatprep.subr.bf16.mxu1 %v8205_v34  ;;  %v526_v30 = vld [vmem:[#allocation5 + $0xd48] sm:$0xff]  ;;  %v533_v34 = vld [vmem:[#allocation5 + $0xd80] sm:$0xff] }
  0xa6   :  { %v8332_v40 = vcombine.low %v518_v28, %v526_v30  ;;  %v8347_v41 = vcombine.high %v533_v34, %v541_v35  ;;  %v8346_v47 = vcombine.low %v533_v34, %v541_v35  ;;  %v136_v34 = vld [vmem:[#allocation5 + $0x118] sm:$0xff] }
  0xa8   :  { %3305 = vmatpush1.bf16.msra.mxu0 %v8202_v36  ;;  %3391 = vmatpush1.bf16.msra.mxu1 %v8204_v37  ;;  %v534_v36 = vld [vmem:[#allocation5 + $0xd88] sm:$0xff]  ;;  %v8333_v37 = vcombine.high %v518_v28, %v526_v30 }
  0xa9   :  { %3306 = vmatprep.subr.bf16.mxu0 %v8219_v38  ;;  %3392 = vmatprep.subr.bf16.mxu1 %v8221_v42  ;;  %v542_v38 = vld [vmem:[#allocation5 + $0xdc8] sm:$0xff]  ;;  %v549_v42 = vld [vmem:[#allocation5 + $0xe00] sm:$0xff] }
  0xaa   :  { %v8348_v48 = vcombine.low %v534_v36, %v542_v38  ;;  %v8363_v49 = vcombine.high %v549_v42, %v557_v43  ;;  %v8362_v55 = vcombine.low %v549_v42, %v557_v43  ;;  %v152_v42 = vld [vmem:[#allocation5 + $0x198] sm:$0xff] }
  0xac   :  { %3307 = vmatpush1.bf16.msra.mxu0 %v8218_v44  ;;  %3393 = vmatpush1.bf16.msra.mxu1 %v8220_v45  ;;  %v550_v44 = vld [vmem:[#allocation5 + $0xe08] sm:$0xff]  ;;  %v8349_v45 = vcombine.high %v534_v36, %v542_v38  ;;  %v144_v36 = vld [vmem:[#allocation5 + $0x158] sm:$0xff] }
  0xad   :  { %3308 = vmatprep.subr.bf16.mxu0 %v8235_v46  ;;  %3394 = vmatprep.subr.bf16.mxu1 %v8237_v50  ;;  %v558_v46 = vld [vmem:[#allocation5 + $0xe48] sm:$0xff]  ;;  %v565_v50 = vld [vmem:[#allocation5 + $0xe80] sm:$0xff]  ;;  %v7953_v43 = vcombine.high %v136_v34, %v144_v36 }
  0xae   :  { %v8364_v56 = vcombine.low %v550_v44, %v558_v46  ;;  %v8379_v57 = vcombine.high %v565_v50, %v573_v51  ;;  %v8378_v0 = vcombine.low %v565_v50, %v573_v51  ;;  %v168_v50 = vld [vmem:[#allocation5 + $0x218] sm:$0xff] }
  0xb0   :  { %3309 = vmatpush1.bf16.msra.mxu0 %v8234_v52  ;;  %3395 = vmatpush1.bf16.msra.mxu1 %v8236_v53  ;;  %v566_v52 = vld [vmem:[#allocation5 + $0xe88] sm:$0xff]  ;;  %v8365_v53 = vcombine.high %v550_v44, %v558_v46  ;;  %v160_v44 = vld [vmem:[#allocation5 + $0x1d8] sm:$0xff]  ;;  %v7952_v46 = vcombine.low %v136_v34, %v144_v36  ;;  %v263_v36 = vld [vmem:[#allocation5 + $0x510] sm:$0xff] }
  0xb1   :  { %3310 = vmatprep.subr.bf16.mxu0 %v8251_v54  ;;  %3396 = vmatprep.subr.bf16.mxu1 %v8253_v59  ;;  %v574_v54 = vld [vmem:[#allocation5 + $0xec8] sm:$0xff]  ;;  %v581_v59 = vld [vmem:[#allocation5 + $0xf00] sm:$0xff]  ;;  %v7969_v51 = vcombine.high %v152_v42, %v160_v44 }
  0xb2   :  { %v8380_v1 = vcombine.low %v566_v52, %v574_v54  ;;  %v8395_v2 = vcombine.high %v581_v59, %v589_v60  ;;  %v8394_v8 = vcombine.low %v581_v59, %v589_v60  ;;  %v184_v59 = vld [vmem:[#allocation5 + $0x298] sm:$0xff] }
  0xb4   :  { %3311 = vmatpush1.bf16.msra.mxu0 %v8250_v61  ;;  %3397 = vmatpush1.bf16.msra.mxu1 %v8252_v62  ;;  %v582_v61 = vld [vmem:[#allocation5 + $0xf08] sm:$0xff]  ;;  %v8381_v62 = vcombine.high %v566_v52, %v574_v54  ;;  %v176_v52 = vld [vmem:[#allocation5 + $0x258] sm:$0xff]  ;;  %v7968_v54 = vcombine.low %v152_v42, %v160_v44  ;;  %v279_v44 = vld [vmem:[#allocation5 + $0x590] sm:$0xff] }
  0xb5   :  { %3312 = vmatprep.subr.bf16.mxu0 %v8267_v63  ;;  %3398 = vmatprep.subr.bf16.mxu1 %v8269_v3  ;;  %v590_v63 = vld [vmem:[#allocation5 + $0xf48] sm:$0xff]  ;;  %v597_v3 = vld [vmem:[#allocation5 + $0xf80] sm:$0xff]  ;;  %v7985_v60 = vcombine.high %v168_v50, %v176_v52 }
  0xb6   :  { %v8396_v9 = vcombine.low %v582_v61, %v590_v63  ;;  %v8411_v10 = vcombine.high %v597_v3, %v605_v4  ;;  %v8410_v19 = vcombine.low %v597_v3, %v605_v4  ;;  %v200_v3 = vld [vmem:[#allocation5 + $0x318] sm:$0xff] }
  0xb8   :  { %3313 = vmatpush1.bf16.msra.mxu0 %v8266_v5  ;;  %3399 = vmatpush1.bf16.msra.mxu1 %v8268_v6  ;;  %v598_v5 = vld [vmem:[#allocation5 + $0xf88] sm:$0xff]  ;;  %v8397_v6 = vcombine.high %v582_v61, %v590_v63  ;;  %v192_v61 = vld [vmem:[#allocation5 + $0x2d8] sm:$0xff]  ;;  %v7984_v63 = vcombine.low %v168_v50, %v176_v52  ;;  %v295_v52 = vld [vmem:[#allocation5 + $0x610] sm:$0xff] }
  0xb9   :  { %3314 = vmatprep.subr.bf16.mxu0 %v8283_v7  ;;  %3400 = vmatprep.subr.bf16.mxu1 %v8285_v11  ;;  %v606_v7 = vld [vmem:[#allocation5 + $0xfc8] sm:$0xff]  ;;  %v103_v11 = vld [vmem:[#allocation5 + $0x10] sm:$0xff]  ;;  %v8001_v4 = vcombine.high %v184_v59, %v192_v61 }
  0xba   :  { %v7919_v21 = vcombine.high %v103_v11, %v111_v12 }
  0xbc   :  { %3315 = vmatpush1.bf16.msra.mxu0 %v8282_v13  ;;  %3401 = vmatpush1.bf16.msra.mxu1 %v8284_v14  ;;  %v104_v13 = vld [vmem:[#allocation5 + $0x18] sm:$0xff]  ;;  %v8413_v14 = vcombine.high %v598_v5, %v606_v7 }
  0xbd   :  { %3316 = vmatprep.subr.bf16.mxu0 %v8299_v16  ;;  %3402 = vmatprep.subr.bf16.mxu1 %v8301_v20  ;;  %v91_v16 = vld [vmem:[#allocation2 + $0x10] sm:$0xff]  ;;  %v8412_v20 = vcombine.low %v598_v5, %v606_v7  ;;  %v7921_v26 = vcombine.high %v104_v13, %v112_v18  ;;  %v7920_v30 = vcombine.low %v104_v13, %v112_v18  ;;  %v208_v5 = vld [vmem:[#allocation5 + $0x358] sm:$0xff] }
  0xbe   :  { %v10135_v28 = vpack.c.bf16 %v95_v17, %v91_v16  ;;  %v8000_v7 = vcombine.low %v184_v59, %v192_v61  ;;  %v224_v13 = vld [vmem:[#allocation5 + $0x3d8] sm:$0xff]  ;;  %v8016_v16 = vcombine.low %v200_v3, %v208_v5  ;;  %v231_v18 = vld [vmem:[#allocation5 + $0x410] sm:$0xff] }
  0xbf   :  { %v311_v61 = vld [vmem:[#allocation5 + $0x690] sm:$0xff] }
  0xc0   :  { %3317 = vmatpush1.bf16.msra.mxu0 %v8298_v22  ;;  %3403 = vmatpush1.bf16.msra.mxu1 %v8300_v23  ;;  %v119_v22 = vld [vmem:[#allocation5 + $0x90] sm:$0xff] }
  0xc1   :  { %3318 = vmatprep.subr.bf16.mxu0 %v8315_v24  ;;  %3404 = vmatprep.subr.bf16.mxu1 %v8317_v29  ;;  %v127_v23 = vld [vmem:[#allocation5 + $0xd0] sm:$0xff]  ;;  %v120_v24 = vld [vmem:[#allocation5 + $0x98] sm:$0xff]  ;;  %v7918_v29 = vcombine.low %v103_v11, %v111_v12  ;;  %v8017_v12 = vcombine.high %v200_v3, %v208_v5 }
  0xc2   :  { %v7937_v35 = vcombine.high %v120_v24, %v128_v27  ;;  %v7936_v38 = vcombine.low %v120_v24, %v128_v27  ;;  %v216_v11 = vld [vmem:[#allocation5 + $0x398] sm:$0xff]  ;;  %v247_v27 = vld [vmem:[#allocation5 + $0x490] sm:$0xff] }
  0xc3   :  { %v8032_v24 = vcombine.low %v216_v11, %v224_v13  ;;  %v327_v5 = vld [vmem:[#allocation5 + $0x710] sm:$0xff] }
  0xc4   :  { %3319 = vmatpush1.bf16.msra.mxu0 %v8314_v31  ;;  %3405 = vmatpush1.bf16.msra.mxu1 %v8316_v32  ;;  %v7935_v31 = vcombine.high %v119_v22, %v127_v23  ;;  %v135_v32 = vld [vmem:[#allocation5 + $0x110] sm:$0xff] }
  0xc5   :  { %3320 = vmatprep.subr.bf16.mxu0 %v8331_v33  ;;  %3406 = vmatprep.subr.bf16.mxu1 %v8333_v37  ;;  %v143_v33 = vld [vmem:[#allocation5 + $0x150] sm:$0xff]  ;;  %v7934_v37 = vcombine.low %v119_v22, %v127_v23  ;;  %v240_v22 = vld [vmem:[#allocation5 + $0x458] sm:$0xff] }
  0xc8   :  { %3321 = vmatpush1.bf16.msra.mxu0 %v8330_v39  ;;  %3407 = vmatpush1.bf16.msra.mxu1 %v8332_v40  ;;  %v7951_v39 = vcombine.high %v135_v32, %v143_v33  ;;  %v151_v40 = vld [vmem:[#allocation5 + $0x190] sm:$0xff] }
  0xc9   :  { %3322 = vmatprep.subr.bf16.mxu0 %v8347_v41  ;;  %3408 = vmatprep.subr.bf16.mxu1 %v8349_v45  ;;  %v159_v41 = vld [vmem:[#allocation5 + $0x1d0] sm:$0xff]  ;;  %v7950_v45 = vcombine.low %v135_v32, %v143_v33  ;;  %v256_v32 = vld [vmem:[#allocation5 + $0x4d8] sm:$0xff] }
  0xcc   :  { %3323 = vmatpush1.bf16.msra.mxu0 %v8346_v47  ;;  %3409 = vmatpush1.bf16.msra.mxu1 %v8348_v48  ;;  %v7967_v47 = vcombine.high %v151_v40, %v159_v41  ;;  %v167_v48 = vld [vmem:[#allocation5 + $0x210] sm:$0xff] }
  0xcd   :  { %3324 = vmatprep.subr.bf16.mxu0 %v8363_v49  ;;  %3410 = vmatprep.subr.bf16.mxu1 %v8365_v53  ;;  %v175_v49 = vld [vmem:[#allocation5 + $0x250] sm:$0xff]  ;;  %v7966_v53 = vcombine.low %v151_v40, %v159_v41  ;;  %v272_v40 = vld [vmem:[#allocation5 + $0x558] sm:$0xff] }
  0xd0   :  { %3325 = vmatpush1.bf16.msra.mxu0 %v8362_v55  ;;  %3411 = vmatpush1.bf16.msra.mxu1 %v8364_v56  ;;  %v7983_v55 = vcombine.high %v167_v48, %v175_v49  ;;  %v183_v56 = vld [vmem:[#allocation5 + $0x290] sm:$0xff] }
  0xd1   :  { %3326 = vmatprep.subr.bf16.mxu0 %v8379_v57  ;;  %3412 = vmatprep.subr.bf16.mxu1 %v8381_v62  ;;  %v191_v57 = vld [vmem:[#allocation5 + $0x2d0] sm:$0xff]  ;;  %v7982_v62 = vcombine.low %v167_v48, %v175_v49  ;;  %v288_v48 = vld [vmem:[#allocation5 + $0x5d8] sm:$0xff] }
  0xd4   :  { %3327 = vmatpush1.bf16.msra.mxu0 %v8378_v0  ;;  %3413 = vmatpush1.bf16.msra.mxu1 %v8380_v1  ;;  %v7999_v0 = vcombine.high %v183_v56, %v191_v57  ;;  %v199_v1 = vld [vmem:[#allocation5 + $0x310] sm:$0xff] }
  0xd5   :  { %3328 = vmatprep.subr.bf16.mxu0 %v8395_v2  ;;  %3414 = vmatprep.subr.bf16.mxu1 %v8397_v6  ;;  %v207_v2 = vld [vmem:[#allocation5 + $0x350] sm:$0xff]  ;;  %v7998_v6 = vcombine.low %v183_v56, %v191_v57  ;;  %v304_v56 = vld [vmem:[#allocation5 + $0x658] sm:$0xff] }
  0xd8   :  { %3329 = vmatpush1.bf16.msra.mxu0 %v8394_v8  ;;  %3415 = vmatpush1.bf16.msra.mxu1 %v8396_v9  ;;  %v8015_v8 = vcombine.high %v199_v1, %v207_v2  ;;  %v215_v9 = vld [vmem:[#allocation5 + $0x390] sm:$0xff] }
  0xd9   :  { %3330 = vmatprep.subr.bf16.mxu0 %v8411_v10  ;;  %3416 = vmatprep.subr.bf16.mxu1 %v8413_v14  ;;  %v223_v10 = vld [vmem:[#allocation5 + $0x3d0] sm:$0xff]  ;;  %v8014_v14 = vcombine.low %v199_v1, %v207_v2  ;;  %v320_v1 = vld [vmem:[#allocation5 + $0x6d8] sm:$0xff] }
  0xda   :  { %v8031_v17 = vcombine.high %v215_v9, %v223_v10  ;;  %v8030_v23 = vcombine.low %v215_v9, %v223_v10  ;;  %v336_v9 = vld [vmem:[#allocation5 + $0x758] sm:$0xff] }
  0xdc   :  { %3331 = vmatpush1.bf16.msra.mxu0 %v8410_v19  ;;  %3417 = vmatpush1.bf16.msra.mxu1 %v8412_v20  ;;  %v239_v19 = vld [vmem:[#allocation5 + $0x450] sm:$0xff]  ;;  %v232_v20 = vld [vmem:[#allocation5 + $0x418] sm:$0xff] }
  0xdd   :  { %3429 = vmatprep.subr.bf16.mxu0 %v7919_v21  ;;  %3515 = vmatprep.subr.bf16.mxu1 %v7921_v26  ;;  %v8033_v21 = vcombine.high %v216_v11, %v224_v13  ;;  %v8047_v26 = vcombine.high %v231_v18, %v239_v19  ;;  %v8046_v33 = vcombine.low %v231_v18, %v239_v19  ;;  %v343_v13 = vld [vmem:[#allocation5 + $0x790] sm:$0xff]  ;;  %v352_v18 = vld [vmem:[#allocation5 + $0x7d8] sm:$0xff] }
  0xde   :  { %v8048_v34 = vcombine.low %v232_v20, %v240_v22 }
  0xdf   :  { %3333 = vmatmul.mubr.bf16.vlgmr.msra.gmra.mrb[0].mxu0 %v10135_v28  ;;  %3419 = vmatmul.mubr.bf16.vlgmr.msra.gmra.mrb[0].mxu1 %v10135_v28 }
  0xe0   :  { %3430 = vmatpush1.bf16.msra.mxu0 %v7918_v29  ;;  %3516 = vmatpush1.bf16.msra.mxu1 %v7920_v30  ;;  %v255_v29 = vld [vmem:[#allocation5 + $0x4d0] sm:$0xff]  ;;  %v248_v30 = vld [vmem:[#allocation5 + $0x498] sm:$0xff] }
  0xe1   :  { %3431 = vmatprep.subr.bf16.mxu0 %v7935_v31  ;;  %3517 = vmatprep.subr.bf16.mxu1 %v7937_v35  ;;  %v8049_v31 = vcombine.high %v232_v20, %v240_v22  ;;  %v8063_v35 = vcombine.high %v247_v27, %v255_v29  ;;  %v8062_v41 = vcombine.low %v247_v27, %v255_v29  ;;  %v359_v22 = vld [vmem:[#allocation5 + $0x810] sm:$0xff]  ;;  %v368_v27 = vld [vmem:[#allocation5 + $0x858] sm:$0xff] }
  0xe2   :  { %3461 = vmatprep.mubr.bf16.mxu0 %v10123_v58  ;;  %3547 = vmatprep.mubr.bf16.mxu1 %v10123_v58  ;;  %v8064_v42 = vcombine.low %v248_v30, %v256_v32 }
  0xe4   :  { %3432 = vmatpush1.bf16.msra.mxu0 %v7934_v37  ;;  %3518 = vmatpush1.bf16.msra.mxu1 %v7936_v38  ;;  %v271_v37 = vld [vmem:[#allocation5 + $0x550] sm:$0xff]  ;;  %v264_v38 = vld [vmem:[#allocation5 + $0x518] sm:$0xff] }
  0xe5   :  { %3433 = vmatprep.subr.bf16.mxu0 %v7951_v39  ;;  %3519 = vmatprep.subr.bf16.mxu1 %v7953_v43  ;;  %v8065_v39 = vcombine.high %v248_v30, %v256_v32  ;;  %v8079_v43 = vcombine.high %v263_v36, %v271_v37  ;;  %v8078_v49 = vcombine.low %v263_v36, %v271_v37  ;;  %v375_v32 = vld [vmem:[#allocation5 + $0x890] sm:$0xff]  ;;  %v384_v36 = vld [vmem:[#allocation5 + $0x8d8] sm:$0xff] }
  0xe6   :  { %v8080_v50 = vcombine.low %v264_v38, %v272_v40 }
  0xe8   :  { %3434 = vmatpush1.bf16.msra.mxu0 %v7950_v45  ;;  %3520 = vmatpush1.bf16.msra.mxu1 %v7952_v46  ;;  %v287_v45 = vld [vmem:[#allocation5 + $0x5d0] sm:$0xff]  ;;  %v280_v46 = vld [vmem:[#allocation5 + $0x598] sm:$0xff] }
  0xe9   :  { %3435 = vmatprep.subr.bf16.mxu0 %v7967_v47  ;;  %3521 = vmatprep.subr.bf16.mxu1 %v7969_v51  ;;  %v8081_v47 = vcombine.high %v264_v38, %v272_v40  ;;  %v8095_v51 = vcombine.high %v279_v44, %v287_v45  ;;  %v8094_v57 = vcombine.low %v279_v44, %v287_v45  ;;  %v391_v40 = vld [vmem:[#allocation5 + $0x910] sm:$0xff]  ;;  %v400_v44 = vld [vmem:[#allocation5 + $0x958] sm:$0xff] }
  0xea   :  { %v8096_v59 = vcombine.low %v280_v46, %v288_v48 }
  0xec   :  { %3436 = vmatpush1.bf16.msra.mxu0 %v7966_v53  ;;  %3522 = vmatpush1.bf16.msra.mxu1 %v7968_v54  ;;  %v303_v53 = vld [vmem:[#allocation5 + $0x650] sm:$0xff]  ;;  %v296_v54 = vld [vmem:[#allocation5 + $0x618] sm:$0xff] }
  0xed   :  { %3437 = vmatprep.subr.bf16.mxu0 %v7983_v55  ;;  %3523 = vmatprep.subr.bf16.mxu1 %v7985_v60  ;;  %v8097_v55 = vcombine.high %v280_v46, %v288_v48  ;;  %v8111_v60 = vcombine.high %v295_v52, %v303_v53  ;;  %v8110_v2 = vcombine.low %v295_v52, %v303_v53  ;;  %v407_v48 = vld [vmem:[#allocation5 + $0x990] sm:$0xff]  ;;  %v416_v52 = vld [vmem:[#allocation5 + $0x9d8] sm:$0xff] }
  0xee   :  { %v8112_v3 = vcombine.low %v296_v54, %v304_v56 }
  0xf0   :  { %3438 = vmatpush1.bf16.msra.mxu0 %v7982_v62  ;;  %3524 = vmatpush1.bf16.msra.mxu1 %v7984_v63  ;;  %v319_v62 = vld [vmem:[#allocation5 + $0x6d0] sm:$0xff]  ;;  %v312_v63 = vld [vmem:[#allocation5 + $0x698] sm:$0xff] }
  0xf1   :  { %3439 = vmatprep.subr.bf16.mxu0 %v7999_v0  ;;  %3525 = vmatprep.subr.bf16.mxu1 %v8001_v4  ;;  %v8113_v0 = vcombine.high %v296_v54, %v304_v56  ;;  %v8127_v4 = vcombine.high %v311_v61, %v319_v62  ;;  %v8126_v10 = vcombine.low %v311_v61, %v319_v62  ;;  %v423_v56 = vld [vmem:[#allocation5 + $0xa10] sm:$0xff]  ;;  %v432_v61 = vld [vmem:[#allocation5 + $0xa58] sm:$0xff] }
  0xf2   :  { %v8128_v11 = vcombine.low %v312_v63, %v320_v1 }
  0xf4   :  { %3440 = vmatpush1.bf16.msra.mxu0 %v7998_v6  ;;  %3526 = vmatpush1.bf16.msra.mxu1 %v8000_v7  ;;  %v335_v6 = vld [vmem:[#allocation5 + $0x750] sm:$0xff]  ;;  %v328_v7 = vld [vmem:[#allocation5 + $0x718] sm:$0xff] }
  0xf5   :  { %3441 = vmatprep.subr.bf16.mxu0 %v8015_v8  ;;  %3527 = vmatprep.subr.bf16.mxu1 %v8017_v12  ;;  %v8129_v8 = vcombine.high %v312_v63, %v320_v1  ;;  %v8143_v12 = vcombine.high %v327_v5, %v335_v6  ;;  %v8142_v19 = vcombine.low %v327_v5, %v335_v6  ;;  %v439_v1 = vld [vmem:[#allocation5 + $0xa90] sm:$0xff]  ;;  %v448_v5 = vld [vmem:[#allocation5 + $0xad8] sm:$0xff] }
  0xf6   :  { %v8144_v20 = vcombine.low %v328_v7, %v336_v9 }
  0xf8   :  { %3442 = vmatpush1.bf16.msra.mxu0 %v8014_v14  ;;  %3528 = vmatpush1.bf16.msra.mxu1 %v8016_v16  ;;  %v351_v14 = vld [vmem:[#allocation5 + $0x7d0] sm:$0xff]  ;;  %v344_v16 = vld [vmem:[#allocation5 + $0x798] sm:$0xff] }
  0xf9   :  { %3443 = vmatprep.subr.bf16.mxu0 %v8031_v17  ;;  %3529 = vmatprep.subr.bf16.mxu1 %v8033_v21  ;;  %v8145_v17 = vcombine.high %v328_v7, %v336_v9  ;;  %v8159_v21 = vcombine.high %v343_v13, %v351_v14  ;;  %v8158_v29 = vcombine.low %v343_v13, %v351_v14  ;;  %v455_v9 = vld [vmem:[#allocation5 + $0xb10] sm:$0xff]  ;;  %v464_v13 = vld [vmem:[#allocation5 + $0xb58] sm:$0xff] }
  0xfa   :  { %v8160_v30 = vcombine.low %v344_v16, %v352_v18 }
  0xfc   :  { %3444 = vmatpush1.bf16.msra.mxu0 %v8030_v23  ;;  %3530 = vmatpush1.bf16.msra.mxu1 %v8032_v24  ;;  %v367_v23 = vld [vmem:[#allocation5 + $0x850] sm:$0xff]  ;;  %v360_v24 = vld [vmem:[#allocation5 + $0x818] sm:$0xff] }
  0xfd   :  { %3445 = vmatprep.subr.bf16.mxu0 %v8047_v26  ;;  %3531 = vmatprep.subr.bf16.mxu1 %v8049_v31  ;;  %v8161_v26 = vcombine.high %v344_v16, %v352_v18  ;;  %v8175_v31 = vcombine.high %v359_v22, %v367_v23  ;;  %v8174_v37 = vcombine.low %v359_v22, %v367_v23  ;;  %v471_v18 = vld [vmem:[#allocation5 + $0xb90] sm:$0xff]  ;;  %v480_v22 = vld [vmem:[#allocation5 + $0xbd8] sm:$0xff] }
  0xfe   :  { %v8176_v38 = vcombine.low %v360_v24, %v368_v27 }
 0x100   :  { %3446 = vmatpush1.bf16.msra.mxu0 %v8046_v33  ;;  %3532 = vmatpush1.bf16.msra.mxu1 %v8048_v34  ;;  %v383_v33 = vld [vmem:[#allocation5 + $0x8d0] sm:$0xff]  ;;  %v376_v34 = vld [vmem:[#allocation5 + $0x898] sm:$0xff] }
 0x101   :  { %3447 = vmatprep.subr.bf16.mxu0 %v8063_v35  ;;  %3533 = vmatprep.subr.bf16.mxu1 %v8065_v39  ;;  %v8177_v35 = vcombine.high %v360_v24, %v368_v27  ;;  %v8191_v39 = vcombine.high %v375_v32, %v383_v33  ;;  %v8190_v45 = vcombine.low %v375_v32, %v383_v33  ;;  %v487_v27 = vld [vmem:[#allocation5 + $0xc10] sm:$0xff]  ;;  %v496_v32 = vld [vmem:[#allocation5 + $0xc58] sm:$0xff] }
 0x102   :  { %v8192_v46 = vcombine.low %v376_v34, %v384_v36 }
 0x104   :  { %3448 = vmatpush1.bf16.msra.mxu0 %v8062_v41  ;;  %3534 = vmatpush1.bf16.msra.mxu1 %v8064_v42  ;;  %v399_v41 = vld [vmem:[#allocation5 + $0x950] sm:$0xff]  ;;  %v392_v42 = vld [vmem:[#allocation5 + $0x918] sm:$0xff] }
 0x105   :  { %3449 = vmatprep.subr.bf16.mxu0 %v8079_v43  ;;  %3535 = vmatprep.subr.bf16.mxu1 %v8081_v47  ;;  %v8193_v43 = vcombine.high %v376_v34, %v384_v36  ;;  %v8207_v47 = vcombine.high %v391_v40, %v399_v41  ;;  %v8206_v53 = vcombine.low %v391_v40, %v399_v41  ;;  %v503_v36 = vld [vmem:[#allocation5 + $0xc90] sm:$0xff]  ;;  %v512_v40 = vld [vmem:[#allocation5 + $0xcd8] sm:$0xff] }
 0x106   :  { %v8208_v54 = vcombine.low %v392_v42, %v400_v44 }
 0x108   :  { %3450 = vmatpush1.bf16.msra.mxu0 %v8078_v49  ;;  %3536 = vmatpush1.bf16.msra.mxu1 %v8080_v50  ;;  %v415_v49 = vld [vmem:[#allocation5 + $0x9d0] sm:$0xff]  ;;  %v408_v50 = vld [vmem:[#allocation5 + $0x998] sm:$0xff] }
 0x109   :  { %3451 = vmatprep.subr.bf16.mxu0 %v8095_v51  ;;  %3537 = vmatprep.subr.bf16.mxu1 %v8097_v55  ;;  %v8209_v51 = vcombine.high %v392_v42, %v400_v44  ;;  %v8223_v55 = vcombine.high %v407_v48, %v415_v49  ;;  %v8222_v62 = vcombine.low %v407_v48, %v415_v49  ;;  %v519_v44 = vld [vmem:[#allocation5 + $0xd10] sm:$0xff]  ;;  %v528_v48 = vld [vmem:[#allocation5 + $0xd58] sm:$0xff] }
 0x10a   :  { %v8224_v63 = vcombine.low %v408_v50, %v416_v52 }
 0x10c   :  { %3452 = vmatpush1.bf16.msra.mxu0 %v8094_v57  ;;  %3538 = vmatpush1.bf16.msra.mxu1 %v8096_v59  ;;  %v431_v57 = vld [vmem:[#allocation5 + $0xa50] sm:$0xff]  ;;  %v424_v59 = vld [vmem:[#allocation5 + $0xa18] sm:$0xff] }
 0x10d   :  { %3453 = vmatprep.subr.bf16.mxu0 %v8111_v60  ;;  %3539 = vmatprep.subr.bf16.mxu1 %v8113_v0  ;;  %v8225_v60 = vcombine.high %v408_v50, %v416_v52  ;;  %v8239_v0 = vcombine.high %v423_v56, %v431_v57  ;;  %v8238_v6 = vcombine.low %v423_v56, %v431_v57  ;;  %v535_v52 = vld [vmem:[#allocation5 + $0xd90] sm:$0xff]  ;;  %v544_v56 = vld [vmem:[#allocation5 + $0xdd8] sm:$0xff] }
 0x10e   :  { %v8240_v7 = vcombine.low %v424_v59, %v432_v61 }
 0x110   :  { %3454 = vmatpush1.bf16.msra.mxu0 %v8110_v2  ;;  %3540 = vmatpush1.bf16.msra.mxu1 %v8112_v3  ;;  %v447_v2 = vld [vmem:[#allocation5 + $0xad0] sm:$0xff]  ;;  %v440_v3 = vld [vmem:[#allocation5 + $0xa98] sm:$0xff] }
 0x111   :  { %3455 = vmatprep.subr.bf16.mxu0 %v8127_v4  ;;  %3541 = vmatprep.subr.bf16.mxu1 %v8129_v8  ;;  %v8241_v4 = vcombine.high %v424_v59, %v432_v61  ;;  %v8255_v8 = vcombine.high %v439_v1, %v447_v2  ;;  %v8254_v14 = vcombine.low %v439_v1, %v447_v2  ;;  %v551_v61 = vld [vmem:[#allocation5 + $0xe10] sm:$0xff]  ;;  %v560_v1 = vld [vmem:[#allocation5 + $0xe58] sm:$0xff] }
 0x112   :  { %v8256_v16 = vcombine.low %v440_v3, %v448_v5 }
 0x114   :  { %3456 = vmatpush1.bf16.msra.mxu0 %v8126_v10  ;;  %3542 = vmatpush1.bf16.msra.mxu1 %v8128_v11  ;;  %v463_v10 = vld [vmem:[#allocation5 + $0xb50] sm:$0xff]  ;;  %v456_v11 = vld [vmem:[#allocation5 + $0xb18] sm:$0xff] }
 0x115   :  { %3457 = vmatprep.subr.bf16.mxu0 %v8143_v12  ;;  %3543 = vmatprep.subr.bf16.mxu1 %v8145_v17  ;;  %v8257_v12 = vcombine.high %v440_v3, %v448_v5  ;;  %v8271_v17 = vcombine.high %v455_v9, %v463_v10  ;;  %v8270_v23 = vcombine.low %v455_v9, %v463_v10  ;;  %v567_v5 = vld [vmem:[#allocation5 + $0xe90] sm:$0xff]  ;;  %v576_v9 = vld [vmem:[#allocation5 + $0xed8] sm:$0xff] }
 0x116   :  { %v8272_v24 = vcombine.low %v456_v11, %v464_v13 }
 0x118   :  { %3458 = vmatpush1.bf16.msra.mxu0 %v8142_v19  ;;  %3544 = vmatpush1.bf16.msra.mxu1 %v8144_v20  ;;  %v479_v19 = vld [vmem:[#allocation5 + $0xbd0] sm:$0xff]  ;;  %v8273_v20 = vcombine.high %v456_v11, %v464_v13 }
 0x119   :  { %3459 = vmatprep.subr.bf16.mxu0 %v8159_v21  ;;  %3545 = vmatprep.subr.bf16.mxu1 %v8161_v26  ;;  %v472_v21 = vld [vmem:[#allocation5 + $0xb98] sm:$0xff]  ;;  %v8287_v26 = vcombine.high %v471_v18, %v479_v19  ;;  %v8286_v33 = vcombine.low %v471_v18, %v479_v19  ;;  %v583_v13 = vld [vmem:[#allocation5 + $0xf10] sm:$0xff] }
 0x11a   :  { %v8288_v34 = vcombine.low %v472_v21, %v480_v22  ;;  %v592_v18 = vld [vmem:[#allocation5 + $0xf58] sm:$0xff] }
 0x11c   :  { %3460 = vmatpush1.bf16.msra.mxu0 %v8158_v29  ;;  %3546 = vmatpush1.bf16.msra.mxu1 %v8160_v30  ;;  %v495_v29 = vld [vmem:[#allocation5 + $0xc50] sm:$0xff]  ;;  %v488_v30 = vld [vmem:[#allocation5 + $0xc18] sm:$0xff] }
 0x11d   :  { %3472 = vmatprep.subr.bf16.mxu0 %v8175_v31  ;;  %3558 = vmatprep.subr.bf16.mxu1 %v8177_v35  ;;  %v8289_v31 = vcombine.high %v472_v21, %v480_v22  ;;  %v8303_v35 = vcombine.high %v487_v27, %v495_v29  ;;  %v8302_v41 = vcombine.low %v487_v27, %v495_v29  ;;  %v599_v22 = vld [vmem:[#allocation5 + $0xf90] sm:$0xff]  ;;  %v608_v27 = vld [vmem:[#allocation5 + $0xfd8] sm:$0xff] }
 0x11e   :  { %v8304_v42 = vcombine.low %v488_v30, %v496_v32 }
 0x11f   :  { %3462 = vmatmul.mubr.bf16.vlgmr.msra.gmra.mrb[4].mxu0 %v10127_v15  ;;  %3548 = vmatmul.mubr.bf16.vlgmr.msra.gmra.mrb[4].mxu1 %v10127_v15 }
 0x120   :  { %3473 = vmatpush1.bf16.msra.mxu0 %v8174_v37  ;;  %3559 = vmatpush1.bf16.msra.mxu1 %v8176_v38  ;;  %v511_v37 = vld [vmem:[#allocation5 + $0xcd0] sm:$0xff]  ;;  %v504_v38 = vld [vmem:[#allocation5 + $0xc98] sm:$0xff] }
 0x121   :  { %3474 = vmatprep.subr.bf16.mxu0 %v8191_v39  ;;  %3560 = vmatprep.subr.bf16.mxu1 %v8193_v43  ;;  %v8305_v39 = vcombine.high %v488_v30, %v496_v32  ;;  %v8319_v43 = vcombine.high %v503_v36, %v511_v37  ;;  %v8318_v49 = vcombine.low %v503_v36, %v511_v37  ;;  %v105_v32 = vld [vmem:[#allocation5 + $0x20] sm:$0xff]  ;;  %v114_v36 = vld [vmem:[#allocation5 + $0x68] sm:$0xff] }
 0x122   :  { %3504 = vmatprep.mubr.bf16.mxu0 %v10129_v25  ;;  %3590 = vmatprep.mubr.bf16.mxu1 %v10129_v25  ;;  %v8320_v50 = vcombine.low %v504_v38, %v512_v40 }
 0x124   :  { %3475 = vmatpush1.bf16.msra.mxu0 %v8190_v45  ;;  %3561 = vmatpush1.bf16.msra.mxu1 %v8192_v46  ;;  %v527_v45 = vld [vmem:[#allocation5 + $0xd50] sm:$0xff]  ;;  %v520_v46 = vld [vmem:[#allocation5 + $0xd18] sm:$0xff] }
 0x125   :  { %3476 = vmatprep.subr.bf16.mxu0 %v8207_v47  ;;  %3562 = vmatprep.subr.bf16.mxu1 %v8209_v51  ;;  %v8321_v47 = vcombine.high %v504_v38, %v512_v40  ;;  %v8335_v51 = vcombine.high %v519_v44, %v527_v45  ;;  %v8334_v57 = vcombine.low %v519_v44, %v527_v45  ;;  %v121_v40 = vld [vmem:[#allocation5 + $0xa0] sm:$0xff]  ;;  %v130_v44 = vld [vmem:[#allocation5 + $0xe8] sm:$0xff] }
 0x126   :  { %v8336_v59 = vcombine.low %v520_v46, %v528_v48 }
 0x128   :  { %3477 = vmatpush1.bf16.msra.mxu0 %v8206_v53  ;;  %3563 = vmatpush1.bf16.msra.mxu1 %v8208_v54  ;;  %v543_v53 = vld [vmem:[#allocation5 + $0xdd0] sm:$0xff]  ;;  %v536_v54 = vld [vmem:[#allocation5 + $0xd98] sm:$0xff] }
 0x129   :  { %3478 = vmatprep.subr.bf16.mxu0 %v8223_v55  ;;  %3564 = vmatprep.subr.bf16.mxu1 %v8225_v60  ;;  %v8337_v55 = vcombine.high %v520_v46, %v528_v48  ;;  %v8351_v60 = vcombine.high %v535_v52, %v543_v53  ;;  %v8350_v2 = vcombine.low %v535_v52, %v543_v53  ;;  %v137_v48 = vld [vmem:[#allocation5 + $0x120] sm:$0xff]  ;;  %v146_v52 = vld [vmem:[#allocation5 + $0x168] sm:$0xff] }
 0x12a   :  { %v8352_v3 = vcombine.low %v536_v54, %v544_v56 }
 0x12c   :  { %3479 = vmatpush1.bf16.msra.mxu0 %v8222_v62  ;;  %3565 = vmatpush1.bf16.msra.mxu1 %v8224_v63  ;;  %v559_v62 = vld [vmem:[#allocation5 + $0xe50] sm:$0xff]  ;;  %v552_v63 = vld [vmem:[#allocation5 + $0xe18] sm:$0xff] }
 0x12d   :  { %3480 = vmatprep.subr.bf16.mxu0 %v8239_v0  ;;  %3566 = vmatprep.subr.bf16.mxu1 %v8241_v4  ;;  %v8353_v0 = vcombine.high %v536_v54, %v544_v56  ;;  %v8367_v4 = vcombine.high %v551_v61, %v559_v62  ;;  %v8366_v10 = vcombine.low %v551_v61, %v559_v62  ;;  %v153_v56 = vld [vmem:[#allocation5 + $0x1a0] sm:$0xff]  ;;  %v162_v61 = vld [vmem:[#allocation5 + $0x1e8] sm:$0xff] }
 0x12e   :  { %v8368_v11 = vcombine.low %v552_v63, %v560_v1 }
 0x130   :  { %3481 = vmatpush1.bf16.msra.mxu0 %v8238_v6  ;;  %3567 = vmatpush1.bf16.msra.mxu1 %v8240_v7  ;;  %v575_v6 = vld [vmem:[#allocation5 + $0xed0] sm:$0xff]  ;;  %v568_v7 = vld [vmem:[#allocation5 + $0xe98] sm:$0xff] }
 0x131   :  { %3482 = vmatprep.subr.bf16.mxu0 %v8255_v8  ;;  %3568 = vmatprep.subr.bf16.mxu1 %v8257_v12  ;;  %v8369_v8 = vcombine.high %v552_v63, %v560_v1  ;;  %v8383_v12 = vcombine.high %v567_v5, %v575_v6  ;;  %v8382_v19 = vcombine.low %v567_v5, %v575_v6  ;;  %v169_v1 = vld [vmem:[#allocation5 + $0x220] sm:$0xff]  ;;  %v178_v5 = vld [vmem:[#allocation5 + $0x268] sm:$0xff] }
 0x134   :  { %3483 = vmatpush1.bf16.msra.mxu0 %v8254_v14  ;;  %3569 = vmatpush1.bf16.msra.mxu1 %v8256_v16  ;;  %v591_v14 = vld [vmem:[#allocation5 + $0xf50] sm:$0xff]  ;;  %v584_v16 = vld [vmem:[#allocation5 + $0xf18] sm:$0xff] }
 0x135   :  { %3484 = vmatprep.subr.bf16.mxu0 %v8271_v17  ;;  %3570 = vmatprep.subr.bf16.mxu1 %v8273_v20  ;;  %v8385_v17 = vcombine.high %v568_v7, %v576_v9  ;;  %v8384_v20 = vcombine.low %v568_v7, %v576_v9  ;;  %v8399_v21 = vcombine.high %v583_v13, %v591_v14  ;;  %v185_v9 = vld [vmem:[#allocation5 + $0x2a0] sm:$0xff] }
 0x136   :  { %v8398_v29 = vcombine.low %v583_v13, %v591_v14  ;;  %v8400_v30 = vcombine.low %v584_v16, %v592_v18  ;;  %v194_v13 = vld [vmem:[#allocation5 + $0x2e8] sm:$0xff] }
 0x138   :  { %3485 = vmatpush1.bf16.msra.mxu0 %v8270_v23  ;;  %3571 = vmatpush1.bf16.msra.mxu1 %v8272_v24  ;;  %v607_v23 = vld [vmem:[#allocation5 + $0xfd0] sm:$0xff]  ;;  %v600_v24 = vld [vmem:[#allocation5 + $0xf98] sm:$0xff] }
 0x139   :  { %3486 = vmatprep.subr.bf16.mxu0 %v8287_v26  ;;  %3572 = vmatprep.subr.bf16.mxu1 %v8289_v31  ;;  %v8401_v26 = vcombine.high %v584_v16, %v592_v18  ;;  %v8415_v31 = vcombine.high %v599_v22, %v607_v23  ;;  %v8414_v37 = vcombine.low %v599_v22, %v607_v23  ;;  %v201_v18 = vld [vmem:[#allocation5 + $0x320] sm:$0xff]  ;;  %v210_v22 = vld [vmem:[#allocation5 + $0x368] sm:$0xff] }
 0x13a   :  { %v8416_v38 = vcombine.low %v600_v24, %v608_v27 }
 0x13c   :  { %3487 = vmatpush1.bf16.msra.mxu0 %v8286_v33  ;;  %3573 = vmatpush1.bf16.msra.mxu1 %v8288_v34  ;;  %v113_v33 = vld [vmem:[#allocation5 + $0x60] sm:$0xff]  ;;  %v106_v34 = vld [vmem:[#allocation5 + $0x28] sm:$0xff] }
 0x13d   :  { %3488 = vmatprep.subr.bf16.mxu0 %v8303_v35  ;;  %3574 = vmatprep.subr.bf16.mxu1 %v8305_v39  ;;  %v8417_v35 = vcombine.high %v600_v24, %v608_v27  ;;  %v7923_v39 = vcombine.high %v105_v32, %v113_v33  ;;  %v7922_v45 = vcombine.low %v105_v32, %v113_v33  ;;  %v217_v27 = vld [vmem:[#allocation5 + $0x3a0] sm:$0xff]  ;;  %v226_v32 = vld [vmem:[#allocation5 + $0x3e8] sm:$0xff] }
 0x13e   :  { %v7924_v46 = vcombine.low %v106_v34, %v114_v36 }
 0x140   :  { %3489 = vmatpush1.bf16.msra.mxu0 %v8302_v41  ;;  %3575 = vmatpush1.bf16.msra.mxu1 %v8304_v42  ;;  %v129_v41 = vld [vmem:[#allocation5 + $0xe0] sm:$0xff]  ;;  %v122_v42 = vld [vmem:[#allocation5 + $0xa8] sm:$0xff] }
 0x141   :  { %3490 = vmatprep.subr.bf16.mxu0 %v8319_v43  ;;  %3576 = vmatprep.subr.bf16.mxu1 %v8321_v47  ;;  %v7925_v43 = vcombine.high %v106_v34, %v114_v36  ;;  %v7939_v47 = vcombine.high %v121_v40, %v129_v41  ;;  %v7938_v53 = vcombine.low %v121_v40, %v129_v41  ;;  %v233_v36 = vld [vmem:[#allocation5 + $0x420] sm:$0xff]  ;;  %v242_v40 = vld [vmem:[#allocation5 + $0x468] sm:$0xff] }
 0x142   :  { %v7940_v54 = vcombine.low %v122_v42, %v130_v44 }
 0x144   :  { %3491 = vmatpush1.bf16.msra.mxu0 %v8318_v49  ;;  %3577 = vmatpush1.bf16.msra.mxu1 %v8320_v50  ;;  %v145_v49 = vld [vmem:[#allocation5 + $0x160] sm:$0xff]  ;;  %v138_v50 = vld [vmem:[#allocation5 + $0x128] sm:$0xff] }
 0x145   :  { %3492 = vmatprep.subr.bf16.mxu0 %v8335_v51  ;;  %3578 = vmatprep.subr.bf16.mxu1 %v8337_v55  ;;  %v7941_v51 = vcombine.high %v122_v42, %v130_v44  ;;  %v7955_v55 = vcombine.high %v137_v48, %v145_v49  ;;  %v7954_v62 = vcombine.low %v137_v48, %v145_v49  ;;  %v249_v44 = vld [vmem:[#allocation5 + $0x4a0] sm:$0xff]  ;;  %v258_v48 = vld [vmem:[#allocation5 + $0x4e8] sm:$0xff] }
 0x146   :  { %v7956_v63 = vcombine.low %v138_v50, %v146_v52 }
 0x148   :  { %3493 = vmatpush1.bf16.msra.mxu0 %v8334_v57  ;;  %3579 = vmatpush1.bf16.msra.mxu1 %v8336_v59  ;;  %v161_v57 = vld [vmem:[#allocation5 + $0x1e0] sm:$0xff]  ;;  %v154_v59 = vld [vmem:[#allocation5 + $0x1a8] sm:$0xff] }
 0x149   :  { %3494 = vmatprep.subr.bf16.mxu0 %v8351_v60  ;;  %3580 = vmatprep.subr.bf16.mxu1 %v8353_v0  ;;  %v7957_v60 = vcombine.high %v138_v50, %v146_v52  ;;  %v7971_v0 = vcombine.high %v153_v56, %v161_v57  ;;  %v7970_v6 = vcombine.low %v153_v56, %v161_v57  ;;  %v265_v52 = vld [vmem:[#allocation5 + $0x520] sm:$0xff]  ;;  %v274_v56 = vld [vmem:[#allocation5 + $0x568] sm:$0xff] }
 0x14a   :  { %v7972_v7 = vcombine.low %v154_v59, %v162_v61 }
 0x14c   :  { %3495 = vmatpush1.bf16.msra.mxu0 %v8350_v2  ;;  %3581 = vmatpush1.bf16.msra.mxu1 %v8352_v3  ;;  %v177_v2 = vld [vmem:[#allocation5 + $0x260] sm:$0xff]  ;;  %v170_v3 = vld [vmem:[#allocation5 + $0x228] sm:$0xff] }
 0x14d   :  { %3496 = vmatprep.subr.bf16.mxu0 %v8367_v4  ;;  %3582 = vmatprep.subr.bf16.mxu1 %v8369_v8  ;;  %v7973_v4 = vcombine.high %v154_v59, %v162_v61  ;;  %v7987_v8 = vcombine.high %v169_v1, %v177_v2  ;;  %v7986_v14 = vcombine.low %v169_v1, %v177_v2  ;;  %v281_v61 = vld [vmem:[#allocation5 + $0x5a0] sm:$0xff]  ;;  %v290_v1 = vld [vmem:[#allocation5 + $0x5e8] sm:$0xff] }
 0x14e   :  { %v7988_v16 = vcombine.low %v170_v3, %v178_v5 }
 0x150   :  { %3497 = vmatpush1.bf16.msra.mxu0 %v8366_v10  ;;  %3583 = vmatpush1.bf16.msra.mxu1 %v8368_v11  ;;  %v193_v10 = vld [vmem:[#allocation5 + $0x2e0] sm:$0xff]  ;;  %v186_v11 = vld [vmem:[#allocation5 + $0x2a8] sm:$0xff] }
 0x151   :  { %3498 = vmatprep.subr.bf16.mxu0 %v8383_v12  ;;  %3584 = vmatprep.subr.bf16.mxu1 %v8385_v17  ;;  %v7989_v12 = vcombine.high %v170_v3, %v178_v5  ;;  %v8003_v17 = vcombine.high %v185_v9, %v193_v10  ;;  %v8002_v23 = vcombine.low %v185_v9, %v193_v10  ;;  %v297_v5 = vld [vmem:[#allocation5 + $0x620] sm:$0xff]  ;;  %v306_v9 = vld [vmem:[#allocation5 + $0x668] sm:$0xff] }
 0x152   :  { %v8004_v24 = vcombine.low %v186_v11, %v194_v13 }
 0x154   :  { %3499 = vmatpush1.bf16.msra.mxu0 %v8382_v19  ;;  %3585 = vmatpush1.bf16.msra.mxu1 %v8384_v20  ;;  %v209_v19 = vld [vmem:[#allocation5 + $0x360] sm:$0xff]  ;;  %v202_v20 = vld [vmem:[#allocation5 + $0x328] sm:$0xff] }
 0x155   :  { %3500 = vmatprep.subr.bf16.mxu0 %v8399_v21  ;;  %3586 = vmatprep.subr.bf16.mxu1 %v8401_v26  ;;  %v8005_v21 = vcombine.high %v186_v11, %v194_v13  ;;  %v8019_v26 = vcombine.high %v201_v18, %v209_v19  ;;  %v8018_v33 = vcombine.low %v201_v18, %v209_v19  ;;  %v313_v13 = vld [vmem:[#allocation5 + $0x6a0] sm:$0xff]  ;;  %v322_v18 = vld [vmem:[#allocation5 + $0x6e8] sm:$0xff] }
 0x156   :  { %v8020_v34 = vcombine.low %v202_v20, %v210_v22 }
 0x158   :  { %3501 = vmatpush1.bf16.msra.mxu0 %v8398_v29  ;;  %3587 = vmatpush1.bf16.msra.mxu1 %v8400_v30  ;;  %v225_v29 = vld [vmem:[#allocation5 + $0x3e0] sm:$0xff]  ;;  %v218_v30 = vld [vmem:[#allocation5 + $0x3a8] sm:$0xff] }
 0x159   :  { %3502 = vmatprep.subr.bf16.mxu0 %v8415_v31  ;;  %3588 = vmatprep.subr.bf16.mxu1 %v8417_v35  ;;  %v8021_v31 = vcombine.high %v202_v20, %v210_v22  ;;  %v8035_v35 = vcombine.high %v217_v27, %v225_v29  ;;  %v8034_v41 = vcombine.low %v217_v27, %v225_v29  ;;  %v329_v22 = vld [vmem:[#allocation5 + $0x720] sm:$0xff]  ;;  %v338_v27 = vld [vmem:[#allocation5 + $0x768] sm:$0xff] }
 0x15a   :  { %v8036_v42 = vcombine.low %v218_v30, %v226_v32 }
 0x15c   :  { %3503 = vmatpush1.bf16.msra.mxu0 %v8414_v37  ;;  %3589 = vmatpush1.bf16.msra.mxu1 %v8416_v38  ;;  %v241_v37 = vld [vmem:[#allocation5 + $0x460] sm:$0xff]  ;;  %v234_v38 = vld [vmem:[#allocation5 + $0x428] sm:$0xff] }
 0x15d   :  { %3601 = vmatprep.subr.bf16.mxu0 %v7923_v39  ;;  %3687 = vmatprep.subr.bf16.mxu1 %v7925_v43  ;;  %v8037_v39 = vcombine.high %v218_v30, %v226_v32  ;;  %v8051_v43 = vcombine.high %v233_v36, %v241_v37  ;;  %v8050_v49 = vcombine.low %v233_v36, %v241_v37  ;;  %v345_v32 = vld [vmem:[#allocation5 + $0x7a0] sm:$0xff]  ;;  %v354_v36 = vld [vmem:[#allocation5 + $0x7e8] sm:$0xff] }
 0x15e   :  { %v8052_v50 = vcombine.low %v234_v38, %v242_v40 }
 0x15f   :  { %3505 = vmatmul.mubr.bf16.vlgmr.msra.gmra.mrb[4].mxu0 %v10135_v28  ;;  %3591 = vmatmul.mubr.bf16.vlgmr.msra.gmra.mrb[4].mxu1 %v10135_v28 }
 0x160   :  { %3602 = vmatpush1.bf16.msra.mxu0 %v7922_v45  ;;  %3688 = vmatpush1.bf16.msra.mxu1 %v7924_v46  ;;  %v257_v45 = vld [vmem:[#allocation5 + $0x4e0] sm:$0xff]  ;;  %v250_v46 = vld [vmem:[#allocation5 + $0x4a8] sm:$0xff] }
 0x161   :  { %3603 = vmatprep.subr.bf16.mxu0 %v7939_v47  ;;  %3689 = vmatprep.subr.bf16.mxu1 %v7941_v51  ;;  %v8053_v47 = vcombine.high %v234_v38, %v242_v40  ;;  %v8067_v51 = vcombine.high %v249_v44, %v257_v45  ;;  %v8066_v57 = vcombine.low %v249_v44, %v257_v45  ;;  %v361_v40 = vld [vmem:[#allocation5 + $0x820] sm:$0xff]  ;;  %v370_v44 = vld [vmem:[#allocation5 + $0x868] sm:$0xff] }
 0x162   :  { %3633 = vmatprep.mubr.bf16.mxu0 %v10123_v58  ;;  %3719 = vmatprep.mubr.bf16.mxu1 %v10123_v58  ;;  %v8068_v59 = vcombine.low %v250_v46, %v258_v48 }
 0x164   :  { %3604 = vmatpush1.bf16.msra.mxu0 %v7938_v53  ;;  %3690 = vmatpush1.bf16.msra.mxu1 %v7940_v54  ;;  %v273_v53 = vld [vmem:[#allocation5 + $0x560] sm:$0xff]  ;;  %v266_v54 = vld [vmem:[#allocation5 + $0x528] sm:$0xff] }
 0x165   :  { %3605 = vmatprep.subr.bf16.mxu0 %v7955_v55  ;;  %3691 = vmatprep.subr.bf16.mxu1 %v7957_v60  ;;  %v8069_v55 = vcombine.high %v250_v46, %v258_v48  ;;  %v8083_v60 = vcombine.high %v265_v52, %v273_v53  ;;  %v8082_v2 = vcombine.low %v265_v52, %v273_v53  ;;  %v377_v48 = vld [vmem:[#allocation5 + $0x8a0] sm:$0xff]  ;;  %v386_v52 = vld [vmem:[#allocation5 + $0x8e8] sm:$0xff] }
 0x166   :  { %v8084_v3 = vcombine.low %v266_v54, %v274_v56 }
 0x168   :  { %3606 = vmatpush1.bf16.msra.mxu0 %v7954_v62  ;;  %3692 = vmatpush1.bf16.msra.mxu1 %v7956_v63  ;;  %v289_v62 = vld [vmem:[#allocation5 + $0x5e0] sm:$0xff]  ;;  %v282_v63 = vld [vmem:[#allocation5 + $0x5a8] sm:$0xff] }
 0x169   :  { %3607 = vmatprep.subr.bf16.mxu0 %v7971_v0  ;;  %3693 = vmatprep.subr.bf16.mxu1 %v7973_v4  ;;  %v8085_v0 = vcombine.high %v266_v54, %v274_v56  ;;  %v8099_v4 = vcombine.high %v281_v61, %v289_v62  ;;  %v8098_v10 = vcombine.low %v281_v61, %v289_v62  ;;  %v393_v56 = vld [vmem:[#allocation5 + $0x920] sm:$0xff]  ;;  %v402_v61 = vld [vmem:[#allocation5 + $0x968] sm:$0xff] }
 0x16a   :  { %v8100_v11 = vcombine.low %v282_v63, %v290_v1 }
 0x16c   :  { %3608 = vmatpush1.bf16.msra.mxu0 %v7970_v6  ;;  %3694 = vmatpush1.bf16.msra.mxu1 %v7972_v7  ;;  %v305_v6 = vld [vmem:[#allocation5 + $0x660] sm:$0xff]  ;;  %v298_v7 = vld [vmem:[#allocation5 + $0x628] sm:$0xff] }
 0x16d   :  { %3609 = vmatprep.subr.bf16.mxu0 %v7987_v8  ;;  %3695 = vmatprep.subr.bf16.mxu1 %v7989_v12  ;;  %v8101_v8 = vcombine.high %v282_v63, %v290_v1  ;;  %v8115_v12 = vcombine.high %v297_v5, %v305_v6  ;;  %v8114_v19 = vcombine.low %v297_v5, %v305_v6  ;;  %v418_v5 = vld [vmem:[#allocation5 + $0x9e8] sm:$0xff] }
 0x16e   :  { %v8116_v20 = vcombine.low %v298_v7, %v306_v9 }
 0x170   :  { %3610 = vmatpush1.bf16.msra.mxu0 %v7986_v14  ;;  %3696 = vmatpush1.bf16.msra.mxu1 %v7988_v16  ;;  %v321_v14 = vld [vmem:[#allocation5 + $0x6e0] sm:$0xff]  ;;  %v314_v16 = vld [vmem:[#allocation5 + $0x6a8] sm:$0xff] }
 0x171   :  { %3611 = vmatprep.subr.bf16.mxu0 %v8003_v17  ;;  %3697 = vmatprep.subr.bf16.mxu1 %v8005_v21  ;;  %v8117_v17 = vcombine.high %v298_v7, %v306_v9  ;;  %v8131_v21 = vcombine.high %v313_v13, %v321_v14  ;;  %v8130_v29 = vcombine.low %v313_v13, %v321_v14  ;;  %v617_v9 = vlaneseq  ;;  %v426_v13 = vld [vmem:[#allocation5 + $0xa28] sm:$0xff] }
 0x172   :  { %v8132_v30 = vcombine.low %v314_v16, %v322_v18  ;;  %v434_v14 = vld [vmem:[#allocation5 + $0xa68] sm:$0xff] }
 0x174   :  { %3612 = vmatpush1.bf16.msra.mxu0 %v8002_v23  ;;  %3698 = vmatpush1.bf16.msra.mxu1 %v8004_v24  ;;  %v337_v23 = vld [vmem:[#allocation5 + $0x760] sm:$0xff]  ;;  %v330_v24 = vld [vmem:[#allocation5 + $0x728] sm:$0xff] }
 0x175   :  { %3613 = vmatprep.subr.bf16.mxu0 %v8019_v26  ;;  %3699 = vmatprep.subr.bf16.mxu1 %v8021_v31  ;;  %v8133_v26 = vcombine.high %v314_v16, %v322_v18  ;;  %v8147_v31 = vcombine.high %v329_v22, %v337_v23  ;;  %v8146_v37 = vcombine.low %v329_v22, %v337_v23  ;;  %v449_v22 = vld [vmem:[#allocation5 + $0xae0] sm:$0xff]  ;;  %v442_v23 = vld [vmem:[#allocation5 + $0xaa8] sm:$0xff] }
 0x176   :  { %v8148_v38 = vcombine.low %v330_v24, %v338_v27 }
 0x178   :  { %3614 = vmatpush1.bf16.msra.mxu0 %v8018_v33  ;;  %3700 = vmatpush1.bf16.msra.mxu1 %v8020_v34  ;;  %v353_v33 = vld [vmem:[#allocation5 + $0x7e0] sm:$0xff]  ;;  %v346_v34 = vld [vmem:[#allocation5 + $0x7a8] sm:$0xff] }
 0x179   :  { %3615 = vmatprep.subr.bf16.mxu0 %v8035_v35  ;;  %3701 = vmatprep.subr.bf16.mxu1 %v8037_v39  ;;  %v8149_v35 = vcombine.high %v330_v24, %v338_v27  ;;  %v8163_v39 = vcombine.high %v345_v32, %v353_v33  ;;  %v8162_v45 = vcombine.low %v345_v32, %v353_v33  ;;  %v450_v24 = vld [vmem:[#allocation5 + $0xae8] sm:$0xff] }
 0x17a   :  { %v8164_v46 = vcombine.low %v346_v34, %v354_v36  ;;  %v8244_v27 = vcombine.low %v426_v13, %v434_v14 }
 0x17c   :  { %3616 = vmatpush1.bf16.msra.mxu0 %v8034_v41  ;;  %3702 = vmatpush1.bf16.msra.mxu1 %v8036_v42  ;;  %v369_v41 = vld [vmem:[#allocation5 + $0x860] sm:$0xff]  ;;  %v362_v42 = vld [vmem:[#allocation5 + $0x828] sm:$0xff] }
 0x17d   :  { %3617 = vmatprep.subr.bf16.mxu0 %v8051_v43  ;;  %3703 = vmatprep.subr.bf16.mxu1 %v8053_v47  ;;  %v8165_v43 = vcombine.high %v346_v34, %v354_v36  ;;  %v8179_v47 = vcombine.high %v361_v40, %v369_v41  ;;  %v8178_v53 = vcombine.low %v361_v40, %v369_v41  ;;  %v465_v36 = vld [vmem:[#allocation5 + $0xb60] sm:$0xff] }
 0x17e   :  { %v8180_v54 = vcombine.low %v362_v42, %v370_v44  ;;  %v8261_v34 = vcombine.high %v442_v23, %v450_v24 }
 0x180   :  { %3618 = vmatpush1.bf16.msra.mxu0 %v8050_v49  ;;  %3704 = vmatpush1.bf16.msra.mxu1 %v8052_v50  ;;  %v385_v49 = vld [vmem:[#allocation5 + $0x8e0] sm:$0xff]  ;;  %v378_v50 = vld [vmem:[#allocation5 + $0x8a8] sm:$0xff] }
 0x181   :  { %3619 = vmatprep.subr.bf16.mxu0 %v8067_v51  ;;  %3705 = vmatprep.subr.bf16.mxu1 %v8069_v55  ;;  %v8181_v51 = vcombine.high %v362_v42, %v370_v44  ;;  %v8195_v55 = vcombine.high %v377_v48, %v385_v49  ;;  %v8194_v62 = vcombine.low %v377_v48, %v385_v49  ;;  %v473_v44 = vld [vmem:[#allocation5 + $0xba0] sm:$0xff] }
 0x182   :  { %v8196_v63 = vcombine.low %v378_v50, %v386_v52  ;;  %v8260_v42 = vcombine.low %v442_v23, %v450_v24  ;;  %v505_v23 = vld [vmem:[#allocation5 + $0xca0] sm:$0xff] }
 0x183   :  { %v513_v24 = vld [vmem:[#allocation5 + $0xce0] sm:$0xff] }
 0x184   :  { %3620 = vmatpush1.bf16.msra.mxu0 %v8066_v57  ;;  %3706 = vmatpush1.bf16.msra.mxu1 %v8068_v59  ;;  %v401_v57 = vld [vmem:[#allocation5 + $0x960] sm:$0xff]  ;;  %v394_v59 = vld [vmem:[#allocation5 + $0x928] sm:$0xff] }
 0x185   :  { %3621 = vmatprep.subr.bf16.mxu0 %v8083_v60  ;;  %3707 = vmatprep.subr.bf16.mxu1 %v8085_v0  ;;  %v8197_v60 = vcombine.high %v378_v50, %v386_v52  ;;  %v8211_v0 = vcombine.high %v393_v56, %v401_v57  ;;  %v8213_v1 = vcombine.high %v394_v59, %v402_v61  ;;  %v474_v50 = vld [vmem:[#allocation5 + $0xba8] sm:$0xff] }
 0x186   :  { %v8210_v6 = vcombine.low %v393_v56, %v401_v57  ;;  %v8212_v7 = vcombine.low %v394_v59, %v402_v61 }
 0x188   :  { %3622 = vmatpush1.bf16.msra.mxu0 %v8082_v2  ;;  %3708 = vmatpush1.bf16.msra.mxu1 %v8084_v3  ;;  %v409_v2 = vld [vmem:[#allocation5 + $0x9a0] sm:$0xff] }
 0x189   :  { %3623 = vmatprep.subr.bf16.mxu0 %v8099_v4  ;;  %3709 = vmatprep.subr.bf16.mxu1 %v8101_v8  ;;  %v417_v3 = vld [vmem:[#allocation5 + $0x9e0] sm:$0xff]  ;;  %v410_v4 = vld [vmem:[#allocation5 + $0x9a8] sm:$0xff] }
 0x18a   :  { %v8227_v8 = vcombine.high %v409_v2, %v417_v3  ;;  %v8226_v16 = vcombine.low %v409_v2, %v417_v3 }
 0x18c   :  { %3624 = vmatpush1.bf16.msra.mxu0 %v8098_v10  ;;  %3710 = vmatpush1.bf16.msra.mxu1 %v8100_v11  ;;  %v8229_v10 = vcombine.high %v410_v4, %v418_v5  ;;  %v425_v11 = vld [vmem:[#allocation5 + $0xa20] sm:$0xff] }
 0x18d   :  { %3625 = vmatprep.subr.bf16.mxu0 %v8115_v12  ;;  %3711 = vmatprep.subr.bf16.mxu1 %v8117_v17  ;;  %v433_v12 = vld [vmem:[#allocation5 + $0xa60] sm:$0xff]  ;;  %v8228_v17 = vcombine.low %v410_v4, %v418_v5 }
 0x18e   :  { %v8243_v18 = vcombine.high %v425_v11, %v433_v12 }
 0x190   :  { %3626 = vmatpush1.bf16.msra.mxu0 %v8114_v19  ;;  %3712 = vmatpush1.bf16.msra.mxu1 %v8116_v20  ;;  %v10153_v19 = vshrl.u32 %v617_v9, 7  ;;  %v8245_v20 = vcombine.high %v426_v13, %v434_v14  ;;  %v498_v13 = vld [vmem:[#allocation5 + $0xc68] sm:$0xff] }
 0x191   :  { %3627 = vmatprep.subr.bf16.mxu0 %v8131_v21  ;;  %3713 = vmatprep.subr.bf16.mxu1 %v8133_v26  ;;  %v441_v21 = vld [vmem:[#allocation5 + $0xaa0] sm:$0xff]  ;;  %v8242_v26 = vcombine.low %v425_v11, %v433_v12  ;;  %v490_v12 = vld [vmem:[#allocation5 + $0xc28] sm:$0xff] }
 0x192   :  { %v10161_v32 = vsub.s32 2, %v10153_v19  ;;  %v10164_v33 = vsub.s32 1, %v10153_v19  ;;  %v8258_v40 = vcombine.low %v441_v21, %v449_v22 }
 0x194   :  { %3628 = vmatpush1.bf16.msra.mxu0 %v8130_v29  ;;  %3714 = vmatpush1.bf16.msra.mxu1 %v8132_v30  ;;  %v10156_v29 = vsub.s32 0, %v10153_v19  ;;  %v8259_v30 = vcombine.high %v441_v21, %v449_v22  ;;  %v8309_v22 = vcombine.high %v490_v12, %v498_v13 }
 0x195   :  { %3629 = vmatprep.subr.bf16.mxu0 %v8147_v31  ;;  %3715 = vmatprep.subr.bf16.mxu1 %v8149_v35  ;;  %v10158_v31 = vld [vmem:[#allocation7] sm:$0xff] }
 0x196   :  { %v457_v35 = vld [vmem:[#allocation5 + $0xb20] sm:$0xff]  ;;  %v620_v41 = vrot.slane %v10158_v31, %v10156_v29  ;;  %v624_v48 = vrot.slane %v10158_v31, %v10164_v33 }
 0x197   :  { %v8274_v57 = vcombine.low %v457_v35, %v465_v36 }
 0x198   :  { %3630 = vmatpush1.bf16.msra.mxu0 %v8146_v37  ;;  %3716 = vmatpush1.bf16.msra.mxu1 %v8148_v38  ;;  %v10167_v37 = vsub.s32 3, %v10153_v19  ;;  %v458_v38 = vld [vmem:[#allocation5 + $0xb28] sm:$0xff] }
 0x199   :  { %3631 = vmatprep.subr.bf16.mxu0 %v8163_v39  ;;  %3717 = vmatprep.subr.bf16.mxu1 %v8165_v43  ;;  %v466_v39 = vld [vmem:[#allocation5 + $0xb68] sm:$0xff]  ;;  %v8275_v43 = vcombine.high %v457_v35, %v465_v36  ;;  %v8323_v35 = vcombine.high %v505_v23, %v513_v24 }
 0x19a   :  { %v8277_v49 = vcombine.high %v458_v38, %v466_v39  ;;  %v8276_v59 = vcombine.low %v458_v38, %v466_v39  ;;  %v521_v38 = vld [vmem:[#allocation5 + $0xd20] sm:$0xff] }
 0x19b   :  { %v529_v39 = vld [vmem:[#allocation5 + $0xd60] sm:$0xff] }
 0x19c   :  { %3632 = vmatpush1.bf16.msra.mxu0 %v8162_v45  ;;  %3718 = vmatpush1.bf16.msra.mxu1 %v8164_v46  ;;  %v481_v45 = vld [vmem:[#allocation5 + $0xbe0] sm:$0xff] }
 0x19d   :  { %3644 = vmatprep.subr.bf16.mxu0 %v8179_v47  ;;  %3730 = vmatprep.subr.bf16.mxu1 %v8181_v51  ;;  %v628_v47 = vrot.slane %v10158_v31, %v10161_v32  ;;  %v482_v51 = vld [vmem:[#allocation5 + $0xbe8] sm:$0xff] }
 0x19f   :  { %3634 = vmatmul.mubr.bf16.vlgmr.msra.gmra.mrb[8].mxu0 %v10127_v15  ;;  %3720 = vmatmul.mubr.bf16.vlgmr.msra.gmra.mrb[8].mxu1 %v10127_v15 }
 0x1a0   :  { %3645 = vmatpush1.bf16.msra.mxu0 %v8178_v53  ;;  %3731 = vmatpush1.bf16.msra.mxu1 %v8180_v54  ;;  %v632_v54 = vrot.slane %v10158_v31, %v10167_v37 }
 0x1a1   :  { %3646 = vmatprep.subr.bf16.mxu0 %v8195_v55  ;;  %3732 = vmatprep.subr.bf16.mxu1 %v8197_v60  ;;  %v8291_v60 = vcombine.high %v473_v44, %v481_v45 }
 0x1a2   :  { %3676 = vmatprep.mubr.bf16.mxu0 %v10129_v25  ;;  %3762 = vmatprep.mubr.bf16.mxu1 %v10129_v25 }
 0x1a4   :  { %3647 = vmatpush1.bf16.msra.mxu0 %v8194_v62  ;;  %3733 = vmatpush1.bf16.msra.mxu1 %v8196_v63 }
 0x1a5   :  { %3648 = vmatprep.subr.bf16.mxu0 %v8211_v0  ;;  %3734 = vmatprep.subr.bf16.mxu1 %v8213_v1  ;;  %v8293_v1 = vcombine.high %v474_v50, %v482_v51 }
 0x1a8   :  { %3649 = vmatpush1.bf16.msra.mxu0 %v8210_v6  ;;  %3735 = vmatpush1.bf16.msra.mxu1 %v8212_v7  ;;  %v489_v7 = vld [vmem:[#allocation5 + $0xc20] sm:$0xff] }
 0x1a9   :  { %3650 = vmatprep.subr.bf16.mxu0 %v8227_v8  ;;  %3736 = vmatprep.subr.bf16.mxu1 %v8229_v10  ;;  %v497_v8 = vld [vmem:[#allocation5 + $0xc60] sm:$0xff] }
 0x1aa   :  { %v8307_v21 = vcombine.high %v489_v7, %v497_v8 }
 0x1ac   :  { %3651 = vmatpush1.bf16.msra.mxu0 %v8226_v16  ;;  %3737 = vmatpush1.bf16.msra.mxu1 %v8228_v17  ;;  %v8290_v17 = vcombine.low %v473_v44, %v481_v45  ;;  %v8339_v44 = vcombine.high %v521_v38, %v529_v39 }
 0x1ad   :  { %3652 = vmatprep.subr.bf16.mxu0 %v8243_v18  ;;  %3738 = vmatprep.subr.bf16.mxu1 %v8245_v20  ;;  %v8292_v20 = vcombine.low %v474_v50, %v482_v51  ;;  %v8338_v50 = vcombine.low %v521_v38, %v529_v39  ;;  %v108_v38 = vld [vmem:[#allocation5 + $0x38] sm:$0xff] }
 0x1ae   :  { %v116_v39 = vld [vmem:[#allocation5 + $0x78] sm:$0xff] }
 0x1b0   :  { %3653 = vmatpush1.bf16.msra.mxu0 %v8242_v26  ;;  %3739 = vmatpush1.bf16.msra.mxu1 %v8244_v27  ;;  %v506_v26 = vld [vmem:[#allocation5 + $0xca8] sm:$0xff] }
 0x1b1   :  { %3654 = vmatprep.subr.bf16.mxu0 %v8259_v30  ;;  %3740 = vmatprep.subr.bf16.mxu1 %v8261_v34  ;;  %v514_v27 = vld [vmem:[#allocation5 + $0xce8] sm:$0xff]  ;;  %v8306_v30 = vcombine.low %v489_v7, %v497_v8  ;;  %v8308_v34 = vcombine.low %v490_v12, %v498_v13  ;;  %v585_v7 = vld [vmem:[#allocation5 + $0xf20] sm:$0xff] }
 0x1b2   :  { %v3334_v46 = vpop.f32.mrb[0].mxu0  ;;  %v3420_v52 = vpop.f32.mrb[0].mxu1  ;;  %v8325_v36 = vcombine.high %v506_v26, %v514_v27  ;;  %v593_v8 = vld [vmem:[#allocation5 + $0xf60] sm:$0xff] }
 0x1b3   :  { %v3336_v53 = vpop.f32.mrb[1].mxu0  ;;  %v3422_v55 = vpop.f32.mrb[1].mxu1  ;;  %v8938_v61 = vadd.f32 %v3334_v46, %v620_v41  ;;  %v8942_v2 = vadd.f32 %v3420_v52, %v628_v47  ;;  %v537_v46 = vld [vmem:[#allocation5 + $0xda0] sm:$0xff] }
 0x1b4   :  { %v3338_v56 = vpop.f32.mrb[2].mxu0  ;;  %3655 = vmatpush1.bf16.msra.mxu0 %v8258_v40  ;;  %v3424_v63 = vpop.f32.mrb[2].mxu1  ;;  %3741 = vmatpush1.bf16.msra.mxu1 %v8260_v42  ;;  %v8939_v3 = vadd.f32 %v3336_v53, %v624_v48  ;;  %v8943_v9 = vadd.f32 %v3422_v55, %v632_v54  ;;  %v522_v40 = vld [vmem:[#allocation5 + $0xd28] sm:$0xff]  ;;  %v8322_v42 = vcombine.low %v505_v23, %v513_v24  ;;  %v561_v55 = vld [vmem:[#allocation5 + $0xe60] sm:$0xff] }
 0x1b5   :  { %v8940_v62 = vadd.f32 %v3338_v56, %v620_v41  ;;  %v3340_v0 = vpop.f32.mrb[3].mxu0  ;;  %3656 = vmatprep.subr.bf16.mxu0 %v8275_v43  ;;  %v8944_v4 = vadd.f32 %v3424_v63, %v628_v47  ;;  %v3426_v6 = vpop.f32.mrb[3].mxu1  ;;  %3742 = vmatprep.subr.bf16.mxu1 %v8277_v49  ;;  %v530_v41 = vld [vmem:[#allocation5 + $0xd68] sm:$0xff]  ;;  %v8324_v43 = vcombine.low %v506_v26, %v514_v27  ;;  %v545_v47 = vld [vmem:[#allocation5 + $0xde0] sm:$0xff] }
 0x1b6   :  { %v8941_v5 = vadd.f32 %v3340_v0, %v624_v48  ;;  %v8945_v11 = vadd.f32 %v3426_v6, %v632_v54  ;;  %v8341_v45 = vcombine.high %v522_v40, %v530_v41  ;;  %v538_v48 = vld [vmem:[#allocation5 + $0xda8] sm:$0xff]  ;;  %v8340_v51 = vcombine.low %v522_v40, %v530_v41  ;;  %v553_v54 = vld [vmem:[#allocation5 + $0xe20] sm:$0xff] }
 0x1b7   :  { %v10177_v10 = vpack.c.bf16 %v8940_v62, %v8938_v61  ;;  %v10179_v14 = vpack.c.bf16 %v8944_v4, %v8942_v2  ;;  %v546_v49 = vld [vmem:[#allocation5 + $0xde8] sm:$0xff]  ;;  %v8355_v52 = vcombine.high %v537_v46, %v545_v47  ;;  %v8371_v61 = vcombine.high %v553_v54, %v561_v55  ;;  %v569_v63 = vld [vmem:[#allocation5 + $0xea0] sm:$0xff] }
 0x1b8   :  { %v10181_v16 = vpack.c.bf16 %v8941_v5, %v8939_v3  ;;  %3657 = vmatpush1.bf16.msra.mxu0 %v8274_v57  ;;  %v10183_v18 = vpack.c.bf16 %v8945_v11, %v8943_v9  ;;  %3743 = vmatpush1.bf16.msra.mxu1 %v8276_v59  ;;  %v8357_v53 = vcombine.high %v538_v48, %v546_v49  ;;  %v554_v56 = vld [vmem:[#allocation5 + $0xe28] sm:$0xff]  ;;  %v577_v0 = vld [vmem:[#allocation5 + $0xee0] sm:$0xff] }
 0x1b9   :  { %3658 = vmatprep.subr.bf16.mxu0 %v8291_v60  ;;  %3744 = vmatprep.subr.bf16.mxu1 %v8293_v1  ;;  %v562_v57 = vld [vmem:[#allocation5 + $0xe68] sm:$0xff]  ;;  %v8354_v59 = vcombine.low %v537_v46, %v545_v47  ;;  %v8356_v60 = vcombine.low %v538_v48, %v546_v49  ;;  %v8370_v3 = vcombine.low %v553_v54, %v561_v55  ;;  %v124_v46 = vld [vmem:[#allocation5 + $0xb8] sm:$0xff] }
 0x1ba   :  { %v8373_v62 = vcombine.high %v554_v56, %v562_v57  ;;  %v570_v1 = vld [vmem:[#allocation5 + $0xea8] sm:$0xff]  ;;  %v8372_v4 = vcombine.low %v554_v56, %v562_v57  ;;  %v8387_v5 = vcombine.high %v569_v63, %v577_v0  ;;  %v8386_v12 = vcombine.low %v569_v63, %v577_v0  ;;  %v132_v47 = vld [vmem:[#allocation5 + $0xf8] sm:$0xff] }
 0x1bb   :  { %v578_v2 = vld [vmem:[#allocation5 + $0xee8] sm:$0xff]  ;;  %v8402_v26 = vcombine.low %v585_v7, %v593_v8  ;;  %v7928_v49 = vcombine.low %v108_v38, %v116_v39  ;;  %v140_v54 = vld [vmem:[#allocation5 + $0x138] sm:$0xff]  ;;  %v7944_v57 = vcombine.low %v124_v46, %v132_v47 }
 0x1bc   :  { %3659 = vmatpush1.bf16.msra.mxu0 %v8290_v17  ;;  %3745 = vmatpush1.bf16.msra.mxu1 %v8292_v20  ;;  %v8389_v6 = vcombine.high %v570_v1, %v578_v2  ;;  %v586_v9 = vld [vmem:[#allocation5 + $0xf28] sm:$0xff]  ;;  %v8388_v13 = vcombine.low %v570_v1, %v578_v2  ;;  %v8403_v17 = vcombine.high %v585_v7, %v593_v8  ;;  %v148_v55 = vld [vmem:[#allocation5 + $0x178] sm:$0xff] }
 0x1bd   :  { %3660 = vmatprep.subr.bf16.mxu0 %v8307_v21  ;;  %3746 = vmatprep.subr.bf16.mxu1 %v8309_v22  ;;  %v594_v11 = vld [vmem:[#allocation5 + $0xf68] sm:$0xff]  ;;  %v601_v21 = vld [vmem:[#allocation5 + $0xfa0] sm:$0xff]  ;;  %v156_v63 = vld [vmem:[#allocation5 + $0x1b8] sm:$0xff]  ;;  %v7960_v2 = vcombine.low %v140_v54, %v148_v55 }
 0x1be   :  { %v8405_v20 = vcombine.high %v586_v9, %v594_v11  ;;  %v609_v22 = vld [vmem:[#allocation5 + $0xfe0] sm:$0xff]  ;;  %v602_v23 = vld [vmem:[#allocation5 + $0xfa8] sm:$0xff]  ;;  %v8404_v27 = vcombine.low %v586_v9, %v594_v11  ;;  %v164_v0 = vld [vmem:[#allocation5 + $0x1f8] sm:$0xff] }
 0x1bf   :  { %v610_v24 = vld [vmem:[#allocation5 + $0xfe8] sm:$0xff]  ;;  %v8418_v40 = vcombine.low %v601_v21, %v609_v22  ;;  %v172_v7 = vld [vmem:[#allocation5 + $0x238] sm:$0xff]  ;;  %v7976_v11 = vcombine.low %v156_v63, %v164_v0 }
 0x1c0   :  { %3661 = vmatpush1.bf16.msra.mxu0 %v8306_v30  ;;  %3747 = vmatpush1.bf16.msra.mxu1 %v8308_v34  ;;  %v8419_v30 = vcombine.high %v601_v21, %v609_v22  ;;  %v8421_v34 = vcombine.high %v602_v23, %v610_v24  ;;  %v8420_v41 = vcombine.low %v602_v23, %v610_v24  ;;  %v180_v8 = vld [vmem:[#allocation5 + $0x278] sm:$0xff] }
 0x1c1   :  { %3662 = vmatprep.subr.bf16.mxu0 %v8323_v35  ;;  %3748 = vmatprep.subr.bf16.mxu1 %v8325_v36  ;;  %v107_v35 = vld [vmem:[#allocation5 + $0x30] sm:$0xff]  ;;  %v196_v21 = vld [vmem:[#allocation5 + $0x2f8] sm:$0xff]  ;;  %v7992_v23 = vcombine.low %v172_v7, %v180_v8 }
 0x1c2   :  { %v115_v36 = vld [vmem:[#allocation5 + $0x70] sm:$0xff] }
 0x1c3   :  { %v7926_v48 = vcombine.low %v107_v35, %v115_v36 }
 0x1c4   :  { %3663 = vmatpush1.bf16.msra.mxu0 %v8322_v42  ;;  %3749 = vmatpush1.bf16.msra.mxu1 %v8324_v43  ;;  %v7927_v42 = vcombine.high %v107_v35, %v115_v36  ;;  %v7929_v43 = vcombine.high %v108_v38, %v116_v39  ;;  %v212_v35 = vld [vmem:[#allocation5 + $0x378] sm:$0xff] }
 0x1c5   :  { %3664 = vmatprep.subr.bf16.mxu0 %v8339_v44  ;;  %3750 = vmatprep.subr.bf16.mxu1 %v8341_v45  ;;  %v123_v44 = vld [vmem:[#allocation5 + $0xb0] sm:$0xff] }
 0x1c6   :  { %v131_v45 = vld [vmem:[#allocation5 + $0xf0] sm:$0xff] }
 0x1c7   :  { %v7942_v56 = vcombine.low %v123_v44, %v131_v45 }
 0x1c8   :  { %3665 = vmatpush1.bf16.msra.mxu0 %v8338_v50  ;;  %3751 = vmatpush1.bf16.msra.mxu1 %v8340_v51  ;;  %v7943_v50 = vcombine.high %v123_v44, %v131_v45  ;;  %v7945_v51 = vcombine.high %v124_v46, %v132_v47  ;;  %v228_v44 = vld [vmem:[#allocation5 + $0x3f8] sm:$0xff] }
 0x1c9   :  { %3666 = vmatprep.subr.bf16.mxu0 %v8355_v52  ;;  %3752 = vmatprep.subr.bf16.mxu1 %v8357_v53  ;;  %v139_v52 = vld [vmem:[#allocation5 + $0x130] sm:$0xff] }
 0x1ca   :  { %v147_v53 = vld [vmem:[#allocation5 + $0x170] sm:$0xff] }
 0x1cb   :  { %v7958_v1 = vcombine.low %v139_v52, %v147_v53 }
 0x1cc   :  { %3667 = vmatpush1.bf16.msra.mxu0 %v8354_v59  ;;  %3753 = vmatpush1.bf16.msra.mxu1 %v8356_v60  ;;  %v7959_v59 = vcombine.high %v139_v52, %v147_v53  ;;  %v7961_v60 = vcombine.high %v140_v54, %v148_v55  ;;  %v244_v52 = vld [vmem:[#allocation5 + $0x478] sm:$0xff] }
 0x1cd   :  { %3668 = vmatprep.subr.bf16.mxu0 %v8371_v61  ;;  %3754 = vmatprep.subr.bf16.mxu1 %v8373_v62  ;;  %v155_v61 = vld [vmem:[#allocation5 + $0x1b0] sm:$0xff] }
 0x1ce   :  { %v163_v62 = vld [vmem:[#allocation5 + $0x1f0] sm:$0xff] }
 0x1cf   :  { %v7974_v9 = vcombine.low %v155_v61, %v163_v62 }
 0x1d0   :  { %3669 = vmatpush1.bf16.msra.mxu0 %v8370_v3  ;;  %3755 = vmatpush1.bf16.msra.mxu1 %v8372_v4  ;;  %v7975_v3 = vcombine.high %v155_v61, %v163_v62  ;;  %v7977_v4 = vcombine.high %v156_v63, %v164_v0  ;;  %v260_v61 = vld [vmem:[#allocation5 + $0x4f8] sm:$0xff] }
 0x1d1   :  { %3670 = vmatprep.subr.bf16.mxu0 %v8387_v5  ;;  %3756 = vmatprep.subr.bf16.mxu1 %v8389_v6  ;;  %v171_v5 = vld [vmem:[#allocation5 + $0x230] sm:$0xff] }
 0x1d2   :  { %v179_v6 = vld [vmem:[#allocation5 + $0x270] sm:$0xff] }
 0x1d3   :  { %v7990_v22 = vcombine.low %v171_v5, %v179_v6 }
 0x1d4   :  { %3671 = vmatpush1.bf16.msra.mxu0 %v8386_v12  ;;  %3757 = vmatpush1.bf16.msra.mxu1 %v8388_v13  ;;  %v7991_v12 = vcombine.high %v171_v5, %v179_v6  ;;  %v187_v13 = vld [vmem:[#allocation5 + $0x2b0] sm:$0xff]  ;;  %v276_v5 = vld [vmem:[#allocation5 + $0x578] sm:$0xff] }
 0x1d5   :  { %3672 = vmatprep.subr.bf16.mxu0 %v8403_v17  ;;  %3758 = vmatprep.subr.bf16.mxu1 %v8405_v20  ;;  %v195_v17 = vld [vmem:[#allocation5 + $0x2f0] sm:$0xff]  ;;  %v188_v20 = vld [vmem:[#allocation5 + $0x2b8] sm:$0xff] }
 0x1d6   :  { %v8007_v24 = vcombine.high %v187_v13, %v195_v17  ;;  %v8006_v36 = vcombine.low %v187_v13, %v195_v17  ;;  %v8008_v38 = vcombine.low %v188_v20, %v196_v21  ;;  %v292_v13 = vld [vmem:[#allocation5 + $0x5f8] sm:$0xff] }
 0x1d8   :  { %3673 = vmatpush1.bf16.msra.mxu0 %v8402_v26  ;;  %3759 = vmatpush1.bf16.msra.mxu1 %v8404_v27  ;;  %v8009_v26 = vcombine.high %v188_v20, %v196_v21  ;;  %v203_v27 = vld [vmem:[#allocation5 + $0x330] sm:$0xff] }
 0x1d9   :  { %3674 = vmatprep.subr.bf16.mxu0 %v8419_v30  ;;  %3760 = vmatprep.subr.bf16.mxu1 %v8421_v34  ;;  %v211_v30 = vld [vmem:[#allocation5 + $0x370] sm:$0xff]  ;;  %v204_v34 = vld [vmem:[#allocation5 + $0x338] sm:$0xff] }
 0x1da   :  { %v8023_v39 = vcombine.high %v203_v27, %v211_v30  ;;  %v8022_v45 = vcombine.low %v203_v27, %v211_v30  ;;  %v8024_v46 = vcombine.low %v204_v34, %v212_v35  ;;  %v308_v27 = vld [vmem:[#allocation5 + $0x678] sm:$0xff] }
 0x1dc   :  { %3675 = vmatpush1.bf16.msra.mxu0 %v8418_v40  ;;  %3761 = vmatpush1.bf16.msra.mxu1 %v8420_v41  ;;  %v8025_v40 = vcombine.high %v204_v34, %v212_v35  ;;  %v219_v41 = vld [vmem:[#allocation5 + $0x3b0] sm:$0xff] }
 0x1dd   :  { %3773 = vmatprep.subr.bf16.mxu0 %v7927_v42  ;;  %3859 = vmatprep.subr.bf16.mxu1 %v7929_v43  ;;  %v227_v42 = vld [vmem:[#allocation5 + $0x3f0] sm:$0xff]  ;;  %v220_v43 = vld [vmem:[#allocation5 + $0x3b8] sm:$0xff] }
 0x1de   :  { %v8039_v47 = vcombine.high %v219_v41, %v227_v42  ;;  %v8038_v53 = vcombine.low %v219_v41, %v227_v42  ;;  %v8040_v54 = vcombine.low %v220_v43, %v228_v44  ;;  %v324_v41 = vld [vmem:[#allocation5 + $0x6f8] sm:$0xff] }
 0x1df   :  { %3677 = vmatmul.mubr.bf16.vlgmr.msra.gmra.mrb[8].mxu0 %v10135_v28  ;;  %3763 = vmatmul.mubr.bf16.vlgmr.msra.gmra.mrb[8].mxu1 %v10135_v28 }
 0x1e0   :  { %3774 = vmatpush1.bf16.msra.mxu0 %v7926_v48  ;;  %3860 = vmatpush1.bf16.msra.mxu1 %v7928_v49  ;;  %v8041_v48 = vcombine.high %v220_v43, %v228_v44  ;;  %v235_v49 = vld [vmem:[#allocation5 + $0x430] sm:$0xff] }
 0x1e1   :  { %3775 = vmatprep.subr.bf16.mxu0 %v7943_v50  ;;  %3861 = vmatprep.subr.bf16.mxu1 %v7945_v51  ;;  %v243_v50 = vld [vmem:[#allocation5 + $0x470] sm:$0xff]  ;;  %v236_v51 = vld [vmem:[#allocation5 + $0x438] sm:$0xff] }
 0x1e2   :  { %3805 = vmatprep.mubr.bf16.mxu0 %v10123_v58  ;;  %3891 = vmatprep.mubr.bf16.mxu1 %v10123_v58  ;;  %v7993_v58 = vcombine.high %v172_v7, %v180_v8  ;;  %v8055_v55 = vcombine.high %v235_v49, %v243_v50  ;;  %v8054_v62 = vcombine.low %v235_v49, %v243_v50  ;;  %v340_v49 = vld [vmem:[#allocation5 + $0x778] sm:$0xff] }
 0x1e3   :  { %v8056_v63 = vcombine.low %v236_v51, %v244_v52 }
 0x1e4   :  { %3776 = vmatpush1.bf16.msra.mxu0 %v7942_v56  ;;  %3862 = vmatpush1.bf16.msra.mxu1 %v7944_v57  ;;  %v8057_v56 = vcombine.high %v236_v51, %v244_v52  ;;  %v251_v57 = vld [vmem:[#allocation5 + $0x4b0] sm:$0xff] }
 0x1e5   :  { %3777 = vmatprep.subr.bf16.mxu0 %v7959_v59  ;;  %3863 = vmatprep.subr.bf16.mxu1 %v7961_v60  ;;  %v259_v59 = vld [vmem:[#allocation5 + $0x4f0] sm:$0xff]  ;;  %v252_v60 = vld [vmem:[#allocation5 + $0x4b8] sm:$0xff] }
 0x1e6   :  { %v8071_v0 = vcombine.high %v251_v57, %v259_v59  ;;  %v8070_v6 = vcombine.low %v251_v57, %v259_v59  ;;  %v8072_v7 = vcombine.low %v252_v60, %v260_v61  ;;  %v356_v57 = vld [vmem:[#allocation5 + $0x7f8] sm:$0xff] }
 0x1e8   :  { %3778 = vmatpush1.bf16.msra.mxu0 %v7958_v1  ;;  %3864 = vmatpush1.bf16.msra.mxu1 %v7960_v2  ;;  %v8073_v1 = vcombine.high %v252_v60, %v260_v61  ;;  %v267_v2 = vld [vmem:[#allocation5 + $0x530] sm:$0xff] }
 0x1e9   :  { %3779 = vmatprep.subr.bf16.mxu0 %v7975_v3  ;;  %3865 = vmatprep.subr.bf16.mxu1 %v7977_v4  ;;  %v275_v3 = vld [vmem:[#allocation5 + $0x570] sm:$0xff]  ;;  %v268_v4 = vld [vmem:[#allocation5 + $0x538] sm:$0xff] }
 0x1ea   :  { %v8087_v8 = vcombine.high %v267_v2, %v275_v3  ;;  %v8086_v17 = vcombine.low %v267_v2, %v275_v3  ;;  %v8088_v20 = vcombine.low %v268_v4, %v276_v5  ;;  %v372_v2 = vld [vmem:[#allocation5 + $0x878] sm:$0xff] }
 0x1ec   :  { %3780 = vmatpush1.bf16.msra.mxu0 %v7974_v9  ;;  %3866 = vmatpush1.bf16.msra.mxu1 %v7976_v11  ;;  %v8089_v9 = vcombine.high %v268_v4, %v276_v5  ;;  %v283_v11 = vld [vmem:[#allocation5 + $0x5b0] sm:$0xff] }
 0x1ed   :  { %3781 = vmatprep.subr.bf16.mxu0 %v7991_v12  ;;  %3867 = vmatprep.subr.bf16.mxu1 %v7993_v58  ;;  %v291_v12 = vld [vmem:[#allocation5 + $0x5f0] sm:$0xff]  ;;  %v284_v58 = vld [vmem:[#allocation5 + $0x5b8] sm:$0xff] }
 0x1ee   :  { %v8103_v21 = vcombine.high %v283_v11, %v291_v12  ;;  %v8102_v30 = vcombine.low %v283_v11, %v291_v12  ;;  %v8104_v34 = vcombine.low %v284_v58, %v292_v13  ;;  %v388_v11 = vld [vmem:[#allocation5 + $0x8f8] sm:$0xff] }
 0x1f0   :  { %3782 = vmatpush1.bf16.msra.mxu0 %v7990_v22  ;;  %3868 = vmatpush1.bf16.msra.mxu1 %v7992_v23  ;;  %v8105_v22 = vcombine.high %v284_v58, %v292_v13  ;;  %v299_v23 = vld [vmem:[#allocation5 + $0x630] sm:$0xff] }
 0x1f1   :  { %3783 = vmatprep.subr.bf16.mxu0 %v8007_v24  ;;  %3869 = vmatprep.subr.bf16.mxu1 %v8009_v26  ;;  %v307_v24 = vld [vmem:[#allocation5 + $0x670] sm:$0xff]  ;;  %v300_v26 = vld [vmem:[#allocation5 + $0x638] sm:$0xff] }
 0x1f2   :  { %v8119_v35 = vcombine.high %v299_v23, %v307_v24  ;;  %v8118_v42 = vcombine.low %v299_v23, %v307_v24  ;;  %v8120_v43 = vcombine.low %v300_v26, %v308_v27  ;;  %v404_v23 = vld [vmem:[#allocation5 + $0x978] sm:$0xff] }
 0x1f4   :  { %3784 = vmatpush1.bf16.msra.mxu0 %v8006_v36  ;;  %3870 = vmatpush1.bf16.msra.mxu1 %v8008_v38  ;;  %v8121_v36 = vcombine.high %v300_v26, %v308_v27  ;;  %v315_v38 = vld [vmem:[#allocation5 + $0x6b0] sm:$0xff] }
 0x1f5   :  { %3785 = vmatprep.subr.bf16.mxu0 %v8023_v39  ;;  %3871 = vmatprep.subr.bf16.mxu1 %v8025_v40  ;;  %v323_v39 = vld [vmem:[#allocation5 + $0x6f0] sm:$0xff]  ;;  %v316_v40 = vld [vmem:[#allocation5 + $0x6b8] sm:$0xff] }
 0x1f6   :  { %v8135_v44 = vcombine.high %v315_v38, %v323_v39  ;;  %v8134_v50 = vcombine.low %v315_v38, %v323_v39  ;;  %v8136_v51 = vcombine.low %v316_v40, %v324_v41  ;;  %v420_v38 = vld [vmem:[#allocation5 + $0x9f8] sm:$0xff] }
 0x1f8   :  { %3786 = vmatpush1.bf16.msra.mxu0 %v8022_v45  ;;  %3872 = vmatpush1.bf16.msra.mxu1 %v8024_v46  ;;  %v8137_v45 = vcombine.high %v316_v40, %v324_v41  ;;  %v331_v46 = vld [vmem:[#allocation5 + $0x730] sm:$0xff] }
 0x1f9   :  { %3787 = vmatprep.subr.bf16.mxu0 %v8039_v47  ;;  %3873 = vmatprep.subr.bf16.mxu1 %v8041_v48  ;;  %v339_v47 = vld [vmem:[#allocation5 + $0x770] sm:$0xff]  ;;  %v332_v48 = vld [vmem:[#allocation5 + $0x738] sm:$0xff] }
 0x1fa   :  { %v8151_v52 = vcombine.high %v331_v46, %v339_v47  ;;  %v8150_v59 = vcombine.low %v331_v46, %v339_v47  ;;  %v8152_v60 = vcombine.low %v332_v48, %v340_v49 }
 0x1fc   :  { %3788 = vmatpush1.bf16.msra.mxu0 %v8038_v53  ;;  %3874 = vmatpush1.bf16.msra.mxu1 %v8040_v54  ;;  %v8153_v53 = vcombine.high %v332_v48, %v340_v49  ;;  %v347_v54 = vld [vmem:[#allocation5 + $0x7b0] sm:$0xff] }
 0x1fd   :  { %3789 = vmatprep.subr.bf16.mxu0 %v8055_v55  ;;  %3875 = vmatprep.subr.bf16.mxu1 %v8057_v56  ;;  %v355_v55 = vld [vmem:[#allocation5 + $0x7f0] sm:$0xff]  ;;  %v348_v56 = vld [vmem:[#allocation5 + $0x7b8] sm:$0xff] }
 0x1fe   :  { %v8167_v61 = vcombine.high %v347_v54, %v355_v55  ;;  %v8166_v3 = vcombine.low %v347_v54, %v355_v55  ;;  %v8168_v4 = vcombine.low %v348_v56, %v356_v57  ;;  %v443_v49 = vld [vmem:[#allocation5 + $0xab0] sm:$0xff]  ;;  %v635_v55 = vsub.s32 4, %v10153_v19 }
 0x200   :  { %3790 = vmatpush1.bf16.msra.mxu0 %v8054_v62  ;;  %3876 = vmatpush1.bf16.msra.mxu1 %v8056_v63  ;;  %v8169_v62 = vcombine.high %v348_v56, %v356_v57  ;;  %v363_v63 = vld [vmem:[#allocation5 + $0x830] sm:$0xff]  ;;  %v643_v57 = vsub.s32 6, %v10153_v19 }
 0x201   :  { %3791 = vmatprep.subr.bf16.mxu0 %v8071_v0  ;;  %3877 = vmatprep.subr.bf16.mxu1 %v8073_v1  ;;  %v371_v0 = vld [vmem:[#allocation5 + $0x870] sm:$0xff]  ;;  %v364_v1 = vld [vmem:[#allocation5 + $0x838] sm:$0xff] }
 0x202   :  { %v8183_v5 = vcombine.high %v363_v63, %v371_v0  ;;  %v8182_v12 = vcombine.low %v363_v63, %v371_v0  ;;  %v8184_v58 = vcombine.low %v364_v1, %v372_v2  ;;  %v647_v63 = vsub.s32 7, %v10153_v19  ;;  %v460_v0 = vld [vmem:[#allocation5 + $0xb38] sm:$0xff] }
 0x204   :  { %3792 = vmatpush1.bf16.msra.mxu0 %v8070_v6  ;;  %3878 = vmatpush1.bf16.msra.mxu1 %v8072_v7  ;;  %v8185_v6 = vcombine.high %v364_v1, %v372_v2  ;;  %v379_v7 = vld [vmem:[#allocation5 + $0x8b0] sm:$0xff]  ;;  %v468_v1 = vld [vmem:[#allocation5 + $0xb78] sm:$0xff] }
 0x205   :  { %3793 = vmatprep.subr.bf16.mxu0 %v8087_v8  ;;  %3879 = vmatprep.subr.bf16.mxu1 %v8089_v9  ;;  %v387_v8 = vld [vmem:[#allocation5 + $0x8f0] sm:$0xff]  ;;  %v380_v9 = vld [vmem:[#allocation5 + $0x8b8] sm:$0xff] }
 0x206   :  { %v8199_v13 = vcombine.high %v379_v7, %v387_v8  ;;  %v8198_v24 = vcombine.low %v379_v7, %v387_v8  ;;  %v8200_v26 = vcombine.low %v380_v9, %v388_v11  ;;  %v483_v7 = vld [vmem:[#allocation5 + $0xbf0] sm:$0xff] }
 0x208   :  { %3794 = vmatpush1.bf16.msra.mxu0 %v8086_v17  ;;  %3880 = vmatpush1.bf16.msra.mxu1 %v8088_v20  ;;  %v8201_v17 = vcombine.high %v380_v9, %v388_v11  ;;  %v395_v20 = vld [vmem:[#allocation5 + $0x930] sm:$0xff]  ;;  %v644_v9 = vrot.slane %v10158_v31, %v643_v57 }
 0x209   :  { %3795 = vmatprep.subr.bf16.mxu0 %v8103_v21  ;;  %3881 = vmatprep.subr.bf16.mxu1 %v8105_v22  ;;  %v403_v21 = vld [vmem:[#allocation5 + $0x970] sm:$0xff]  ;;  %v396_v22 = vld [vmem:[#allocation5 + $0x938] sm:$0xff] }
 0x20a   :  { %v8215_v27 = vcombine.high %v395_v20, %v403_v21  ;;  %v8214_v39 = vcombine.low %v395_v20, %v403_v21  ;;  %v648_v21 = vrot.slane %v10158_v31, %v647_v63 }
 0x20c   :  { %3796 = vmatpush1.bf16.msra.mxu0 %v8102_v30  ;;  %3882 = vmatpush1.bf16.msra.mxu1 %v8104_v34  ;;  %v8217_v30 = vcombine.high %v396_v22, %v404_v23  ;;  %v411_v34 = vld [vmem:[#allocation5 + $0x9b0] sm:$0xff] }
 0x20d   :  { %3797 = vmatprep.subr.bf16.mxu0 %v8119_v35  ;;  %3883 = vmatprep.subr.bf16.mxu1 %v8121_v36  ;;  %v419_v35 = vld [vmem:[#allocation5 + $0x9f0] sm:$0xff]  ;;  %v412_v36 = vld [vmem:[#allocation5 + $0x9b8] sm:$0xff] }
 0x20e   :  { %v8231_v40 = vcombine.high %v411_v34, %v419_v35  ;;  %v8233_v41 = vcombine.high %v412_v36, %v420_v38  ;;  %v8230_v46 = vcombine.low %v411_v34, %v419_v35  ;;  %v8232_v47 = vcombine.low %v412_v36, %v420_v38 }
 0x210   :  { %3798 = vmatpush1.bf16.msra.mxu0 %v8118_v42  ;;  %3884 = vmatpush1.bf16.msra.mxu1 %v8120_v43  ;;  %v427_v42 = vld [vmem:[#allocation5 + $0xa30] sm:$0xff] }
 0x211   :  { %3799 = vmatprep.subr.bf16.mxu0 %v8135_v44  ;;  %3885 = vmatprep.subr.bf16.mxu1 %v8137_v45  ;;  %v435_v43 = vld [vmem:[#allocation5 + $0xa70] sm:$0xff]  ;;  %v428_v44 = vld [vmem:[#allocation5 + $0xa38] sm:$0xff] }
 0x212   :  { %v436_v45 = vld [vmem:[#allocation5 + $0xa78] sm:$0xff]  ;;  %v8247_v48 = vcombine.high %v427_v42, %v435_v43 }
 0x213   :  { %v8248_v54 = vcombine.low %v428_v44, %v436_v45 }
 0x214   :  { %3800 = vmatpush1.bf16.msra.mxu0 %v8134_v50  ;;  %3886 = vmatpush1.bf16.msra.mxu1 %v8136_v51  ;;  %v451_v50 = vld [vmem:[#allocation5 + $0xaf0] sm:$0xff]  ;;  %v444_v51 = vld [vmem:[#allocation5 + $0xab8] sm:$0xff] }
 0x215   :  { %3801 = vmatprep.subr.bf16.mxu0 %v8151_v52  ;;  %3887 = vmatprep.subr.bf16.mxu1 %v8153_v53  ;;  %v452_v52 = vld [vmem:[#allocation5 + $0xaf8] sm:$0xff]  ;;  %v8246_v53 = vcombine.low %v427_v42, %v435_v43  ;;  %v8263_v56 = vcombine.high %v443_v49, %v451_v50  ;;  %v8262_v2 = vcombine.low %v443_v49, %v451_v50  ;;  %v491_v43 = vld [vmem:[#allocation5 + $0xc30] sm:$0xff] }
 0x218   :  { %3802 = vmatpush1.bf16.msra.mxu0 %v8150_v59  ;;  %3888 = vmatpush1.bf16.msra.mxu1 %v8152_v60  ;;  %v639_v59 = vsub.s32 5, %v10153_v19  ;;  %v8265_v60 = vcombine.high %v444_v51, %v452_v52 }
 0x219   :  { %3803 = vmatprep.subr.bf16.mxu0 %v8167_v61  ;;  %3889 = vmatprep.subr.bf16.mxu1 %v8169_v62  ;;  %v459_v61 = vld [vmem:[#allocation5 + $0xb30] sm:$0xff] }
 0x21a   :  { %v467_v62 = vld [vmem:[#allocation5 + $0xb70] sm:$0xff]  ;;  %v640_v11 = vrot.slane %v10158_v31, %v639_v59 }
 0x21c   :  { %3804 = vmatpush1.bf16.msra.mxu0 %v8166_v3  ;;  %3890 = vmatpush1.bf16.msra.mxu1 %v8168_v4  ;;  %v636_v3 = vrot.slane %v10158_v31, %v635_v55  ;;  %v8264_v4 = vcombine.low %v444_v51, %v452_v52 }
 0x21d   :  { %3816 = vmatprep.subr.bf16.mxu0 %v8183_v5  ;;  %3902 = vmatprep.subr.bf16.mxu1 %v8185_v6  ;;  %v8279_v5 = vcombine.high %v459_v61, %v467_v62  ;;  %v475_v6 = vld [vmem:[#allocation5 + $0xbb0] sm:$0xff] }
 0x21e   :  { %v8294_v51 = vcombine.low %v475_v6, %v483_v7 }
 0x21f   :  { %3806 = vmatmul.mubr.bf16.vlgmr.msra.gmra.mrb[12].mxu0 %v10127_v15  ;;  %3892 = vmatmul.mubr.bf16.vlgmr.msra.gmra.mrb[12].mxu1 %v10127_v15  ;;  %v8216_v15 = vcombine.low %v396_v22, %v404_v23  ;;  %v3962_v22 = vmul.bf16 %v10181_v16, %v10181_v16 }
 0x220   :  { %3817 = vmatpush1.bf16.msra.mxu0 %v8182_v12  ;;  %3903 = vmatpush1.bf16.msra.mxu1 %v8184_v58  ;;  %v8281_v12 = vcombine.high %v460_v0, %v468_v1  ;;  %v476_v58 = vld [vmem:[#allocation5 + $0xbb8] sm:$0xff] }
 0x221   :  { %3818 = vmatprep.subr.bf16.mxu0 %v8199_v13  ;;  %3904 = vmatprep.subr.bf16.mxu1 %v8201_v17  ;;  %v484_v13 = vld [vmem:[#allocation5 + $0xbf8] sm:$0xff] }
 0x222   :  { %3848 = vmatprep.mubr.bf16.mxu0 %v10129_v25  ;;  %3934 = vmatprep.mubr.bf16.mxu1 %v10129_v25  ;;  %v8249_v25 = vcombine.high %v428_v44, %v436_v45  ;;  %v499_v44 = vld [vmem:[#allocation5 + $0xc70] sm:$0xff]  ;;  %v8296_v52 = vcombine.low %v476_v58, %v484_v13 }
 0x224   :  { %3819 = vmatpush1.bf16.msra.mxu0 %v8198_v24  ;;  %3905 = vmatpush1.bf16.msra.mxu1 %v8200_v26  ;;  %v8278_v26 = vcombine.low %v459_v61, %v467_v62  ;;  %v507_v61 = vld [vmem:[#allocation5 + $0xcb0] sm:$0xff] }
 0x225   :  { %3820 = vmatprep.subr.bf16.mxu0 %v8215_v27  ;;  %3906 = vmatprep.subr.bf16.mxu1 %v8217_v30  ;;  %v8280_v27 = vcombine.low %v460_v0, %v468_v1  ;;  %v8295_v30 = vcombine.high %v475_v6, %v483_v7  ;;  %v515_v62 = vld [vmem:[#allocation5 + $0xcf0] sm:$0xff]  ;;  %v508_v0 = vld [vmem:[#allocation5 + $0xcb8] sm:$0xff] }
 0x226   :  { %v516_v1 = vld [vmem:[#allocation5 + $0xcf8] sm:$0xff]  ;;  %v523_v7 = vld [vmem:[#allocation5 + $0xd30] sm:$0xff] }
 0x227   :  { %v8329_v6 = vcombine.high %v508_v0, %v516_v1 }
 0x228   :  { %3821 = vmatpush1.bf16.msra.mxu0 %v8214_v39  ;;  %3907 = vmatpush1.bf16.msra.mxu1 %v8216_v15  ;;  %v8297_v39 = vcombine.high %v476_v58, %v484_v13  ;;  %v8328_v58 = vcombine.low %v508_v0, %v516_v1 }
 0x229   :  { %3822 = vmatprep.subr.bf16.mxu0 %v8231_v40  ;;  %3908 = vmatprep.subr.bf16.mxu1 %v8233_v41 }
 0x22c   :  { %3823 = vmatpush1.bf16.msra.mxu0 %v8230_v46  ;;  %3909 = vmatpush1.bf16.msra.mxu1 %v8232_v47 }
 0x22d   :  { %3824 = vmatprep.subr.bf16.mxu0 %v8247_v48  ;;  %3910 = vmatprep.subr.bf16.mxu1 %v8249_v25  ;;  %v492_v48 = vld [vmem:[#allocation5 + $0xc38] sm:$0xff] }
 0x22e   :  { %v500_v25 = vld [vmem:[#allocation5 + $0xc78] sm:$0xff] }
 0x230   :  { %3825 = vmatpush1.bf16.msra.mxu0 %v8246_v53  ;;  %3911 = vmatpush1.bf16.msra.mxu1 %v8248_v54  ;;  %v3978_v53 = vmul.bf16 %v3962_v22, %v10181_v16  ;;  %v547_v22 = vld [vmem:[#allocation5 + $0xdf0] sm:$0xff] }
 0x231   :  { %3826 = vmatprep.subr.bf16.mxu0 %v8263_v56  ;;  %3912 = vmatprep.subr.bf16.mxu1 %v8265_v60  ;;  %v8311_v56 = vcombine.high %v491_v43, %v499_v44  ;;  %v8313_v60 = vcombine.high %v492_v48, %v500_v25 }
 0x232   :  { %v3506_v8 = vpop.f32.mrb[4].mxu0  ;;  %v3592_v17 = vpop.f32.mrb[4].mxu1 }
 0x233   :  { %v3508_v20 = vpop.f32.mrb[5].mxu0  ;;  %v3594_v23 = vpop.f32.mrb[5].mxu1  ;;  %v8946_v34 = vadd.f32 %v3506_v8, %v636_v3  ;;  %v8950_v15 = vadd.f32 %v3592_v17, %v644_v9  ;;  %v531_v8 = vld [vmem:[#allocation5 + $0xd70] sm:$0xff] }
 0x234   :  { %v3510_v24 = vpop.f32.mrb[6].mxu0  ;;  %3827 = vmatpush1.bf16.msra.mxu0 %v8262_v2  ;;  %v3596_v36 = vpop.f32.mrb[6].mxu1  ;;  %3913 = vmatpush1.bf16.msra.mxu1 %v8264_v4  ;;  %v8947_v40 = vadd.f32 %v3508_v20, %v640_v11  ;;  %v8951_v45 = vadd.f32 %v3594_v23, %v648_v21  ;;  %v8310_v2 = vcombine.low %v491_v43, %v499_v44  ;;  %v540_v23 = vld [vmem:[#allocation5 + $0xdb8] sm:$0xff]  ;;  %v571_v43 = vld [vmem:[#allocation5 + $0xeb0] sm:$0xff] }
 0x235   :  { %v8948_v35 = vadd.f32 %v3510_v24, %v636_v3  ;;  %v3512_v38 = vpop.f32.mrb[7].mxu0  ;;  %3828 = vmatprep.subr.bf16.mxu0 %v8279_v5  ;;  %v8952_v41 = vadd.f32 %v3596_v36, %v644_v9  ;;  %v3598_v42 = vpop.f32.mrb[7].mxu1  ;;  %3914 = vmatprep.subr.bf16.mxu1 %v8281_v12  ;;  %v3994_v3 = vmul.bf16 1027030327, %v3978_v53  ;;  %v8312_v4 = vcombine.low %v492_v48, %v500_v25  ;;  %v524_v9 = vld [vmem:[#allocation5 + $0xd38] sm:$0xff]  ;;  %v555_v36 = vld [vmem:[#allocation5 + $0xe30] sm:$0xff] }
 0x236   :  { %v8949_v31 = vadd.f32 %v3512_v38, %v640_v11  ;;  %v8953_v47 = vadd.f32 %v3598_v42, %v648_v21  ;;  %v8327_v5 = vcombine.high %v507_v61, %v515_v62  ;;  %v532_v11 = vld [vmem:[#allocation5 + $0xd78] sm:$0xff]  ;;  %v8326_v12 = vcombine.low %v507_v61, %v515_v62  ;;  %v539_v21 = vld [vmem:[#allocation5 + $0xdb0] sm:$0xff] }
 0x237   :  { %v10211_v46 = vpack.c.bf16 %v8948_v35, %v8946_v34  ;;  %v10213_v49 = vpack.c.bf16 %v8952_v41, %v8950_v15  ;;  %v8343_v13 = vcombine.high %v523_v7, %v531_v8  ;;  %v4010_v17 = vadd.bf16 %v3994_v3, %v10181_v16  ;;  %v548_v24 = vld [vmem:[#allocation5 + $0xdf8] sm:$0xff]  ;;  %v563_v38 = vld [vmem:[#allocation5 + $0xe70] sm:$0xff] }
 0x238   :  { %v10215_v50 = vpack.c.bf16 %v8949_v31, %v8947_v40  ;;  %3829 = vmatpush1.bf16.msra.mxu0 %v8278_v26  ;;  %v10218_v54 = vpack.c.bf16 %v8953_v47, %v8951_v45  ;;  %3915 = vmatpush1.bf16.msra.mxu1 %v8280_v27  ;;  %v8345_v20 = vcombine.high %v524_v9, %v532_v11  ;;  %v564_v15 = vld [vmem:[#allocation5 + $0xe78] sm:$0xff]  ;;  %v579_v44 = vld [vmem:[#allocation5 + $0xef0] sm:$0xff] }
 0x239   :  { %3830 = vmatprep.subr.bf16.mxu0 %v8295_v30  ;;  %3916 = vmatprep.subr.bf16.mxu1 %v8297_v39  ;;  %v8342_v26 = vcombine.low %v523_v7, %v531_v8  ;;  %v8344_v27 = vcombine.low %v524_v9, %v532_v11  ;;  %v8359_v30 = vcombine.high %v539_v21, %v547_v22  ;;  %v4026_v34 = vmul.bf16 1061961548, %v4010_v17  ;;  %v556_v39 = vld [vmem:[#allocation5 + $0xe38] sm:$0xff]  ;;  %v587_v53 = vld [vmem:[#allocation5 + $0xf30] sm:$0xff] }
 0x23a   :  { %v8361_v35 = vcombine.high %v540_v23, %v548_v24  ;;  %v8358_v40 = vcombine.low %v539_v21, %v547_v22  ;;  %v8360_v41 = vcombine.low %v540_v23, %v548_v24  ;;  %v8375_v31 = vcombine.high %v555_v36, %v563_v38  ;;  %v572_v45 = vld [vmem:[#allocation5 + $0xeb8] sm:$0xff]  ;;  %v603_v3 = vld [vmem:[#allocation5 + $0xfb0] sm:$0xff] }
 0x23b   :  { %9846 = vtanh.bf16 %v4026_v34  ;;  %v8377_v42 = vcombine.high %v556_v39, %v564_v15  ;;  %v580_v47 = vld [vmem:[#allocation5 + $0xef8] sm:$0xff]  ;;  %v8374_v48 = vcombine.low %v555_v36, %v563_v38  ;;  %v8376_v25 = vcombine.low %v556_v39, %v564_v15  ;;  %v9078_v23 = vld [vmem:[#allocation8] ss:$16 sps:$4 sm:$0xff]   ;;  %v9092_v36 = vld [vmem:[#allocation8 + $0x44] ss:$16 sps:$4 sm:$0xff]  }
 0x23c   :  { %3831 = vmatpush1.bf16.msra.mxu0 %v8294_v51  ;;  %3917 = vmatpush1.bf16.msra.mxu1 %v8296_v52  ;;  %v8391_v51 = vcombine.high %v571_v43, %v579_v44  ;;  %v8393_v52 = vcombine.high %v572_v45, %v580_v47  ;;  %v596_v61 = vld [vmem:[#allocation5 + $0xf78] sm:$0xff]  ;;  %v8390_v62 = vcombine.low %v571_v43, %v579_v44  ;;  %v9084_v34 = vld [vmem:[#allocation8 + $0x20] ss:$16 sps:$4 sm:$0xff]  }
 0x23d   :  { %3832 = vmatprep.subr.bf16.mxu0 %v8311_v56  ;;  %3918 = vmatprep.subr.bf16.mxu1 %v8313_v60  ;;  %v595_v56 = vld [vmem:[#allocation5 + $0xf70] sm:$0xff]  ;;  %v588_v60 = vld [vmem:[#allocation5 + $0xf38] sm:$0xff]  ;;  %v8392_v0 = vcombine.low %v572_v45, %v580_v47 }
 0x23e   :  { %v8407_v1 = vcombine.high %v587_v53, %v595_v56  ;;  %v8406_v8 = vcombine.low %v587_v53, %v595_v56  ;;  %v8408_v9 = vcombine.low %v588_v60, %v596_v61  ;;  %v9083_v21 = vld [vmem:[#allocation8 + $0xc] ss:$16 sps:$4 sm:$0xff]   ;;  %v9081_v24 = vld [vmem:[#allocation8 + $0x8] ss:$16 sps:$4 sm:$0xff]   ;;  %v9090_v39 = vld [vmem:[#allocation8 + $0x40] ss:$16 sps:$4 sm:$0xff]   ;;  %v3961_v53 = vmul.bf16 %v10177_v10, %v10177_v10 }
 0x23f   :  { %v9095_v38 = vld [vmem:[#allocation8 + $0x4c] ss:$16 sps:$4 sm:$0xff]   ;;  %v9093_v15 = vld [vmem:[#allocation8 + $0x48] ss:$16 sps:$4 sm:$0xff]   ;;  %v9102_v43 = vld [vmem:[#allocation8 + $0x80] ss:$16 sps:$4 sm:$0xff]  }
 0x240   :  { %3833 = vmatpush1.bf16.msra.mxu0 %v8310_v2  ;;  %3919 = vmatpush1.bf16.msra.mxu1 %v8312_v4  ;;  %v8409_v2 = vcombine.high %v588_v60, %v596_v61  ;;  %v611_v4 = vld [vmem:[#allocation5 + $0xff0] sm:$0xff]  ;;  %v9105_v44 = vld [vmem:[#allocation8 + $0x88] ss:$16 sps:$4 sm:$0xff]   ;;  %v9113_v47 = vld [vmem:[#allocation8 + $0xac] ss:$16 sps:$4 sm:$0xff]   ;;  %v3964_v60 = vmul.bf16 %v10183_v18, %v10183_v18 }
 0x241   :  { %3834 = vmatprep.subr.bf16.mxu0 %v8327_v5  ;;  %3920 = vmatprep.subr.bf16.mxu1 %v8329_v6  ;;  %v604_v5 = vld [vmem:[#allocation5 + $0xfb8] sm:$0xff]  ;;  %v8423_v11 = vcombine.high %v603_v3, %v611_v4  ;;  %v9110_v45 = vld [vmem:[#allocation8 + $0xa4] ss:$16 sps:$4 sm:$0xff]   ;;  %v9114_v56 = vld [vmem:[#allocation8 + $0xc0] ss:$16 sps:$4 sm:$0xff]  }
 0x242   :  { %v612_v6 = vld [vmem:[#allocation5 + $0xff8] sm:$0xff] }
 0x243   :  { %v8424_v17 = vcombine.low %v604_v5, %v612_v6  ;;  %v9117_v61 = vld [vmem:[#allocation8 + $0xc8] ss:$16 sps:$4 sm:$0xff]  }
 0x244   :  { %3835 = vmatpush1.bf16.msra.mxu0 %v8326_v12  ;;  %3921 = vmatpush1.bf16.msra.mxu1 %v8328_v58  ;;  %v8425_v12 = vcombine.high %v604_v5, %v612_v6  ;;  %v9128_v5 = vld [vmem:[#allocation8 + $0x104] ss:$16 sps:$4 sm:$0xff]   ;;  %v9131_v6 = vld [vmem:[#allocation8 + $0x10c] ss:$16 sps:$4 sm:$0xff]  }
 0x245   :  { %3836 = vmatprep.subr.bf16.mxu0 %v8343_v13  ;;  %3922 = vmatprep.subr.bf16.mxu1 %v8345_v20  ;;  %v8422_v13 = vcombine.low %v603_v3, %v611_v4  ;;  %v9080_v20 = vld [vmem:[#allocation8 + $0x4] ss:$16 sps:$4 sm:$0xff]   ;;  %v3980_v3 = vmul.bf16 %v3964_v60, %v10183_v18  ;;  %v9123_v4 = vld [vmem:[#allocation8 + $0xe8] ss:$16 sps:$4 sm:$0xff]   ;;  %v9168_v60 = vld [vmem:[#allocation8 + $0x1e0] ss:$16 sps:$4 sm:$0xff]  }
 0x246   :  { %v9847_v7 = vpop.eup %9846 }
 0x247   :  { %v4058_v58 = vadd.bf16 1065369472, %v9847_v7 }
 0x248   :  { %3837 = vmatpush1.bf16.msra.mxu0 %v8342_v26  ;;  %3923 = vmatpush1.bf16.msra.mxu1 %v8344_v27  ;;  %v9086_v26 = vld [vmem:[#allocation8 + $0x24] ss:$16 sps:$4 sm:$0xff]  }
 0x249   :  { %3838 = vmatprep.subr.bf16.mxu0 %v8359_v30  ;;  %3924 = vmatprep.subr.bf16.mxu1 %v8361_v35  ;;  %v4074_v22 = vmul.bf16 1056980736, %v4058_v58  ;;  %v9089_v30 = vld [vmem:[#allocation8 + $0x2c] ss:$16 sps:$4 sm:$0xff]   ;;  %v9087_v35 = vld [vmem:[#allocation8 + $0x28] ss:$16 sps:$4 sm:$0xff]  }
 0x24a   :  { %v9137_v58 = vld [vmem:[#allocation8 + $0x12c] ss:$16 sps:$4 sm:$0xff]  }
 0x24b   :  { %v4090_v27 = vmul.bf16 %v4074_v22, %v10181_v16  ;;  %v9101_v16 = vld [vmem:[#allocation8 + $0x6c] ss:$16 sps:$4 sm:$0xff]  }
 0x24c   :  { %3839 = vmatpush1.bf16.msra.mxu0 %v8358_v40  ;;  %3925 = vmatpush1.bf16.msra.mxu1 %v8360_v41  ;;  %v9098_v40 = vld [vmem:[#allocation8 + $0x64] ss:$16 sps:$4 sm:$0xff]   ;;  %v9099_v41 = vld [vmem:[#allocation8 + $0x68] ss:$16 sps:$4 sm:$0xff]  }
 0x24d   :  { %3840 = vmatprep.subr.bf16.mxu0 %v8375_v31  ;;  %3926 = vmatprep.subr.bf16.mxu1 %v8377_v42  ;;  %v9104_v31 = vld [vmem:[#allocation8 + $0x84] ss:$16 sps:$4 sm:$0xff]   ;;  %v9107_v42 = vld [vmem:[#allocation8 + $0x8c] ss:$16 sps:$4 sm:$0xff]  }
 0x250   :  { %3841 = vmatpush1.bf16.msra.mxu0 %v8374_v48  ;;  %3927 = vmatpush1.bf16.msra.mxu1 %v8376_v25  ;;  %v9108_v48 = vld [vmem:[#allocation8 + $0xa0] ss:$16 sps:$4 sm:$0xff]   ;;  %v9111_v25 = vld [vmem:[#allocation8 + $0xa8] ss:$16 sps:$4 sm:$0xff]  }
 0x251   :  { %3842 = vmatprep.subr.bf16.mxu0 %v8391_v51  ;;  %3928 = vmatprep.subr.bf16.mxu1 %v8393_v52  ;;  %v9116_v51 = vld [vmem:[#allocation8 + $0xc4] ss:$16 sps:$4 sm:$0xff]   ;;  %v9119_v52 = vld [vmem:[#allocation8 + $0xcc] ss:$16 sps:$4 sm:$0xff]  }
 0x254   :  { %3843 = vmatpush1.bf16.msra.mxu0 %v8390_v62  ;;  %3929 = vmatpush1.bf16.msra.mxu1 %v8392_v0  ;;  %v9122_v62 = vld [vmem:[#allocation8 + $0xe4] ss:$16 sps:$4 sm:$0xff]   ;;  %v9125_v0 = vld [vmem:[#allocation8 + $0xec] ss:$16 sps:$4 sm:$0xff]  }
 0x255   :  { %3844 = vmatprep.subr.bf16.mxu0 %v8407_v1  ;;  %3930 = vmatprep.subr.bf16.mxu1 %v8409_v2  ;;  %v3977_v1 = vmul.bf16 %v3961_v53, %v10177_v10  ;;  %v9120_v2 = vld [vmem:[#allocation8 + $0xe0] ss:$16 sps:$4 sm:$0xff]   ;;  %v9173_v53 = vld [vmem:[#allocation8 + $0x1ec] ss:$16 sps:$4 sm:$0xff]  }
 0x257   :  { %v3993_v7 = vmul.bf16 1027030327, %v3977_v1  ;;  %v9179_v1 = vld [vmem:[#allocation8 + $0x20c] ss:$16 sps:$4 sm:$0xff]  }
 0x258   :  { %3845 = vmatpush1.bf16.msra.mxu0 %v8406_v8  ;;  %3931 = vmatpush1.bf16.msra.mxu1 %v8408_v9  ;;  %v9126_v8 = vld [vmem:[#allocation8 + $0x100] ss:$16 sps:$4 sm:$0xff]   ;;  %v3996_v9 = vmul.bf16 1027030327, %v3980_v3 }
 0x259   :  { %3846 = vmatprep.subr.bf16.mxu0 %v8423_v11  ;;  %3932 = vmatprep.subr.bf16.mxu1 %v8425_v12  ;;  %v9129_v11 = vld [vmem:[#allocation8 + $0x108] ss:$16 sps:$4 sm:$0xff]   ;;  %v9134_v12 = vld [vmem:[#allocation8 + $0x124] ss:$16 sps:$4 sm:$0xff]   ;;  %v9174_v3 = vld [vmem:[#allocation8 + $0x200] ss:$16 sps:$4 sm:$0xff]  }
 0x25a   :  { %v4012_v22 = vadd.bf16 %v3996_v9, %v10183_v18  ;;  %v9180_v9 = vld [vmem:[#allocation8 + $0x220] ss:$16 sps:$4 sm:$0xff]  }
 0x25c   :  { %3847 = vmatpush1.bf16.msra.mxu0 %v8422_v13  ;;  %3933 = vmatpush1.bf16.msra.mxu1 %v8424_v17  ;;  %v4009_v13 = vadd.bf16 %v3993_v7, %v10177_v10  ;;  %v9132_v17 = vld [vmem:[#allocation8 + $0x120] ss:$16 sps:$4 sm:$0xff]  }
 0x25d   :  { %7199 = vmatprep.subr.bf16.mxu0 %v9080_v20  ;;  %7543 = vmatprep.subr.bf16.mxu1 %v9083_v21  ;;  %v9135_v20 = vld [vmem:[#allocation8 + $0x128] ss:$16 sps:$4 sm:$0xff]   ;;  %v9140_v21 = vld [vmem:[#allocation8 + $0x144] ss:$16 sps:$4 sm:$0xff]  }
 0x25f   :  { %3849 = vmatmul.mubr.bf16.vlgmr.msra.gmra.mrb[12].mxu0 %v10135_v28  ;;  %3935 = vmatmul.mubr.bf16.vlgmr.msra.gmra.mrb[12].mxu1 %v10135_v28  ;;  %v9096_v28 = vld [vmem:[#allocation8 + $0x60] ss:$16 sps:$4 sm:$0xff]  }
 0x260   :  { %7200 = vmatpush1.bf16.msra.mxu0 %v9078_v23  ;;  %7231 = vmatprep.mubr.bf16.mxu0 %v4090_v27  ;;  %v9143_v23 = vld [vmem:[#allocation8 + $0x14c] ss:$16 sps:$4 sm:$0xff]  }
 0x261   :  { %7544 = vmatpush1.bf16.msra.mxu1 %v9081_v24  ;;  %7575 = vmatprep.mubr.bf16.mxu1 %v4090_v27  ;;  %v4025_v24 = vmul.bf16 1061961548, %v4009_v13  ;;  %v9141_v27 = vld [vmem:[#allocation8 + $0x148] ss:$16 sps:$4 sm:$0xff]  }
 0x262   :  { %7201 = vmatprep.subr.bf16.mxu0 %v9086_v26  ;;  %7545 = vmatprep.subr.bf16.mxu1 %v9089_v30  ;;  %v9138_v26 = vld [vmem:[#allocation8 + $0x140] ss:$16 sps:$4 sm:$0xff]   ;;  %v9146_v30 = vld [vmem:[#allocation8 + $0x164] ss:$16 sps:$4 sm:$0xff]   ;;  %v9189_v13 = vld [vmem:[#allocation8 + $0x248] ss:$16 sps:$4 sm:$0xff]  }
 0x263   :  { %9848 = vtanh.bf16 %v4025_v24  ;;  %v9198_v24 = vld [vmem:[#allocation8 + $0x280] ss:$16 sps:$4 sm:$0xff]  }
 0x264   :  { %7202 = vmatpush1.bf16.msra.mxu0 %v9084_v34  ;;  %v4028_v34 = vmul.bf16 1061961548, %v4012_v22  ;;  %v9200_v22 = vld [vmem:[#allocation8 + $0x284] ss:$16 sps:$4 sm:$0xff]  }
 0x265   :  { %7546 = vmatpush1.bf16.msra.mxu1 %v9087_v35  ;;  %7203 = vmatprep.subr.bf16.mxu0 %v9092_v36  ;;  %v9149_v35 = vld [vmem:[#allocation8 + $0x16c] ss:$16 sps:$4 sm:$0xff]   ;;  %v9144_v36 = vld [vmem:[#allocation8 + $0x160] ss:$16 sps:$4 sm:$0xff]  }
 0x266   :  { %7547 = vmatprep.subr.bf16.mxu1 %v9095_v38  ;;  %v9147_v38 = vld [vmem:[#allocation8 + $0x168] ss:$16 sps:$4 sm:$0xff]   ;;  %9850 = vtanh.bf16 %v4028_v34  ;;  %v9209_v34 = vld [vmem:[#allocation8 + $0x2ac] ss:$16 sps:$4 sm:$0xff]  }
 0x268   :  { %7204 = vmatpush1.bf16.msra.mxu0 %v9090_v39  ;;  %v9152_v39 = vld [vmem:[#allocation8 + $0x184] ss:$16 sps:$4 sm:$0xff]  }
 0x269   :  { %7548 = vmatpush1.bf16.msra.mxu1 %v9093_v15  ;;  %7205 = vmatprep.subr.bf16.mxu0 %v9098_v40  ;;  %v9155_v15 = vld [vmem:[#allocation8 + $0x18c] ss:$16 sps:$4 sm:$0xff]   ;;  %v9150_v40 = vld [vmem:[#allocation8 + $0x180] ss:$16 sps:$4 sm:$0xff]  }
 0x26a   :  { %7549 = vmatprep.subr.bf16.mxu1 %v9101_v16  ;;  %v9153_v16 = vld [vmem:[#allocation8 + $0x188] ss:$16 sps:$4 sm:$0xff]  }
 0x26c   :  { %7206 = vmatpush1.bf16.msra.mxu0 %v9096_v28  ;;  %v9158_v28 = vld [vmem:[#allocation8 + $0x1a4] ss:$16 sps:$4 sm:$0xff]  }
 0x26d   :  { %7550 = vmatpush1.bf16.msra.mxu1 %v9099_v41  ;;  %7207 = vmatprep.subr.bf16.mxu0 %v9104_v31  ;;  %v9161_v41 = vld [vmem:[#allocation8 + $0x1ac] ss:$16 sps:$4 sm:$0xff]   ;;  %v9156_v31 = vld [vmem:[#allocation8 + $0x1a0] ss:$16 sps:$4 sm:$0xff]  }
 0x26e   :  { %7551 = vmatprep.subr.bf16.mxu1 %v9107_v42  ;;  %v9159_v42 = vld [vmem:[#allocation8 + $0x1a8] ss:$16 sps:$4 sm:$0xff]  }
 0x270   :  { %7208 = vmatpush1.bf16.msra.mxu0 %v9102_v43  ;;  %v9164_v43 = vld [vmem:[#allocation8 + $0x1c4] ss:$16 sps:$4 sm:$0xff]  }
 0x271   :  { %7552 = vmatpush1.bf16.msra.mxu1 %v9105_v44  ;;  %7209 = vmatprep.subr.bf16.mxu0 %v9110_v45  ;;  %v9849_v44 = vpop.eup %9848  ;;  %v9167_v45 = vld [vmem:[#allocation8 + $0x1cc] ss:$16 sps:$4 sm:$0xff]  }
 0x272   :  { %7553 = vmatprep.subr.bf16.mxu1 %v9113_v47  ;;  %v9851_v47 = vpop.eup %9850 }
 0x274   :  { %7210 = vmatpush1.bf16.msra.mxu0 %v9108_v48  ;;  %v9162_v48 = vld [vmem:[#allocation8 + $0x1c0] ss:$16 sps:$4 sm:$0xff]  }
 0x275   :  { %7554 = vmatpush1.bf16.msra.mxu1 %v9111_v25  ;;  %7211 = vmatprep.subr.bf16.mxu0 %v9116_v51  ;;  %v9165_v25 = vld [vmem:[#allocation8 + $0x1c8] ss:$16 sps:$4 sm:$0xff]   ;;  %v9170_v51 = vld [vmem:[#allocation8 + $0x1e4] ss:$16 sps:$4 sm:$0xff]  }
 0x276   :  { %7555 = vmatprep.subr.bf16.mxu1 %v9119_v52  ;;  %v4057_v52 = vadd.bf16 1065369472, %v9849_v44 }
 0x278   :  { %7212 = vmatpush1.bf16.msra.mxu0 %v9114_v56  ;;  %v4060_v56 = vadd.bf16 1065369472, %v9851_v47  ;;  %v9210_v47 = vld [vmem:[#allocation8 + $0x2c0] ss:$16 sps:$4 sm:$0xff]  }
 0x279   :  { %7556 = vmatpush1.bf16.msra.mxu1 %v9117_v61  ;;  %7213 = vmatprep.subr.bf16.mxu0 %v9122_v62  ;;  %v9171_v61 = vld [vmem:[#allocation8 + $0x1e8] ss:$16 sps:$4 sm:$0xff]   ;;  %v4073_v62 = vmul.bf16 1056980736, %v4057_v52 }
 0x27a   :  { %7557 = vmatprep.subr.bf16.mxu1 %v9125_v0  ;;  %v9176_v0 = vld [vmem:[#allocation8 + $0x204] ss:$16 sps:$4 sm:$0xff]  }
 0x27c   :  { %7214 = vmatpush1.bf16.msra.mxu0 %v9120_v2  ;;  %v4076_v2 = vmul.bf16 1056980736, %v4060_v56  ;;  %v9213_v56 = vld [vmem:[#allocation8 + $0x2c8] ss:$16 sps:$4 sm:$0xff]  }
 0x27d   :  { %7558 = vmatpush1.bf16.msra.mxu1 %v9123_v4  ;;  %7215 = vmatprep.subr.bf16.mxu0 %v9128_v5  ;;  %v4089_v4 = vmul.bf16 %v4073_v62, %v10177_v10  ;;  %v9177_v5 = vld [vmem:[#allocation8 + $0x208] ss:$16 sps:$4 sm:$0xff]   ;;  %v9186_v10 = vld [vmem:[#allocation8 + $0x240] ss:$16 sps:$4 sm:$0xff]  }
 0x27e   :  { %7559 = vmatprep.subr.bf16.mxu1 %v9131_v6  ;;  %v9182_v6 = vld [vmem:[#allocation8 + $0x224] ss:$16 sps:$4 sm:$0xff]   ;;  %v4092_v7 = vmul.bf16 %v4076_v2, %v10183_v18  ;;  %v9197_v18 = vld [vmem:[#allocation8 + $0x26c] ss:$16 sps:$4 sm:$0xff]  }
 0x280   :  { %7216 = vmatpush1.bf16.msra.mxu0 %v9126_v8  ;;  %v9185_v8 = vld [vmem:[#allocation8 + $0x22c] ss:$16 sps:$4 sm:$0xff]  }
 0x281   :  { %7560 = vmatpush1.bf16.msra.mxu1 %v9129_v11  ;;  %7217 = vmatprep.subr.bf16.mxu0 %v9134_v12  ;;  %v9183_v11 = vld [vmem:[#allocation8 + $0x228] ss:$16 sps:$4 sm:$0xff]   ;;  %v9188_v12 = vld [vmem:[#allocation8 + $0x244] ss:$16 sps:$4 sm:$0xff]  }
 0x282   :  { %7561 = vmatprep.subr.bf16.mxu1 %v9137_v58  ;;  %v9191_v58 = vld [vmem:[#allocation8 + $0x24c] ss:$16 sps:$4 sm:$0xff]  }
 0x284   :  { %7218 = vmatpush1.bf16.msra.mxu0 %v9132_v17  ;;  %v9194_v17 = vld [vmem:[#allocation8 + $0x264] ss:$16 sps:$4 sm:$0xff]  }
 0x285   :  { %7562 = vmatpush1.bf16.msra.mxu1 %v9135_v20  ;;  %7219 = vmatprep.subr.bf16.mxu0 %v9140_v21  ;;  %v9192_v20 = vld [vmem:[#allocation8 + $0x260] ss:$16 sps:$4 sm:$0xff]   ;;  %v9195_v21 = vld [vmem:[#allocation8 + $0x268] ss:$16 sps:$4 sm:$0xff]  }
 0x286   :  { %7563 = vmatprep.subr.bf16.mxu1 %v9143_v23  ;;  %v9203_v23 = vld [vmem:[#allocation8 + $0x28c] ss:$16 sps:$4 sm:$0xff]  }
 0x288   :  { %7220 = vmatpush1.bf16.msra.mxu0 %v9138_v26  ;;  %v9201_v26 = vld [vmem:[#allocation8 + $0x288] ss:$16 sps:$4 sm:$0xff]  }
 0x289   :  { %7564 = vmatpush1.bf16.msra.mxu1 %v9141_v27  ;;  %7221 = vmatprep.subr.bf16.mxu0 %v9146_v30  ;;  %v9206_v27 = vld [vmem:[#allocation8 + $0x2a4] ss:$16 sps:$4 sm:$0xff]   ;;  %v10234_v30 = vld [vmem:[#allocation7 + $0x8] sm:$0xff] }
 0x28a   :  { %7565 = vmatprep.subr.bf16.mxu1 %v9149_v35  ;;  %v9204_v35 = vld [vmem:[#allocation8 + $0x2a0] ss:$16 sps:$4 sm:$0xff]  }
 0x28c   :  { %7222 = vmatpush1.bf16.msra.mxu0 %v9144_v36  ;;  %v652_v36 = vrot.slane %v10234_v30, %v10156_v29 }
 0x28d   :  { %7566 = vmatpush1.bf16.msra.mxu1 %v9147_v38  ;;  %7223 = vmatprep.subr.bf16.mxu0 %v9152_v39  ;;  %v9207_v38 = vld [vmem:[#allocation8 + $0x2a8] ss:$16 sps:$4 sm:$0xff]   ;;  %v9212_v39 = vld [vmem:[#allocation8 + $0x2c4] ss:$16 sps:$4 sm:$0xff]  }
 0x28e   :  { %7567 = vmatprep.subr.bf16.mxu1 %v9155_v15 }
 0x290   :  { %7224 = vmatpush1.bf16.msra.mxu0 %v9150_v40  ;;  %v660_v40 = vrot.slane %v10234_v30, %v10161_v32 }
 0x291   :  { %7568 = vmatpush1.bf16.msra.mxu1 %v9153_v16  ;;  %7225 = vmatprep.subr.bf16.mxu0 %v9158_v28  ;;  %v656_v16 = vrot.slane %v10234_v30, %v10164_v33  ;;  %v9215_v28 = vld [vmem:[#allocation8 + $0x2cc] ss:$16 sps:$4 sm:$0xff]  }
 0x292   :  { %7569 = vmatprep.subr.bf16.mxu1 %v9161_v41  ;;  %v3963_v41 = vmul.bf16 %v10179_v14, %v10179_v14 }
 0x294   :  { %7226 = vmatpush1.bf16.msra.mxu0 %v9156_v31 }
 0x295   :  { %7570 = vmatpush1.bf16.msra.mxu1 %v9159_v42  ;;  %7227 = vmatprep.subr.bf16.mxu0 %v9164_v43  ;;  %v664_v43 = vrot.slane %v10234_v30, %v10167_v37 }
 0x296   :  { %7571 = vmatprep.subr.bf16.mxu1 %v9167_v45 }
 0x298   :  { %7228 = vmatpush1.bf16.msra.mxu0 %v9162_v48  ;;  %v3966_v48 = vmul.bf16 %v10215_v50, %v10215_v50 }
 0x299   :  { %7572 = vmatpush1.bf16.msra.mxu1 %v9165_v25  ;;  %7229 = vmatprep.subr.bf16.mxu0 %v9170_v51 }
 0x29a   :  { %7573 = vmatprep.subr.bf16.mxu1 %v9173_v53 }
 0x29c   :  { %7230 = vmatpush1.bf16.msra.mxu0 %v9168_v60  ;;  %v9218_v60 = vld [vmem:[#allocation8 + $0x2e4] ss:$16 sps:$4 sm:$0xff]  }
 0x29d   :  { %7574 = vmatpush1.bf16.msra.mxu1 %v9171_v61  ;;  %7242 = vmatprep.subr.bf16.mxu0 %v9176_v0 }
 0x29e   :  { %7586 = vmatprep.subr.bf16.mxu1 %v9179_v1 }
 0x29f   :  { %7232 = vmatmul.mubr.bf16.vlgmr.msra.gmra.mrb[16].mxu0 %v4089_v4 }
 0x2a0   :  { %7576 = vmatmul.mubr.bf16.vlgmr.msra.gmra.mrb[16].mxu1 %v4089_v4  ;;  %7243 = vmatpush1.bf16.msra.mxu0 %v9174_v3  ;;  %v9221_v3 = vld [vmem:[#allocation8 + $0x2ec] ss:$16 sps:$4 sm:$0xff]   ;;  %v3979_v4 = vmul.bf16 %v3963_v41, %v10179_v14 }
 0x2a1   :  { %7274 = vmatprep.mubr.bf16.mxu0 %v4092_v7  ;;  %7587 = vmatpush1.bf16.msra.mxu1 %v9177_v5  ;;  %v9245_v41 = vld [vmem:[#allocation8 + $0x36c] ss:$16 sps:$4 sm:$0xff]  }
 0x2a2   :  { %7618 = vmatprep.mubr.bf16.mxu1 %v4092_v7  ;;  %7244 = vmatprep.subr.bf16.mxu0 %v9182_v6 }
 0x2a3   :  { %7588 = vmatprep.subr.bf16.mxu1 %v9185_v8 }
 0x2a4   :  { %7245 = vmatpush1.bf16.msra.mxu0 %v9180_v9 }
 0x2a5   :  { %7589 = vmatpush1.bf16.msra.mxu1 %v9183_v11  ;;  %7246 = vmatprep.subr.bf16.mxu0 %v9188_v12  ;;  %v9216_v11 = vld [vmem:[#allocation8 + $0x2e0] ss:$16 sps:$4 sm:$0xff]   ;;  %v3982_v12 = vmul.bf16 %v3966_v48, %v10215_v50  ;;  %v9254_v48 = vld [vmem:[#allocation8 + $0x3a4] ss:$16 sps:$4 sm:$0xff]  }
 0x2a6   :  { %7590 = vmatprep.subr.bf16.mxu1 %v9191_v58 }
 0x2a8   :  { %7247 = vmatpush1.bf16.msra.mxu0 %v9186_v10  ;;  %v9219_v10 = vld [vmem:[#allocation8 + $0x2e8] ss:$16 sps:$4 sm:$0xff]  }
 0x2a9   :  { %7591 = vmatpush1.bf16.msra.mxu1 %v9189_v13  ;;  %7248 = vmatprep.subr.bf16.mxu0 %v9194_v17  ;;  %v9224_v13 = vld [vmem:[#allocation8 + $0x304] ss:$16 sps:$4 sm:$0xff]   ;;  %v9227_v17 = vld [vmem:[#allocation8 + $0x30c] ss:$16 sps:$4 sm:$0xff]  }
 0x2aa   :  { %7592 = vmatprep.subr.bf16.mxu1 %v9197_v18  ;;  %v3995_v18 = vmul.bf16 1027030327, %v3979_v4 }
 0x2ac   :  { %7249 = vmatpush1.bf16.msra.mxu0 %v9192_v20  ;;  %v9222_v20 = vld [vmem:[#allocation8 + $0x300] ss:$16 sps:$4 sm:$0xff]  }
 0x2ad   :  { %7593 = vmatpush1.bf16.msra.mxu1 %v9195_v21  ;;  %7250 = vmatprep.subr.bf16.mxu0 %v9200_v22  ;;  %v3998_v21 = vmul.bf16 1027030327, %v3982_v12  ;;  %v9225_v22 = vld [vmem:[#allocation8 + $0x308] ss:$16 sps:$4 sm:$0xff]   ;;  %v9272_v12 = vld [vmem:[#allocation8 + $0x404] ss:$16 sps:$4 sm:$0xff]  }
 0x2ae   :  { %7594 = vmatprep.subr.bf16.mxu1 %v9203_v23  ;;  %v9230_v23 = vld [vmem:[#allocation8 + $0x324] ss:$16 sps:$4 sm:$0xff]  }
 0x2b0   :  { %7251 = vmatpush1.bf16.msra.mxu0 %v9198_v24  ;;  %v9233_v24 = vld [vmem:[#allocation8 + $0x32c] ss:$16 sps:$4 sm:$0xff]  }
 0x2b1   :  { %7595 = vmatpush1.bf16.msra.mxu1 %v9201_v26  ;;  %7252 = vmatprep.subr.bf16.mxu0 %v9206_v27  ;;  %v4011_v26 = vadd.bf16 %v3995_v18, %v10179_v14  ;;  %v9228_v27 = vld [vmem:[#allocation8 + $0x320] ss:$16 sps:$4 sm:$0xff]  }
 0x2b2   :  { %v3678_v15 = vpop.f32.mrb[8].mxu0  ;;  %7596 = vmatprep.subr.bf16.mxu1 %v9209_v34  ;;  %v3764_v31 = vpop.f32.mrb[8].mxu1  ;;  %v9231_v34 = vld [vmem:[#allocation8 + $0x328] ss:$16 sps:$4 sm:$0xff]  }
 0x2b3   :  { %v3680_v42 = vpop.f32.mrb[9].mxu0  ;;  %v3766_v44 = vpop.f32.mrb[9].mxu1  ;;  %v8954_v25 = vadd.f32 %v3678_v15, %v652_v36  ;;  %v8958_v61 = vadd.f32 %v3764_v31, %v660_v40  ;;  %v9234_v15 = vld [vmem:[#allocation8 + $0x340] ss:$16 sps:$4 sm:$0xff]  }
 0x2b4   :  { %v3682_v45 = vpop.f32.mrb[10].mxu0  ;;  %7253 = vmatpush1.bf16.msra.mxu0 %v9204_v35  ;;  %v3768_v52 = vpop.f32.mrb[10].mxu1  ;;  %v8955_v62 = vadd.f32 %v3680_v42, %v656_v16  ;;  %v8959_v5 = vadd.f32 %v3766_v44, %v664_v43  ;;  %v9236_v35 = vld [vmem:[#allocation8 + $0x344] ss:$16 sps:$4 sm:$0xff]   ;;  %v9240_v31 = vld [vmem:[#allocation8 + $0x360] ss:$16 sps:$4 sm:$0xff]  }
 0x2b5   :  { %v8956_v51 = vadd.f32 %v3682_v45, %v652_v36  ;;  %7597 = vmatpush1.bf16.msra.mxu1 %v9207_v38  ;;  %v3684_v53 = vpop.f32.mrb[11].mxu0  ;;  %7254 = vmatprep.subr.bf16.mxu0 %v9212_v39  ;;  %v8960_v0 = vadd.f32 %v3768_v52, %v660_v40  ;;  %v3770_v2 = vpop.f32.mrb[11].mxu1  ;;  %v4014_v36 = vadd.bf16 %v3998_v21, %v10215_v50  ;;  %v9239_v38 = vld [vmem:[#allocation8 + $0x34c] ss:$16 sps:$4 sm:$0xff]   ;;  %v4027_v39 = vmul.bf16 1061961548, %v4011_v26 }
 0x2b6   :  { %v8957_v1 = vadd.f32 %v3684_v53, %v656_v16  ;;  %7598 = vmatprep.subr.bf16.mxu1 %v9215_v28  ;;  %v8961_v7 = vadd.f32 %v3770_v2, %v664_v43  ;;  %v9237_v40 = vld [vmem:[#allocation8 + $0x348] ss:$16 sps:$4 sm:$0xff]   ;;  %v9242_v16 = vld [vmem:[#allocation8 + $0x364] ss:$16 sps:$4 sm:$0xff]   ;;  %v9251_v44 = vld [vmem:[#allocation8 + $0x38c] ss:$16 sps:$4 sm:$0xff]  }
 0x2b7   :  { %v10249_v6 = vpack.c.bf16 %v8956_v51, %v8954_v25  ;;  %v10251_v8 = vpack.c.bf16 %v8960_v0, %v8958_v61  ;;  %v4030_v28 = vmul.bf16 1061961548, %v4014_v36  ;;  %9852 = vtanh.bf16 %v4027_v39  ;;  %v9243_v42 = vld [vmem:[#allocation8 + $0x368] ss:$16 sps:$4 sm:$0xff]   ;;  %v9248_v43 = vld [vmem:[#allocation8 + $0x384] ss:$16 sps:$4 sm:$0xff]  }
 0x2b8   :  { %v10253_v9 = vpack.c.bf16 %v8957_v1, %v8955_v62  ;;  %7255 = vmatpush1.bf16.msra.mxu0 %v9210_v47  ;;  %v10256_v58 = vpack.c.bf16 %v8961_v7, %v8959_v5  ;;  %v9246_v45 = vld [vmem:[#allocation8 + $0x380] ss:$16 sps:$4 sm:$0xff]   ;;  %v9249_v47 = vld [vmem:[#allocation8 + $0x388] ss:$16 sps:$4 sm:$0xff]   ;;  %v9257_v25 = vld [vmem:[#allocation8 + $0x3ac] ss:$16 sps:$4 sm:$0xff]  }
 0x2b9   :  { %7599 = vmatpush1.bf16.msra.mxu1 %v9213_v56  ;;  %7256 = vmatprep.subr.bf16.mxu0 %v9218_v60  ;;  %9854 = vtanh.bf16 %v4030_v28  ;;  %v9252_v51 = vld [vmem:[#allocation8 + $0x3a0] ss:$16 sps:$4 sm:$0xff]   ;;  %v9255_v52 = vld [vmem:[#allocation8 + $0x3a8] ss:$16 sps:$4 sm:$0xff]   ;;  %v9260_v53 = vld [vmem:[#allocation8 + $0x3c4] ss:$16 sps:$4 sm:$0xff]  }
 0x2ba   :  { %7600 = vmatprep.subr.bf16.mxu1 %v9221_v3  ;;  %v9263_v60 = vld [vmem:[#allocation8 + $0x3cc] ss:$16 sps:$4 sm:$0xff]   ;;  %v9258_v62 = vld [vmem:[#allocation8 + $0x3c0] ss:$16 sps:$4 sm:$0xff]   ;;  %v9261_v0 = vld [vmem:[#allocation8 + $0x3c8] ss:$16 sps:$4 sm:$0xff]  }
 0x2bb   :  { %v9266_v1 = vld [vmem:[#allocation8 + $0x3e4] ss:$16 sps:$4 sm:$0xff]   ;;  %v9269_v3 = vld [vmem:[#allocation8 + $0x3ec] ss:$16 sps:$4 sm:$0xff]   ;;  %v9264_v5 = vld [vmem:[#allocation8 + $0x3e0] ss:$16 sps:$4 sm:$0xff]  }
 0x2bc   :  { %7257 = vmatpush1.bf16.msra.mxu0 %v9216_v11  ;;  %v9267_v7 = vld [vmem:[#allocation8 + $0x3e8] ss:$16 sps:$4 sm:$0xff]   ;;  %v9278_v21 = vld [vmem:[#allocation8 + $0x424] ss:$16 sps:$4 sm:$0xff]  }
 0x2bd   :  { %7601 = vmatpush1.bf16.msra.mxu1 %v9219_v10  ;;  %7258 = vmatprep.subr.bf16.mxu0 %v9224_v13  ;;  %v9275_v10 = vld [vmem:[#allocation8 + $0x40c] ss:$16 sps:$4 sm:$0xff]   ;;  %v9279_v26 = vld [vmem:[#allocation8 + $0x428] ss:$16 sps:$4 sm:$0xff]   ;;  %v9290_v36 = vld [vmem:[#allocation8 + $0x464] ss:$16 sps:$4 sm:$0xff]  }
 0x2be   :  { %7602 = vmatprep.subr.bf16.mxu1 %v9227_v17  ;;  %v9270_v17 = vld [vmem:[#allocation8 + $0x400] ss:$16 sps:$4 sm:$0xff]   ;;  %v9291_v39 = vld [vmem:[#allocation8 + $0x468] ss:$16 sps:$4 sm:$0xff]  }
 0x2bf   :  { %v9297_v28 = vld [vmem:[#allocation8 + $0x488] ss:$16 sps:$4 sm:$0xff]  }
 0x2c0   :  { %7259 = vmatpush1.bf16.msra.mxu0 %v9222_v20  ;;  %v9273_v20 = vld [vmem:[#allocation8 + $0x408] ss:$16 sps:$4 sm:$0xff]  }
 0x2c1   :  { %7603 = vmatpush1.bf16.msra.mxu1 %v9225_v22  ;;  %7260 = vmatprep.subr.bf16.mxu0 %v9230_v23  ;;  %v9281_v23 = vld [vmem:[#allocation8 + $0x42c] ss:$16 sps:$4 sm:$0xff]  }
 0x2c2   :  { %7604 = vmatprep.subr.bf16.mxu1 %v9233_v24  ;;  %v9853_v56 = vpop.eup %9852  ;;  %v9276_v24 = vld [vmem:[#allocation8 + $0x420] ss:$16 sps:$4 sm:$0xff]  }
 0x2c3   :  { %v4059_v2 = vadd.bf16 1065369472, %v9853_v56 }
 0x2c4   :  { %7261 = vmatpush1.bf16.msra.mxu0 %v9228_v27  ;;  %v9855_v61 = vpop.eup %9854  ;;  %v9284_v27 = vld [vmem:[#allocation8 + $0x444] ss:$16 sps:$4 sm:$0xff]  }
 0x2c5   :  { %7605 = vmatpush1.bf16.msra.mxu1 %v9231_v34  ;;  %7262 = vmatprep.subr.bf16.mxu0 %v9236_v35  ;;  %v4062_v4 = vadd.bf16 1065369472, %v9855_v61  ;;  %v4075_v11 = vmul.bf16 1056980736, %v4059_v2  ;;  %v9287_v34 = vld [vmem:[#allocation8 + $0x44c] ss:$16 sps:$4 sm:$0xff]  }
 0x2c6   :  { %7606 = vmatprep.subr.bf16.mxu1 %v9239_v38  ;;  %v9285_v35 = vld [vmem:[#allocation8 + $0x448] ss:$16 sps:$4 sm:$0xff]   ;;  %v9288_v38 = vld [vmem:[#allocation8 + $0x460] ss:$16 sps:$4 sm:$0xff]  }
 0x2c7   :  { %v4078_v13 = vmul.bf16 1056980736, %v4062_v4  ;;  %v4091_v18 = vmul.bf16 %v4075_v11, %v10179_v14  ;;  %v9282_v14 = vld [vmem:[#allocation8 + $0x440] ss:$16 sps:$4 sm:$0xff]   ;;  %v9329_v11 = vld [vmem:[#allocation8 + $0x52c] ss:$16 sps:$4 sm:$0xff]  }
 0x2c8   :  { %7263 = vmatpush1.bf16.msra.mxu0 %v9234_v15  ;;  %v9296_v15 = vld [vmem:[#allocation8 + $0x484] ss:$16 sps:$4 sm:$0xff]  }
 0x2c9   :  { %7607 = vmatpush1.bf16.msra.mxu1 %v9237_v40  ;;  %7264 = vmatprep.subr.bf16.mxu0 %v9242_v16  ;;  %v4094_v22 = vmul.bf16 %v4078_v13, %v10215_v50  ;;  %v9293_v50 = vld [vmem:[#allocation8 + $0x46c] ss:$16 sps:$4 sm:$0xff]   ;;  %v9294_v16 = vld [vmem:[#allocation8 + $0x480] ss:$16 sps:$4 sm:$0xff]   ;;  %v9327_v13 = vld [vmem:[#allocation8 + $0x528] ss:$16 sps:$4 sm:$0xff]  }
 0x2ca   :  { %7608 = vmatprep.subr.bf16.mxu1 %v9245_v41  ;;  %v9299_v40 = vld [vmem:[#allocation8 + $0x48c] ss:$16 sps:$4 sm:$0xff]   ;;  %v9302_v41 = vld [vmem:[#allocation8 + $0x4a4] ss:$16 sps:$4 sm:$0xff]  }
 0x2cc   :  { %7265 = vmatpush1.bf16.msra.mxu0 %v9240_v31  ;;  %v9305_v31 = vld [vmem:[#allocation8 + $0x4ac] ss:$16 sps:$4 sm:$0xff]  }
 0x2cd   :  { %7609 = vmatpush1.bf16.msra.mxu1 %v9243_v42  ;;  %7266 = vmatprep.subr.bf16.mxu0 %v9248_v43  ;;  %v9300_v42 = vld [vmem:[#allocation8 + $0x4a0] ss:$16 sps:$4 sm:$0xff]   ;;  %v9303_v43 = vld [vmem:[#allocation8 + $0x4a8] ss:$16 sps:$4 sm:$0xff]  }
 0x2ce   :  { %7610 = vmatprep.subr.bf16.mxu1 %v9251_v44  ;;  %v9308_v44 = vld [vmem:[#allocation8 + $0x4c4] ss:$16 sps:$4 sm:$0xff]  }
 0x2d0   :  { %7267 = vmatpush1.bf16.msra.mxu0 %v9246_v45  ;;  %v9311_v45 = vld [vmem:[#allocation8 + $0x4cc] ss:$16 sps:$4 sm:$0xff]  }
 0x2d1   :  { %7611 = vmatpush1.bf16.msra.mxu1 %v9249_v47  ;;  %7268 = vmatprep.subr.bf16.mxu0 %v9254_v48  ;;  %v3965_v47 = vmul.bf16 %v10211_v46, %v10211_v46  ;;  %v9306_v48 = vld [vmem:[#allocation8 + $0x4c0] ss:$16 sps:$4 sm:$0xff]  }
 0x2d2   :  { %7612 = vmatprep.subr.bf16.mxu1 %v9257_v25  ;;  %v3968_v25 = vmul.bf16 %v10218_v54, %v10218_v54 }
 0x2d3   :  { %v3981_v56 = vmul.bf16 %v3965_v47, %v10211_v46 }
 0x2d4   :  { %7269 = vmatpush1.bf16.msra.mxu0 %v9252_v51  ;;  %v9309_v51 = vld [vmem:[#allocation8 + $0x4c8] ss:$16 sps:$4 sm:$0xff]   ;;  %v3984_v61 = vmul.bf16 %v3968_v25, %v10218_v54 }
 0x2d5   :  { %7613 = vmatpush1.bf16.msra.mxu1 %v9255_v52  ;;  %7270 = vmatprep.subr.bf16.mxu0 %v9260_v53  ;;  %v9314_v52 = vld [vmem:[#allocation8 + $0x4e4] ss:$16 sps:$4 sm:$0xff]   ;;  %v9317_v53 = vld [vmem:[#allocation8 + $0x4ec] ss:$16 sps:$4 sm:$0xff]   ;;  %v3997_v2 = vmul.bf16 1027030327, %v3981_v56 }
 0x2d6   :  { %7614 = vmatprep.subr.bf16.mxu1 %v9263_v60  ;;  %v9312_v60 = vld [vmem:[#allocation8 + $0x4e0] ss:$16 sps:$4 sm:$0xff]   ;;  %v4000_v4 = vmul.bf16 1027030327, %v3984_v61  ;;  %v9368_v56 = vld [vmem:[#allocation8 + $0x604] ss:$16 sps:$4 sm:$0xff]  }
 0x2d8   :  { %7271 = vmatpush1.bf16.msra.mxu0 %v9258_v62  ;;  %v9315_v62 = vld [vmem:[#allocation8 + $0x4e8] ss:$16 sps:$4 sm:$0xff]  }
 0x2d9   :  { %7615 = vmatpush1.bf16.msra.mxu1 %v9261_v0  ;;  %7272 = vmatprep.subr.bf16.mxu0 %v9266_v1  ;;  %v9320_v0 = vld [vmem:[#allocation8 + $0x504] ss:$16 sps:$4 sm:$0xff]   ;;  %v9323_v1 = vld [vmem:[#allocation8 + $0x50c] ss:$16 sps:$4 sm:$0xff]  }
 0x2da   :  { %7616 = vmatprep.subr.bf16.mxu1 %v9269_v3  ;;  %v9318_v3 = vld [vmem:[#allocation8 + $0x500] ss:$16 sps:$4 sm:$0xff]  }
 0x2dc   :  { %7273 = vmatpush1.bf16.msra.mxu0 %v9264_v5  ;;  %v9321_v5 = vld [vmem:[#allocation8 + $0x508] ss:$16 sps:$4 sm:$0xff]  }
 0x2dd   :  { %7617 = vmatpush1.bf16.msra.mxu1 %v9267_v7  ;;  %7285 = vmatprep.subr.bf16.mxu0 %v9272_v12  ;;  %v9326_v7 = vld [vmem:[#allocation8 + $0x524] ss:$16 sps:$4 sm:$0xff]   ;;  %v4013_v12 = vadd.bf16 %v3997_v2, %v10211_v46 }
 0x2de   :  { %7629 = vmatprep.subr.bf16.mxu1 %v9275_v10  ;;  %v9324_v10 = vld [vmem:[#allocation8 + $0x520] ss:$16 sps:$4 sm:$0xff]   ;;  %v9374_v2 = vld [vmem:[#allocation8 + $0x624] ss:$16 sps:$4 sm:$0xff]  }
 0x2df   :  { %7275 = vmatmul.mubr.bf16.vlgmr.msra.gmra.mrb[16].mxu0 %v4091_v18 }
 0x2e0   :  { %7619 = vmatmul.mubr.bf16.vlgmr.msra.gmra.mrb[16].mxu1 %v4091_v18  ;;  %7286 = vmatpush1.bf16.msra.mxu0 %v9270_v17  ;;  %v9332_v17 = vld [vmem:[#allocation8 + $0x544] ss:$16 sps:$4 sm:$0xff]   ;;  %v4016_v18 = vadd.bf16 %v4000_v4, %v10218_v54  ;;  %v9377_v4 = vld [vmem:[#allocation8 + $0x62c] ss:$16 sps:$4 sm:$0xff]  }
 0x2e1   :  { %7317 = vmatprep.mubr.bf16.mxu0 %v4094_v22  ;;  %7630 = vmatpush1.bf16.msra.mxu1 %v9273_v20  ;;  %v9335_v20 = vld [vmem:[#allocation8 + $0x54c] ss:$16 sps:$4 sm:$0xff]  }
 0x2e2   :  { %7661 = vmatprep.mubr.bf16.mxu1 %v4094_v22  ;;  %7287 = vmatprep.subr.bf16.mxu0 %v9278_v21  ;;  %v4029_v21 = vmul.bf16 1061961548, %v4013_v12  ;;  %v9330_v22 = vld [vmem:[#allocation8 + $0x540] ss:$16 sps:$4 sm:$0xff]   ;;  %v9383_v12 = vld [vmem:[#allocation8 + $0x64c] ss:$16 sps:$4 sm:$0xff]  }
 0x2e3   :  { %7631 = vmatprep.subr.bf16.mxu1 %v9281_v23  ;;  %v9333_v23 = vld [vmem:[#allocation8 + $0x548] ss:$16 sps:$4 sm:$0xff]  }
 0x2e4   :  { %7288 = vmatpush1.bf16.msra.mxu0 %v9276_v24  ;;  %v9338_v24 = vld [vmem:[#allocation8 + $0x564] ss:$16 sps:$4 sm:$0xff]   ;;  %9856 = vtanh.bf16 %v4029_v21  ;;  %v9395_v21 = vld [vmem:[#allocation8 + $0x68c] ss:$16 sps:$4 sm:$0xff]  }
 0x2e5   :  { %7632 = vmatpush1.bf16.msra.mxu1 %v9279_v26  ;;  %7289 = vmatprep.subr.bf16.mxu0 %v9284_v27  ;;  %v4032_v26 = vmul.bf16 1061961548, %v4016_v18  ;;  %v9341_v27 = vld [vmem:[#allocation8 + $0x56c] ss:$16 sps:$4 sm:$0xff]   ;;  %v9387_v18 = vld [vmem:[#allocation8 + $0x668] ss:$16 sps:$4 sm:$0xff]  }
 0x2e6   :  { %7633 = vmatprep.subr.bf16.mxu1 %v9287_v34  ;;  %v9336_v34 = vld [vmem:[#allocation8 + $0x560] ss:$16 sps:$4 sm:$0xff]  }
 0x2e7   :  { %9858 = vtanh.bf16 %v4032_v26  ;;  %v9401_v26 = vld [vmem:[#allocation8 + $0x6ac] ss:$16 sps:$4 sm:$0xff]  }
 0x2e8   :  { %7290 = vmatpush1.bf16.msra.mxu0 %v9282_v14  ;;  %v9339_v14 = vld [vmem:[#allocation8 + $0x568] ss:$16 sps:$4 sm:$0xff]  }
 0x2e9   :  { %7634 = vmatpush1.bf16.msra.mxu1 %v9285_v35  ;;  %7291 = vmatprep.subr.bf16.mxu0 %v9290_v36  ;;  %v9344_v35 = vld [vmem:[#allocation8 + $0x584] ss:$16 sps:$4 sm:$0xff]   ;;  %v9347_v36 = vld [vmem:[#allocation8 + $0x58c] ss:$16 sps:$4 sm:$0xff]  }
 0x2ea   :  { %7635 = vmatprep.subr.bf16.mxu1 %v9293_v50  ;;  %v9342_v50 = vld [vmem:[#allocation8 + $0x580] ss:$16 sps:$4 sm:$0xff]  }
 0x2ec   :  { %7292 = vmatpush1.bf16.msra.mxu0 %v9288_v38  ;;  %v9345_v38 = vld [vmem:[#allocation8 + $0x588] ss:$16 sps:$4 sm:$0xff]  }
 0x2ed   :  { %7636 = vmatpush1.bf16.msra.mxu1 %v9291_v39  ;;  %7293 = vmatprep.subr.bf16.mxu0 %v9296_v15  ;;  %v9350_v39 = vld [vmem:[#allocation8 + $0x5a4] ss:$16 sps:$4 sm:$0xff]   ;;  %v9353_v15 = vld [vmem:[#allocation8 + $0x5ac] ss:$16 sps:$4 sm:$0xff]  }
 0x2ee   :  { %7637 = vmatprep.subr.bf16.mxu1 %v9299_v40  ;;  %v9348_v40 = vld [vmem:[#allocation8 + $0x5a0] ss:$16 sps:$4 sm:$0xff]  }
 0x2f0   :  { %7294 = vmatpush1.bf16.msra.mxu0 %v9294_v16  ;;  %v9351_v16 = vld [vmem:[#allocation8 + $0x5a8] ss:$16 sps:$4 sm:$0xff]  }
 0x2f1   :  { %7638 = vmatpush1.bf16.msra.mxu1 %v9297_v28  ;;  %7295 = vmatprep.subr.bf16.mxu0 %v9302_v41  ;;  %v9356_v28 = vld [vmem:[#allocation8 + $0x5c4] ss:$16 sps:$4 sm:$0xff]   ;;  %v9857_v41 = vpop.eup %9856 }
 0x2f2   :  { %7639 = vmatprep.subr.bf16.mxu1 %v9305_v31  ;;  %v9359_v31 = vld [vmem:[#allocation8 + $0x5cc] ss:$16 sps:$4 sm:$0xff]   ;;  %v4061_v47 = vadd.bf16 1065369472, %v9857_v41 }
 0x2f4   :  { %7296 = vmatpush1.bf16.msra.mxu0 %v9300_v42  ;;  %v9859_v42 = vpop.eup %9858 }
 0x2f5   :  { %7640 = vmatpush1.bf16.msra.mxu1 %v9303_v43  ;;  %7297 = vmatprep.subr.bf16.mxu0 %v9308_v44  ;;  %v9354_v43 = vld [vmem:[#allocation8 + $0x5c0] ss:$16 sps:$4 sm:$0xff]   ;;  %v9357_v44 = vld [vmem:[#allocation8 + $0x5c8] ss:$16 sps:$4 sm:$0xff]   ;;  %v4064_v25 = vadd.bf16 1065369472, %v9859_v42 }
 0x2f6   :  { %7641 = vmatprep.subr.bf16.mxu1 %v9311_v45  ;;  %v9362_v45 = vld [vmem:[#allocation8 + $0x5e4] ss:$16 sps:$4 sm:$0xff]  }
 0x2f7   :  { %v4080_v61 = vmul.bf16 1056980736, %v4064_v25 }
 0x2f8   :  { %7298 = vmatpush1.bf16.msra.mxu0 %v9306_v48  ;;  %v9365_v48 = vld [vmem:[#allocation8 + $0x5ec] ss:$16 sps:$4 sm:$0xff]  }
 0x2f9   :  { %7642 = vmatpush1.bf16.msra.mxu1 %v9309_v51  ;;  %7299 = vmatprep.subr.bf16.mxu0 %v9314_v52  ;;  %v9360_v51 = vld [vmem:[#allocation8 + $0x5e0] ss:$16 sps:$4 sm:$0xff]   ;;  %v9363_v52 = vld [vmem:[#allocation8 + $0x5e8] ss:$16 sps:$4 sm:$0xff]  }
 0x2fa   :  { %7643 = vmatprep.subr.bf16.mxu1 %v9317_v53  ;;  %v4077_v53 = vmul.bf16 1056980736, %v4061_v47  ;;  %v9410_v47 = vld [vmem:[#allocation8 + $0x6e4] ss:$16 sps:$4 sm:$0xff]  }
 0x2fc   :  { %7300 = vmatpush1.bf16.msra.mxu0 %v9312_v60  ;;  %v9371_v60 = vld [vmem:[#allocation8 + $0x60c] ss:$16 sps:$4 sm:$0xff]  }
 0x2fd   :  { %7644 = vmatpush1.bf16.msra.mxu1 %v9315_v62  ;;  %7301 = vmatprep.subr.bf16.mxu0 %v9320_v0  ;;  %v9366_v62 = vld [vmem:[#allocation8 + $0x600] ss:$16 sps:$4 sm:$0xff]   ;;  %v4093_v0 = vmul.bf16 %v4077_v53, %v10211_v46 }
 0x2fe   :  { %7645 = vmatprep.subr.bf16.mxu1 %v9323_v1  ;;  %v9369_v1 = vld [vmem:[#allocation8 + $0x608] ss:$16 sps:$4 sm:$0xff]   ;;  %v9378_v46 = vld [vmem:[#allocation8 + $0x640] ss:$16 sps:$4 sm:$0xff]  }
 0x300   :  { %7302 = vmatpush1.bf16.msra.mxu0 %v9318_v3  ;;  %v4096_v3 = vmul.bf16 %v4080_v61, %v10218_v54  ;;  %v9389_v54 = vld [vmem:[#allocation8 + $0x66c] ss:$16 sps:$4 sm:$0xff]  }
 0x301   :  { %7646 = vmatpush1.bf16.msra.mxu1 %v9321_v5  ;;  %7303 = vmatprep.subr.bf16.mxu0 %v9326_v7  ;;  %v9372_v5 = vld [vmem:[#allocation8 + $0x620] ss:$16 sps:$4 sm:$0xff]   ;;  %v9375_v7 = vld [vmem:[#allocation8 + $0x628] ss:$16 sps:$4 sm:$0xff]  }
 0x302   :  { %7647 = vmatprep.subr.bf16.mxu1 %v9329_v11  ;;  %v9380_v11 = vld [vmem:[#allocation8 + $0x644] ss:$16 sps:$4 sm:$0xff]  }
 0x304   :  { %7304 = vmatpush1.bf16.msra.mxu0 %v9324_v10  ;;  %v9381_v10 = vld [vmem:[#allocation8 + $0x648] ss:$16 sps:$4 sm:$0xff]  }
 0x305   :  { %7648 = vmatpush1.bf16.msra.mxu1 %v9327_v13  ;;  %7305 = vmatprep.subr.bf16.mxu0 %v9332_v17  ;;  %v9386_v13 = vld [vmem:[#allocation8 + $0x664] ss:$16 sps:$4 sm:$0xff]   ;;  %v9384_v17 = vld [vmem:[#allocation8 + $0x660] ss:$16 sps:$4 sm:$0xff]  }
 0x306   :  { %7649 = vmatprep.subr.bf16.mxu1 %v9335_v20  ;;  %v9392_v20 = vld [vmem:[#allocation8 + $0x684] ss:$16 sps:$4 sm:$0xff]  }
 0x308   :  { %7306 = vmatpush1.bf16.msra.mxu0 %v9330_v22  ;;  %v9390_v22 = vld [vmem:[#allocation8 + $0x680] ss:$16 sps:$4 sm:$0xff]  }
 0x309   :  { %7650 = vmatpush1.bf16.msra.mxu1 %v9333_v23  ;;  %7307 = vmatprep.subr.bf16.mxu0 %v9338_v24  ;;  %v9393_v23 = vld [vmem:[#allocation8 + $0x688] ss:$16 sps:$4 sm:$0xff]   ;;  %v9398_v24 = vld [vmem:[#allocation8 + $0x6a4] ss:$16 sps:$4 sm:$0xff]  }
 0x30a   :  { %7651 = vmatprep.subr.bf16.mxu1 %v9341_v27  ;;  %v9396_v27 = vld [vmem:[#allocation8 + $0x6a0] ss:$16 sps:$4 sm:$0xff]  }
 0x30c   :  { %7308 = vmatpush1.bf16.msra.mxu0 %v9336_v34  ;;  %v668_v34 = vrot.slane %v10234_v30, %v635_v55  ;;  %v680_v55 = vrot.slane %v10234_v30, %v647_v63 }
 0x30d   :  { %7652 = vmatpush1.bf16.msra.mxu1 %v9339_v14  ;;  %7309 = vmatprep.subr.bf16.mxu0 %v9344_v35  ;;  %v9399_v14 = vld [vmem:[#allocation8 + $0x6a8] ss:$16 sps:$4 sm:$0xff]   ;;  %v9404_v35 = vld [vmem:[#allocation8 + $0x6c4] ss:$16 sps:$4 sm:$0xff]  }
 0x30e   :  { %7653 = vmatprep.subr.bf16.mxu1 %v9347_v36 }
 0x310   :  { %7310 = vmatpush1.bf16.msra.mxu0 %v9342_v50  ;;  %v676_v50 = vrot.slane %v10234_v30, %v643_v57  ;;  %v3970_v57 = vmul.bf16 %v10253_v9, %v10253_v9 }
 0x311   :  { %7654 = vmatpush1.bf16.msra.mxu1 %v9345_v38  ;;  %7311 = vmatprep.subr.bf16.mxu0 %v9350_v39  ;;  %v672_v38 = vrot.slane %v10234_v30, %v639_v59  ;;  %v9407_v39 = vld [vmem:[#allocation8 + $0x6cc] ss:$16 sps:$4 sm:$0xff]  }
 0x312   :  { %7655 = vmatprep.subr.bf16.mxu1 %v9353_v15  ;;  %v3967_v15 = vmul.bf16 %v10213_v49, %v10213_v49  ;;  %v9413_v30 = vld [vmem:[#allocation8 + $0x6ec] ss:$16 sps:$4 sm:$0xff]  }
 0x314   :  { %7312 = vmatpush1.bf16.msra.mxu0 %v9348_v40 }
 0x315   :  { %7656 = vmatpush1.bf16.msra.mxu1 %v9351_v16  ;;  %7313 = vmatprep.subr.bf16.mxu0 %v9356_v28 }
 0x316   :  { %7657 = vmatprep.subr.bf16.mxu1 %v9359_v31  ;;  %v9402_v31 = vld [vmem:[#allocation8 + $0x6c0] ss:$16 sps:$4 sm:$0xff]  }
 0x318   :  { %7314 = vmatpush1.bf16.msra.mxu0 %v9354_v43 }
 0x319   :  { %7658 = vmatpush1.bf16.msra.mxu1 %v9357_v44  ;;  %7315 = vmatprep.subr.bf16.mxu0 %v9362_v45  ;;  %v9405_v45 = vld [vmem:[#allocation8 + $0x6c8] ss:$16 sps:$4 sm:$0xff]  }
 0x31a   :  { %7659 = vmatprep.subr.bf16.mxu1 %v9365_v48 }
 0x31c   :  { %7316 = vmatpush1.bf16.msra.mxu0 %v9360_v51 }
 0x31d   :  { %7660 = vmatpush1.bf16.msra.mxu1 %v9363_v52  ;;  %7328 = vmatprep.subr.bf16.mxu0 %v9368_v56  ;;  %v3983_v52 = vmul.bf16 %v3967_v15, %v10213_v49  ;;  %v9441_v15 = vld [vmem:[#allocation8 + $0x788] ss:$16 sps:$4 sm:$0xff]  }
 0x31e   :  { %7672 = vmatprep.subr.bf16.mxu1 %v9371_v60 }
 0x31f   :  { %7318 = vmatmul.mubr.bf16.vlgmr.msra.gmra.mrb[16].mxu0 %v4093_v0 }
 0x320   :  { %7662 = vmatmul.mubr.bf16.vlgmr.msra.gmra.mrb[16].mxu1 %v4093_v0  ;;  %7329 = vmatpush1.bf16.msra.mxu0 %v9366_v62  ;;  %v9408_v0 = vld [vmem:[#allocation8 + $0x6e0] ss:$16 sps:$4 sm:$0xff]  }
 0x321   :  { %7360 = vmatprep.mubr.bf16.mxu0 %v4096_v3  ;;  %7673 = vmatpush1.bf16.msra.mxu1 %v9369_v1  ;;  %v3986_v1 = vmul.bf16 %v3970_v57, %v10253_v9  ;;  %v9455_v57 = vld [vmem:[#allocation8 + $0x7cc] ss:$16 sps:$4 sm:$0xff]  }
 0x322   :  { %7704 = vmatprep.mubr.bf16.mxu1 %v4096_v3  ;;  %7330 = vmatprep.subr.bf16.mxu0 %v9374_v2  ;;  %v9411_v3 = vld [vmem:[#allocation8 + $0x6e8] ss:$16 sps:$4 sm:$0xff]  }
 0x323   :  { %7674 = vmatprep.subr.bf16.mxu1 %v9377_v4  ;;  %v9416_v4 = vld [vmem:[#allocation8 + $0x704] ss:$16 sps:$4 sm:$0xff]  }
 0x324   :  { %7331 = vmatpush1.bf16.msra.mxu0 %v9372_v5  ;;  %v9419_v5 = vld [vmem:[#allocation8 + $0x70c] ss:$16 sps:$4 sm:$0xff]  }
 0x325   :  { %7675 = vmatpush1.bf16.msra.mxu1 %v9375_v7  ;;  %7332 = vmatprep.subr.bf16.mxu0 %v9380_v11  ;;  %v3999_v7 = vmul.bf16 1027030327, %v3983_v52  ;;  %v9414_v11 = vld [vmem:[#allocation8 + $0x700] ss:$16 sps:$4 sm:$0xff]  }
 0x326   :  { %7676 = vmatprep.subr.bf16.mxu1 %v9383_v12  ;;  %v4002_v12 = vmul.bf16 1027030327, %v3986_v1  ;;  %v9470_v1 = vld [vmem:[#allocation8 + $0x824] ss:$16 sps:$4 sm:$0xff]  }
 0x328   :  { %7333 = vmatpush1.bf16.msra.mxu0 %v9378_v46  ;;  %v9417_v46 = vld [vmem:[#allocation8 + $0x708] ss:$16 sps:$4 sm:$0xff]  }
 0x329   :  { %7677 = vmatpush1.bf16.msra.mxu1 %v9381_v10  ;;  %7334 = vmatprep.subr.bf16.mxu0 %v9386_v13  ;;  %v9422_v10 = vld [vmem:[#allocation8 + $0x724] ss:$16 sps:$4 sm:$0xff]   ;;  %v9425_v13 = vld [vmem:[#allocation8 + $0x72c] ss:$16 sps:$4 sm:$0xff]  }
 0x32a   :  { %7678 = vmatprep.subr.bf16.mxu1 %v9389_v54  ;;  %v4015_v54 = vadd.bf16 %v3999_v7, %v10213_v49  ;;  %v9471_v7 = vld [vmem:[#allocation8 + $0x828] ss:$16 sps:$4 sm:$0xff]  }
 0x32c   :  { %7335 = vmatpush1.bf16.msra.mxu0 %v9384_v17  ;;  %v9420_v17 = vld [vmem:[#allocation8 + $0x720] ss:$16 sps:$4 sm:$0xff]  }
 0x32d   :  { %7679 = vmatpush1.bf16.msra.mxu1 %v9387_v18  ;;  %7336 = vmatprep.subr.bf16.mxu0 %v9392_v20  ;;  %v9423_v18 = vld [vmem:[#allocation8 + $0x728] ss:$16 sps:$4 sm:$0xff]   ;;  %v9428_v20 = vld [vmem:[#allocation8 + $0x744] ss:$16 sps:$4 sm:$0xff]  }
 0x32e   :  { %7680 = vmatprep.subr.bf16.mxu1 %v9395_v21  ;;  %v4018_v21 = vadd.bf16 %v4002_v12, %v10253_v9  ;;  %v9479_v12 = vld [vmem:[#allocation8 + $0x84c] ss:$16 sps:$4 sm:$0xff]  }
 0x330   :  { %7337 = vmatpush1.bf16.msra.mxu0 %v9390_v22  ;;  %v9431_v22 = vld [vmem:[#allocation8 + $0x74c] ss:$16 sps:$4 sm:$0xff]  }
 0x331   :  { %7681 = vmatpush1.bf16.msra.mxu1 %v9393_v23  ;;  %7338 = vmatprep.subr.bf16.mxu0 %v9398_v24  ;;  %v4031_v23 = vmul.bf16 1061961548, %v4015_v54  ;;  %v9426_v24 = vld [vmem:[#allocation8 + $0x740] ss:$16 sps:$4 sm:$0xff]   ;;  %v9483_v54 = vld [vmem:[#allocation8 + $0x868] ss:$16 sps:$4 sm:$0xff]  }
 0x332   :  { %v3850_v36 = vpop.f32.mrb[12].mxu0  ;;  %7682 = vmatprep.subr.bf16.mxu1 %v9401_v26  ;;  %v3936_v40 = vpop.f32.mrb[12].mxu1  ;;  %v9429_v26 = vld [vmem:[#allocation8 + $0x748] ss:$16 sps:$4 sm:$0xff]  }
 0x333   :  { %v3852_v16 = vpop.f32.mrb[13].mxu0  ;;  %v3938_v28 = vpop.f32.mrb[13].mxu1  ;;  %v8962_v42 = vadd.f32 %v3850_v36, %v668_v34  ;;  %v8966_v48 = vadd.f32 %v3936_v40, %v676_v50  ;;  %9860 = vtanh.bf16 %v4031_v23  ;;  %v9435_v36 = vld [vmem:[#allocation8 + $0x768] ss:$16 sps:$4 sm:$0xff]   ;;  %v9446_v40 = vld [vmem:[#allocation8 + $0x7a4] ss:$16 sps:$4 sm:$0xff]  }
 0x334   :  { %v3854_v41 = vpop.f32.mrb[14].mxu0  ;;  %7339 = vmatpush1.bf16.msra.mxu0 %v9396_v27  ;;  %v3940_v43 = vpop.f32.mrb[14].mxu1  ;;  %v8963_v25 = vadd.f32 %v3852_v16, %v672_v38  ;;  %v8967_v53 = vadd.f32 %v3938_v28, %v680_v55  ;;  %v9434_v27 = vld [vmem:[#allocation8 + $0x764] ss:$16 sps:$4 sm:$0xff]   ;;  %v9449_v16 = vld [vmem:[#allocation8 + $0x7ac] ss:$16 sps:$4 sm:$0xff]  }
 0x335   :  { %v8964_v59 = vadd.f32 %v3854_v41, %v668_v34  ;;  %7683 = vmatpush1.bf16.msra.mxu1 %v9399_v14  ;;  %v3856_v44 = vpop.f32.mrb[15].mxu0  ;;  %7340 = vmatprep.subr.bf16.mxu0 %v9404_v35  ;;  %v8968_v19 = vadd.f32 %v3940_v43, %v676_v50  ;;  %v3942_v63 = vpop.f32.mrb[15].mxu1  ;;  %v4034_v34 = vmul.bf16 1061961548, %v4018_v21  ;;  %v9437_v14 = vld [vmem:[#allocation8 + $0x76c] ss:$16 sps:$4 sm:$0xff]  }
 0x336   :  { %v8965_v51 = vadd.f32 %v3856_v44, %v672_v38  ;;  %7684 = vmatprep.subr.bf16.mxu1 %v9407_v39  ;;  %v8969_v60 = vadd.f32 %v3942_v63, %v680_v55  ;;  %v9432_v35 = vld [vmem:[#allocation8 + $0x760] ss:$16 sps:$4 sm:$0xff]   ;;  %v9440_v50 = vld [vmem:[#allocation8 + $0x784] ss:$16 sps:$4 sm:$0xff]   ;;  %v9443_v38 = vld [vmem:[#allocation8 + $0x78c] ss:$16 sps:$4 sm:$0xff]  }
 0x337   :  { %v10289_v56 = vpack.c.bf16 %v8964_v59, %v8962_v42  ;;  %v10291_v61 = vpack.c.bf16 %v8968_v19, %v8966_v48  ;;  %9862 = vtanh.bf16 %v4034_v34  ;;  %v9438_v39 = vld [vmem:[#allocation8 + $0x780] ss:$16 sps:$4 sm:$0xff]   ;;  %v9447_v28 = vld [vmem:[#allocation8 + $0x7a8] ss:$16 sps:$4 sm:$0xff]   ;;  %v9452_v41 = vld [vmem:[#allocation8 + $0x7c4] ss:$16 sps:$4 sm:$0xff]  }
 0x338   :  { %v10293_v62 = vpack.c.bf16 %v8965_v51, %v8963_v25  ;;  %7341 = vmatpush1.bf16.msra.mxu0 %v9402_v31  ;;  %v10296_v2 = vpack.c.bf16 %v8969_v60, %v8967_v53  ;;  %v9444_v55 = vld [vmem:[#allocation8 + $0x7a0] ss:$16 sps:$4 sm:$0xff]   ;;  %v9453_v43 = vld [vmem:[#allocation8 + $0x7c8] ss:$16 sps:$4 sm:$0xff]   ;;  %v9458_v44 = vld [vmem:[#allocation8 + $0x7e4] ss:$16 sps:$4 sm:$0xff]  }
 0x339   :  { %7685 = vmatpush1.bf16.msra.mxu1 %v9405_v45  ;;  %7342 = vmatprep.subr.bf16.mxu0 %v9410_v47  ;;  %v9450_v59 = vld [vmem:[#allocation8 + $0x7c0] ss:$16 sps:$4 sm:$0xff]   ;;  %v9461_v47 = vld [vmem:[#allocation8 + $0x7ec] ss:$16 sps:$4 sm:$0xff]   ;;  %v9459_v19 = vld [vmem:[#allocation8 + $0x7e8] ss:$16 sps:$4 sm:$0xff]  }
 0x33a   :  { %7686 = vmatprep.subr.bf16.mxu1 %v9413_v30  ;;  %v9456_v25 = vld [vmem:[#allocation8 + $0x7e0] ss:$16 sps:$4 sm:$0xff]   ;;  %v9464_v63 = vld [vmem:[#allocation8 + $0x804] ss:$16 sps:$4 sm:$0xff]   ;;  %v9467_v30 = vld [vmem:[#allocation8 + $0x80c] ss:$16 sps:$4 sm:$0xff]  }
 0x33b   :  { %v9462_v53 = vld [vmem:[#allocation8 + $0x800] ss:$16 sps:$4 sm:$0xff]   ;;  %v9489_v21 = vld [vmem:[#allocation8 + $0x888] ss:$16 sps:$4 sm:$0xff]   ;;  %v9497_v23 = vld [vmem:[#allocation8 + $0x8ac] ss:$16 sps:$4 sm:$0xff]  }
 0x33c   :  { %7343 = vmatpush1.bf16.msra.mxu0 %v9408_v0  ;;  %v9465_v0 = vld [vmem:[#allocation8 + $0x808] ss:$16 sps:$4 sm:$0xff]   ;;  %v9503_v34 = vld [vmem:[#allocation8 + $0x8cc] ss:$16 sps:$4 sm:$0xff]  }
 0x33d   :  { %7687 = vmatpush1.bf16.msra.mxu1 %v9411_v3  ;;  %7344 = vmatprep.subr.bf16.mxu0 %v9416_v4  ;;  %v9473_v4 = vld [vmem:[#allocation8 + $0x82c] ss:$16 sps:$4 sm:$0xff]  }
 0x33e   :  { %7688 = vmatprep.subr.bf16.mxu1 %v9419_v5  ;;  %v9861_v31 = vpop.eup %9860  ;;  %v9468_v5 = vld [vmem:[#allocation8 + $0x820] ss:$16 sps:$4 sm:$0xff]  }
 0x33f   :  { %v4063_v45 = vadd.bf16 1065369472, %v9861_v31 }
 0x340   :  { %7345 = vmatpush1.bf16.msra.mxu0 %v9414_v11  ;;  %v9476_v11 = vld [vmem:[#allocation8 + $0x844] ss:$16 sps:$4 sm:$0xff]  }
 0x341   :  { %7689 = vmatpush1.bf16.msra.mxu1 %v9417_v46  ;;  %7346 = vmatprep.subr.bf16.mxu0 %v9422_v10  ;;  %v4079_v51 = vmul.bf16 1056980736, %v4063_v45  ;;  %v9477_v46 = vld [vmem:[#allocation8 + $0x848] ss:$16 sps:$4 sm:$0xff]   ;;  %v9482_v10 = vld [vmem:[#allocation8 + $0x864] ss:$16 sps:$4 sm:$0xff]  }
 0x342   :  { %7690 = vmatprep.subr.bf16.mxu1 %v9425_v13  ;;  %v9863_v42 = vpop.eup %9862  ;;  %v9480_v13 = vld [vmem:[#allocation8 + $0x860] ss:$16 sps:$4 sm:$0xff]  }
 0x343   :  { %v4066_v48 = vadd.bf16 1065369472, %v9863_v42  ;;  %v4095_v60 = vmul.bf16 %v4079_v51, %v10213_v49  ;;  %v9474_v49 = vld [vmem:[#allocation8 + $0x840] ss:$16 sps:$4 sm:$0xff]   ;;  %v9527_v51 = vld [vmem:[#allocation8 + $0x94c] ss:$16 sps:$4 sm:$0xff]  }
 0x344   :  { %7347 = vmatpush1.bf16.msra.mxu0 %v9420_v17  ;;  %v9488_v17 = vld [vmem:[#allocation8 + $0x884] ss:$16 sps:$4 sm:$0xff]  }
 0x345   :  { %7691 = vmatpush1.bf16.msra.mxu1 %v9423_v18  ;;  %7348 = vmatprep.subr.bf16.mxu0 %v9428_v20  ;;  %v4082_v52 = vmul.bf16 1056980736, %v4066_v48  ;;  %v9491_v18 = vld [vmem:[#allocation8 + $0x88c] ss:$16 sps:$4 sm:$0xff]   ;;  %v9486_v20 = vld [vmem:[#allocation8 + $0x880] ss:$16 sps:$4 sm:$0xff]  }
 0x346   :  { %7692 = vmatprep.subr.bf16.mxu1 %v9431_v22  ;;  %v9494_v22 = vld [vmem:[#allocation8 + $0x8a4] ss:$16 sps:$4 sm:$0xff]   ;;  %v9519_v48 = vld [vmem:[#allocation8 + $0x928] ss:$16 sps:$4 sm:$0xff]  }
 0x347   :  { %v4098_v3 = vmul.bf16 %v4082_v52, %v10253_v9  ;;  %v9485_v9 = vld [vmem:[#allocation8 + $0x86c] ss:$16 sps:$4 sm:$0xff]   ;;  %v9525_v52 = vld [vmem:[#allocation8 + $0x948] ss:$16 sps:$4 sm:$0xff]  }
 0x348   :  { %7349 = vmatpush1.bf16.msra.mxu0 %v9426_v24  ;;  %v9492_v24 = vld [vmem:[#allocation8 + $0x8a0] ss:$16 sps:$4 sm:$0xff]  }
 0x349   :  { %7693 = vmatpush1.bf16.msra.mxu1 %v9429_v26  ;;  %7350 = vmatprep.subr.bf16.mxu0 %v9434_v27  ;;  %v9495_v26 = vld [vmem:[#allocation8 + $0x8a8] ss:$16 sps:$4 sm:$0xff]   ;;  %v9500_v27 = vld [vmem:[#allocation8 + $0x8c4] ss:$16 sps:$4 sm:$0xff]  }
 0x34a   :  { %7694 = vmatprep.subr.bf16.mxu1 %v9437_v14  ;;  %v3969_v14 = vmul.bf16 %v10249_v6, %v10249_v6 }
 0x34c   :  { %7351 = vmatpush1.bf16.msra.mxu0 %v9432_v35  ;;  %v9498_v35 = vld [vmem:[#allocation8 + $0x8c0] ss:$16 sps:$4 sm:$0xff]  }
 0x34d   :  { %7695 = vmatpush1.bf16.msra.mxu1 %v9435_v36  ;;  %7352 = vmatprep.subr.bf16.mxu0 %v9440_v50  ;;  %v3972_v36 = vmul.bf16 %v10256_v58, %v10256_v58  ;;  %v9501_v50 = vld [vmem:[#allocation8 + $0x8c8] ss:$16 sps:$4 sm:$0xff]  }
 0x34e   :  { %7696 = vmatprep.subr.bf16.mxu1 %v9443_v38  ;;  %v9506_v38 = vld [vmem:[#allocation8 + $0x8e4] ss:$16 sps:$4 sm:$0xff]  }
 0x350   :  { %7353 = vmatpush1.bf16.msra.mxu0 %v9438_v39  ;;  %v9509_v39 = vld [vmem:[#allocation8 + $0x8ec] ss:$16 sps:$4 sm:$0xff]  }
 0x351   :  { %7697 = vmatpush1.bf16.msra.mxu1 %v9441_v15  ;;  %7354 = vmatprep.subr.bf16.mxu0 %v9446_v40  ;;  %v3985_v15 = vmul.bf16 %v3969_v14, %v10249_v6  ;;  %v9504_v40 = vld [vmem:[#allocation8 + $0x8e0] ss:$16 sps:$4 sm:$0xff]   ;;  %v9560_v14 = vld [vmem:[#allocation8 + $0xa04] ss:$16 sps:$4 sm:$0xff]  }
 0x352   :  { %7698 = vmatprep.subr.bf16.mxu1 %v9449_v16  ;;  %v3988_v16 = vmul.bf16 %v3972_v36, %v10256_v58 }
 0x353   :  { %v4001_v31 = vmul.bf16 1027030327, %v3985_v15  ;;  %v9566_v15 = vld [vmem:[#allocation8 + $0xa24] ss:$16 sps:$4 sm:$0xff]  }
 0x354   :  { %7355 = vmatpush1.bf16.msra.mxu0 %v9444_v55  ;;  %v9507_v55 = vld [vmem:[#allocation8 + $0x8e8] ss:$16 sps:$4 sm:$0xff]   ;;  %v4004_v42 = vmul.bf16 1027030327, %v3988_v16  ;;  %v9569_v16 = vld [vmem:[#allocation8 + $0xa2c] ss:$16 sps:$4 sm:$0xff]  }
 0x355   :  { %7699 = vmatpush1.bf16.msra.mxu1 %v9447_v28  ;;  %7356 = vmatprep.subr.bf16.mxu0 %v9452_v41  ;;  %v9512_v28 = vld [vmem:[#allocation8 + $0x904] ss:$16 sps:$4 sm:$0xff]   ;;  %v9515_v41 = vld [vmem:[#allocation8 + $0x90c] ss:$16 sps:$4 sm:$0xff]   ;;  %v4017_v45 = vadd.bf16 %v4001_v31, %v10249_v6 }
 0x356   :  { %7700 = vmatprep.subr.bf16.mxu1 %v9455_v57  ;;  %v9510_v57 = vld [vmem:[#allocation8 + $0x900] ss:$16 sps:$4 sm:$0xff]   ;;  %v9575_v31 = vld [vmem:[#allocation8 + $0xa4c] ss:$16 sps:$4 sm:$0xff]  }
 0x358   :  { %7357 = vmatpush1.bf16.msra.mxu0 %v9450_v59  ;;  %v9513_v59 = vld [vmem:[#allocation8 + $0x908] ss:$16 sps:$4 sm:$0xff]  }
 0x359   :  { %7701 = vmatpush1.bf16.msra.mxu1 %v9453_v43  ;;  %7358 = vmatprep.subr.bf16.mxu0 %v9458_v44  ;;  %v9518_v43 = vld [vmem:[#allocation8 + $0x924] ss:$16 sps:$4 sm:$0xff]   ;;  %v9521_v44 = vld [vmem:[#allocation8 + $0x92c] ss:$16 sps:$4 sm:$0xff]  }
 0x35a   :  { %7702 = vmatprep.subr.bf16.mxu1 %v9461_v47  ;;  %v9516_v47 = vld [vmem:[#allocation8 + $0x920] ss:$16 sps:$4 sm:$0xff]  }
 0x35c   :  { %7359 = vmatpush1.bf16.msra.mxu0 %v9456_v25  ;;  %v9524_v25 = vld [vmem:[#allocation8 + $0x944] ss:$16 sps:$4 sm:$0xff]  }
 0x35d   :  { %7703 = vmatpush1.bf16.msra.mxu1 %v9459_v19  ;;  %7371 = vmatprep.subr.bf16.mxu0 %v9464_v63  ;;  %v4020_v19 = vadd.bf16 %v4004_v42, %v10256_v58  ;;  %v4033_v63 = vmul.bf16 1061961548, %v4017_v45  ;;  %v9578_v42 = vld [vmem:[#allocation8 + $0xa64] ss:$16 sps:$4 sm:$0xff]   ;;  %v9587_v45 = vld [vmem:[#allocation8 + $0xa8c] ss:$16 sps:$4 sm:$0xff]  }
 0x35e   :  { %7715 = vmatprep.subr.bf16.mxu1 %v9467_v30  ;;  %v9522_v30 = vld [vmem:[#allocation8 + $0x940] ss:$16 sps:$4 sm:$0xff]  }
 0x35f   :  { %7361 = vmatmul.mubr.bf16.vlgmr.msra.gmra.mrb[16].mxu0 %v4095_v60  ;;  %9864 = vtanh.bf16 %v4033_v63  ;;  %v9591_v63 = vld [vmem:[#allocation8 + $0xaa8] ss:$16 sps:$4 sm:$0xff]  }
 0x360   :  { %7705 = vmatmul.mubr.bf16.vlgmr.msra.gmra.mrb[16].mxu1 %v4095_v60  ;;  %7372 = vmatpush1.bf16.msra.mxu0 %v9462_v53  ;;  %v9530_v53 = vld [vmem:[#allocation8 + $0x964] ss:$16 sps:$4 sm:$0xff]   ;;  %v4036_v60 = vmul.bf16 1061961548, %v4020_v19  ;;  %v9593_v19 = vld [vmem:[#allocation8 + $0xaac] ss:$16 sps:$4 sm:$0xff]  }
 0x361   :  { %7403 = vmatprep.mubr.bf16.mxu0 %v4098_v3  ;;  %7716 = vmatpush1.bf16.msra.mxu1 %v9465_v0  ;;  %v9533_v0 = vld [vmem:[#allocation8 + $0x96c] ss:$16 sps:$4 sm:$0xff]  }
 0x362   :  { %7747 = vmatprep.mubr.bf16.mxu1 %v4098_v3  ;;  %7373 = vmatprep.subr.bf16.mxu0 %v9470_v1  ;;  %v9528_v1 = vld [vmem:[#allocation8 + $0x960] ss:$16 sps:$4 sm:$0xff]   ;;  %v9531_v3 = vld [vmem:[#allocation8 + $0x968] ss:$16 sps:$4 sm:$0xff]   ;;  %9866 = vtanh.bf16 %v4036_v60 }
 0x363   :  { %7717 = vmatprep.subr.bf16.mxu1 %v9473_v4  ;;  %v9536_v4 = vld [vmem:[#allocation8 + $0x984] ss:$16 sps:$4 sm:$0xff]   ;;  %v9594_v60 = vld [vmem:[#allocation8 + $0xac0] ss:$16 sps:$4 sm:$0xff]  }
 0x364   :  { %7374 = vmatpush1.bf16.msra.mxu0 %v9468_v5  ;;  %v9539_v5 = vld [vmem:[#allocation8 + $0x98c] ss:$16 sps:$4 sm:$0xff]  }
 0x365   :  { %7718 = vmatpush1.bf16.msra.mxu1 %v9471_v7  ;;  %7375 = vmatprep.subr.bf16.mxu0 %v9476_v11  ;;  %v9534_v7 = vld [vmem:[#allocation8 + $0x980] ss:$16 sps:$4 sm:$0xff]   ;;  %v9537_v11 = vld [vmem:[#allocation8 + $0x988] ss:$16 sps:$4 sm:$0xff]  }
 0x366   :  { %7719 = vmatprep.subr.bf16.mxu1 %v9479_v12  ;;  %v9542_v12 = vld [vmem:[#allocation8 + $0x9a4] ss:$16 sps:$4 sm:$0xff]  }
 0x368   :  { %7376 = vmatpush1.bf16.msra.mxu0 %v9474_v49  ;;  %v9545_v49 = vld [vmem:[#allocation8 + $0x9ac] ss:$16 sps:$4 sm:$0xff]  }
 0x369   :  { %7720 = vmatpush1.bf16.msra.mxu1 %v9477_v46  ;;  %7377 = vmatprep.subr.bf16.mxu0 %v9482_v10  ;;  %v9540_v46 = vld [vmem:[#allocation8 + $0x9a0] ss:$16 sps:$4 sm:$0xff]   ;;  %v9543_v10 = vld [vmem:[#allocation8 + $0x9a8] ss:$16 sps:$4 sm:$0xff]  }
 0x36a   :  { %7721 = vmatprep.subr.bf16.mxu1 %v9485_v9  ;;  %v9548_v9 = vld [vmem:[#allocation8 + $0x9c4] ss:$16 sps:$4 sm:$0xff]  }
 0x36c   :  { %7378 = vmatpush1.bf16.msra.mxu0 %v9480_v13  ;;  %v9865_v13 = vpop.eup %9864 }
 0x36d   :  { %7722 = vmatpush1.bf16.msra.mxu1 %v9483_v54  ;;  %7379 = vmatprep.subr.bf16.mxu0 %v9488_v17  ;;  %v9551_v54 = vld [vmem:[#allocation8 + $0x9cc] ss:$16 sps:$4 sm:$0xff]   ;;  %v9867_v17 = vpop.eup %9866 }
 0x36e   :  { %7723 = vmatprep.subr.bf16.mxu1 %v9491_v18  ;;  %v9546_v18 = vld [vmem:[#allocation8 + $0x9c0] ss:$16 sps:$4 sm:$0xff]  }
 0x370   :  { %7380 = vmatpush1.bf16.msra.mxu0 %v9486_v20  ;;  %v9549_v20 = vld [vmem:[#allocation8 + $0x9c8] ss:$16 sps:$4 sm:$0xff]  }
 0x371   :  { %7724 = vmatpush1.bf16.msra.mxu1 %v9489_v21  ;;  %7381 = vmatprep.subr.bf16.mxu0 %v9494_v22  ;;  %v9554_v21 = vld [vmem:[#allocation8 + $0x9e4] ss:$16 sps:$4 sm:$0xff]   ;;  %v4065_v22 = vadd.bf16 1065369472, %v9865_v13 }
 0x372   :  { %7725 = vmatprep.subr.bf16.mxu1 %v9497_v23  ;;  %v9557_v23 = vld [vmem:[#allocation8 + $0x9ec] ss:$16 sps:$4 sm:$0xff]  }
 0x374   :  { %7382 = vmatpush1.bf16.msra.mxu0 %v9492_v24  ;;  %v4068_v24 = vadd.bf16 1065369472, %v9867_v17  ;;  %v9614_v17 = vld [vmem:[#allocation8 + $0xb24] ss:$16 sps:$4 sm:$0xff]  }
 0x375   :  { %7726 = vmatpush1.bf16.msra.mxu1 %v9495_v26  ;;  %7383 = vmatprep.subr.bf16.mxu0 %v9500_v27  ;;  %v9552_v26 = vld [vmem:[#allocation8 + $0x9e0] ss:$16 sps:$4 sm:$0xff]   ;;  %v9555_v27 = vld [vmem:[#allocation8 + $0x9e8] ss:$16 sps:$4 sm:$0xff]  }
 0x376   :  { %7727 = vmatprep.subr.bf16.mxu1 %v9503_v34  ;;  %v4081_v34 = vmul.bf16 1056980736, %v4065_v22  ;;  %v4084_v36 = vmul.bf16 1056980736, %v4068_v24  ;;  %v9615_v22 = vld [vmem:[#allocation8 + $0xb28] ss:$16 sps:$4 sm:$0xff]  }
 0x378   :  { %7384 = vmatpush1.bf16.msra.mxu0 %v9498_v35  ;;  %v9563_v35 = vld [vmem:[#allocation8 + $0xa0c] ss:$16 sps:$4 sm:$0xff]  }
 0x379   :  { %7728 = vmatpush1.bf16.msra.mxu1 %v9501_v50  ;;  %7385 = vmatprep.subr.bf16.mxu0 %v9506_v38  ;;  %v9558_v50 = vld [vmem:[#allocation8 + $0xa00] ss:$16 sps:$4 sm:$0xff]   ;;  %v4097_v38 = vmul.bf16 %v4081_v34, %v10249_v6 }
 0x37a   :  { %7729 = vmatprep.subr.bf16.mxu1 %v9509_v39  ;;  %v9561_v39 = vld [vmem:[#allocation8 + $0xa08] ss:$16 sps:$4 sm:$0xff]   ;;  %v9570_v6 = vld [vmem:[#allocation8 + $0xa40] ss:$16 sps:$4 sm:$0xff]  }
 0x37b   :  { %v9618_v34 = vld [vmem:[#allocation8 + $0xb40] ss:$16 sps:$4 sm:$0xff]  }
 0x37c   :  { %7386 = vmatpush1.bf16.msra.mxu0 %v9504_v40  ;;  %v4100_v40 = vmul.bf16 %v4084_v36, %v10256_v58  ;;  %v9581_v58 = vld [vmem:[#allocation8 + $0xa6c] ss:$16 sps:$4 sm:$0xff]  }
 0x37d   :  { %7730 = vmatpush1.bf16.msra.mxu1 %v9507_v55  ;;  %7387 = vmatprep.subr.bf16.mxu0 %v9512_v28  ;;  %v9564_v55 = vld [vmem:[#allocation8 + $0xa20] ss:$16 sps:$4 sm:$0xff]   ;;  %v9567_v28 = vld [vmem:[#allocation8 + $0xa28] ss:$16 sps:$4 sm:$0xff]  }
 0x37e   :  { %7731 = vmatprep.subr.bf16.mxu1 %v9515_v41  ;;  %v9572_v41 = vld [vmem:[#allocation8 + $0xa44] ss:$16 sps:$4 sm:$0xff]  }
 0x380   :  { %7388 = vmatpush1.bf16.msra.mxu0 %v9510_v57  ;;  %v9573_v57 = vld [vmem:[#allocation8 + $0xa48] ss:$16 sps:$4 sm:$0xff]  }
 0x381   :  { %7732 = vmatpush1.bf16.msra.mxu1 %v9513_v59  ;;  %7389 = vmatprep.subr.bf16.mxu0 %v9518_v43  ;;  %v9576_v59 = vld [vmem:[#allocation8 + $0xa60] ss:$16 sps:$4 sm:$0xff]   ;;  %v9579_v43 = vld [vmem:[#allocation8 + $0xa68] ss:$16 sps:$4 sm:$0xff]  }
 0x382   :  { %7733 = vmatprep.subr.bf16.mxu1 %v9521_v44  ;;  %v9584_v44 = vld [vmem:[#allocation8 + $0xa84] ss:$16 sps:$4 sm:$0xff]  }
 0x384   :  { %7390 = vmatpush1.bf16.msra.mxu0 %v9516_v47  ;;  %v9582_v47 = vld [vmem:[#allocation8 + $0xa80] ss:$16 sps:$4 sm:$0xff]  }
 0x385   :  { %7734 = vmatpush1.bf16.msra.mxu1 %v9519_v48  ;;  %7391 = vmatprep.subr.bf16.mxu0 %v9524_v25  ;;  %v9585_v48 = vld [vmem:[#allocation8 + $0xa88] ss:$16 sps:$4 sm:$0xff]   ;;  %v9590_v25 = vld [vmem:[#allocation8 + $0xaa4] ss:$16 sps:$4 sm:$0xff]  }
 0x386   :  { %7735 = vmatprep.subr.bf16.mxu1 %v9527_v51  ;;  %v9588_v51 = vld [vmem:[#allocation8 + $0xaa0] ss:$16 sps:$4 sm:$0xff]  }
 0x388   :  { %7392 = vmatpush1.bf16.msra.mxu0 %v9522_v30  ;;  %v9596_v30 = vld [vmem:[#allocation8 + $0xac4] ss:$16 sps:$4 sm:$0xff]  }
 0x389   :  { %7736 = vmatpush1.bf16.msra.mxu1 %v9525_v52  ;;  %7393 = vmatprep.subr.bf16.mxu0 %v9530_v53  ;;  %v9599_v52 = vld [vmem:[#allocation8 + $0xacc] ss:$16 sps:$4 sm:$0xff]   ;;  %v3971_v53 = vmul.bf16 %v10251_v8, %v10251_v8 }
 0x38a   :  { %7737 = vmatprep.subr.bf16.mxu1 %v9533_v0  ;;  %v3974_v0 = vmul.bf16 %v10293_v62, %v10293_v62 }
 0x38c   :  { %7394 = vmatpush1.bf16.msra.mxu0 %v9528_v1  ;;  %v9597_v1 = vld [vmem:[#allocation8 + $0xac8] ss:$16 sps:$4 sm:$0xff]  }
 0x38d   :  { %7738 = vmatpush1.bf16.msra.mxu1 %v9531_v3  ;;  %7395 = vmatprep.subr.bf16.mxu0 %v9536_v4  ;;  %v9602_v3 = vld [vmem:[#allocation8 + $0xae4] ss:$16 sps:$4 sm:$0xff]   ;;  %v9605_v4 = vld [vmem:[#allocation8 + $0xaec] ss:$16 sps:$4 sm:$0xff]  }
 0x38e   :  { %7739 = vmatprep.subr.bf16.mxu1 %v9539_v5  ;;  %v3987_v5 = vmul.bf16 %v3971_v53, %v10251_v8 }
 0x390   :  { %7396 = vmatpush1.bf16.msra.mxu0 %v9534_v7  ;;  %v9600_v7 = vld [vmem:[#allocation8 + $0xae0] ss:$16 sps:$4 sm:$0xff]  }
 0x391   :  { %7740 = vmatpush1.bf16.msra.mxu1 %v9537_v11  ;;  %7397 = vmatprep.subr.bf16.mxu0 %v9542_v12  ;;  %v3990_v11 = vmul.bf16 %v3974_v0, %v10293_v62  ;;  %v9603_v12 = vld [vmem:[#allocation8 + $0xae8] ss:$16 sps:$4 sm:$0xff]  }
 0x392   :  { %7741 = vmatprep.subr.bf16.mxu1 %v9545_v49  ;;  %v9608_v49 = vld [vmem:[#allocation8 + $0xb04] ss:$16 sps:$4 sm:$0xff]  }
 0x393   :  { %v4006_v13 = vmul.bf16 1027030327, %v3990_v11  ;;  %v9663_v11 = vld [vmem:[#allocation8 + $0xc28] ss:$16 sps:$4 sm:$0xff]  }
 0x394   :  { %7398 = vmatpush1.bf16.msra.mxu0 %v9540_v46  ;;  %v9611_v46 = vld [vmem:[#allocation8 + $0xb0c] ss:$16 sps:$4 sm:$0xff]  }
 0x395   :  { %7742 = vmatpush1.bf16.msra.mxu1 %v9543_v10  ;;  %7399 = vmatprep.subr.bf16.mxu0 %v9548_v9  ;;  %v4003_v10 = vmul.bf16 1027030327, %v3987_v5  ;;  %v9606_v9 = vld [vmem:[#allocation8 + $0xb00] ss:$16 sps:$4 sm:$0xff]   ;;  %v4022_v24 = vadd.bf16 %v4006_v13, %v10293_v62  ;;  %v9665_v5 = vld [vmem:[#allocation8 + $0xc2c] ss:$16 sps:$4 sm:$0xff]  }
 0x396   :  { %7743 = vmatprep.subr.bf16.mxu1 %v9551_v54  ;;  %v9609_v54 = vld [vmem:[#allocation8 + $0xb08] ss:$16 sps:$4 sm:$0xff]  }
 0x397   :  { %v4038_v36 = vmul.bf16 1061961548, %v4022_v24  ;;  %v9675_v13 = vld [vmem:[#allocation8 + $0xc68] ss:$16 sps:$4 sm:$0xff]  }
 0x398   :  { %7400 = vmatpush1.bf16.msra.mxu0 %v9546_v18  ;;  %v9617_v18 = vld [vmem:[#allocation8 + $0xb2c] ss:$16 sps:$4 sm:$0xff]   ;;  %v9687_v24 = vld [vmem:[#allocation8 + $0xca8] ss:$16 sps:$4 sm:$0xff]  }
 0x399   :  { %7744 = vmatpush1.bf16.msra.mxu1 %v9549_v20  ;;  %7401 = vmatprep.subr.bf16.mxu0 %v9554_v21  ;;  %v4019_v20 = vadd.bf16 %v4003_v10, %v10251_v8  ;;  %v9612_v21 = vld [vmem:[#allocation8 + $0xb20] ss:$16 sps:$4 sm:$0xff]   ;;  %v9674_v10 = vld [vmem:[#allocation8 + $0xc64] ss:$16 sps:$4 sm:$0xff]  }
 0x39a   :  { %7745 = vmatprep.subr.bf16.mxu1 %v9557_v23  ;;  %v9620_v23 = vld [vmem:[#allocation8 + $0xb44] ss:$16 sps:$4 sm:$0xff]  }
 0x39c   :  { %7402 = vmatpush1.bf16.msra.mxu0 %v9552_v26  ;;  %v9623_v26 = vld [vmem:[#allocation8 + $0xb4c] ss:$16 sps:$4 sm:$0xff]  }
 0x39d   :  { %7746 = vmatpush1.bf16.msra.mxu1 %v9555_v27  ;;  %7414 = vmatprep.subr.bf16.mxu0 %v9560_v14  ;;  %v4035_v27 = vmul.bf16 1061961548, %v4019_v20  ;;  %v9621_v14 = vld [vmem:[#allocation8 + $0xb48] ss:$16 sps:$4 sm:$0xff]  }
 0x39e   :  { %7758 = vmatprep.subr.bf16.mxu1 %v9563_v35  ;;  %v9626_v35 = vld [vmem:[#allocation8 + $0xb64] ss:$16 sps:$4 sm:$0xff]   ;;  %v9681_v20 = vld [vmem:[#allocation8 + $0xc88] ss:$16 sps:$4 sm:$0xff]  }
 0x39f   :  { %7404 = vmatmul.mubr.bf16.vlgmr.msra.gmra.mrb[16].mxu0 %v4097_v38  ;;  %9868 = vtanh.bf16 %v4035_v27  ;;  %v9695_v27 = vld [vmem:[#allocation8 + $0xccc] ss:$16 sps:$4 sm:$0xff]  }
 0x3a0   :  { %7748 = vmatmul.mubr.bf16.vlgmr.msra.gmra.mrb[16].mxu1 %v4097_v38  ;;  %7415 = vmatpush1.bf16.msra.mxu0 %v9558_v50  ;;  %v9629_v50 = vld [vmem:[#allocation8 + $0xb6c] ss:$16 sps:$4 sm:$0xff]   ;;  %v9624_v38 = vld [vmem:[#allocation8 + $0xb60] ss:$16 sps:$4 sm:$0xff]   ;;  %9870 = vtanh.bf16 %v4038_v36  ;;  %v9693_v36 = vld [vmem:[#allocation8 + $0xcc8] ss:$16 sps:$4 sm:$0xff]  }
 0x3a1   :  { %7446 = vmatprep.mubr.bf16.mxu0 %v4100_v40  ;;  %7759 = vmatpush1.bf16.msra.mxu1 %v9561_v39  ;;  %v9627_v39 = vld [vmem:[#allocation8 + $0xb68] ss:$16 sps:$4 sm:$0xff]  }
 0x3a2   :  { %7790 = vmatprep.mubr.bf16.mxu1 %v4100_v40  ;;  %7416 = vmatprep.subr.bf16.mxu0 %v9566_v15  ;;  %v9632_v15 = vld [vmem:[#allocation8 + $0xb84] ss:$16 sps:$4 sm:$0xff]   ;;  %v9635_v40 = vld [vmem:[#allocation8 + $0xb8c] ss:$16 sps:$4 sm:$0xff]  }
 0x3a3   :  { %7760 = vmatprep.subr.bf16.mxu1 %v9569_v16  ;;  %v9630_v16 = vld [vmem:[#allocation8 + $0xb80] ss:$16 sps:$4 sm:$0xff]  }
 0x3a4   :  { %7417 = vmatpush1.bf16.msra.mxu0 %v9564_v55  ;;  %v9633_v55 = vld [vmem:[#allocation8 + $0xb88] ss:$16 sps:$4 sm:$0xff]  }
 0x3a5   :  { %7761 = vmatpush1.bf16.msra.mxu1 %v9567_v28  ;;  %7418 = vmatprep.subr.bf16.mxu0 %v9572_v41  ;;  %v9638_v28 = vld [vmem:[#allocation8 + $0xba4] ss:$16 sps:$4 sm:$0xff]   ;;  %v9641_v41 = vld [vmem:[#allocation8 + $0xbac] ss:$16 sps:$4 sm:$0xff]  }
 0x3a6   :  { %7762 = vmatprep.subr.bf16.mxu1 %v9575_v31  ;;  %v9636_v31 = vld [vmem:[#allocation8 + $0xba0] ss:$16 sps:$4 sm:$0xff]  }
 0x3a8   :  { %7419 = vmatpush1.bf16.msra.mxu0 %v9570_v6  ;;  %v9639_v6 = vld [vmem:[#allocation8 + $0xba8] ss:$16 sps:$4 sm:$0xff]  }
 0x3a9   :  { %7763 = vmatpush1.bf16.msra.mxu1 %v9573_v57  ;;  %7420 = vmatprep.subr.bf16.mxu0 %v9578_v42  ;;  %v9644_v57 = vld [vmem:[#allocation8 + $0xbc4] ss:$16 sps:$4 sm:$0xff]  }
 0x3aa   :  { %7764 = vmatprep.subr.bf16.mxu1 %v9581_v58  ;;  %v9869_v42 = vpop.eup %9868  ;;  %v9647_v58 = vld [vmem:[#allocation8 + $0xbcc] ss:$16 sps:$4 sm:$0xff]  }
 0x3ac   :  { %7421 = vmatpush1.bf16.msra.mxu0 %v9576_v59  ;;  %v9871_v59 = vpop.eup %9870 }
 0x3ad   :  { %7765 = vmatpush1.bf16.msra.mxu1 %v9579_v43  ;;  %7422 = vmatprep.subr.bf16.mxu0 %v9584_v44  ;;  %v9642_v43 = vld [vmem:[#allocation8 + $0xbc0] ss:$16 sps:$4 sm:$0xff]   ;;  %v9645_v44 = vld [vmem:[#allocation8 + $0xbc8] ss:$16 sps:$4 sm:$0xff]  }
 0x3ae   :  { %7766 = vmatprep.subr.bf16.mxu1 %v9587_v45  ;;  %v9650_v45 = vld [vmem:[#allocation8 + $0xbe4] ss:$16 sps:$4 sm:$0xff]  }
 0x3b0   :  { %7423 = vmatpush1.bf16.msra.mxu0 %v9582_v47  ;;  %v4067_v47 = vadd.bf16 1065369472, %v9869_v42  ;;  %v9710_v42 = vld [vmem:[#allocation8 + $0xd24] ss:$16 sps:$4 sm:$0xff]  }
 0x3b1   :  { %7767 = vmatpush1.bf16.msra.mxu1 %v9585_v48  ;;  %7424 = vmatprep.subr.bf16.mxu0 %v9590_v25  ;;  %v9653_v48 = vld [vmem:[#allocation8 + $0xbec] ss:$16 sps:$4 sm:$0xff]   ;;  %v4070_v25 = vadd.bf16 1065369472, %v9871_v59 }
 0x3b2   :  { %7768 = vmatprep.subr.bf16.mxu1 %v9593_v19  ;;  %v9648_v19 = vld [vmem:[#allocation8 + $0xbe0] ss:$16 sps:$4 sm:$0xff]  }
 0x3b3   :  { %v4086_v53 = vmul.bf16 1056980736, %v4070_v25 }
 0x3b4   :  { %7425 = vmatpush1.bf16.msra.mxu0 %v9588_v51  ;;  %v9651_v51 = vld [vmem:[#allocation8 + $0xbe8] ss:$16 sps:$4 sm:$0xff]  }
 0x3b5   :  { %7769 = vmatpush1.bf16.msra.mxu1 %v9591_v63  ;;  %7426 = vmatprep.subr.bf16.mxu0 %v9596_v30  ;;  %v4083_v63 = vmul.bf16 1056980736, %v4067_v47  ;;  %v9656_v30 = vld [vmem:[#allocation8 + $0xc04] ss:$16 sps:$4 sm:$0xff]  }
 0x3b6   :  { %7770 = vmatprep.subr.bf16.mxu1 %v9599_v52  ;;  %v9659_v52 = vld [vmem:[#allocation8 + $0xc0c] ss:$16 sps:$4 sm:$0xff]  }
 0x3b7   :  { %v4099_v0 = vmul.bf16 %v4083_v63, %v10251_v8  ;;  %v9666_v8 = vld [vmem:[#allocation8 + $0xc40] ss:$16 sps:$4 sm:$0xff]   ;;  %v9722_v63 = vld [vmem:[#allocation8 + $0xd64] ss:$16 sps:$4 sm:$0xff]  }
 0x3b8   :  { %7427 = vmatpush1.bf16.msra.mxu0 %v9594_v60  ;;  %v9654_v60 = vld [vmem:[#allocation8 + $0xc00] ss:$16 sps:$4 sm:$0xff]  }
 0x3b9   :  { %7771 = vmatpush1.bf16.msra.mxu1 %v9597_v1  ;;  %7428 = vmatprep.subr.bf16.mxu0 %v9602_v3  ;;  %v9657_v1 = vld [vmem:[#allocation8 + $0xc08] ss:$16 sps:$4 sm:$0xff]   ;;  %v9662_v3 = vld [vmem:[#allocation8 + $0xc24] ss:$16 sps:$4 sm:$0xff]  }
 0x3ba   :  { %7772 = vmatprep.subr.bf16.mxu1 %v9605_v4  ;;  %v4102_v4 = vmul.bf16 %v4086_v53, %v10293_v62  ;;  %v9677_v62 = vld [vmem:[#allocation8 + $0xc6c] ss:$16 sps:$4 sm:$0xff]   ;;  %v9720_v53 = vld [vmem:[#allocation8 + $0xd60] ss:$16 sps:$4 sm:$0xff]  }
 0x3bc   :  { %7429 = vmatpush1.bf16.msra.mxu0 %v9600_v7  ;;  %v9660_v7 = vld [vmem:[#allocation8 + $0xc20] ss:$16 sps:$4 sm:$0xff]  }
 0x3bd   :  { %7773 = vmatpush1.bf16.msra.mxu1 %v9603_v12  ;;  %7430 = vmatprep.subr.bf16.mxu0 %v9608_v49  ;;  %v9668_v12 = vld [vmem:[#allocation8 + $0xc44] ss:$16 sps:$4 sm:$0xff]   ;;  %v9671_v49 = vld [vmem:[#allocation8 + $0xc4c] ss:$16 sps:$4 sm:$0xff]  }
 0x3be   :  { %7774 = vmatprep.subr.bf16.mxu1 %v9611_v46  ;;  %v9669_v46 = vld [vmem:[#allocation8 + $0xc48] ss:$16 sps:$4 sm:$0xff]  }
 0x3c0   :  { %7431 = vmatpush1.bf16.msra.mxu0 %v9606_v9  ;;  %v9672_v9 = vld [vmem:[#allocation8 + $0xc60] ss:$16 sps:$4 sm:$0xff]  }
 0x3c1   :  { %7775 = vmatpush1.bf16.msra.mxu1 %v9609_v54  ;;  %7432 = vmatprep.subr.bf16.mxu0 %v9614_v17  ;;  %v9680_v54 = vld [vmem:[#allocation8 + $0xc84] ss:$16 sps:$4 sm:$0xff]   ;;  %v9683_v17 = vld [vmem:[#allocation8 + $0xc8c] ss:$16 sps:$4 sm:$0xff]  }
 0x3c2   :  { %7776 = vmatprep.subr.bf16.mxu1 %v9617_v18  ;;  %v9678_v18 = vld [vmem:[#allocation8 + $0xc80] ss:$16 sps:$4 sm:$0xff]  }
 0x3c4   :  { %7433 = vmatpush1.bf16.msra.mxu0 %v9612_v21  ;;  %v9686_v21 = vld [vmem:[#allocation8 + $0xca4] ss:$16 sps:$4 sm:$0xff]  }
 0x3c5   :  { %7777 = vmatpush1.bf16.msra.mxu1 %v9615_v22  ;;  %7434 = vmatprep.subr.bf16.mxu0 %v9620_v23  ;;  %v9689_v22 = vld [vmem:[#allocation8 + $0xcac] ss:$16 sps:$4 sm:$0xff]   ;;  %v9684_v23 = vld [vmem:[#allocation8 + $0xca0] ss:$16 sps:$4 sm:$0xff]  }
 0x3c6   :  { %7778 = vmatprep.subr.bf16.mxu1 %v9623_v26  ;;  %v9692_v26 = vld [vmem:[#allocation8 + $0xcc4] ss:$16 sps:$4 sm:$0xff]  }
 0x3c8   :  { %7435 = vmatpush1.bf16.msra.mxu0 %v9618_v34  ;;  %v3973_v34 = vmul.bf16 %v10289_v56, %v10289_v56 }
 0x3c9   :  { %7779 = vmatpush1.bf16.msra.mxu1 %v9621_v14  ;;  %7436 = vmatprep.subr.bf16.mxu0 %v9626_v35  ;;  %v9690_v14 = vld [vmem:[#allocation8 + $0xcc0] ss:$16 sps:$4 sm:$0xff]   ;;  %v3976_v35 = vmul.bf16 %v10296_v2, %v10296_v2 }
 0x3ca   :  { %7780 = vmatprep.subr.bf16.mxu1 %v9629_v50  ;;  %v9698_v50 = vld [vmem:[#allocation8 + $0xce4] ss:$16 sps:$4 sm:$0xff]  }
 0x3cc   :  { %7437 = vmatpush1.bf16.msra.mxu0 %v9624_v38  ;;  %v9701_v38 = vld [vmem:[#allocation8 + $0xcec] ss:$16 sps:$4 sm:$0xff]  }
 0x3cd   :  { %7781 = vmatpush1.bf16.msra.mxu1 %v9627_v39  ;;  %7438 = vmatprep.subr.bf16.mxu0 %v9632_v15  ;;  %v3989_v39 = vmul.bf16 %v3973_v34, %v10289_v56  ;;  %v9696_v15 = vld [vmem:[#allocation8 + $0xce0] ss:$16 sps:$4 sm:$0xff]  }
 0x3ce   :  { %7782 = vmatprep.subr.bf16.mxu1 %v9635_v40  ;;  %v3992_v40 = vmul.bf16 %v3976_v35, %v10296_v2  ;;  %v9758_v35 = vld [vmem:[#allocation8 + $0xe24] ss:$16 sps:$4 sm:$0xff]  }
 0x3d0   :  { %7439 = vmatpush1.bf16.msra.mxu0 %v9630_v16  ;;  %v9699_v16 = vld [vmem:[#allocation8 + $0xce8] ss:$16 sps:$4 sm:$0xff]  }
 0x3d1   :  { %7783 = vmatpush1.bf16.msra.mxu1 %v9633_v55  ;;  %7440 = vmatprep.subr.bf16.mxu0 %v9638_v28  ;;  %v9704_v55 = vld [vmem:[#allocation8 + $0xd04] ss:$16 sps:$4 sm:$0xff]   ;;  %v9707_v28 = vld [vmem:[#allocation8 + $0xd0c] ss:$16 sps:$4 sm:$0xff]  }
 0x3d2   :  { %7784 = vmatprep.subr.bf16.mxu1 %v9641_v41  ;;  %v4005_v41 = vmul.bf16 1027030327, %v3989_v39  ;;  %v9759_v39 = vld [vmem:[#allocation8 + $0xe28] ss:$16 sps:$4 sm:$0xff]  }
 0x3d4   :  { %7441 = vmatpush1.bf16.msra.mxu0 %v9636_v31  ;;  %v9702_v31 = vld [vmem:[#allocation8 + $0xd00] ss:$16 sps:$4 sm:$0xff]   ;;  %v4021_v59 = vadd.bf16 %v4005_v41, %v10289_v56  ;;  %v9771_v41 = vld [vmem:[#allocation8 + $0xe68] ss:$16 sps:$4 sm:$0xff]  }
 0x3d5   :  { %7785 = vmatpush1.bf16.msra.mxu1 %v9639_v6  ;;  %7442 = vmatprep.subr.bf16.mxu0 %v9644_v57  ;;  %v4008_v6 = vmul.bf16 1027030327, %v3992_v40  ;;  %v9705_v57 = vld [vmem:[#allocation8 + $0xd08] ss:$16 sps:$4 sm:$0xff]   ;;  %v9767_v40 = vld [vmem:[#allocation8 + $0xe4c] ss:$16 sps:$4 sm:$0xff]  }
 0x3d6   :  { %7786 = vmatprep.subr.bf16.mxu1 %v9647_v58  ;;  %v9713_v58 = vld [vmem:[#allocation8 + $0xd2c] ss:$16 sps:$4 sm:$0xff]   ;;  %v4037_v25 = vmul.bf16 1061961548, %v4021_v59 }
 0x3d7   :  { %v4024_v47 = vadd.bf16 %v4008_v6, %v10296_v2  ;;  %v9779_v6 = vld [vmem:[#allocation8 + $0xe8c] ss:$16 sps:$4 sm:$0xff]  }
 0x3d8   :  { %7443 = vmatpush1.bf16.msra.mxu0 %v9642_v43  ;;  %v9708_v43 = vld [vmem:[#allocation8 + $0xd20] ss:$16 sps:$4 sm:$0xff]   ;;  %9872 = vtanh.bf16 %v4037_v25  ;;  %v9785_v59 = vld [vmem:[#allocation8 + $0xeac] ss:$16 sps:$4 sm:$0xff]  }
 0x3d9   :  { %7787 = vmatpush1.bf16.msra.mxu1 %v9645_v44  ;;  %7444 = vmatprep.subr.bf16.mxu0 %v9650_v45  ;;  %v9711_v44 = vld [vmem:[#allocation8 + $0xd28] ss:$16 sps:$4 sm:$0xff]   ;;  %v9716_v45 = vld [vmem:[#allocation8 + $0xd44] ss:$16 sps:$4 sm:$0xff]   ;;  %v9786_v25 = vld [vmem:[#allocation8 + $0xec0] ss:$16 sps:$4 sm:$0xff]  }
 0x3da   :  { %7788 = vmatprep.subr.bf16.mxu1 %v9653_v48  ;;  %v9719_v48 = vld [vmem:[#allocation8 + $0xd4c] ss:$16 sps:$4 sm:$0xff]  }
 0x3dc   :  { %7445 = vmatpush1.bf16.msra.mxu0 %v9648_v19  ;;  %v9714_v19 = vld [vmem:[#allocation8 + $0xd40] ss:$16 sps:$4 sm:$0xff]  }
 0x3dd   :  { %7789 = vmatpush1.bf16.msra.mxu1 %v9651_v51  ;;  %7457 = vmatprep.subr.bf16.mxu0 %v9656_v30  ;;  %v9717_v51 = vld [vmem:[#allocation8 + $0xd48] ss:$16 sps:$4 sm:$0xff]   ;;  %v4040_v30 = vmul.bf16 1061961548, %v4024_v47  ;;  %v9791_v47 = vld [vmem:[#allocation8 + $0xecc] ss:$16 sps:$4 sm:$0xff]  }
 0x3de   :  { %7801 = vmatprep.subr.bf16.mxu1 %v9659_v52  ;;  %v9725_v52 = vld [vmem:[#allocation8 + $0xd6c] ss:$16 sps:$4 sm:$0xff]  }
 0x3df   :  { %7447 = vmatmul.mubr.bf16.vlgmr.msra.gmra.mrb[16].mxu0 %v4099_v0  ;;  %9874 = vtanh.bf16 %v4040_v30 }
 0x3e0   :  { %7791 = vmatmul.mubr.bf16.vlgmr.msra.gmra.mrb[16].mxu1 %v4099_v0  ;;  %7458 = vmatpush1.bf16.msra.mxu0 %v9654_v60  ;;  %v9723_v60 = vld [vmem:[#allocation8 + $0xd68] ss:$16 sps:$4 sm:$0xff]   ;;  %v9728_v0 = vld [vmem:[#allocation8 + $0xd84] ss:$16 sps:$4 sm:$0xff]  }
 0x3e1   :  { %7489 = vmatprep.mubr.bf16.mxu0 %v4102_v4  ;;  %7802 = vmatpush1.bf16.msra.mxu1 %v9657_v1  ;;  %v9731_v1 = vld [vmem:[#allocation8 + $0xd8c] ss:$16 sps:$4 sm:$0xff]  }
 0x3e2   :  { %7833 = vmatprep.mubr.bf16.mxu1 %v4102_v4  ;;  %7459 = vmatprep.subr.bf16.mxu0 %v9662_v3  ;;  %v9726_v3 = vld [vmem:[#allocation8 + $0xd80] ss:$16 sps:$4 sm:$0xff]   ;;  %v9729_v4 = vld [vmem:[#allocation8 + $0xd88] ss:$16 sps:$4 sm:$0xff]  }
 0x3e3   :  { %7803 = vmatprep.subr.bf16.mxu1 %v9665_v5  ;;  %v9734_v5 = vld [vmem:[#allocation8 + $0xda4] ss:$16 sps:$4 sm:$0xff]  }
 0x3e4   :  { %7460 = vmatpush1.bf16.msra.mxu0 %v9660_v7  ;;  %v9737_v7 = vld [vmem:[#allocation8 + $0xdac] ss:$16 sps:$4 sm:$0xff]  }
 0x3e5   :  { %7804 = vmatpush1.bf16.msra.mxu1 %v9663_v11  ;;  %7461 = vmatprep.subr.bf16.mxu0 %v9668_v12  ;;  %v9732_v11 = vld [vmem:[#allocation8 + $0xda0] ss:$16 sps:$4 sm:$0xff]   ;;  %v9735_v12 = vld [vmem:[#allocation8 + $0xda8] ss:$16 sps:$4 sm:$0xff]  }
 0x3e6   :  { %7805 = vmatprep.subr.bf16.mxu1 %v9671_v49  ;;  %v9740_v49 = vld [vmem:[#allocation8 + $0xdc4] ss:$16 sps:$4 sm:$0xff]  }
 0x3e8   :  { %7462 = vmatpush1.bf16.msra.mxu0 %v9666_v8  ;;  %v9873_v8 = vpop.eup %9872 }
 0x3e9   :  { %7806 = vmatpush1.bf16.msra.mxu1 %v9669_v46  ;;  %7463 = vmatprep.subr.bf16.mxu0 %v9674_v10  ;;  %v9743_v46 = vld [vmem:[#allocation8 + $0xdcc] ss:$16 sps:$4 sm:$0xff]  }
 0x3ea   :  { %7807 = vmatprep.subr.bf16.mxu1 %v9677_v62  ;;  %v9875_v10 = vpop.eup %9874  ;;  %v9738_v62 = vld [vmem:[#allocation8 + $0xdc0] ss:$16 sps:$4 sm:$0xff]  }
 0x3ec   :  { %7464 = vmatpush1.bf16.msra.mxu0 %v9672_v9  ;;  %v9741_v9 = vld [vmem:[#allocation8 + $0xdc8] ss:$16 sps:$4 sm:$0xff]  }
 0x3ed   :  { %7808 = vmatpush1.bf16.msra.mxu1 %v9675_v13  ;;  %7465 = vmatprep.subr.bf16.mxu0 %v9680_v54  ;;  %v9746_v13 = vld [vmem:[#allocation8 + $0xde4] ss:$16 sps:$4 sm:$0xff]   ;;  %v4069_v54 = vadd.bf16 1065369472, %v9873_v8 }
 0x3ee   :  { %7809 = vmatprep.subr.bf16.mxu1 %v9683_v17  ;;  %v9749_v17 = vld [vmem:[#allocation8 + $0xdec] ss:$16 sps:$4 sm:$0xff]   ;;  %v9812_v8 = vld [vmem:[#allocation8 + $0xf44] ss:$16 sps:$4 sm:$0xff]  }
 0x3f0   :  { %7466 = vmatpush1.bf16.msra.mxu0 %v9678_v18  ;;  %v4072_v18 = vadd.bf16 1065369472, %v9875_v10 }
 0x3f1   :  { %7810 = vmatpush1.bf16.msra.mxu1 %v9681_v20  ;;  %7467 = vmatprep.subr.bf16.mxu0 %v9686_v21  ;;  %v9744_v20 = vld [vmem:[#allocation8 + $0xde0] ss:$16 sps:$4 sm:$0xff]   ;;  %v9747_v21 = vld [vmem:[#allocation8 + $0xde8] ss:$16 sps:$4 sm:$0xff]  }
 0x3f2   :  { %7811 = vmatprep.subr.bf16.mxu1 %v9689_v22  ;;  %v4085_v22 = vmul.bf16 1056980736, %v4069_v54  ;;  %v9821_v54 = vld [vmem:[#allocation8 + $0xf6c] ss:$16 sps:$4 sm:$0xff]  }
 0x3f4   :  { %7468 = vmatpush1.bf16.msra.mxu0 %v9684_v23  ;;  %v9752_v23 = vld [vmem:[#allocation8 + $0xe04] ss:$16 sps:$4 sm:$0xff]   ;;  %v4101_v34 = vmul.bf16 %v4085_v22, %v10289_v56  ;;  %v9762_v56 = vld [vmem:[#allocation8 + $0xe40] ss:$16 sps:$4 sm:$0xff]  }
 0x3f5   :  { %7812 = vmatpush1.bf16.msra.mxu1 %v9687_v24  ;;  %7469 = vmatprep.subr.bf16.mxu0 %v9692_v26  ;;  %v9755_v24 = vld [vmem:[#allocation8 + $0xe0c] ss:$16 sps:$4 sm:$0xff]   ;;  %v4088_v26 = vmul.bf16 1056980736, %v4072_v18  ;;  %v9819_v18 = vld [vmem:[#allocation8 + $0xf68] ss:$16 sps:$4 sm:$0xff]  }
 0x3f6   :  { %7813 = vmatprep.subr.bf16.mxu1 %v9695_v27  ;;  %v9750_v27 = vld [vmem:[#allocation8 + $0xe00] ss:$16 sps:$4 sm:$0xff]  }
 0x3f7   :  { %v9822_v22 = vld [vmem:[#allocation8 + $0xf80] ss:$16 sps:$4 sm:$0xff]  }
 0x3f8   :  { %7470 = vmatpush1.bf16.msra.mxu0 %v9690_v14  ;;  %v9753_v14 = vld [vmem:[#allocation8 + $0xe08] ss:$16 sps:$4 sm:$0xff]  }
 0x3f9   :  { %7814 = vmatpush1.bf16.msra.mxu1 %v9693_v36  ;;  %7471 = vmatprep.subr.bf16.mxu0 %v9698_v50  ;;  %v4104_v36 = vmul.bf16 %v4088_v26, %v10296_v2  ;;  %v9761_v50 = vld [vmem:[#allocation8 + $0xe2c] ss:$16 sps:$4 sm:$0xff]  }
 0x3fa   :  { %7815 = vmatprep.subr.bf16.mxu1 %v9701_v38  ;;  %v9756_v38 = vld [vmem:[#allocation8 + $0xe20] ss:$16 sps:$4 sm:$0xff]   ;;  %v9773_v2 = vld [vmem:[#allocation8 + $0xe6c] ss:$16 sps:$4 sm:$0xff]  }
 0x3fb   :  { %v9833_v26 = vld [vmem:[#allocation8 + $0xfac] ss:$16 sps:$4 sm:$0xff]  }
 0x3fc   :  { %7472 = vmatpush1.bf16.msra.mxu0 %v9696_v15  ;;  %v9764_v15 = vld [vmem:[#allocation8 + $0xe44] ss:$16 sps:$4 sm:$0xff]  }
 0x3fd   :  { %7816 = vmatpush1.bf16.msra.mxu1 %v9699_v16  ;;  %7473 = vmatprep.subr.bf16.mxu0 %v9704_v55  ;;  %v9765_v16 = vld [vmem:[#allocation8 + $0xe48] ss:$16 sps:$4 sm:$0xff]   ;;  %v9770_v55 = vld [vmem:[#allocation8 + $0xe64] ss:$16 sps:$4 sm:$0xff]  }
 0x3fe   :  { %7817 = vmatprep.subr.bf16.mxu1 %v9707_v28  ;;  %v9768_v28 = vld [vmem:[#allocation8 + $0xe60] ss:$16 sps:$4 sm:$0xff]  }
 0x400   :  { %7474 = vmatpush1.bf16.msra.mxu0 %v9702_v31  ;;  %v9776_v31 = vld [vmem:[#allocation8 + $0xe84] ss:$16 sps:$4 sm:$0xff]  }
 0x401   :  { %7818 = vmatpush1.bf16.msra.mxu1 %v9705_v57  ;;  %7475 = vmatprep.subr.bf16.mxu0 %v9710_v42  ;;  %v9774_v57 = vld [vmem:[#allocation8 + $0xe80] ss:$16 sps:$4 sm:$0xff]   ;;  %v9777_v42 = vld [vmem:[#allocation8 + $0xe88] ss:$16 sps:$4 sm:$0xff]  }
 0x402   :  { %7819 = vmatprep.subr.bf16.mxu1 %v9713_v58  ;;  %v9782_v58 = vld [vmem:[#allocation8 + $0xea4] ss:$16 sps:$4 sm:$0xff]  }
 0x404   :  { %7476 = vmatpush1.bf16.msra.mxu0 %v9708_v43  ;;  %v9780_v43 = vld [vmem:[#allocation8 + $0xea0] ss:$16 sps:$4 sm:$0xff]  }
 0x405   :  { %7820 = vmatpush1.bf16.msra.mxu1 %v9711_v44  ;;  %7477 = vmatprep.subr.bf16.mxu0 %v9716_v45  ;;  %v9783_v44 = vld [vmem:[#allocation8 + $0xea8] ss:$16 sps:$4 sm:$0xff]   ;;  %v9788_v45 = vld [vmem:[#allocation8 + $0xec4] ss:$16 sps:$4 sm:$0xff]  }
 0x406   :  { %7821 = vmatprep.subr.bf16.mxu1 %v9719_v48  ;;  %v3975_v48 = vmul.bf16 %v10291_v61, %v10291_v61 }
 0x408   :  { %7478 = vmatpush1.bf16.msra.mxu0 %v9714_v19  ;;  %v9789_v19 = vld [vmem:[#allocation8 + $0xec8] ss:$16 sps:$4 sm:$0xff]   ;;  %v3991_v30 = vmul.bf16 %v3975_v48, %v10291_v61 }
 0x409   :  { %7822 = vmatpush1.bf16.msra.mxu1 %v9717_v51  ;;  %7479 = vmatprep.subr.bf16.mxu0 %v9722_v63  ;;  %v9794_v51 = vld [vmem:[#allocation8 + $0xee4] ss:$16 sps:$4 sm:$0xff]   ;;  %v9797_v63 = vld [vmem:[#allocation8 + $0xeec] ss:$16 sps:$4 sm:$0xff]  }
 0x40a   :  { %7823 = vmatprep.subr.bf16.mxu1 %v9725_v52  ;;  %v9792_v52 = vld [vmem:[#allocation8 + $0xee0] ss:$16 sps:$4 sm:$0xff]  }
 0x40c   :  { %7480 = vmatpush1.bf16.msra.mxu0 %v9720_v53  ;;  %v9795_v53 = vld [vmem:[#allocation8 + $0xee8] ss:$16 sps:$4 sm:$0xff]  }
 0x40d   :  { %7824 = vmatpush1.bf16.msra.mxu1 %v9723_v60  ;;  %7481 = vmatprep.subr.bf16.mxu0 %v9728_v0  ;;  %v9800_v60 = vld [vmem:[#allocation8 + $0xf04] ss:$16 sps:$4 sm:$0xff]   ;;  %v9803_v0 = vld [vmem:[#allocation8 + $0xf0c] ss:$16 sps:$4 sm:$0xff]  }
 0x40e   :  { %7825 = vmatprep.subr.bf16.mxu1 %v9731_v1  ;;  %v4007_v1 = vmul.bf16 1027030327, %v3991_v30 }
 0x410   :  { %7482 = vmatpush1.bf16.msra.mxu0 %v9726_v3  ;;  %v9798_v3 = vld [vmem:[#allocation8 + $0xf00] ss:$16 sps:$4 sm:$0xff]  }
 0x411   :  { %7826 = vmatpush1.bf16.msra.mxu1 %v9729_v4  ;;  %7483 = vmatprep.subr.bf16.mxu0 %v9734_v5  ;;  %v9801_v4 = vld [vmem:[#allocation8 + $0xf08] ss:$16 sps:$4 sm:$0xff]   ;;  %v9806_v5 = vld [vmem:[#allocation8 + $0xf24] ss:$16 sps:$4 sm:$0xff]  }
 0x412   :  { %7827 = vmatprep.subr.bf16.mxu1 %v9737_v7  ;;  %v9809_v7 = vld [vmem:[#allocation8 + $0xf2c] ss:$16 sps:$4 sm:$0xff]  }
 0x414   :  { %7484 = vmatpush1.bf16.msra.mxu0 %v9732_v11  ;;  %v4023_v11 = vadd.bf16 %v4007_v1, %v10291_v61 }
 0x415   :  { %7828 = vmatpush1.bf16.msra.mxu1 %v9735_v12  ;;  %7485 = vmatprep.subr.bf16.mxu0 %v9740_v49  ;;  %v9804_v12 = vld [vmem:[#allocation8 + $0xf20] ss:$16 sps:$4 sm:$0xff]   ;;  %v9807_v49 = vld [vmem:[#allocation8 + $0xf28] ss:$16 sps:$4 sm:$0xff]  }
 0x416   :  { %7829 = vmatprep.subr.bf16.mxu1 %v9743_v46  ;;  %v9815_v46 = vld [vmem:[#allocation8 + $0xf4c] ss:$16 sps:$4 sm:$0xff]   ;;  %v4039_v10 = vmul.bf16 1061961548, %v4023_v11 }
 0x418   :  { %7486 = vmatpush1.bf16.msra.mxu0 %v9738_v62  ;;  %v9810_v62 = vld [vmem:[#allocation8 + $0xf40] ss:$16 sps:$4 sm:$0xff]   ;;  %9876 = vtanh.bf16 %v4039_v10 }
 0x419   :  { %7830 = vmatpush1.bf16.msra.mxu1 %v9741_v9  ;;  %7487 = vmatprep.subr.bf16.mxu0 %v9746_v13  ;;  %v9813_v9 = vld [vmem:[#allocation8 + $0xf48] ss:$16 sps:$4 sm:$0xff]   ;;  %v9818_v13 = vld [vmem:[#allocation8 + $0xf64] ss:$16 sps:$4 sm:$0xff]  }
 0x41a   :  { %7831 = vmatprep.subr.bf16.mxu1 %v9749_v17  ;;  %v9816_v17 = vld [vmem:[#allocation8 + $0xf60] ss:$16 sps:$4 sm:$0xff]  }
 0x41c   :  { %7488 = vmatpush1.bf16.msra.mxu0 %v9744_v20  ;;  %v9824_v20 = vld [vmem:[#allocation8 + $0xf84] ss:$16 sps:$4 sm:$0xff]  }
 0x41d   :  { %7832 = vmatpush1.bf16.msra.mxu1 %v9747_v21  ;;  %7500 = vmatprep.subr.bf16.mxu0 %v9752_v23  ;;  %v9827_v21 = vld [vmem:[#allocation8 + $0xf8c] ss:$16 sps:$4 sm:$0xff]   ;;  %v9825_v23 = vld [vmem:[#allocation8 + $0xf88] ss:$16 sps:$4 sm:$0xff]  }
 0x41e   :  { %7844 = vmatprep.subr.bf16.mxu1 %v9755_v24  ;;  %v9830_v24 = vld [vmem:[#allocation8 + $0xfa4] ss:$16 sps:$4 sm:$0xff]  }
 0x41f   :  { %7490 = vmatmul.mubr.bf16.vlgmr.msra.gmra.mrb[16].mxu0 %v4101_v34 }
 0x420   :  { %7834 = vmatmul.mubr.bf16.vlgmr.msra.gmra.mrb[16].mxu1 %v4101_v34  ;;  %7501 = vmatpush1.bf16.msra.mxu0 %v9750_v27  ;;  %v9828_v27 = vld [vmem:[#allocation8 + $0xfa0] ss:$16 sps:$4 sm:$0xff]   ;;  %v9831_v34 = vld [vmem:[#allocation8 + $0xfa8] ss:$16 sps:$4 sm:$0xff]  }
 0x421   :  { %7532 = vmatprep.mubr.bf16.mxu0 %v4104_v36  ;;  %7845 = vmatpush1.bf16.msra.mxu1 %v9753_v14  ;;  %v9836_v14 = vld [vmem:[#allocation8 + $0xfc4] ss:$16 sps:$4 sm:$0xff]  }
 0x422   :  { %7876 = vmatprep.mubr.bf16.mxu1 %v4104_v36  ;;  %7502 = vmatprep.subr.bf16.mxu0 %v9758_v35  ;;  %v9839_v36 = vld [vmem:[#allocation8 + $0xfcc] ss:$16 sps:$4 sm:$0xff]  }
 0x423   :  { %7846 = vmatprep.subr.bf16.mxu1 %v9761_v50  ;;  %v9877_v35 = vpop.eup %9876  ;;  %v9834_v50 = vld [vmem:[#allocation8 + $0xfc0] ss:$16 sps:$4 sm:$0xff]  }
 0x424   :  { %7503 = vmatpush1.bf16.msra.mxu0 %v9756_v38  ;;  %v9837_v38 = vld [vmem:[#allocation8 + $0xfc8] ss:$16 sps:$4 sm:$0xff]  }
 0x425   :  { %7847 = vmatpush1.bf16.msra.mxu1 %v9759_v39  ;;  %7504 = vmatprep.subr.bf16.mxu0 %v9764_v15  ;;  %v9842_v39 = vld [vmem:[#allocation8 + $0xfe4] ss:$16 sps:$4 sm:$0xff]   ;;  %v4071_v15 = vadd.bf16 1065369472, %v9877_v35 }
 0x426   :  { %7848 = vmatprep.subr.bf16.mxu1 %v9767_v40  ;;  %v9845_v40 = vld [vmem:[#allocation8 + $0xfec] ss:$16 sps:$4 sm:$0xff]  }
 0x428   :  { %7505 = vmatpush1.bf16.msra.mxu0 %v9762_v56  ;;  %v9840_v56 = vld [vmem:[#allocation8 + $0xfe0] ss:$16 sps:$4 sm:$0xff]  }
 0x429   :  { %7849 = vmatpush1.bf16.msra.mxu1 %v9765_v16  ;;  %7506 = vmatprep.subr.bf16.mxu0 %v9770_v55  ;;  %v9843_v16 = vld [vmem:[#allocation8 + $0xfe8] ss:$16 sps:$4 sm:$0xff]   ;;  %v4087_v55 = vmul.bf16 1056980736, %v4071_v15 }
 0x42a   :  { %7850 = vmatprep.subr.bf16.mxu1 %v9773_v2 }
 0x42b   :  { %v4103_v2 = vmul.bf16 %v4087_v55, %v10291_v61 }
 0x42c   :  { %7507 = vmatpush1.bf16.msra.mxu0 %v9768_v28  ;;  %v4617_v28 = vld [vmem:[#allocation10] sm:$0xf] }
 0x42d   :  { %7851 = vmatpush1.bf16.msra.mxu1 %v9771_v41  ;;  %7508 = vmatprep.subr.bf16.mxu0 %v9776_v31  ;;  %v4622_v41 = vrot.slane %v4617_v28, %v10156_v29  ;;  %v4630_v31 = vrot.slane %v4617_v28, %v10161_v32 }
 0x42e   :  { %7852 = vmatprep.subr.bf16.mxu1 %v9779_v6  ;;  %v4626_v6 = vrot.slane %v4617_v28, %v10164_v33 }
 0x430   :  { %7509 = vmatpush1.bf16.msra.mxu0 %v9774_v57  ;;  %v4634_v57 = vrot.slane %v4617_v28, %v10167_v37 }
 0x431   :  { %7853 = vmatpush1.bf16.msra.mxu1 %v9777_v42  ;;  %7510 = vmatprep.subr.bf16.mxu0 %v9782_v58 }
 0x432   :  { %7854 = vmatprep.subr.bf16.mxu1 %v9785_v59 }
 0x434   :  { %7511 = vmatpush1.bf16.msra.mxu0 %v9780_v43 }
 0x435   :  { %7855 = vmatpush1.bf16.msra.mxu1 %v9783_v44  ;;  %7512 = vmatprep.subr.bf16.mxu0 %v9788_v45 }
 0x436   :  { %7856 = vmatprep.subr.bf16.mxu1 %v9791_v47 }
 0x438   :  { %7513 = vmatpush1.bf16.msra.mxu0 %v9786_v25 }
 0x439   :  { %7857 = vmatpush1.bf16.msra.mxu1 %v9789_v19  ;;  %7514 = vmatprep.subr.bf16.mxu0 %v9794_v51 }
 0x43a   :  { %7858 = vmatprep.subr.bf16.mxu1 %v9797_v63 }
 0x43c   :  { %7515 = vmatpush1.bf16.msra.mxu0 %v9792_v52 }
 0x43d   :  { %7859 = vmatpush1.bf16.msra.mxu1 %v9795_v53  ;;  %7516 = vmatprep.subr.bf16.mxu0 %v9800_v60 }
 0x43e   :  { %7860 = vmatprep.subr.bf16.mxu1 %v9803_v0 }
 0x440   :  { %7517 = vmatpush1.bf16.msra.mxu0 %v9798_v3 }
 0x441   :  { %7861 = vmatpush1.bf16.msra.mxu1 %v9801_v4  ;;  %7518 = vmatprep.subr.bf16.mxu0 %v9806_v5 }
 0x442   :  { %7862 = vmatprep.subr.bf16.mxu1 %v9809_v7 }
 0x444   :  { %7519 = vmatpush1.bf16.msra.mxu0 %v9804_v12 }
 0x445   :  { %7863 = vmatpush1.bf16.msra.mxu1 %v9807_v49  ;;  %7520 = vmatprep.subr.bf16.mxu0 %v9812_v8 }
 0x446   :  { %7864 = vmatprep.subr.bf16.mxu1 %v9815_v46 }
 0x448   :  { %7521 = vmatpush1.bf16.msra.mxu0 %v9810_v62 }
 0x449   :  { %7865 = vmatpush1.bf16.msra.mxu1 %v9813_v9  ;;  %7522 = vmatprep.subr.bf16.mxu0 %v9818_v13 }
 0x44a   :  { %7866 = vmatprep.subr.bf16.mxu1 %v9821_v54 }
 0x44c   :  { %7523 = vmatpush1.bf16.msra.mxu0 %v9816_v17 }
 0x44d   :  { %7867 = vmatpush1.bf16.msra.mxu1 %v9819_v18  ;;  %7524 = vmatprep.subr.bf16.mxu0 %v9824_v20 }
 0x44e   :  { %7868 = vmatprep.subr.bf16.mxu1 %v9827_v21 }
 0x450   :  { %7525 = vmatpush1.bf16.msra.mxu0 %v9822_v22 }
 0x451   :  { %7869 = vmatpush1.bf16.msra.mxu1 %v9825_v23  ;;  %7526 = vmatprep.subr.bf16.mxu0 %v9830_v24 }
 0x452   :  { %7870 = vmatprep.subr.bf16.mxu1 %v9833_v26 }
 0x454   :  { %7527 = vmatpush1.bf16.msra.mxu0 %v9828_v27 }
 0x455   :  { %7871 = vmatpush1.bf16.msra.mxu1 %v9831_v34  ;;  %7528 = vmatprep.subr.bf16.mxu0 %v9836_v14 }
 0x456   :  { %7872 = vmatprep.subr.bf16.mxu1 %v9839_v36 }
 0x458   :  { %7529 = vmatpush1.bf16.msra.mxu0 %v9834_v50 }
 0x459   :  { %7873 = vmatpush1.bf16.msra.mxu1 %v9837_v38  ;;  %7530 = vmatprep.subr.bf16.mxu0 %v9842_v39 }
 0x45a   :  { %7874 = vmatprep.subr.bf16.mxu1 %v9845_v40 }
 0x45c   :  { %7531 = vmatpush1.bf16.msra.mxu0 %v9840_v56 }
 0x45d   :  { %7875 = vmatpush1.bf16.msra.mxu1 %v9843_v16 }
 0x45f   :  { %7533 = vmatmul.mubr.bf16.vlgmr.msra.gmra.mrb[16].mxu0 %v4103_v2 }
 0x460   :  { %7877 = vmatmul.mubr.bf16.vlgmr.msra.gmra.mrb[16].mxu1 %v4103_v2 }
 0x532   :  { %v7534_v42 = vpop.f32.mrb[16].mxu0 }
 0x533   :  { %v8970_v58 = vadd.f32 %v7534_v42, %v4622_v41  ;;  %v7878_v59 = vpop.f32.mrb[16].mxu1  ;;  %v7536_v43 = vpop.f32.mrb[17].mxu0 }
 0x534   :  { %v8974_v44 = vadd.f32 %v7878_v59, %v4630_v31  ;;  %v8971_v45 = vadd.f32 %v7536_v43, %v4626_v6  ;;  %v7880_v47 = vpop.f32.mrb[17].mxu1  ;;  %v7538_v48 = vpop.f32.mrb[18].mxu0 }
 0x535   :  { %7887 = vst [vmem:[#allocation11] sm:$0xff] %v8970_v58  ;;  %v8975_v61 = vadd.f32 %v7880_v47, %v4634_v57  ;;  %v8972_v25 = vadd.f32 %v7538_v48, %v4622_v41  ;;  %v7882_v29 = vpop.f32.mrb[18].mxu1  ;;  %v7540_v19 = vpop.f32.mrb[19].mxu0 }
 0x536   :  { %7889 = vst [vmem:[#allocation11 + $0x10] sm:$0xff] %v8974_v44  ;;  %7888 = vst [vmem:[#allocation11 + $0x8] sm:$0xff] %v8971_v45  ;;  %v8976_v32 = vadd.f32 %v7882_v29, %v4630_v31  ;;  %v8973_v33 = vadd.f32 %v7540_v19, %v4626_v6  ;;  %v7884_v37 = vpop.f32.mrb[19].mxu1 }
 0x537   :  { %7890 = vst [vmem:[#allocation11 + $0x18] sm:$0xff] %v8975_v61  ;;  %7891 = vst [vmem:[#allocation11 + $0x20] sm:$0xff] %v8972_v25  ;;  %v8977_v51 = vadd.f32 %v7884_v37, %v4634_v57 }
 0x538   :  { %7893 = vst [vmem:[#allocation11 + $0x30] sm:$0xff] %v8976_v32  ;;  %7892 = vst [vmem:[#allocation11 + $0x28] sm:$0xff] %v8973_v33 }
 0x539   :  { %7894 = vst [vmem:[#allocation11 + $0x38] sm:$0xff] %v8977_v51 }
 0x53a   :  { %9999 = shalt.err (!%p9996_p2)
}
 0x53b   :  { %s10000_s9 = scalar_lea.hbm %s10361_s5, 1024 }
 0x53c   :  { %p10001_p3 = scmp.ne.s32.totalorder %s10361_s5, %s10000_s9  ;;  %p10004_p4 = scmp.lt.u32.totalorder %s10000_s9, %s10361_s5 }
 0x53e   :  { %p10006_p5 = pnand %p10004_p4, %p10001_p3 }
 0x540   :  { %10009 = shalt.err (!%p10006_p5)
}
 0x541   :  { %7906 = dma.vmem_to_hbm [thread:$0]  %s7901_s29, 1024, %s10361_s5, [#allocation4], %s10025_s3, %s10025_s3, %s10026_s30  }
 0x542   :  { %10016 = dma.done.wait [#allocation4], 1024  }
 0x543   :  { %10017 = vsyncadd [#allocation4], 4294966272 }
 0x544   :  { %7910 = vsyncpa [#allocation3], 1 }
 0x545   :  { %7911 = vsyncpa [#allocation6], 1 }
 0x546   :  { %7912 = vsyncpa [#allocation9], 1 }
 0x547   :  { %7913 = vsyncpa [#allocation4], 1 }

// kernel: feed_forward.1
= control target key start
LH: loop header
LB: loop body
LE: loop exit
PB: predicated region body
PF: predicated region fallthrough
CT: control target
= control target key end

     0   :  { %10 = vsyncpa [#allocation3], 0  ;;  %s10356_s0 = inlined_call_operand.hbm [shape: f32[16,512], index: 0, kind: input, shape index: {}]   ;;  %s10357_s1 = inlined_call_operand.hbm [shape: bf16[512,2048], index: 1, kind: input, shape index: {}]   ;;  %s10358_s2 = inlined_call_operand.hbm [shape: f32[1,2048], index: 2, kind: input, shape index: {}]   ;;  %s10359_s3 = inlined_call_operand.hbm [shape: bf16[2048,512], index: 3, kind: input, shape index: {}]   ;;  %s10360_s4 = inlined_call_operand.hbm [shape: f32[1,512], index: 4, kind: input, shape index: {}]   ;;  %s10361_s5 = inlined_call_operand.hbm [shape: f32[16,512], index: 5, kind: output, shape index: {}]  }
   0x1   :  { %11 = vsyncpa [#allocation6], 0 }
   0x2   :  { %12 = vsyncpa [#allocation9], 0 }
   0x3   :  { %13 = vsyncpa [#allocation4], 0  ;;  %s10018_s18 = smov [#allocation5]   ;;  %s9878_s22 = scalar_lea.hbm %s10357_s1, 65536 }
   0x4   :  { %s31_s19 = sshll.u32 %s10018_s18, 4  ;;  %p9879_p0 = scmp.ne.s32.totalorder %s10357_s1, %s9878_s22  ;;  %s32_s19 = int_to_ptr.vmem [resolvable:$true] %s31_s19 }
   0x5   :  { %p9882_p1 = scmp.lt.u32.totalorder %s9878_s22, %s10357_s1 }
   0x7   :  { %p9884_p2 = pnand %p9882_p1, %p9879_p0 }
   0x9   :  { %9887 = shalt.err (!%p9884_p2)
}
   0xa   :  { %s9888_s27 = scalar_lea.vmem %s32_s19, 65536  ;;  %p9893_p4 = scmp.lt.s32.totalorder %s32_s19, %s32_s19 }
   0xb   :  { %p9889_p3 = scmp.ne.s32.totalorder %s32_s19, %s9888_s27  ;;  %p9894_p5 = scmp.lt.s32.totalorder %s9888_s27, %s9888_s27 }
   0xd   :  { %p9895_p6 = por %p9894_p5, %p9893_p4 }
   0xf   :  { %p9896_p7 = pnand %p9895_p6, %p9889_p3 }
  0x11   :  { %9899 = shalt.err (!%p9896_p7)
}
  0x12   :  { %s10019_s28 = smov 1024   ;;  %s10020_s29 = smov 64  }
  0x13   :  { %37 = dma.hbm_to_vmem [thread:$0]  %s10357_s1, 65536, %s32_s19, [#allocation6], %s10019_s28, %s10019_s28, %s10020_s29  }
  0x14   :  { %s10021_s7 = smov [#allocation8]   ;;  %s9900_s11 = scalar_lea.hbm %s10359_s3, 65536 }
  0x15   :  { %s53_s8 = sshll.u32 %s10021_s7, 4  ;;  %p9901_p8 = scmp.ne.s32.totalorder %s10359_s3, %s9900_s11  ;;  %s54_s8 = int_to_ptr.vmem [resolvable:$true] %s53_s8 }
  0x16   :  { %p9904_p9 = scmp.lt.u32.totalorder %s9900_s11, %s10359_s3 }
  0x18   :  { %p9906_p10 = pnand %p9904_p9, %p9901_p8 }
  0x1a   :  { %9909 = shalt.err (!%p9906_p10)
}
  0x1b   :  { %s9910_s16 = scalar_lea.vmem %s54_s8, 65536  ;;  %p9915_p12 = scmp.lt.s32.totalorder %s54_s8, %s54_s8 }
  0x1c   :  { %p9911_p11 = scmp.ne.s32.totalorder %s54_s8, %s9910_s16  ;;  %p9916_p13 = scmp.lt.s32.totalorder %s9910_s16, %s9910_s16 }
  0x1e   :  { %p9917_p0 = por %p9916_p13, %p9915_p12 }
  0x20   :  { %p9918_p1 = pnand %p9917_p0, %p9911_p11 }
  0x22   :  { %9921 = shalt.err (!%p9918_p1)
}
  0x23   :  { %s10022_s1 = smov 256   ;;  %s10023_s17 = smov 16  }
  0x24   :  { %59 = dma.hbm_to_vmem [thread:$0]  %s10359_s3, 65536, %s54_s8, [#allocation9], %s10022_s1, %s10022_s1, %s10023_s17  }
  0x25   :  { %s10024_s20 = smov [#allocation2]   ;;  %s9922_s24 = scalar_lea.hbm %s10356_s0, 1024 }
  0x26   :  { %s19_s21 = sshll.u32 %s10024_s20, 4  ;;  %p9923_p2 = scmp.ne.s32.totalorder %s10356_s0, %s9922_s24  ;;  %s20_s21 = int_to_ptr.vmem [resolvable:$true] %s19_s21 }
  0x27   :  { %p9926_p3 = scmp.lt.u32.totalorder %s9922_s24, %s10356_s0 }
  0x29   :  { %p9928_p4 = pnand %p9926_p3, %p9923_p2 }
  0x2b   :  { %9931 = shalt.err (!%p9928_p4)
}
  0x2c   :  { %s9932_s29 = scalar_lea.vmem %s20_s21, 1024  ;;  %p9937_p6 = scmp.lt.s32.totalorder %s20_s21, %s20_s21 }
  0x2d   :  { %p9933_p5 = scmp.ne.s32.totalorder %s20_s21, %s9932_s29  ;;  %p9938_p7 = scmp.lt.s32.totalorder %s9932_s29, %s9932_s29 }
  0x2f   :  { %p9939_p8 = por %p9938_p7, %p9937_p6 }
  0x31   :  { %p9940_p9 = pnand %p9939_p8, %p9933_p5 }
  0x33   :  { %9943 = shalt.err (!%p9940_p9)
}
  0x34   :  { %s10025_s3 = smov 512   ;;  %s10026_s30 = smov 32  }
  0x35   :  { %25 = dma.hbm_to_vmem [thread:$0]  %s10356_s0, 1024, %s20_s21, [#allocation3], %s10025_s3, %s10025_s3, %s10026_s30  }
  0x36   :  { %s10027_s8 = smov [#allocation7]   ;;  %s10028_s10 = smov [#allocation10]  }
  0x37   :  { %s44_s9 = sshll.u32 %s10027_s8, 4  ;;  %s66_s11 = sshll.u32 %s10028_s10, 4  ;;  %s45_s9 = int_to_ptr.vmem [resolvable:$true] %s44_s9  ;;  %s67_s11 = int_to_ptr.vmem [resolvable:$true] %s66_s11 }
  0x38   :  { %s9944_s14 = scalar_lea.hbm %s10358_s2, 256 }
  0x39   :  { %p9945_p10 = scmp.ne.s32.totalorder %s10358_s2, %s9944_s14  ;;  %p9948_p11 = scmp.lt.u32.totalorder %s9944_s14, %s10358_s2 }
  0x3b   :  { %p9950_p12 = pnand %p9948_p11, %p9945_p10 }
  0x3d   :  { %9953 = shalt.err (!%p9950_p12)
}
  0x3e   :  { %s9954_s0 = scalar_lea.vmem %s45_s9, 256  ;;  %p9959_p0 = scmp.lt.s32.totalorder %s45_s9, %s45_s9 }
  0x3f   :  { %p9955_p13 = scmp.ne.s32.totalorder %s45_s9, %s9954_s0  ;;  %p9960_p1 = scmp.lt.s32.totalorder %s9954_s0, %s9954_s0 }
  0x41   :  { %p9961_p2 = por %p9960_p1, %p9959_p0 }
  0x43   :  { %p9962_p3 = pnand %p9961_p2, %p9955_p13 }
  0x45   :  { %9965 = shalt.err (!%p9962_p3)
}
  0x46   :  { %47 = dma.hbm_to_vmem [thread:$0]  %s10358_s2, 256, %s45_s9, [#allocation6]  }
  0x47   :  { %s9966_s22 = scalar_lea.hbm %s10360_s4, 64 }
  0x48   :  { %p9967_p4 = scmp.ne.s32.totalorder %s10360_s4, %s9966_s22  ;;  %p9970_p5 = scmp.lt.u32.totalorder %s9966_s22, %s10360_s4 }
  0x4a   :  { %p9972_p6 = pnand %p9970_p5, %p9967_p4 }
  0x4c   :  { %9975 = shalt.err (!%p9972_p6)
}
  0x4d   :  { %s9976_s27 = scalar_lea.vmem %s67_s11, 64  ;;  %p9981_p8 = scmp.lt.s32.totalorder %s67_s11, %s67_s11 }
  0x4e   :  { %p9977_p7 = scmp.ne.s32.totalorder %s67_s11, %s9976_s27  ;;  %p9982_p9 = scmp.lt.s32.totalorder %s9976_s27, %s9976_s27 }
  0x50   :  { %p9983_p10 = por %p9982_p9, %p9981_p8 }
  0x52   :  { %p9984_p11 = pnand %p9983_p10, %p9977_p7 }
  0x54   :  { %9987 = shalt.err (!%p9984_p11)
}
  0x55   :  { %69 = dma.hbm_to_vmem [thread:$0]  %s10360_s4, 64, %s67_s11, [#allocation9]  }
  0x56   :  { %10010 = dma.done.wait [#allocation3], 1024  }
  0x57   :  { %10011 = vsyncadd [#allocation3], 4294966272 }
  0x58   :  { %10012 = dma.done.wait [#allocation6], 65792  }
  0x59   :  { %10013 = vsyncadd [#allocation6], 4294901504 }
  0x5a   :  { %10014 = dma.done.wait [#allocation9], 65600  }
  0x5b   :  { %10015 = vsyncadd [#allocation9], 4294901696  ;;  %v101_v0 = vld [vmem:[#allocation5] sm:$0xff]  ;;  %v102_v2 = vld [vmem:[#allocation5 + $0x8] sm:$0xff]  ;;  %s10029_s4 = smov [#allocation11]  }
  0x5c   :  { %v109_v1 = vld [vmem:[#allocation5 + $0x40] sm:$0xff]  ;;  %v110_v4 = vld [vmem:[#allocation5 + $0x48] sm:$0xff]  ;;  %s7900_s29 = sshll.u32 %s10029_s4, 4  ;;  %s7901_s29 = int_to_ptr.vmem [resolvable:$true] %s7900_s29 }
  0x5d   :  { %v7915_v3 = vcombine.high %v101_v0, %v109_v1  ;;  %v7914_v5 = vcombine.low %v101_v0, %v109_v1  ;;  %v117_v6 = vld [vmem:[#allocation5 + $0x80] sm:$0xff]  ;;  %v7917_v8 = vcombine.high %v102_v2, %v110_v4  ;;  %v7916_v9 = vcombine.low %v102_v2, %v110_v4  ;;  %v118_v11 = vld [vmem:[#allocation5 + $0x88] sm:$0xff]  ;;  %s9988_s6 = scalar_lea.vmem %s7901_s29, 1024  ;;  %p9993_p13 = scmp.lt.s32.totalorder %s7901_s29, %s7901_s29 }
  0x5e   :  { %v125_v7 = vld [vmem:[#allocation5 + $0xc0] sm:$0xff]  ;;  %v126_v12 = vld [vmem:[#allocation5 + $0xc8] sm:$0xff]  ;;  %p9989_p12 = scmp.ne.s32.totalorder %s7901_s29, %s9988_s6  ;;  %p9994_p0 = scmp.lt.s32.totalorder %s9988_s6, %s9988_s6 }
  0x5f   :  { %v7931_v10 = vcombine.high %v117_v6, %v125_v7  ;;  %v133_v13 = vld [vmem:[#allocation5 + $0x100] sm:$0xff]  ;;  %3257 = vmatprep.subr.bf16.mxu0 %v7915_v3  ;;  %v7933_v14 = vcombine.high %v118_v11, %v126_v12  ;;  %v134_v16 = vld [vmem:[#allocation5 + $0x108] sm:$0xff]  ;;  %3343 = vmatprep.subr.bf16.mxu1 %v7917_v8  ;;  %v7930_v18 = vcombine.low %v117_v6, %v125_v7 }
  0x60   :  { %v141_v15 = vld [vmem:[#allocation5 + $0x140] sm:$0xff]  ;;  %v142_v17 = vld [vmem:[#allocation5 + $0x148] sm:$0xff]  ;;  %3258 = vmatpush1.bf16.msra.mxu0 %v7914_v5  ;;  %3344 = vmatpush1.bf16.msra.mxu1 %v7916_v9  ;;  %v7932_v19 = vcombine.low %v118_v11, %v126_v12  ;;  %p9995_p1 = por %p9994_p0, %p9993_p13 }
  0x61   :  { %3259 = vmatprep.subr.bf16.mxu0 %v7931_v10  ;;  %v7947_v20 = vcombine.high %v133_v13, %v141_v15  ;;  %3345 = vmatprep.subr.bf16.mxu1 %v7933_v14  ;;  %v7949_v21 = vcombine.high %v134_v16, %v142_v17  ;;  %v149_v22 = vld [vmem:[#allocation5 + $0x180] sm:$0xff]  ;;  %v150_v24 = vld [vmem:[#allocation5 + $0x188] sm:$0xff]  ;;  %v7946_v26 = vcombine.low %v133_v13, %v141_v15 }
  0x62   :  { %v157_v23 = vld [vmem:[#allocation5 + $0x1c0] sm:$0xff]  ;;  %v158_v25 = vld [vmem:[#allocation5 + $0x1c8] sm:$0xff]  ;;  %v7948_v27 = vcombine.low %v134_v16, %v142_v17  ;;  %p9996_p2 = pnand %p9995_p1, %p9989_p12 }
  0x63   :  { %v7963_v28 = vcombine.high %v149_v22, %v157_v23  ;;  %v7965_v29 = vcombine.high %v150_v24, %v158_v25  ;;  %v165_v30 = vld [vmem:[#allocation5 + $0x200] sm:$0xff]  ;;  %v166_v32 = vld [vmem:[#allocation5 + $0x208] sm:$0xff]  ;;  %v7962_v34 = vcombine.low %v149_v22, %v157_v23  ;;  %v7964_v35 = vcombine.low %v150_v24, %v158_v25 }
  0x64   :  { %3260 = vmatpush1.bf16.msra.mxu0 %v7930_v18  ;;  %3346 = vmatpush1.bf16.msra.mxu1 %v7932_v19  ;;  %v173_v31 = vld [vmem:[#allocation5 + $0x240] sm:$0xff]  ;;  %v174_v33 = vld [vmem:[#allocation5 + $0x248] sm:$0xff] }
  0x65   :  { %3261 = vmatprep.subr.bf16.mxu0 %v7947_v20  ;;  %3347 = vmatprep.subr.bf16.mxu1 %v7949_v21  ;;  %v7979_v36 = vcombine.high %v165_v30, %v173_v31  ;;  %v7981_v37 = vcombine.high %v166_v32, %v174_v33  ;;  %v181_v38 = vld [vmem:[#allocation5 + $0x280] sm:$0xff]  ;;  %v182_v40 = vld [vmem:[#allocation5 + $0x288] sm:$0xff]  ;;  %v7978_v42 = vcombine.low %v165_v30, %v173_v31 }
  0x66   :  { %v189_v39 = vld [vmem:[#allocation5 + $0x2c0] sm:$0xff]  ;;  %v190_v41 = vld [vmem:[#allocation5 + $0x2c8] sm:$0xff]  ;;  %v7980_v43 = vcombine.low %v166_v32, %v174_v33 }
  0x67   :  { %v7995_v44 = vcombine.high %v181_v38, %v189_v39  ;;  %v7997_v45 = vcombine.high %v182_v40, %v190_v41  ;;  %v197_v46 = vld [vmem:[#allocation5 + $0x300] sm:$0xff]  ;;  %v198_v48 = vld [vmem:[#allocation5 + $0x308] sm:$0xff]  ;;  %v7994_v50 = vcombine.low %v181_v38, %v189_v39  ;;  %v7996_v51 = vcombine.low %v182_v40, %v190_v41 }
  0x68   :  { %3262 = vmatpush1.bf16.msra.mxu0 %v7946_v26  ;;  %3348 = vmatpush1.bf16.msra.mxu1 %v7948_v27  ;;  %v205_v47 = vld [vmem:[#allocation5 + $0x340] sm:$0xff]  ;;  %v206_v49 = vld [vmem:[#allocation5 + $0x348] sm:$0xff] }
  0x69   :  { %3263 = vmatprep.subr.bf16.mxu0 %v7963_v28  ;;  %3349 = vmatprep.subr.bf16.mxu1 %v7965_v29  ;;  %v8011_v52 = vcombine.high %v197_v46, %v205_v47  ;;  %v90_v53 = vld [vmem:[#allocation2 + $0x8] sm:$0xff]  ;;  %v8013_v55 = vcombine.high %v198_v48, %v206_v49  ;;  %v213_v56 = vld [vmem:[#allocation5 + $0x380] sm:$0xff]  ;;  %v8010_v61 = vcombine.low %v197_v46, %v205_v47 }
  0x6a   :  { %v94_v54 = vld [vmem:[#allocation2 + $0x28] sm:$0xff]  ;;  %v221_v57 = vld [vmem:[#allocation5 + $0x3c0] sm:$0xff]  ;;  %v8012_v62 = vcombine.low %v198_v48, %v206_v49 }
  0x6b   :  { %v10123_v58 = vpack.c.bf16 %v94_v54, %v90_v53  ;;  %v214_v59 = vld [vmem:[#allocation5 + $0x388] sm:$0xff]  ;;  %v8027_v63 = vcombine.high %v213_v56, %v221_v57  ;;  %v229_v1 = vld [vmem:[#allocation5 + $0x400] sm:$0xff]  ;;  %v8026_v5 = vcombine.low %v213_v56, %v221_v57 }
  0x6c   :  { %3264 = vmatpush1.bf16.msra.mxu0 %v7962_v34  ;;  %3350 = vmatpush1.bf16.msra.mxu1 %v7964_v35  ;;  %v222_v60 = vld [vmem:[#allocation5 + $0x3c8] sm:$0xff]  ;;  %v237_v2 = vld [vmem:[#allocation5 + $0x440] sm:$0xff] }
  0x6d   :  { %3265 = vmatprep.subr.bf16.mxu0 %v7979_v36  ;;  %3351 = vmatprep.subr.bf16.mxu1 %v7981_v37  ;;  %v8029_v0 = vcombine.high %v214_v59, %v222_v60  ;;  %v230_v3 = vld [vmem:[#allocation5 + $0x408] sm:$0xff]  ;;  %v8028_v6 = vcombine.low %v214_v59, %v222_v60  ;;  %v8043_v7 = vcombine.high %v229_v1, %v237_v2  ;;  %v245_v9 = vld [vmem:[#allocation5 + $0x480] sm:$0xff] }
  0x6e   :  { %3289 = vmatprep.mubr.bf16.mxu0 %v10123_v58  ;;  %3375 = vmatprep.mubr.bf16.mxu1 %v10123_v58  ;;  %v238_v4 = vld [vmem:[#allocation5 + $0x448] sm:$0xff]  ;;  %v253_v10 = vld [vmem:[#allocation5 + $0x4c0] sm:$0xff]  ;;  %v8042_v13 = vcombine.low %v229_v1, %v237_v2 }
  0x6f   :  { %v8045_v8 = vcombine.high %v230_v3, %v238_v4  ;;  %v246_v11 = vld [vmem:[#allocation5 + $0x488] sm:$0xff]  ;;  %v8044_v14 = vcombine.low %v230_v3, %v238_v4  ;;  %v8059_v15 = vcombine.high %v245_v9, %v253_v10  ;;  %v261_v17 = vld [vmem:[#allocation5 + $0x500] sm:$0xff]  ;;  %v8058_v21 = vcombine.low %v245_v9, %v253_v10 }
  0x70   :  { %3266 = vmatpush1.bf16.msra.mxu0 %v7978_v42  ;;  %3352 = vmatpush1.bf16.msra.mxu1 %v7980_v43  ;;  %v254_v12 = vld [vmem:[#allocation5 + $0x4c8] sm:$0xff]  ;;  %v269_v18 = vld [vmem:[#allocation5 + $0x540] sm:$0xff] }
  0x71   :  { %3267 = vmatprep.subr.bf16.mxu0 %v7995_v44  ;;  %3353 = vmatprep.subr.bf16.mxu1 %v7997_v45  ;;  %v8061_v16 = vcombine.high %v246_v11, %v254_v12  ;;  %v262_v19 = vld [vmem:[#allocation5 + $0x508] sm:$0xff]  ;;  %v8060_v22 = vcombine.low %v246_v11, %v254_v12  ;;  %v8075_v23 = vcombine.high %v261_v17, %v269_v18  ;;  %v277_v25 = vld [vmem:[#allocation5 + $0x580] sm:$0xff] }
  0x72   :  { %v270_v20 = vld [vmem:[#allocation5 + $0x548] sm:$0xff]  ;;  %v285_v26 = vld [vmem:[#allocation5 + $0x5c0] sm:$0xff]  ;;  %v8074_v29 = vcombine.low %v261_v17, %v269_v18  ;;  %v92_v17 = vld [vmem:[#allocation2 + $0x18] sm:$0xff] }
  0x73   :  { %v8077_v24 = vcombine.high %v262_v19, %v270_v20  ;;  %v278_v27 = vld [vmem:[#allocation5 + $0x588] sm:$0xff]  ;;  %v8076_v30 = vcombine.low %v262_v19, %v270_v20  ;;  %v8091_v31 = vcombine.high %v277_v25, %v285_v26  ;;  %v293_v33 = vld [vmem:[#allocation5 + $0x600] sm:$0xff]  ;;  %v8090_v37 = vcombine.low %v277_v25, %v285_v26  ;;  %v96_v18 = vld [vmem:[#allocation2 + $0x38] sm:$0xff] }
  0x74   :  { %3268 = vmatpush1.bf16.msra.mxu0 %v7994_v50  ;;  %3354 = vmatpush1.bf16.msra.mxu1 %v7996_v51  ;;  %v286_v28 = vld [vmem:[#allocation5 + $0x5c8] sm:$0xff]  ;;  %v301_v34 = vld [vmem:[#allocation5 + $0x640] sm:$0xff]  ;;  %v10129_v25 = vpack.c.bf16 %v96_v18, %v92_v17 }
  0x75   :  { %3269 = vmatprep.subr.bf16.mxu0 %v8011_v52  ;;  %3355 = vmatprep.subr.bf16.mxu1 %v8013_v55  ;;  %v8093_v32 = vcombine.high %v278_v27, %v286_v28  ;;  %v294_v35 = vld [vmem:[#allocation5 + $0x608] sm:$0xff]  ;;  %v8092_v38 = vcombine.low %v278_v27, %v286_v28  ;;  %v8107_v39 = vcombine.high %v293_v33, %v301_v34  ;;  %v309_v41 = vld [vmem:[#allocation5 + $0x680] sm:$0xff] }
  0x76   :  { %v302_v36 = vld [vmem:[#allocation5 + $0x648] sm:$0xff]  ;;  %v317_v42 = vld [vmem:[#allocation5 + $0x6c0] sm:$0xff]  ;;  %v8106_v45 = vcombine.low %v293_v33, %v301_v34 }
  0x77   :  { %v8109_v40 = vcombine.high %v294_v35, %v302_v36  ;;  %v310_v43 = vld [vmem:[#allocation5 + $0x688] sm:$0xff]  ;;  %v8108_v46 = vcombine.low %v294_v35, %v302_v36  ;;  %v8123_v47 = vcombine.high %v309_v41, %v317_v42  ;;  %v325_v49 = vld [vmem:[#allocation5 + $0x700] sm:$0xff]  ;;  %v8122_v53 = vcombine.low %v309_v41, %v317_v42 }
  0x78   :  { %3270 = vmatpush1.bf16.msra.mxu0 %v8010_v61  ;;  %3356 = vmatpush1.bf16.msra.mxu1 %v8012_v62  ;;  %v318_v44 = vld [vmem:[#allocation5 + $0x6c8] sm:$0xff]  ;;  %v333_v50 = vld [vmem:[#allocation5 + $0x740] sm:$0xff] }
  0x79   :  { %3271 = vmatprep.subr.bf16.mxu0 %v8027_v63  ;;  %3357 = vmatprep.subr.bf16.mxu1 %v8029_v0  ;;  %v8125_v48 = vcombine.high %v310_v43, %v318_v44  ;;  %v326_v51 = vld [vmem:[#allocation5 + $0x708] sm:$0xff]  ;;  %v8124_v54 = vcombine.low %v310_v43, %v318_v44  ;;  %v8139_v55 = vcombine.high %v325_v49, %v333_v50  ;;  %v341_v57 = vld [vmem:[#allocation5 + $0x780] sm:$0xff] }
  0x7a   :  { %v334_v52 = vld [vmem:[#allocation5 + $0x748] sm:$0xff]  ;;  %v349_v59 = vld [vmem:[#allocation5 + $0x7c0] sm:$0xff]  ;;  %v8138_v62 = vcombine.low %v325_v49, %v333_v50 }
  0x7b   :  { %v8141_v56 = vcombine.high %v326_v51, %v334_v52  ;;  %v342_v60 = vld [vmem:[#allocation5 + $0x788] sm:$0xff]  ;;  %v8140_v63 = vcombine.low %v326_v51, %v334_v52  ;;  %v8155_v0 = vcombine.high %v341_v57, %v349_v59  ;;  %v357_v2 = vld [vmem:[#allocation5 + $0x800] sm:$0xff] }
  0x7c   :  { %3272 = vmatpush1.bf16.msra.mxu0 %v8026_v5  ;;  %3358 = vmatpush1.bf16.msra.mxu1 %v8028_v6  ;;  %v350_v61 = vld [vmem:[#allocation5 + $0x7c8] sm:$0xff]  ;;  %v365_v3 = vld [vmem:[#allocation5 + $0x840] sm:$0xff]  ;;  %v8154_v6 = vcombine.low %v341_v57, %v349_v59 }
  0x7d   :  { %3273 = vmatprep.subr.bf16.mxu0 %v8043_v7  ;;  %3359 = vmatprep.subr.bf16.mxu1 %v8045_v8  ;;  %v8157_v1 = vcombine.high %v342_v60, %v350_v61  ;;  %v358_v4 = vld [vmem:[#allocation5 + $0x808] sm:$0xff]  ;;  %v89_v7 = vld [vmem:[#allocation2] sm:$0xff]  ;;  %v8156_v9 = vcombine.low %v342_v60, %v350_v61  ;;  %v8171_v10 = vcombine.high %v357_v2, %v365_v3 }
  0x7e   :  { %v366_v5 = vld [vmem:[#allocation5 + $0x848] sm:$0xff]  ;;  %v93_v8 = vld [vmem:[#allocation2 + $0x20] sm:$0xff]  ;;  %v8170_v19 = vcombine.low %v357_v2, %v365_v3 }
  0x7f   :  { %v8173_v11 = vcombine.high %v358_v4, %v366_v5  ;;  %v373_v12 = vld [vmem:[#allocation5 + $0x880] sm:$0xff]  ;;  %v8172_v20 = vcombine.low %v358_v4, %v366_v5  ;;  %v390_v26 = vld [vmem:[#allocation5 + $0x908] sm:$0xff] }
  0x80   :  { %3274 = vmatpush1.bf16.msra.mxu0 %v8042_v13  ;;  %3360 = vmatpush1.bf16.msra.mxu1 %v8044_v14  ;;  %v381_v13 = vld [vmem:[#allocation5 + $0x8c0] sm:$0xff]  ;;  %v374_v14 = vld [vmem:[#allocation5 + $0x888] sm:$0xff] }
  0x81   :  { %3275 = vmatprep.subr.bf16.mxu0 %v8059_v15  ;;  %3361 = vmatprep.subr.bf16.mxu1 %v8061_v16  ;;  %v10127_v15 = vpack.c.bf16 %v93_v8, %v89_v7  ;;  %v382_v16 = vld [vmem:[#allocation5 + $0x8c8] sm:$0xff]  ;;  %v8186_v28 = vcombine.low %v373_v12, %v381_v13  ;;  %v485_v8 = vld [vmem:[#allocation5 + $0xc00] sm:$0xff] }
  0x82   :  { %v398_v27 = vld [vmem:[#allocation5 + $0x948] sm:$0xff]  ;;  %v501_v17 = vld [vmem:[#allocation5 + $0xc80] sm:$0xff] }
  0x83   :  { %v406_v33 = vld [vmem:[#allocation5 + $0x988] sm:$0xff]  ;;  %v8205_v34 = vcombine.high %v390_v26, %v398_v27  ;;  %v509_v18 = vld [vmem:[#allocation5 + $0xcc0] sm:$0xff] }
  0x84   :  { %3276 = vmatpush1.bf16.msra.mxu0 %v8058_v21  ;;  %3362 = vmatpush1.bf16.msra.mxu1 %v8060_v22  ;;  %v8187_v21 = vcombine.high %v373_v12, %v381_v13  ;;  %v8189_v22 = vcombine.high %v374_v14, %v382_v16  ;;  %v414_v35 = vld [vmem:[#allocation5 + $0x9c8] sm:$0xff] }
  0x85   :  { %3277 = vmatprep.subr.bf16.mxu0 %v8075_v23  ;;  %3363 = vmatprep.subr.bf16.mxu1 %v8077_v24  ;;  %v389_v23 = vld [vmem:[#allocation5 + $0x900] sm:$0xff]  ;;  %v422_v41 = vld [vmem:[#allocation5 + $0xa08] sm:$0xff]  ;;  %v8221_v42 = vcombine.high %v406_v33, %v414_v35 }
  0x86   :  { %v397_v24 = vld [vmem:[#allocation5 + $0x940] sm:$0xff]  ;;  %v430_v43 = vld [vmem:[#allocation5 + $0xa48] sm:$0xff] }
  0x87   :  { %v8202_v36 = vcombine.low %v389_v23, %v397_v24  ;;  %v438_v49 = vld [vmem:[#allocation5 + $0xa88] sm:$0xff]  ;;  %v8237_v50 = vcombine.high %v422_v41, %v430_v43 }
  0x88   :  { %3278 = vmatpush1.bf16.msra.mxu0 %v8074_v29  ;;  %3364 = vmatpush1.bf16.msra.mxu1 %v8076_v30  ;;  %v8188_v29 = vcombine.low %v374_v14, %v382_v16  ;;  %v8203_v30 = vcombine.high %v389_v23, %v397_v24  ;;  %v446_v51 = vld [vmem:[#allocation5 + $0xac8] sm:$0xff]  ;;  %v8315_v24 = vcombine.high %v501_v17, %v509_v18 }
  0x89   :  { %3279 = vmatprep.subr.bf16.mxu0 %v8091_v31  ;;  %3365 = vmatprep.subr.bf16.mxu1 %v8093_v32  ;;  %v405_v31 = vld [vmem:[#allocation5 + $0x980] sm:$0xff]  ;;  %v454_v57 = vld [vmem:[#allocation5 + $0xb08] sm:$0xff]  ;;  %v8253_v59 = vcombine.high %v438_v49, %v446_v51 }
  0x8a   :  { %v413_v32 = vld [vmem:[#allocation5 + $0x9c0] sm:$0xff]  ;;  %v462_v60 = vld [vmem:[#allocation5 + $0xb48] sm:$0xff] }
  0x8b   :  { %v8218_v44 = vcombine.low %v405_v31, %v413_v32  ;;  %v470_v2 = vld [vmem:[#allocation5 + $0xb88] sm:$0xff]  ;;  %v8269_v3 = vcombine.high %v454_v57, %v462_v60 }
  0x8c   :  { %3280 = vmatpush1.bf16.msra.mxu0 %v8090_v37  ;;  %3366 = vmatpush1.bf16.msra.mxu1 %v8092_v38  ;;  %v8204_v37 = vcombine.low %v390_v26, %v398_v27  ;;  %v8219_v38 = vcombine.high %v405_v31, %v413_v32  ;;  %v478_v4 = vld [vmem:[#allocation5 + $0xbc8] sm:$0xff]  ;;  %v517_v26 = vld [vmem:[#allocation5 + $0xd00] sm:$0xff]  ;;  %v8314_v31 = vcombine.low %v501_v17, %v509_v18  ;;  %v95_v17 = vld [vmem:[#allocation2 + $0x30] sm:$0xff] }
  0x8d   :  { %3281 = vmatprep.subr.bf16.mxu0 %v8107_v39  ;;  %3367 = vmatprep.subr.bf16.mxu1 %v8109_v40  ;;  %v421_v39 = vld [vmem:[#allocation5 + $0xa00] sm:$0xff]  ;;  %v494_v12 = vld [vmem:[#allocation5 + $0xc48] sm:$0xff]  ;;  %v8284_v14 = vcombine.low %v470_v2, %v478_v4  ;;  %v112_v18 = vld [vmem:[#allocation5 + $0x58] sm:$0xff] }
  0x8e   :  { %v429_v40 = vld [vmem:[#allocation5 + $0xa40] sm:$0xff] }
  0x8f   :  { %v8234_v52 = vcombine.low %v421_v39, %v429_v40  ;;  %v525_v27 = vld [vmem:[#allocation5 + $0xd40] sm:$0xff] }
  0x90   :  { %3282 = vmatpush1.bf16.msra.mxu0 %v8106_v45  ;;  %3368 = vmatpush1.bf16.msra.mxu1 %v8108_v46  ;;  %v8220_v45 = vcombine.low %v406_v33, %v414_v35  ;;  %v8235_v46 = vcombine.high %v421_v39, %v429_v40  ;;  %v8331_v33 = vcombine.high %v517_v26, %v525_v27  ;;  %v541_v35 = vld [vmem:[#allocation5 + $0xdc0] sm:$0xff] }
  0x91   :  { %3283 = vmatprep.subr.bf16.mxu0 %v8123_v47  ;;  %3369 = vmatprep.subr.bf16.mxu1 %v8125_v48  ;;  %v437_v47 = vld [vmem:[#allocation5 + $0xa80] sm:$0xff]  ;;  %v8330_v39 = vcombine.low %v517_v26, %v525_v27  ;;  %v128_v27 = vld [vmem:[#allocation5 + $0xd8] sm:$0xff] }
  0x92   :  { %v445_v48 = vld [vmem:[#allocation5 + $0xac0] sm:$0xff] }
  0x93   :  { %v8250_v61 = vcombine.low %v437_v47, %v445_v48 }
  0x94   :  { %3284 = vmatpush1.bf16.msra.mxu0 %v8122_v53  ;;  %3370 = vmatpush1.bf16.msra.mxu1 %v8124_v54  ;;  %v8236_v53 = vcombine.low %v422_v41, %v430_v43  ;;  %v8251_v54 = vcombine.high %v437_v47, %v445_v48  ;;  %v557_v43 = vld [vmem:[#allocation5 + $0xe40] sm:$0xff] }
  0x95   :  { %3285 = vmatprep.subr.bf16.mxu0 %v8139_v55  ;;  %3371 = vmatprep.subr.bf16.mxu1 %v8141_v56  ;;  %v453_v55 = vld [vmem:[#allocation5 + $0xb00] sm:$0xff] }
  0x96   :  { %v461_v56 = vld [vmem:[#allocation5 + $0xb40] sm:$0xff] }
  0x97   :  { %v8266_v5 = vcombine.low %v453_v55, %v461_v56 }
  0x98   :  { %3286 = vmatpush1.bf16.msra.mxu0 %v8138_v62  ;;  %3372 = vmatpush1.bf16.msra.mxu1 %v8140_v63  ;;  %v8252_v62 = vcombine.low %v438_v49, %v446_v51  ;;  %v8267_v63 = vcombine.high %v453_v55, %v461_v56  ;;  %v573_v51 = vld [vmem:[#allocation5 + $0xec0] sm:$0xff] }
  0x99   :  { %3287 = vmatprep.subr.bf16.mxu0 %v8155_v0  ;;  %3373 = vmatprep.subr.bf16.mxu1 %v8157_v1  ;;  %v469_v0 = vld [vmem:[#allocation5 + $0xb80] sm:$0xff] }
  0x9a   :  { %v477_v1 = vld [vmem:[#allocation5 + $0xbc0] sm:$0xff] }
  0x9b   :  { %v8283_v7 = vcombine.high %v469_v0, %v477_v1  ;;  %v8282_v13 = vcombine.low %v469_v0, %v477_v1 }
  0x9c   :  { %3288 = vmatpush1.bf16.msra.mxu0 %v8154_v6  ;;  %3374 = vmatpush1.bf16.msra.mxu1 %v8156_v9  ;;  %v8268_v6 = vcombine.low %v454_v57, %v462_v60  ;;  %v493_v9 = vld [vmem:[#allocation5 + $0xc40] sm:$0xff] }
  0x9d   :  { %3300 = vmatprep.subr.bf16.mxu0 %v8171_v10  ;;  %3386 = vmatprep.subr.bf16.mxu1 %v8173_v11  ;;  %v486_v10 = vld [vmem:[#allocation5 + $0xc08] sm:$0xff]  ;;  %v8285_v11 = vcombine.high %v470_v2, %v478_v4  ;;  %v8299_v16 = vcombine.high %v485_v8, %v493_v9  ;;  %v589_v60 = vld [vmem:[#allocation5 + $0xf40] sm:$0xff] }
  0x9e   :  { %v8300_v23 = vcombine.low %v486_v10, %v494_v12  ;;  %v605_v4 = vld [vmem:[#allocation5 + $0xfc0] sm:$0xff] }
  0x9f   :  { %3290 = vmatmul.mubr.bf16.vlgmr.msra.gmra.mrb[0].mxu0 %v10127_v15  ;;  %3376 = vmatmul.mubr.bf16.vlgmr.msra.gmra.mrb[0].mxu1 %v10127_v15 }
  0xa0   :  { %3301 = vmatpush1.bf16.msra.mxu0 %v8170_v19  ;;  %3387 = vmatpush1.bf16.msra.mxu1 %v8172_v20  ;;  %v502_v19 = vld [vmem:[#allocation5 + $0xc88] sm:$0xff]  ;;  %v8301_v20 = vcombine.high %v486_v10, %v494_v12  ;;  %v111_v12 = vld [vmem:[#allocation5 + $0x50] sm:$0xff] }
  0xa1   :  { %3302 = vmatprep.subr.bf16.mxu0 %v8187_v21  ;;  %3388 = vmatprep.subr.bf16.mxu1 %v8189_v22  ;;  %v510_v21 = vld [vmem:[#allocation5 + $0xcc8] sm:$0xff]  ;;  %v8298_v22 = vcombine.low %v485_v8, %v493_v9 }
  0xa2   :  { %3332 = vmatprep.mubr.bf16.mxu0 %v10129_v25  ;;  %3418 = vmatprep.mubr.bf16.mxu1 %v10129_v25  ;;  %v8316_v32 = vcombine.low %v502_v19, %v510_v21 }
  0xa4   :  { %3303 = vmatpush1.bf16.msra.mxu0 %v8186_v28  ;;  %3389 = vmatpush1.bf16.msra.mxu1 %v8188_v29  ;;  %v518_v28 = vld [vmem:[#allocation5 + $0xd08] sm:$0xff]  ;;  %v8317_v29 = vcombine.high %v502_v19, %v510_v21 }
  0xa5   :  { %3304 = vmatprep.subr.bf16.mxu0 %v8203_v30  ;;  %3390 = vmatprep.subr.bf16.mxu1 %v8205_v34  ;;  %v526_v30 = vld [vmem:[#allocation5 + $0xd48] sm:$0xff]  ;;  %v533_v34 = vld [vmem:[#allocation5 + $0xd80] sm:$0xff] }
  0xa6   :  { %v8332_v40 = vcombine.low %v518_v28, %v526_v30  ;;  %v8347_v41 = vcombine.high %v533_v34, %v541_v35  ;;  %v8346_v47 = vcombine.low %v533_v34, %v541_v35  ;;  %v136_v34 = vld [vmem:[#allocation5 + $0x118] sm:$0xff] }
  0xa8   :  { %3305 = vmatpush1.bf16.msra.mxu0 %v8202_v36  ;;  %3391 = vmatpush1.bf16.msra.mxu1 %v8204_v37  ;;  %v534_v36 = vld [vmem:[#allocation5 + $0xd88] sm:$0xff]  ;;  %v8333_v37 = vcombine.high %v518_v28, %v526_v30 }
  0xa9   :  { %3306 = vmatprep.subr.bf16.mxu0 %v8219_v38  ;;  %3392 = vmatprep.subr.bf16.mxu1 %v8221_v42  ;;  %v542_v38 = vld [vmem:[#allocation5 + $0xdc8] sm:$0xff]  ;;  %v549_v42 = vld [vmem:[#allocation5 + $0xe00] sm:$0xff] }
  0xaa   :  { %v8348_v48 = vcombine.low %v534_v36, %v542_v38  ;;  %v8363_v49 = vcombine.high %v549_v42, %v557_v43  ;;  %v8362_v55 = vcombine.low %v549_v42, %v557_v43  ;;  %v152_v42 = vld [vmem:[#allocation5 + $0x198] sm:$0xff] }
  0xac   :  { %3307 = vmatpush1.bf16.msra.mxu0 %v8218_v44  ;;  %3393 = vmatpush1.bf16.msra.mxu1 %v8220_v45  ;;  %v550_v44 = vld [vmem:[#allocation5 + $0xe08] sm:$0xff]  ;;  %v8349_v45 = vcombine.high %v534_v36, %v542_v38  ;;  %v144_v36 = vld [vmem:[#allocation5 + $0x158] sm:$0xff] }
  0xad   :  { %3308 = vmatprep.subr.bf16.mxu0 %v8235_v46  ;;  %3394 = vmatprep.subr.bf16.mxu1 %v8237_v50  ;;  %v558_v46 = vld [vmem:[#allocation5 + $0xe48] sm:$0xff]  ;;  %v565_v50 = vld [vmem:[#allocation5 + $0xe80] sm:$0xff]  ;;  %v7953_v43 = vcombine.high %v136_v34, %v144_v36 }
  0xae   :  { %v8364_v56 = vcombine.low %v550_v44, %v558_v46  ;;  %v8379_v57 = vcombine.high %v565_v50, %v573_v51  ;;  %v8378_v0 = vcombine.low %v565_v50, %v573_v51  ;;  %v168_v50 = vld [vmem:[#allocation5 + $0x218] sm:$0xff] }
  0xb0   :  { %3309 = vmatpush1.bf16.msra.mxu0 %v8234_v52  ;;  %3395 = vmatpush1.bf16.msra.mxu1 %v8236_v53  ;;  %v566_v52 = vld [vmem:[#allocation5 + $0xe88] sm:$0xff]  ;;  %v8365_v53 = vcombine.high %v550_v44, %v558_v46  ;;  %v160_v44 = vld [vmem:[#allocation5 + $0x1d8] sm:$0xff]  ;;  %v7952_v46 = vcombine.low %v136_v34, %v144_v36  ;;  %v263_v36 = vld [vmem:[#allocation5 + $0x510] sm:$0xff] }
  0xb1   :  { %3310 = vmatprep.subr.bf16.mxu0 %v8251_v54  ;;  %3396 = vmatprep.subr.bf16.mxu1 %v8253_v59  ;;  %v574_v54 = vld [vmem:[#allocation5 + $0xec8] sm:$0xff]  ;;  %v581_v59 = vld [vmem:[#allocation5 + $0xf00] sm:$0xff]  ;;  %v7969_v51 = vcombine.high %v152_v42, %v160_v44 }
  0xb2   :  { %v8380_v1 = vcombine.low %v566_v52, %v574_v54  ;;  %v8395_v2 = vcombine.high %v581_v59, %v589_v60  ;;  %v8394_v8 = vcombine.low %v581_v59, %v589_v60  ;;  %v184_v59 = vld [vmem:[#allocation5 + $0x298] sm:$0xff] }
  0xb4   :  { %3311 = vmatpush1.bf16.msra.mxu0 %v8250_v61  ;;  %3397 = vmatpush1.bf16.msra.mxu1 %v8252_v62  ;;  %v582_v61 = vld [vmem:[#allocation5 + $0xf08] sm:$0xff]  ;;  %v8381_v62 = vcombine.high %v566_v52, %v574_v54  ;;  %v176_v52 = vld [vmem:[#allocation5 + $0x258] sm:$0xff]  ;;  %v7968_v54 = vcombine.low %v152_v42, %v160_v44  ;;  %v279_v44 = vld [vmem:[#allocation5 + $0x590] sm:$0xff] }
  0xb5   :  { %3312 = vmatprep.subr.bf16.mxu0 %v8267_v63  ;;  %3398 = vmatprep.subr.bf16.mxu1 %v8269_v3  ;;  %v590_v63 = vld [vmem:[#allocation5 + $0xf48] sm:$0xff]  ;;  %v597_v3 = vld [vmem:[#allocation5 + $0xf80] sm:$0xff]  ;;  %v7985_v60 = vcombine.high %v168_v50, %v176_v52 }
  0xb6   :  { %v8396_v9 = vcombine.low %v582_v61, %v590_v63  ;;  %v8411_v10 = vcombine.high %v597_v3, %v605_v4  ;;  %v8410_v19 = vcombine.low %v597_v3, %v605_v4  ;;  %v200_v3 = vld [vmem:[#allocation5 + $0x318] sm:$0xff] }
  0xb8   :  { %3313 = vmatpush1.bf16.msra.mxu0 %v8266_v5  ;;  %3399 = vmatpush1.bf16.msra.mxu1 %v8268_v6  ;;  %v598_v5 = vld [vmem:[#allocation5 + $0xf88] sm:$0xff]  ;;  %v8397_v6 = vcombine.high %v582_v61, %v590_v63  ;;  %v192_v61 = vld [vmem:[#allocation5 + $0x2d8] sm:$0xff]  ;;  %v7984_v63 = vcombine.low %v168_v50, %v176_v52  ;;  %v295_v52 = vld [vmem:[#allocation5 + $0x610] sm:$0xff] }
  0xb9   :  { %3314 = vmatprep.subr.bf16.mxu0 %v8283_v7  ;;  %3400 = vmatprep.subr.bf16.mxu1 %v8285_v11  ;;  %v606_v7 = vld [vmem:[#allocation5 + $0xfc8] sm:$0xff]  ;;  %v103_v11 = vld [vmem:[#allocation5 + $0x10] sm:$0xff]  ;;  %v8001_v4 = vcombine.high %v184_v59, %v192_v61 }
  0xba   :  { %v7919_v21 = vcombine.high %v103_v11, %v111_v12 }
  0xbc   :  { %3315 = vmatpush1.bf16.msra.mxu0 %v8282_v13  ;;  %3401 = vmatpush1.bf16.msra.mxu1 %v8284_v14  ;;  %v104_v13 = vld [vmem:[#allocation5 + $0x18] sm:$0xff]  ;;  %v8413_v14 = vcombine.high %v598_v5, %v606_v7 }
  0xbd   :  { %3316 = vmatprep.subr.bf16.mxu0 %v8299_v16  ;;  %3402 = vmatprep.subr.bf16.mxu1 %v8301_v20  ;;  %v91_v16 = vld [vmem:[#allocation2 + $0x10] sm:$0xff]  ;;  %v8412_v20 = vcombine.low %v598_v5, %v606_v7  ;;  %v7921_v26 = vcombine.high %v104_v13, %v112_v18  ;;  %v7920_v30 = vcombine.low %v104_v13, %v112_v18  ;;  %v208_v5 = vld [vmem:[#allocation5 + $0x358] sm:$0xff] }
  0xbe   :  { %v10135_v28 = vpack.c.bf16 %v95_v17, %v91_v16  ;;  %v8000_v7 = vcombine.low %v184_v59, %v192_v61  ;;  %v224_v13 = vld [vmem:[#allocation5 + $0x3d8] sm:$0xff]  ;;  %v8016_v16 = vcombine.low %v200_v3, %v208_v5  ;;  %v231_v18 = vld [vmem:[#allocation5 + $0x410] sm:$0xff] }
  0xbf   :  { %v311_v61 = vld [vmem:[#allocation5 + $0x690] sm:$0xff] }
  0xc0   :  { %3317 = vmatpush1.bf16.msra.mxu0 %v8298_v22  ;;  %3403 = vmatpush1.bf16.msra.mxu1 %v8300_v23  ;;  %v119_v22 = vld [vmem:[#allocation5 + $0x90] sm:$0xff] }
  0xc1   :  { %3318 = vmatprep.subr.bf16.mxu0 %v8315_v24  ;;  %3404 = vmatprep.subr.bf16.mxu1 %v8317_v29  ;;  %v127_v23 = vld [vmem:[#allocation5 + $0xd0] sm:$0xff]  ;;  %v120_v24 = vld [vmem:[#allocation5 + $0x98] sm:$0xff]  ;;  %v7918_v29 = vcombine.low %v103_v11, %v111_v12  ;;  %v8017_v12 = vcombine.high %v200_v3, %v208_v5 }
  0xc2   :  { %v7937_v35 = vcombine.high %v120_v24, %v128_v27  ;;  %v7936_v38 = vcombine.low %v120_v24, %v128_v27  ;;  %v216_v11 = vld [vmem:[#allocation5 + $0x398] sm:$0xff]  ;;  %v247_v27 = vld [vmem:[#allocation5 + $0x490] sm:$0xff] }
  0xc3   :  { %v8032_v24 = vcombine.low %v216_v11, %v224_v13  ;;  %v327_v5 = vld [vmem:[#allocation5 + $0x710] sm:$0xff] }
  0xc4   :  { %3319 = vmatpush1.bf16.msra.mxu0 %v8314_v31  ;;  %3405 = vmatpush1.bf16.msra.mxu1 %v8316_v32  ;;  %v7935_v31 = vcombine.high %v119_v22, %v127_v23  ;;  %v135_v32 = vld [vmem:[#allocation5 + $0x110] sm:$0xff] }
  0xc5   :  { %3320 = vmatprep.subr.bf16.mxu0 %v8331_v33  ;;  %3406 = vmatprep.subr.bf16.mxu1 %v8333_v37  ;;  %v143_v33 = vld [vmem:[#allocation5 + $0x150] sm:$0xff]  ;;  %v7934_v37 = vcombine.low %v119_v22, %v127_v23  ;;  %v240_v22 = vld [vmem:[#allocation5 + $0x458] sm:$0xff] }
  0xc8   :  { %3321 = vmatpush1.bf16.msra.mxu0 %v8330_v39  ;;  %3407 = vmatpush1.bf16.msra.mxu1 %v8332_v40  ;;  %v7951_v39 = vcombine.high %v135_v32, %v143_v33  ;;  %v151_v40 = vld [vmem:[#allocation5 + $0x190] sm:$0xff] }
  0xc9   :  { %3322 = vmatprep.subr.bf16.mxu0 %v8347_v41  ;;  %3408 = vmatprep.subr.bf16.mxu1 %v8349_v45  ;;  %v159_v41 = vld [vmem:[#allocation5 + $0x1d0] sm:$0xff]  ;;  %v7950_v45 = vcombine.low %v135_v32, %v143_v33  ;;  %v256_v32 = vld [vmem:[#allocation5 + $0x4d8] sm:$0xff] }
  0xcc   :  { %3323 = vmatpush1.bf16.msra.mxu0 %v8346_v47  ;;  %3409 = vmatpush1.bf16.msra.mxu1 %v8348_v48  ;;  %v7967_v47 = vcombine.high %v151_v40, %v159_v41  ;;  %v167_v48 = vld [vmem:[#allocation5 + $0x210] sm:$0xff] }
  0xcd   :  { %3324 = vmatprep.subr.bf16.mxu0 %v8363_v49  ;;  %3410 = vmatprep.subr.bf16.mxu1 %v8365_v53  ;;  %v175_v49 = vld [vmem:[#allocation5 + $0x250] sm:$0xff]  ;;  %v7966_v53 = vcombine.low %v151_v40, %v159_v41  ;;  %v272_v40 = vld [vmem:[#allocation5 + $0x558] sm:$0xff] }
  0xd0   :  { %3325 = vmatpush1.bf16.msra.mxu0 %v8362_v55  ;;  %3411 = vmatpush1.bf16.msra.mxu1 %v8364_v56  ;;  %v7983_v55 = vcombine.high %v167_v48, %v175_v49  ;;  %v183_v56 = vld [vmem:[#allocation5 + $0x290] sm:$0xff] }
  0xd1   :  { %3326 = vmatprep.subr.bf16.mxu0 %v8379_v57  ;;  %3412 = vmatprep.subr.bf16.mxu1 %v8381_v62  ;;  %v191_v57 = vld [vmem:[#allocation5 + $0x2d0] sm:$0xff]  ;;  %v7982_v62 = vcombine.low %v167_v48, %v175_v49  ;;  %v288_v48 = vld [vmem:[#allocation5 + $0x5d8] sm:$0xff] }
  0xd4   :  { %3327 = vmatpush1.bf16.msra.mxu0 %v8378_v0  ;;  %3413 = vmatpush1.bf16.msra.mxu1 %v8380_v1  ;;  %v7999_v0 = vcombine.high %v183_v56, %v191_v57  ;;  %v199_v1 = vld [vmem:[#allocation5 + $0x310] sm:$0xff] }
  0xd5   :  { %3328 = vmatprep.subr.bf16.mxu0 %v8395_v2  ;;  %3414 = vmatprep.subr.bf16.mxu1 %v8397_v6  ;;  %v207_v2 = vld [vmem:[#allocation5 + $0x350] sm:$0xff]  ;;  %v7998_v6 = vcombine.low %v183_v56, %v191_v57  ;;  %v304_v56 = vld [vmem:[#allocation5 + $0x658] sm:$0xff] }
  0xd8   :  { %3329 = vmatpush1.bf16.msra.mxu0 %v8394_v8  ;;  %3415 = vmatpush1.bf16.msra.mxu1 %v8396_v9  ;;  %v8015_v8 = vcombine.high %v199_v1, %v207_v2  ;;  %v215_v9 = vld [vmem:[#allocation5 + $0x390] sm:$0xff] }
  0xd9   :  { %3330 = vmatprep.subr.bf16.mxu0 %v8411_v10  ;;  %3416 = vmatprep.subr.bf16.mxu1 %v8413_v14  ;;  %v223_v10 = vld [vmem:[#allocation5 + $0x3d0] sm:$0xff]  ;;  %v8014_v14 = vcombine.low %v199_v1, %v207_v2  ;;  %v320_v1 = vld [vmem:[#allocation5 + $0x6d8] sm:$0xff] }
  0xda   :  { %v8031_v17 = vcombine.high %v215_v9, %v223_v10  ;;  %v8030_v23 = vcombine.low %v215_v9, %v223_v10  ;;  %v336_v9 = vld [vmem:[#allocation5 + $0x758] sm:$0xff] }
  0xdc   :  { %3331 = vmatpush1.bf16.msra.mxu0 %v8410_v19  ;;  %3417 = vmatpush1.bf16.msra.mxu1 %v8412_v20  ;;  %v239_v19 = vld [vmem:[#allocation5 + $0x450] sm:$0xff]  ;;  %v232_v20 = vld [vmem:[#allocation5 + $0x418] sm:$0xff] }
  0xdd   :  { %3429 = vmatprep.subr.bf16.mxu0 %v7919_v21  ;;  %3515 = vmatprep.subr.bf16.mxu1 %v7921_v26  ;;  %v8033_v21 = vcombine.high %v216_v11, %v224_v13  ;;  %v8047_v26 = vcombine.high %v231_v18, %v239_v19  ;;  %v8046_v33 = vcombine.low %v231_v18, %v239_v19  ;;  %v343_v13 = vld [vmem:[#allocation5 + $0x790] sm:$0xff]  ;;  %v352_v18 = vld [vmem:[#allocation5 + $0x7d8] sm:$0xff] }
  0xde   :  { %v8048_v34 = vcombine.low %v232_v20, %v240_v22 }
  0xdf   :  { %3333 = vmatmul.mubr.bf16.vlgmr.msra.gmra.mrb[0].mxu0 %v10135_v28  ;;  %3419 = vmatmul.mubr.bf16.vlgmr.msra.gmra.mrb[0].mxu1 %v10135_v28 }
  0xe0   :  { %3430 = vmatpush1.bf16.msra.mxu0 %v7918_v29  ;;  %3516 = vmatpush1.bf16.msra.mxu1 %v7920_v30  ;;  %v255_v29 = vld [vmem:[#allocation5 + $0x4d0] sm:$0xff]  ;;  %v248_v30 = vld [vmem:[#allocation5 + $0x498] sm:$0xff] }
  0xe1   :  { %3431 = vmatprep.subr.bf16.mxu0 %v7935_v31  ;;  %3517 = vmatprep.subr.bf16.mxu1 %v7937_v35  ;;  %v8049_v31 = vcombine.high %v232_v20, %v240_v22  ;;  %v8063_v35 = vcombine.high %v247_v27, %v255_v29  ;;  %v8062_v41 = vcombine.low %v247_v27, %v255_v29  ;;  %v359_v22 = vld [vmem:[#allocation5 + $0x810] sm:$0xff]  ;;  %v368_v27 = vld [vmem:[#allocation5 + $0x858] sm:$0xff] }
  0xe2   :  { %3461 = vmatprep.mubr.bf16.mxu0 %v10123_v58  ;;  %3547 = vmatprep.mubr.bf16.mxu1 %v10123_v58  ;;  %v8064_v42 = vcombine.low %v248_v30, %v256_v32 }
  0xe4   :  { %3432 = vmatpush1.bf16.msra.mxu0 %v7934_v37  ;;  %3518 = vmatpush1.bf16.msra.mxu1 %v7936_v38  ;;  %v271_v37 = vld [vmem:[#allocation5 + $0x550] sm:$0xff]  ;;  %v264_v38 = vld [vmem:[#allocation5 + $0x518] sm:$0xff] }
  0xe5   :  { %3433 = vmatprep.subr.bf16.mxu0 %v7951_v39  ;;  %3519 = vmatprep.subr.bf16.mxu1 %v7953_v43  ;;  %v8065_v39 = vcombine.high %v248_v30, %v256_v32  ;;  %v8079_v43 = vcombine.high %v263_v36, %v271_v37  ;;  %v8078_v49 = vcombine.low %v263_v36, %v271_v37  ;;  %v375_v32 = vld [vmem:[#allocation5 + $0x890] sm:$0xff]  ;;  %v384_v36 = vld [vmem:[#allocation5 + $0x8d8] sm:$0xff] }
  0xe6   :  { %v8080_v50 = vcombine.low %v264_v38, %v272_v40 }
  0xe8   :  { %3434 = vmatpush1.bf16.msra.mxu0 %v7950_v45  ;;  %3520 = vmatpush1.bf16.msra.mxu1 %v7952_v46  ;;  %v287_v45 = vld [vmem:[#allocation5 + $0x5d0] sm:$0xff]  ;;  %v280_v46 = vld [vmem:[#allocation5 + $0x598] sm:$0xff] }
  0xe9   :  { %3435 = vmatprep.subr.bf16.mxu0 %v7967_v47  ;;  %3521 = vmatprep.subr.bf16.mxu1 %v7969_v51  ;;  %v8081_v47 = vcombine.high %v264_v38, %v272_v40  ;;  %v8095_v51 = vcombine.high %v279_v44, %v287_v45  ;;  %v8094_v57 = vcombine.low %v279_v44, %v287_v45  ;;  %v391_v40 = vld [vmem:[#allocation5 + $0x910] sm:$0xff]  ;;  %v400_v44 = vld [vmem:[#allocation5 + $0x958] sm:$0xff] }
  0xea   :  { %v8096_v59 = vcombine.low %v280_v46, %v288_v48 }
  0xec   :  { %3436 = vmatpush1.bf16.msra.mxu0 %v7966_v53  ;;  %3522 = vmatpush1.bf16.msra.mxu1 %v7968_v54  ;;  %v303_v53 = vld [vmem:[#allocation5 + $0x650] sm:$0xff]  ;;  %v296_v54 = vld [vmem:[#allocation5 + $0x618] sm:$0xff] }
  0xed   :  { %3437 = vmatprep.subr.bf16.mxu0 %v7983_v55  ;;  %3523 = vmatprep.subr.bf16.mxu1 %v7985_v60  ;;  %v8097_v55 = vcombine.high %v280_v46, %v288_v48  ;;  %v8111_v60 = vcombine.high %v295_v52, %v303_v53  ;;  %v8110_v2 = vcombine.low %v295_v52, %v303_v53  ;;  %v407_v48 = vld [vmem:[#allocation5 + $0x990] sm:$0xff]  ;;  %v416_v52 = vld [vmem:[#allocation5 + $0x9d8] sm:$0xff] }
  0xee   :  { %v8112_v3 = vcombine.low %v296_v54, %v304_v56 }
  0xf0   :  { %3438 = vmatpush1.bf16.msra.mxu0 %v7982_v62  ;;  %3524 = vmatpush1.bf16.msra.mxu1 %v7984_v63  ;;  %v319_v62 = vld [vmem:[#allocation5 + $0x6d0] sm:$0xff]  ;;  %v312_v63 = vld [vmem:[#allocation5 + $0x698] sm:$0xff] }
  0xf1   :  { %3439 = vmatprep.subr.bf16.mxu0 %v7999_v0  ;;  %3525 = vmatprep.subr.bf16.mxu1 %v8001_v4  ;;  %v8113_v0 = vcombine.high %v296_v54, %v304_v56  ;;  %v8127_v4 = vcombine.high %v311_v61, %v319_v62  ;;  %v8126_v10 = vcombine.low %v311_v61, %v319_v62  ;;  %v423_v56 = vld [vmem:[#allocation5 + $0xa10] sm:$0xff]  ;;  %v432_v61 = vld [vmem:[#allocation5 + $0xa58] sm:$0xff] }
  0xf2   :  { %v8128_v11 = vcombine.low %v312_v63, %v320_v1 }
  0xf4   :  { %3440 = vmatpush1.bf16.msra.mxu0 %v7998_v6  ;;  %3526 = vmatpush1.bf16.msra.mxu1 %v8000_v7  ;;  %v335_v6 = vld [vmem:[#allocation5 + $0x750] sm:$0xff]  ;;  %v328_v7 = vld [vmem:[#allocation5 + $0x718] sm:$0xff] }
  0xf5   :  { %3441 = vmatprep.subr.bf16.mxu0 %v8015_v8  ;;  %3527 = vmatprep.subr.bf16.mxu1 %v8017_v12  ;;  %v8129_v8 = vcombine.high %v312_v63, %v320_v1  ;;  %v8143_v12 = vcombine.high %v327_v5, %v335_v6  ;;  %v8142_v19 = vcombine.low %v327_v5, %v335_v6  ;;  %v439_v1 = vld [vmem:[#allocation5 + $0xa90] sm:$0xff]  ;;  %v448_v5 = vld [vmem:[#allocation5 + $0xad8] sm:$0xff] }
  0xf6   :  { %v8144_v20 = vcombine.low %v328_v7, %v336_v9 }
  0xf8   :  { %3442 = vmatpush1.bf16.msra.mxu0 %v8014_v14  ;;  %3528 = vmatpush1.bf16.msra.mxu1 %v8016_v16  ;;  %v351_v14 = vld [vmem:[#allocation5 + $0x7d0] sm:$0xff]  ;;  %v344_v16 = vld [vmem:[#allocation5 + $0x798] sm:$0xff] }
  0xf9   :  { %3443 = vmatprep.subr.bf16.mxu0 %v8031_v17  ;;  %3529 = vmatprep.subr.bf16.mxu1 %v8033_v21  ;;  %v8145_v17 = vcombine.high %v328_v7, %v336_v9  ;;  %v8159_v21 = vcombine.high %v343_v13, %v351_v14  ;;  %v8158_v29 = vcombine.low %v343_v13, %v351_v14  ;;  %v455_v9 = vld [vmem:[#allocation5 + $0xb10] sm:$0xff]  ;;  %v464_v13 = vld [vmem:[#allocation5 + $0xb58] sm:$0xff] }
  0xfa   :  { %v8160_v30 = vcombine.low %v344_v16, %v352_v18 }
  0xfc   :  { %3444 = vmatpush1.bf16.msra.mxu0 %v8030_v23  ;;  %3530 = vmatpush1.bf16.msra.mxu1 %v8032_v24  ;;  %v367_v23 = vld [vmem:[#allocation5 + $0x850] sm:$0xff]  ;;  %v360_v24 = vld [vmem:[#allocation5 + $0x818] sm:$0xff] }
  0xfd   :  { %3445 = vmatprep.subr.bf16.mxu0 %v8047_v26  ;;  %3531 = vmatprep.subr.bf16.mxu1 %v8049_v31  ;;  %v8161_v26 = vcombine.high %v344_v16, %v352_v18  ;;  %v8175_v31 = vcombine.high %v359_v22, %v367_v23  ;;  %v8174_v37 = vcombine.low %v359_v22, %v367_v23  ;;  %v471_v18 = vld [vmem:[#allocation5 + $0xb90] sm:$0xff]  ;;  %v480_v22 = vld [vmem:[#allocation5 + $0xbd8] sm:$0xff] }
  0xfe   :  { %v8176_v38 = vcombine.low %v360_v24, %v368_v27 }
 0x100   :  { %3446 = vmatpush1.bf16.msra.mxu0 %v8046_v33  ;;  %3532 = vmatpush1.bf16.msra.mxu1 %v8048_v34  ;;  %v383_v33 = vld [vmem:[#allocation5 + $0x8d0] sm:$0xff]  ;;  %v376_v34 = vld [vmem:[#allocation5 + $0x898] sm:$0xff] }
 0x101   :  { %3447 = vmatprep.subr.bf16.mxu0 %v8063_v35  ;;  %3533 = vmatprep.subr.bf16.mxu1 %v8065_v39  ;;  %v8177_v35 = vcombine.high %v360_v24, %v368_v27  ;;  %v8191_v39 = vcombine.high %v375_v32, %v383_v33  ;;  %v8190_v45 = vcombine.low %v375_v32, %v383_v33  ;;  %v487_v27 = vld [vmem:[#allocation5 + $0xc10] sm:$0xff]  ;;  %v496_v32 = vld [vmem:[#allocation5 + $0xc58] sm:$0xff] }
 0x102   :  { %v8192_v46 = vcombine.low %v376_v34, %v384_v36 }
 0x104   :  { %3448 = vmatpush1.bf16.msra.mxu0 %v8062_v41  ;;  %3534 = vmatpush1.bf16.msra.mxu1 %v8064_v42  ;;  %v399_v41 = vld [vmem:[#allocation5 + $0x950] sm:$0xff]  ;;  %v392_v42 = vld [vmem:[#allocation5 + $0x918] sm:$0xff] }
 0x105   :  { %3449 = vmatprep.subr.bf16.mxu0 %v8079_v43  ;;  %3535 = vmatprep.subr.bf16.mxu1 %v8081_v47  ;;  %v8193_v43 = vcombine.high %v376_v34, %v384_v36  ;;  %v8207_v47 = vcombine.high %v391_v40, %v399_v41  ;;  %v8206_v53 = vcombine.low %v391_v40, %v399_v41  ;;  %v503_v36 = vld [vmem:[#allocation5 + $0xc90] sm:$0xff]  ;;  %v512_v40 = vld [vmem:[#allocation5 + $0xcd8] sm:$0xff] }
 0x106   :  { %v8208_v54 = vcombine.low %v392_v42, %v400_v44 }
 0x108   :  { %3450 = vmatpush1.bf16.msra.mxu0 %v8078_v49  ;;  %3536 = vmatpush1.bf16.msra.mxu1 %v8080_v50  ;;  %v415_v49 = vld [vmem:[#allocation5 + $0x9d0] sm:$0xff]  ;;  %v408_v50 = vld [vmem:[#allocation5 + $0x998] sm:$0xff] }
 0x109   :  { %3451 = vmatprep.subr.bf16.mxu0 %v8095_v51  ;;  %3537 = vmatprep.subr.bf16.mxu1 %v8097_v55  ;;  %v8209_v51 = vcombine.high %v392_v42, %v400_v44  ;;  %v8223_v55 = vcombine.high %v407_v48, %v415_v49  ;;  %v8222_v62 = vcombine.low %v407_v48, %v415_v49  ;;  %v519_v44 = vld [vmem:[#allocation5 + $0xd10] sm:$0xff]  ;;  %v528_v48 = vld [vmem:[#allocation5 + $0xd58] sm:$0xff] }
 0x10a   :  { %v8224_v63 = vcombine.low %v408_v50, %v416_v52 }
 0x10c   :  { %3452 = vmatpush1.bf16.msra.mxu0 %v8094_v57  ;;  %3538 = vmatpush1.bf16.msra.mxu1 %v8096_v59  ;;  %v431_v57 = vld [vmem:[#allocation5 + $0xa50] sm:$0xff]  ;;  %v424_v59 = vld [vmem:[#allocation5 + $0xa18] sm:$0xff] }
 0x10d   :  { %3453 = vmatprep.subr.bf16.mxu0 %v8111_v60  ;;  %3539 = vmatprep.subr.bf16.mxu1 %v8113_v0  ;;  %v8225_v60 = vcombine.high %v408_v50, %v416_v52  ;;  %v8239_v0 = vcombine.high %v423_v56, %v431_v57  ;;  %v8238_v6 = vcombine.low %v423_v56, %v431_v57  ;;  %v535_v52 = vld [vmem:[#allocation5 + $0xd90] sm:$0xff]  ;;  %v544_v56 = vld [vmem:[#allocation5 + $0xdd8] sm:$0xff] }
 0x10e   :  { %v8240_v7 = vcombine.low %v424_v59, %v432_v61 }
 0x110   :  { %3454 = vmatpush1.bf16.msra.mxu0 %v8110_v2  ;;  %3540 = vmatpush1.bf16.msra.mxu1 %v8112_v3  ;;  %v447_v2 = vld [vmem:[#allocation5 + $0xad0] sm:$0xff]  ;;  %v440_v3 = vld [vmem:[#allocation5 + $0xa98] sm:$0xff] }
 0x111   :  { %3455 = vmatprep.subr.bf16.mxu0 %v8127_v4  ;;  %3541 = vmatprep.subr.bf16.mxu1 %v8129_v8  ;;  %v8241_v4 = vcombine.high %v424_v59, %v432_v61  ;;  %v8255_v8 = vcombine.high %v439_v1, %v447_v2  ;;  %v8254_v14 = vcombine.low %v439_v1, %v447_v2  ;;  %v551_v61 = vld [vmem:[#allocation5 + $0xe10] sm:$0xff]  ;;  %v560_v1 = vld [vmem:[#allocation5 + $0xe58] sm:$0xff] }
 0x112   :  { %v8256_v16 = vcombine.low %v440_v3, %v448_v5 }
 0x114   :  { %3456 = vmatpush1.bf16.msra.mxu0 %v8126_v10  ;;  %3542 = vmatpush1.bf16.msra.mxu1 %v8128_v11  ;;  %v463_v10 = vld [vmem:[#allocation5 + $0xb50] sm:$0xff]  ;;  %v456_v11 = vld [vmem:[#allocation5 + $0xb18] sm:$0xff] }
 0x115   :  { %3457 = vmatprep.subr.bf16.mxu0 %v8143_v12  ;;  %3543 = vmatprep.subr.bf16.mxu1 %v8145_v17  ;;  %v8257_v12 = vcombine.high %v440_v3, %v448_v5  ;;  %v8271_v17 = vcombine.high %v455_v9, %v463_v10  ;;  %v8270_v23 = vcombine.low %v455_v9, %v463_v10  ;;  %v567_v5 = vld [vmem:[#allocation5 + $0xe90] sm:$0xff]  ;;  %v576_v9 = vld [vmem:[#allocation5 + $0xed8] sm:$0xff] }
 0x116   :  { %v8272_v24 = vcombine.low %v456_v11, %v464_v13 }
 0x118   :  { %3458 = vmatpush1.bf16.msra.mxu0 %v8142_v19  ;;  %3544 = vmatpush1.bf16.msra.mxu1 %v8144_v20  ;;  %v479_v19 = vld [vmem:[#allocation5 + $0xbd0] sm:$0xff]  ;;  %v8273_v20 = vcombine.high %v456_v11, %v464_v13 }
 0x119   :  { %3459 = vmatprep.subr.bf16.mxu0 %v8159_v21  ;;  %3545 = vmatprep.subr.bf16.mxu1 %v8161_v26  ;;  %v472_v21 = vld [vmem:[#allocation5 + $0xb98] sm:$0xff]  ;;  %v8287_v26 = vcombine.high %v471_v18, %v479_v19  ;;  %v8286_v33 = vcombine.low %v471_v18, %v479_v19  ;;  %v583_v13 = vld [vmem:[#allocation5 + $0xf10] sm:$0xff] }
 0x11a   :  { %v8288_v34 = vcombine.low %v472_v21, %v480_v22  ;;  %v592_v18 = vld [vmem:[#allocation5 + $0xf58] sm:$0xff] }
 0x11c   :  { %3460 = vmatpush1.bf16.msra.mxu0 %v8158_v29  ;;  %3546 = vmatpush1.bf16.msra.mxu1 %v8160_v30  ;;  %v495_v29 = vld [vmem:[#allocation5 + $0xc50] sm:$0xff]  ;;  %v488_v30 = vld [vmem:[#allocation5 + $0xc18] sm:$0xff] }
 0x11d   :  { %3472 = vmatprep.subr.bf16.mxu0 %v8175_v31  ;;  %3558 = vmatprep.subr.bf16.mxu1 %v8177_v35  ;;  %v8289_v31 = vcombine.high %v472_v21, %v480_v22  ;;  %v8303_v35 = vcombine.high %v487_v27, %v495_v29  ;;  %v8302_v41 = vcombine.low %v487_v27, %v495_v29  ;;  %v599_v22 = vld [vmem:[#allocation5 + $0xf90] sm:$0xff]  ;;  %v608_v27 = vld [vmem:[#allocation5 + $0xfd8] sm:$0xff] }
 0x11e   :  { %v8304_v42 = vcombine.low %v488_v30, %v496_v32 }
 0x11f   :  { %3462 = vmatmul.mubr.bf16.vlgmr.msra.gmra.mrb[4].mxu0 %v10127_v15  ;;  %3548 = vmatmul.mubr.bf16.vlgmr.msra.gmra.mrb[4].mxu1 %v10127_v15 }
 0x120   :  { %3473 = vmatpush1.bf16.msra.mxu0 %v8174_v37  ;;  %3559 = vmatpush1.bf16.msra.mxu1 %v8176_v38  ;;  %v511_v37 = vld [vmem:[#allocation5 + $0xcd0] sm:$0xff]  ;;  %v504_v38 = vld [vmem:[#allocation5 + $0xc98] sm:$0xff] }
 0x121   :  { %3474 = vmatprep.subr.bf16.mxu0 %v8191_v39  ;;  %3560 = vmatprep.subr.bf16.mxu1 %v8193_v43  ;;  %v8305_v39 = vcombine.high %v488_v30, %v496_v32  ;;  %v8319_v43 = vcombine.high %v503_v36, %v511_v37  ;;  %v8318_v49 = vcombine.low %v503_v36, %v511_v37  ;;  %v105_v32 = vld [vmem:[#allocation5 + $0x20] sm:$0xff]  ;;  %v114_v36 = vld [vmem:[#allocation5 + $0x68] sm:$0xff] }
 0x122   :  { %3504 = vmatprep.mubr.bf16.mxu0 %v10129_v25  ;;  %3590 = vmatprep.mubr.bf16.mxu1 %v10129_v25  ;;  %v8320_v50 = vcombine.low %v504_v38, %v512_v40 }
 0x124   :  { %3475 = vmatpush1.bf16.msra.mxu0 %v8190_v45  ;;  %3561 = vmatpush1.bf16.msra.mxu1 %v8192_v46  ;;  %v527_v45 = vld [vmem:[#allocation5 + $0xd50] sm:$0xff]  ;;  %v520_v46 = vld [vmem:[#allocation5 + $0xd18] sm:$0xff] }
 0x125   :  { %3476 = vmatprep.subr.bf16.mxu0 %v8207_v47  ;;  %3562 = vmatprep.subr.bf16.mxu1 %v8209_v51  ;;  %v8321_v47 = vcombine.high %v504_v38, %v512_v40  ;;  %v8335_v51 = vcombine.high %v519_v44, %v527_v45  ;;  %v8334_v57 = vcombine.low %v519_v44, %v527_v45  ;;  %v121_v40 = vld [vmem:[#allocation5 + $0xa0] sm:$0xff]  ;;  %v130_v44 = vld [vmem:[#allocation5 + $0xe8] sm:$0xff] }
 0x126   :  { %v8336_v59 = vcombine.low %v520_v46, %v528_v48 }
 0x128   :  { %3477 = vmatpush1.bf16.msra.mxu0 %v8206_v53  ;;  %3563 = vmatpush1.bf16.msra.mxu1 %v8208_v54  ;;  %v543_v53 = vld [vmem:[#allocation5 + $0xdd0] sm:$0xff]  ;;  %v536_v54 = vld [vmem:[#allocation5 + $0xd98] sm:$0xff] }
 0x129   :  { %3478 = vmatprep.subr.bf16.mxu0 %v8223_v55  ;;  %3564 = vmatprep.subr.bf16.mxu1 %v8225_v60  ;;  %v8337_v55 = vcombine.high %v520_v46, %v528_v48  ;;  %v8351_v60 = vcombine.high %v535_v52, %v543_v53  ;;  %v8350_v2 = vcombine.low %v535_v52, %v543_v53  ;;  %v137_v48 = vld [vmem:[#allocation5 + $0x120] sm:$0xff]  ;;  %v146_v52 = vld [vmem:[#allocation5 + $0x168] sm:$0xff] }
 0x12a   :  { %v8352_v3 = vcombine.low %v536_v54, %v544_v56 }
 0x12c   :  { %3479 = vmatpush1.bf16.msra.mxu0 %v8222_v62  ;;  %3565 = vmatpush1.bf16.msra.mxu1 %v8224_v63  ;;  %v559_v62 = vld [vmem:[#allocation5 + $0xe50] sm:$0xff]  ;;  %v552_v63 = vld [vmem:[#allocation5 + $0xe18] sm:$0xff] }
 0x12d   :  { %3480 = vmatprep.subr.bf16.mxu0 %v8239_v0  ;;  %3566 = vmatprep.subr.bf16.mxu1 %v8241_v4  ;;  %v8353_v0 = vcombine.high %v536_v54, %v544_v56  ;;  %v8367_v4 = vcombine.high %v551_v61, %v559_v62  ;;  %v8366_v10 = vcombine.low %v551_v61, %v559_v62  ;;  %v153_v56 = vld [vmem:[#allocation5 + $0x1a0] sm:$0xff]  ;;  %v162_v61 = vld [vmem:[#allocation5 + $0x1e8] sm:$0xff] }
 0x12e   :  { %v8368_v11 = vcombine.low %v552_v63, %v560_v1 }
 0x130   :  { %3481 = vmatpush1.bf16.msra.mxu0 %v8238_v6  ;;  %3567 = vmatpush1.bf16.msra.mxu1 %v8240_v7  ;;  %v575_v6 = vld [vmem:[#allocation5 + $0xed0] sm:$0xff]  ;;  %v568_v7 = vld [vmem:[#allocation5 + $0xe98] sm:$0xff] }
 0x131   :  { %3482 = vmatprep.subr.bf16.mxu0 %v8255_v8  ;;  %3568 = vmatprep.subr.bf16.mxu1 %v8257_v12  ;;  %v8369_v8 = vcombine.high %v552_v63, %v560_v1  ;;  %v8383_v12 = vcombine.high %v567_v5, %v575_v6  ;;  %v8382_v19 = vcombine.low %v567_v5, %v575_v6  ;;  %v169_v1 = vld [vmem:[#allocation5 + $0x220] sm:$0xff]  ;;  %v178_v5 = vld [vmem:[#allocation5 + $0x268] sm:$0xff] }
 0x134   :  { %3483 = vmatpush1.bf16.msra.mxu0 %v8254_v14  ;;  %3569 = vmatpush1.bf16.msra.mxu1 %v8256_v16  ;;  %v591_v14 = vld [vmem:[#allocation5 + $0xf50] sm:$0xff]  ;;  %v584_v16 = vld [vmem:[#allocation5 + $0xf18] sm:$0xff] }
 0x135   :  { %3484 = vmatprep.subr.bf16.mxu0 %v8271_v17  ;;  %3570 = vmatprep.subr.bf16.mxu1 %v8273_v20  ;;  %v8385_v17 = vcombine.high %v568_v7, %v576_v9  ;;  %v8384_v20 = vcombine.low %v568_v7, %v576_v9  ;;  %v8399_v21 = vcombine.high %v583_v13, %v591_v14  ;;  %v185_v9 = vld [vmem:[#allocation5 + $0x2a0] sm:$0xff] }
 0x136   :  { %v8398_v29 = vcombine.low %v583_v13, %v591_v14  ;;  %v8400_v30 = vcombine.low %v584_v16, %v592_v18  ;;  %v194_v13 = vld [vmem:[#allocation5 + $0x2e8] sm:$0xff] }
 0x138   :  { %3485 = vmatpush1.bf16.msra.mxu0 %v8270_v23  ;;  %3571 = vmatpush1.bf16.msra.mxu1 %v8272_v24  ;;  %v607_v23 = vld [vmem:[#allocation5 + $0xfd0] sm:$0xff]  ;;  %v600_v24 = vld [vmem:[#allocation5 + $0xf98] sm:$0xff] }
 0x139   :  { %3486 = vmatprep.subr.bf16.mxu0 %v8287_v26  ;;  %3572 = vmatprep.subr.bf16.mxu1 %v8289_v31  ;;  %v8401_v26 = vcombine.high %v584_v16, %v592_v18  ;;  %v8415_v31 = vcombine.high %v599_v22, %v607_v23  ;;  %v8414_v37 = vcombine.low %v599_v22, %v607_v23  ;;  %v201_v18 = vld [vmem:[#allocation5 + $0x320] sm:$0xff]  ;;  %v210_v22 = vld [vmem:[#allocation5 + $0x368] sm:$0xff] }
 0x13a   :  { %v8416_v38 = vcombine.low %v600_v24, %v608_v27 }
 0x13c   :  { %3487 = vmatpush1.bf16.msra.mxu0 %v8286_v33  ;;  %3573 = vmatpush1.bf16.msra.mxu1 %v8288_v34  ;;  %v113_v33 = vld [vmem:[#allocation5 + $0x60] sm:$0xff]  ;;  %v106_v34 = vld [vmem:[#allocation5 + $0x28] sm:$0xff] }
 0x13d   :  { %3488 = vmatprep.subr.bf16.mxu0 %v8303_v35  ;;  %3574 = vmatprep.subr.bf16.mxu1 %v8305_v39  ;;  %v8417_v35 = vcombine.high %v600_v24, %v608_v27  ;;  %v7923_v39 = vcombine.high %v105_v32, %v113_v33  ;;  %v7922_v45 = vcombine.low %v105_v32, %v113_v33  ;;  %v217_v27 = vld [vmem:[#allocation5 + $0x3a0] sm:$0xff]  ;;  %v226_v32 = vld [vmem:[#allocation5 + $0x3e8] sm:$0xff] }
 0x13e   :  { %v7924_v46 = vcombine.low %v106_v34, %v114_v36 }
 0x140   :  { %3489 = vmatpush1.bf16.msra.mxu0 %v8302_v41  ;;  %3575 = vmatpush1.bf16.msra.mxu1 %v8304_v42  ;;  %v129_v41 = vld [vmem:[#allocation5 + $0xe0] sm:$0xff]  ;;  %v122_v42 = vld [vmem:[#allocation5 + $0xa8] sm:$0xff] }
 0x141   :  { %3490 = vmatprep.subr.bf16.mxu0 %v8319_v43  ;;  %3576 = vmatprep.subr.bf16.mxu1 %v8321_v47  ;;  %v7925_v43 = vcombine.high %v106_v34, %v114_v36  ;;  %v7939_v47 = vcombine.high %v121_v40, %v129_v41  ;;  %v7938_v53 = vcombine.low %v121_v40, %v129_v41  ;;  %v233_v36 = vld [vmem:[#allocation5 + $0x420] sm:$0xff]  ;;  %v242_v40 = vld [vmem:[#allocation5 + $0x468] sm:$0xff] }
 0x142   :  { %v7940_v54 = vcombine.low %v122_v42, %v130_v44 }
 0x144   :  { %3491 = vmatpush1.bf16.msra.mxu0 %v8318_v49  ;;  %3577 = vmatpush1.bf16.msra.mxu1 %v8320_v50  ;;  %v145_v49 = vld [vmem:[#allocation5 + $0x160] sm:$0xff]  ;;  %v138_v50 = vld [vmem:[#allocation5 + $0x128] sm:$0xff] }
 0x145   :  { %3492 = vmatprep.subr.bf16.mxu0 %v8335_v51  ;;  %3578 = vmatprep.subr.bf16.mxu1 %v8337_v55  ;;  %v7941_v51 = vcombine.high %v122_v42, %v130_v44  ;;  %v7955_v55 = vcombine.high %v137_v48, %v145_v49  ;;  %v7954_v62 = vcombine.low %v137_v48, %v145_v49  ;;  %v249_v44 = vld [vmem:[#allocation5 + $0x4a0] sm:$0xff]  ;;  %v258_v48 = vld [vmem:[#allocation5 + $0x4e8] sm:$0xff] }
 0x146   :  { %v7956_v63 = vcombine.low %v138_v50, %v146_v52 }
 0x148   :  { %3493 = vmatpush1.bf16.msra.mxu0 %v8334_v57  ;;  %3579 = vmatpush1.bf16.msra.mxu1 %v8336_v59  ;;  %v161_v57 = vld [vmem:[#allocation5 + $0x1e0] sm:$0xff]  ;;  %v154_v59 = vld [vmem:[#allocation5 + $0x1a8] sm:$0xff] }
 0x149   :  { %3494 = vmatprep.subr.bf16.mxu0 %v8351_v60  ;;  %3580 = vmatprep.subr.bf16.mxu1 %v8353_v0  ;;  %v7957_v60 = vcombine.high %v138_v50, %v146_v52  ;;  %v7971_v0 = vcombine.high %v153_v56, %v161_v57  ;;  %v7970_v6 = vcombine.low %v153_v56, %v161_v57  ;;  %v265_v52 = vld [vmem:[#allocation5 + $0x520] sm:$0xff]  ;;  %v274_v56 = vld [vmem:[#allocation5 + $0x568] sm:$0xff] }
 0x14a   :  { %v7972_v7 = vcombine.low %v154_v59, %v162_v61 }
 0x14c   :  { %3495 = vmatpush1.bf16.msra.mxu0 %v8350_v2  ;;  %3581 = vmatpush1.bf16.msra.mxu1 %v8352_v3  ;;  %v177_v2 = vld [vmem:[#allocation5 + $0x260] sm:$0xff]  ;;  %v170_v3 = vld [vmem:[#allocation5 + $0x228] sm:$0xff] }
 0x14d   :  { %3496 = vmatprep.subr.bf16.mxu0 %v8367_v4  ;;  %3582 = vmatprep.subr.bf16.mxu1 %v8369_v8  ;;  %v7973_v4 = vcombine.high %v154_v59, %v162_v61  ;;  %v7987_v8 = vcombine.high %v169_v1, %v177_v2  ;;  %v7986_v14 = vcombine.low %v169_v1, %v177_v2  ;;  %v281_v61 = vld [vmem:[#allocation5 + $0x5a0] sm:$0xff]  ;;  %v290_v1 = vld [vmem:[#allocation5 + $0x5e8] sm:$0xff] }
 0x14e   :  { %v7988_v16 = vcombine.low %v170_v3, %v178_v5 }
 0x150   :  { %3497 = vmatpush1.bf16.msra.mxu0 %v8366_v10  ;;  %3583 = vmatpush1.bf16.msra.mxu1 %v8368_v11  ;;  %v193_v10 = vld [vmem:[#allocation5 + $0x2e0] sm:$0xff]  ;;  %v186_v11 = vld [vmem:[#allocation5 + $0x2a8] sm:$0xff] }
 0x151   :  { %3498 = vmatprep.subr.bf16.mxu0 %v8383_v12  ;;  %3584 = vmatprep.subr.bf16.mxu1 %v8385_v17  ;;  %v7989_v12 = vcombine.high %v170_v3, %v178_v5  ;;  %v8003_v17 = vcombine.high %v185_v9, %v193_v10  ;;  %v8002_v23 = vcombine.low %v185_v9, %v193_v10  ;;  %v297_v5 = vld [vmem:[#allocation5 + $0x620] sm:$0xff]  ;;  %v306_v9 = vld [vmem:[#allocation5 + $0x668] sm:$0xff] }
 0x152   :  { %v8004_v24 = vcombine.low %v186_v11, %v194_v13 }
 0x154   :  { %3499 = vmatpush1.bf16.msra.mxu0 %v8382_v19  ;;  %3585 = vmatpush1.bf16.msra.mxu1 %v8384_v20  ;;  %v209_v19 = vld [vmem:[#allocation5 + $0x360] sm:$0xff]  ;;  %v202_v20 = vld [vmem:[#allocation5 + $0x328] sm:$0xff] }
 0x155   :  { %3500 = vmatprep.subr.bf16.mxu0 %v8399_v21  ;;  %3586 = vmatprep.subr.bf16.mxu1 %v8401_v26  ;;  %v8005_v21 = vcombine.high %v186_v11, %v194_v13  ;;  %v8019_v26 = vcombine.high %v201_v18, %v209_v19  ;;  %v8018_v33 = vcombine.low %v201_v18, %v209_v19  ;;  %v313_v13 = vld [vmem:[#allocation5 + $0x6a0] sm:$0xff]  ;;  %v322_v18 = vld [vmem:[#allocation5 + $0x6e8] sm:$0xff] }
 0x156   :  { %v8020_v34 = vcombine.low %v202_v20, %v210_v22 }
 0x158   :  { %3501 = vmatpush1.bf16.msra.mxu0 %v8398_v29  ;;  %3587 = vmatpush1.bf16.msra.mxu1 %v8400_v30  ;;  %v225_v29 = vld [vmem:[#allocation5 + $0x3e0] sm:$0xff]  ;;  %v218_v30 = vld [vmem:[#allocation5 + $0x3a8] sm:$0xff] }
 0x159   :  { %3502 = vmatprep.subr.bf16.mxu0 %v8415_v31  ;;  %3588 = vmatprep.subr.bf16.mxu1 %v8417_v35  ;;  %v8021_v31 = vcombine.high %v202_v20, %v210_v22  ;;  %v8035_v35 = vcombine.high %v217_v27, %v225_v29  ;;  %v8034_v41 = vcombine.low %v217_v27, %v225_v29  ;;  %v329_v22 = vld [vmem:[#allocation5 + $0x720] sm:$0xff]  ;;  %v338_v27 = vld [vmem:[#allocation5 + $0x768] sm:$0xff] }
 0x15a   :  { %v8036_v42 = vcombine.low %v218_v30, %v226_v32 }
 0x15c   :  { %3503 = vmatpush1.bf16.msra.mxu0 %v8414_v37  ;;  %3589 = vmatpush1.bf16.msra.mxu1 %v8416_v38  ;;  %v241_v37 = vld [vmem:[#allocation5 + $0x460] sm:$0xff]  ;;  %v234_v38 = vld [vmem:[#allocation5 + $0x428] sm:$0xff] }
 0x15d   :  { %3601 = vmatprep.subr.bf16.mxu0 %v7923_v39  ;;  %3687 = vmatprep.subr.bf16.mxu1 %v7925_v43  ;;  %v8037_v39 = vcombine.high %v218_v30, %v226_v32  ;;  %v8051_v43 = vcombine.high %v233_v36, %v241_v37  ;;  %v8050_v49 = vcombine.low %v233_v36, %v241_v37  ;;  %v345_v32 = vld [vmem:[#allocation5 + $0x7a0] sm:$0xff]  ;;  %v354_v36 = vld [vmem:[#allocation5 + $0x7e8] sm:$0xff] }
 0x15e   :  { %v8052_v50 = vcombine.low %v234_v38, %v242_v40 }
 0x15f   :  { %3505 = vmatmul.mubr.bf16.vlgmr.msra.gmra.mrb[4].mxu0 %v10135_v28  ;;  %3591 = vmatmul.mubr.bf16.vlgmr.msra.gmra.mrb[4].mxu1 %v10135_v28 }
 0x160   :  { %3602 = vmatpush1.bf16.msra.mxu0 %v7922_v45  ;;  %3688 = vmatpush1.bf16.msra.mxu1 %v7924_v46  ;;  %v257_v45 = vld [vmem:[#allocation5 + $0x4e0] sm:$0xff]  ;;  %v250_v46 = vld [vmem:[#allocation5 + $0x4a8] sm:$0xff] }
 0x161   :  { %3603 = vmatprep.subr.bf16.mxu0 %v7939_v47  ;;  %3689 = vmatprep.subr.bf16.mxu1 %v7941_v51  ;;  %v8053_v47 = vcombine.high %v234_v38, %v242_v40  ;;  %v8067_v51 = vcombine.high %v249_v44, %v257_v45  ;;  %v8066_v57 = vcombine.low %v249_v44, %v257_v45  ;;  %v361_v40 = vld [vmem:[#allocation5 + $0x820] sm:$0xff]  ;;  %v370_v44 = vld [vmem:[#allocation5 + $0x868] sm:$0xff] }
 0x162   :  { %3633 = vmatprep.mubr.bf16.mxu0 %v10123_v58  ;;  %3719 = vmatprep.mubr.bf16.mxu1 %v10123_v58  ;;  %v8068_v59 = vcombine.low %v250_v46, %v258_v48 }
 0x164   :  { %3604 = vmatpush1.bf16.msra.mxu0 %v7938_v53  ;;  %3690 = vmatpush1.bf16.msra.mxu1 %v7940_v54  ;;  %v273_v53 = vld [vmem:[#allocation5 + $0x560] sm:$0xff]  ;;  %v266_v54 = vld [vmem:[#allocation5 + $0x528] sm:$0xff] }
 0x165   :  { %3605 = vmatprep.subr.bf16.mxu0 %v7955_v55  ;;  %3691 = vmatprep.subr.bf16.mxu1 %v7957_v60  ;;  %v8069_v55 = vcombine.high %v250_v46, %v258_v48  ;;  %v8083_v60 = vcombine.high %v265_v52, %v273_v53  ;;  %v8082_v2 = vcombine.low %v265_v52, %v273_v53  ;;  %v377_v48 = vld [vmem:[#allocation5 + $0x8a0] sm:$0xff]  ;;  %v386_v52 = vld [vmem:[#allocation5 + $0x8e8] sm:$0xff] }
 0x166   :  { %v8084_v3 = vcombine.low %v266_v54, %v274_v56 }
 0x168   :  { %3606 = vmatpush1.bf16.msra.mxu0 %v7954_v62  ;;  %3692 = vmatpush1.bf16.msra.mxu1 %v7956_v63  ;;  %v289_v62 = vld [vmem:[#allocation5 + $0x5e0] sm:$0xff]  ;;  %v282_v63 = vld [vmem:[#allocation5 + $0x5a8] sm:$0xff] }
 0x169   :  { %3607 = vmatprep.subr.bf16.mxu0 %v7971_v0  ;;  %3693 = vmatprep.subr.bf16.mxu1 %v7973_v4  ;;  %v8085_v0 = vcombine.high %v266_v54, %v274_v56  ;;  %v8099_v4 = vcombine.high %v281_v61, %v289_v62  ;;  %v8098_v10 = vcombine.low %v281_v61, %v289_v62  ;;  %v393_v56 = vld [vmem:[#allocation5 + $0x920] sm:$0xff]  ;;  %v402_v61 = vld [vmem:[#allocation5 + $0x968] sm:$0xff] }
 0x16a   :  { %v8100_v11 = vcombine.low %v282_v63, %v290_v1 }
 0x16c   :  { %3608 = vmatpush1.bf16.msra.mxu0 %v7970_v6  ;;  %3694 = vmatpush1.bf16.msra.mxu1 %v7972_v7  ;;  %v305_v6 = vld [vmem:[#allocation5 + $0x660] sm:$0xff]  ;;  %v298_v7 = vld [vmem:[#allocation5 + $0x628] sm:$0xff] }
 0x16d   :  { %3609 = vmatprep.subr.bf16.mxu0 %v7987_v8  ;;  %3695 = vmatprep.subr.bf16.mxu1 %v7989_v12  ;;  %v8101_v8 = vcombine.high %v282_v63, %v290_v1  ;;  %v8115_v12 = vcombine.high %v297_v5, %v305_v6  ;;  %v8114_v19 = vcombine.low %v297_v5, %v305_v6  ;;  %v418_v5 = vld [vmem:[#allocation5 + $0x9e8] sm:$0xff] }
 0x16e   :  { %v8116_v20 = vcombine.low %v298_v7, %v306_v9 }
 0x170   :  { %3610 = vmatpush1.bf16.msra.mxu0 %v7986_v14  ;;  %3696 = vmatpush1.bf16.msra.mxu1 %v7988_v16  ;;  %v321_v14 = vld [vmem:[#allocation5 + $0x6e0] sm:$0xff]  ;;  %v314_v16 = vld [vmem:[#allocation5 + $0x6a8] sm:$0xff] }
 0x171   :  { %3611 = vmatprep.subr.bf16.mxu0 %v8003_v17  ;;  %3697 = vmatprep.subr.bf16.mxu1 %v8005_v21  ;;  %v8117_v17 = vcombine.high %v298_v7, %v306_v9  ;;  %v8131_v21 = vcombine.high %v313_v13, %v321_v14  ;;  %v8130_v29 = vcombine.low %v313_v13, %v321_v14  ;;  %v617_v9 = vlaneseq  ;;  %v426_v13 = vld [vmem:[#allocation5 + $0xa28] sm:$0xff] }
 0x172   :  { %v8132_v30 = vcombine.low %v314_v16, %v322_v18  ;;  %v434_v14 = vld [vmem:[#allocation5 + $0xa68] sm:$0xff] }
 0x174   :  { %3612 = vmatpush1.bf16.msra.mxu0 %v8002_v23  ;;  %3698 = vmatpush1.bf16.msra.mxu1 %v8004_v24  ;;  %v337_v23 = vld [vmem:[#allocation5 + $0x760] sm:$0xff]  ;;  %v330_v24 = vld [vmem:[#allocation5 + $0x728] sm:$0xff] }
 0x175   :  { %3613 = vmatprep.subr.bf16.mxu0 %v8019_v26  ;;  %3699 = vmatprep.subr.bf16.mxu1 %v8021_v31  ;;  %v8133_v26 = vcombine.high %v314_v16, %v322_v18  ;;  %v8147_v31 = vcombine.high %v329_v22, %v337_v23  ;;  %v8146_v37 = vcombine.low %v329_v22, %v337_v23  ;;  %v449_v22 = vld [vmem:[#allocation5 + $0xae0] sm:$0xff]  ;;  %v442_v23 = vld [vmem:[#allocation5 + $0xaa8] sm:$0xff] }
 0x176   :  { %v8148_v38 = vcombine.low %v330_v24, %v338_v27 }
 0x178   :  { %3614 = vmatpush1.bf16.msra.mxu0 %v8018_v33  ;;  %3700 = vmatpush1.bf16.msra.mxu1 %v8020_v34  ;;  %v353_v33 = vld [vmem:[#allocation5 + $0x7e0] sm:$0xff]  ;;  %v346_v34 = vld [vmem:[#allocation5 + $0x7a8] sm:$0xff] }
 0x179   :  { %3615 = vmatprep.subr.bf16.mxu0 %v8035_v35  ;;  %3701 = vmatprep.subr.bf16.mxu1 %v8037_v39  ;;  %v8149_v35 = vcombine.high %v330_v24, %v338_v27  ;;  %v8163_v39 = vcombine.high %v345_v32, %v353_v33  ;;  %v8162_v45 = vcombine.low %v345_v32, %v353_v33  ;;  %v450_v24 = vld [vmem:[#allocation5 + $0xae8] sm:$0xff] }
 0x17a   :  { %v8164_v46 = vcombine.low %v346_v34, %v354_v36  ;;  %v8244_v27 = vcombine.low %v426_v13, %v434_v14 }
 0x17c   :  { %3616 = vmatpush1.bf16.msra.mxu0 %v8034_v41  ;;  %3702 = vmatpush1.bf16.msra.mxu1 %v8036_v42  ;;  %v369_v41 = vld [vmem:[#allocation5 + $0x860] sm:$0xff]  ;;  %v362_v42 = vld [vmem:[#allocation5 + $0x828] sm:$0xff] }
 0x17d   :  { %3617 = vmatprep.subr.bf16.mxu0 %v8051_v43  ;;  %3703 = vmatprep.subr.bf16.mxu1 %v8053_v47  ;;  %v8165_v43 = vcombine.high %v346_v34, %v354_v36  ;;  %v8179_v47 = vcombine.high %v361_v40, %v369_v41  ;;  %v8178_v53 = vcombine.low %v361_v40, %v369_v41  ;;  %v465_v36 = vld [vmem:[#allocation5 + $0xb60] sm:$0xff] }
 0x17e   :  { %v8180_v54 = vcombine.low %v362_v42, %v370_v44  ;;  %v8261_v34 = vcombine.high %v442_v23, %v450_v24 }
 0x180   :  { %3618 = vmatpush1.bf16.msra.mxu0 %v8050_v49  ;;  %3704 = vmatpush1.bf16.msra.mxu1 %v8052_v50  ;;  %v385_v49 = vld [vmem:[#allocation5 + $0x8e0] sm:$0xff]  ;;  %v378_v50 = vld [vmem:[#allocation5 + $0x8a8] sm:$0xff] }
 0x181   :  { %3619 = vmatprep.subr.bf16.mxu0 %v8067_v51  ;;  %3705 = vmatprep.subr.bf16.mxu1 %v8069_v55  ;;  %v8181_v51 = vcombine.high %v362_v42, %v370_v44  ;;  %v8195_v55 = vcombine.high %v377_v48, %v385_v49  ;;  %v8194_v62 = vcombine.low %v377_v48, %v385_v49  ;;  %v473_v44 = vld [vmem:[#allocation5 + $0xba0] sm:$0xff] }
 0x182   :  { %v8196_v63 = vcombine.low %v378_v50, %v386_v52  ;;  %v8260_v42 = vcombine.low %v442_v23, %v450_v24  ;;  %v505_v23 = vld [vmem:[#allocation5 + $0xca0] sm:$0xff] }
 0x183   :  { %v513_v24 = vld [vmem:[#allocation5 + $0xce0] sm:$0xff] }
 0x184   :  { %3620 = vmatpush1.bf16.msra.mxu0 %v8066_v57  ;;  %3706 = vmatpush1.bf16.msra.mxu1 %v8068_v59  ;;  %v401_v57 = vld [vmem:[#allocation5 + $0x960] sm:$0xff]  ;;  %v394_v59 = vld [vmem:[#allocation5 + $0x928] sm:$0xff] }
 0x185   :  { %3621 = vmatprep.subr.bf16.mxu0 %v8083_v60  ;;  %3707 = vmatprep.subr.bf16.mxu1 %v8085_v0  ;;  %v8197_v60 = vcombine.high %v378_v50, %v386_v52  ;;  %v8211_v0 = vcombine.high %v393_v56, %v401_v57  ;;  %v8213_v1 = vcombine.high %v394_v59, %v402_v61  ;;  %v474_v50 = vld [vmem:[#allocation5 + $0xba8] sm:$0xff] }
 0x186   :  { %v8210_v6 = vcombine.low %v393_v56, %v401_v57  ;;  %v8212_v7 = vcombine.low %v394_v59, %v402_v61 }
 0x188   :  { %3622 = vmatpush1.bf16.msra.mxu0 %v8082_v2  ;;  %3708 = vmatpush1.bf16.msra.mxu1 %v8084_v3  ;;  %v409_v2 = vld [vmem:[#allocation5 + $0x9a0] sm:$0xff] }
 0x189   :  { %3623 = vmatprep.subr.bf16.mxu0 %v8099_v4  ;;  %3709 = vmatprep.subr.bf16.mxu1 %v8101_v8  ;;  %v417_v3 = vld [vmem:[#allocation5 + $0x9e0] sm:$0xff]  ;;  %v410_v4 = vld [vmem:[#allocation5 + $0x9a8] sm:$0xff] }
 0x18a   :  { %v8227_v8 = vcombine.high %v409_v2, %v417_v3  ;;  %v8226_v16 = vcombine.low %v409_v2, %v417_v3 }
 0x18c   :  { %3624 = vmatpush1.bf16.msra.mxu0 %v8098_v10  ;;  %3710 = vmatpush1.bf16.msra.mxu1 %v8100_v11  ;;  %v8229_v10 = vcombine.high %v410_v4, %v418_v5  ;;  %v425_v11 = vld [vmem:[#allocation5 + $0xa20] sm:$0xff] }
 0x18d   :  { %3625 = vmatprep.subr.bf16.mxu0 %v8115_v12  ;;  %3711 = vmatprep.subr.bf16.mxu1 %v8117_v17  ;;  %v433_v12 = vld [vmem:[#allocation5 + $0xa60] sm:$0xff]  ;;  %v8228_v17 = vcombine.low %v410_v4, %v418_v5 }
 0x18e   :  { %v8243_v18 = vcombine.high %v425_v11, %v433_v12 }
 0x190   :  { %3626 = vmatpush1.bf16.msra.mxu0 %v8114_v19  ;;  %3712 = vmatpush1.bf16.msra.mxu1 %v8116_v20  ;;  %v10153_v19 = vshrl.u32 %v617_v9, 7  ;;  %v8245_v20 = vcombine.high %v426_v13, %v434_v14  ;;  %v498_v13 = vld [vmem:[#allocation5 + $0xc68] sm:$0xff] }
 0x191   :  { %3627 = vmatprep.subr.bf16.mxu0 %v8131_v21  ;;  %3713 = vmatprep.subr.bf16.mxu1 %v8133_v26  ;;  %v441_v21 = vld [vmem:[#allocation5 + $0xaa0] sm:$0xff]  ;;  %v8242_v26 = vcombine.low %v425_v11, %v433_v12  ;;  %v490_v12 = vld [vmem:[#allocation5 + $0xc28] sm:$0xff] }
 0x192   :  { %v10161_v32 = vsub.s32 2, %v10153_v19  ;;  %v10164_v33 = vsub.s32 1, %v10153_v19  ;;  %v8258_v40 = vcombine.low %v441_v21, %v449_v22 }
 0x194   :  { %3628 = vmatpush1.bf16.msra.mxu0 %v8130_v29  ;;  %3714 = vmatpush1.bf16.msra.mxu1 %v8132_v30  ;;  %v10156_v29 = vsub.s32 0, %v10153_v19  ;;  %v8259_v30 = vcombine.high %v441_v21, %v449_v22  ;;  %v8309_v22 = vcombine.high %v490_v12, %v498_v13 }
 0x195   :  { %3629 = vmatprep.subr.bf16.mxu0 %v8147_v31  ;;  %3715 = vmatprep.subr.bf16.mxu1 %v8149_v35  ;;  %v10158_v31 = vld [vmem:[#allocation7] sm:$0xff] }
 0x196   :  { %v457_v35 = vld [vmem:[#allocation5 + $0xb20] sm:$0xff]  ;;  %v620_v41 = vrot.slane %v10158_v31, %v10156_v29  ;;  %v624_v48 = vrot.slane %v10158_v31, %v10164_v33 }
 0x197   :  { %v8274_v57 = vcombine.low %v457_v35, %v465_v36 }
 0x198   :  { %3630 = vmatpush1.bf16.msra.mxu0 %v8146_v37  ;;  %3716 = vmatpush1.bf16.msra.mxu1 %v8148_v38  ;;  %v10167_v37 = vsub.s32 3, %v10153_v19  ;;  %v458_v38 = vld [vmem:[#allocation5 + $0xb28] sm:$0xff] }
 0x199   :  { %3631 = vmatprep.subr.bf16.mxu0 %v8163_v39  ;;  %3717 = vmatprep.subr.bf16.mxu1 %v8165_v43  ;;  %v466_v39 = vld [vmem:[#allocation5 + $0xb68] sm:$0xff]  ;;  %v8275_v43 = vcombine.high %v457_v35, %v465_v36  ;;  %v8323_v35 = vcombine.high %v505_v23, %v513_v24 }
 0x19a   :  { %v8277_v49 = vcombine.high %v458_v38, %v466_v39  ;;  %v8276_v59 = vcombine.low %v458_v38, %v466_v39  ;;  %v521_v38 = vld [vmem:[#allocation5 + $0xd20] sm:$0xff] }
 0x19b   :  { %v529_v39 = vld [vmem:[#allocation5 + $0xd60] sm:$0xff] }
 0x19c   :  { %3632 = vmatpush1.bf16.msra.mxu0 %v8162_v45  ;;  %3718 = vmatpush1.bf16.msra.mxu1 %v8164_v46  ;;  %v481_v45 = vld [vmem:[#allocation5 + $0xbe0] sm:$0xff] }
 0x19d   :  { %3644 = vmatprep.subr.bf16.mxu0 %v8179_v47  ;;  %3730 = vmatprep.subr.bf16.mxu1 %v8181_v51  ;;  %v628_v47 = vrot.slane %v10158_v31, %v10161_v32  ;;  %v482_v51 = vld [vmem:[#allocation5 + $0xbe8] sm:$0xff] }
 0x19f   :  { %3634 = vmatmul.mubr.bf16.vlgmr.msra.gmra.mrb[8].mxu0 %v10127_v15  ;;  %3720 = vmatmul.mubr.bf16.vlgmr.msra.gmra.mrb[8].mxu1 %v10127_v15 }
 0x1a0   :  { %3645 = vmatpush1.bf16.msra.mxu0 %v8178_v53  ;;  %3731 = vmatpush1.bf16.msra.mxu1 %v8180_v54  ;;  %v632_v54 = vrot.slane %v10158_v31, %v10167_v37 }
 0x1a1   :  { %3646 = vmatprep.subr.bf16.mxu0 %v8195_v55  ;;  %3732 = vmatprep.subr.bf16.mxu1 %v8197_v60  ;;  %v8291_v60 = vcombine.high %v473_v44, %v481_v45 }
 0x1a2   :  { %3676 = vmatprep.mubr.bf16.mxu0 %v10129_v25  ;;  %3762 = vmatprep.mubr.bf16.mxu1 %v10129_v25 }
 0x1a4   :  { %3647 = vmatpush1.bf16.msra.mxu0 %v8194_v62  ;;  %3733 = vmatpush1.bf16.msra.mxu1 %v8196_v63 }
 0x1a5   :  { %3648 = vmatprep.subr.bf16.mxu0 %v8211_v0  ;;  %3734 = vmatprep.subr.bf16.mxu1 %v8213_v1  ;;  %v8293_v1 = vcombine.high %v474_v50, %v482_v51 }
 0x1a8   :  { %3649 = vmatpush1.bf16.msra.mxu0 %v8210_v6  ;;  %3735 = vmatpush1.bf16.msra.mxu1 %v8212_v7  ;;  %v489_v7 = vld [vmem:[#allocation5 + $0xc20] sm:$0xff] }
 0x1a9   :  { %3650 = vmatprep.subr.bf16.mxu0 %v8227_v8  ;;  %3736 = vmatprep.subr.bf16.mxu1 %v8229_v10  ;;  %v497_v8 = vld [vmem:[#allocation5 + $0xc60] sm:$0xff] }
 0x1aa   :  { %v8307_v21 = vcombine.high %v489_v7, %v497_v8 }
 0x1ac   :  { %3651 = vmatpush1.bf16.msra.mxu0 %v8226_v16  ;;  %3737 = vmatpush1.bf16.msra.mxu1 %v8228_v17  ;;  %v8290_v17 = vcombine.low %v473_v44, %v481_v45  ;;  %v8339_v44 = vcombine.high %v521_v38, %v529_v39 }
 0x1ad   :  { %3652 = vmatprep.subr.bf16.mxu0 %v8243_v18  ;;  %3738 = vmatprep.subr.bf16.mxu1 %v8245_v20  ;;  %v8292_v20 = vcombine.low %v474_v50, %v482_v51  ;;  %v8338_v50 = vcombine.low %v521_v38, %v529_v39  ;;  %v108_v38 = vld [vmem:[#allocation5 + $0x38] sm:$0xff] }
 0x1ae   :  { %v116_v39 = vld [vmem:[#allocation5 + $0x78] sm:$0xff] }
 0x1b0   :  { %3653 = vmatpush1.bf16.msra.mxu0 %v8242_v26  ;;  %3739 = vmatpush1.bf16.msra.mxu1 %v8244_v27  ;;  %v506_v26 = vld [vmem:[#allocation5 + $0xca8] sm:$0xff] }
 0x1b1   :  { %3654 = vmatprep.subr.bf16.mxu0 %v8259_v30  ;;  %3740 = vmatprep.subr.bf16.mxu1 %v8261_v34  ;;  %v514_v27 = vld [vmem:[#allocation5 + $0xce8] sm:$0xff]  ;;  %v8306_v30 = vcombine.low %v489_v7, %v497_v8  ;;  %v8308_v34 = vcombine.low %v490_v12, %v498_v13  ;;  %v585_v7 = vld [vmem:[#allocation5 + $0xf20] sm:$0xff] }
 0x1b2   :  { %v3334_v46 = vpop.f32.mrb[0].mxu0  ;;  %v3420_v52 = vpop.f32.mrb[0].mxu1  ;;  %v8325_v36 = vcombine.high %v506_v26, %v514_v27  ;;  %v593_v8 = vld [vmem:[#allocation5 + $0xf60] sm:$0xff] }
 0x1b3   :  { %v3336_v53 = vpop.f32.mrb[1].mxu0  ;;  %v3422_v55 = vpop.f32.mrb[1].mxu1  ;;  %v8938_v61 = vadd.f32 %v3334_v46, %v620_v41  ;;  %v8942_v2 = vadd.f32 %v3420_v52, %v628_v47  ;;  %v537_v46 = vld [vmem:[#allocation5 + $0xda0] sm:$0xff] }
 0x1b4   :  { %v3338_v56 = vpop.f32.mrb[2].mxu0  ;;  %3655 = vmatpush1.bf16.msra.mxu0 %v8258_v40  ;;  %v3424_v63 = vpop.f32.mrb[2].mxu1  ;;  %3741 = vmatpush1.bf16.msra.mxu1 %v8260_v42  ;;  %v8939_v3 = vadd.f32 %v3336_v53, %v624_v48  ;;  %v8943_v9 = vadd.f32 %v3422_v55, %v632_v54  ;;  %v522_v40 = vld [vmem:[#allocation5 + $0xd28] sm:$0xff]  ;;  %v8322_v42 = vcombine.low %v505_v23, %v513_v24  ;;  %v561_v55 = vld [vmem:[#allocation5 + $0xe60] sm:$0xff] }
 0x1b5   :  { %v8940_v62 = vadd.f32 %v3338_v56, %v620_v41  ;;  %v3340_v0 = vpop.f32.mrb[3].mxu0  ;;  %3656 = vmatprep.subr.bf16.mxu0 %v8275_v43  ;;  %v8944_v4 = vadd.f32 %v3424_v63, %v628_v47  ;;  %v3426_v6 = vpop.f32.mrb[3].mxu1  ;;  %3742 = vmatprep.subr.bf16.mxu1 %v8277_v49  ;;  %v530_v41 = vld [vmem:[#allocation5 + $0xd68] sm:$0xff]  ;;  %v8324_v43 = vcombine.low %v506_v26, %v514_v27  ;;  %v545_v47 = vld [vmem:[#allocation5 + $0xde0] sm:$0xff] }
 0x1b6   :  { %v8941_v5 = vadd.f32 %v3340_v0, %v624_v48  ;;  %v8945_v11 = vadd.f32 %v3426_v6, %v632_v54  ;;  %v8341_v45 = vcombine.high %v522_v40, %v530_v41  ;;  %v538_v48 = vld [vmem:[#allocation5 + $0xda8] sm:$0xff]  ;;  %v8340_v51 = vcombine.low %v522_v40, %v530_v41  ;;  %v553_v54 = vld [vmem:[#allocation5 + $0xe20] sm:$0xff] }
 0x1b7   :  { %v10177_v10 = vpack.c.bf16 %v8940_v62, %v8938_v61  ;;  %v10179_v14 = vpack.c.bf16 %v8944_v4, %v8942_v2  ;;  %v546_v49 = vld [vmem:[#allocation5 + $0xde8] sm:$0xff]  ;;  %v8355_v52 = vcombine.high %v537_v46, %v545_v47  ;;  %v8371_v61 = vcombine.high %v553_v54, %v561_v55  ;;  %v569_v63 = vld [vmem:[#allocation5 + $0xea0] sm:$0xff] }
 0x1b8   :  { %v10181_v16 = vpack.c.bf16 %v8941_v5, %v8939_v3  ;;  %3657 = vmatpush1.bf16.msra.mxu0 %v8274_v57  ;;  %v10183_v18 = vpack.c.bf16 %v8945_v11, %v8943_v9  ;;  %3743 = vmatpush1.bf16.msra.mxu1 %v8276_v59  ;;  %v8357_v53 = vcombine.high %v538_v48, %v546_v49  ;;  %v554_v56 = vld [vmem:[#allocation5 + $0xe28] sm:$0xff]  ;;  %v577_v0 = vld [vmem:[#allocation5 + $0xee0] sm:$0xff] }
 0x1b9   :  { %3658 = vmatprep.subr.bf16.mxu0 %v8291_v60  ;;  %3744 = vmatprep.subr.bf16.mxu1 %v8293_v1  ;;  %v562_v57 = vld [vmem:[#allocation5 + $0xe68] sm:$0xff]  ;;  %v8354_v59 = vcombine.low %v537_v46, %v545_v47  ;;  %v8356_v60 = vcombine.low %v538_v48, %v546_v49  ;;  %v8370_v3 = vcombine.low %v553_v54, %v561_v55  ;;  %v124_v46 = vld [vmem:[#allocation5 + $0xb8] sm:$0xff] }
 0x1ba   :  { %v8373_v62 = vcombine.high %v554_v56, %v562_v57  ;;  %v570_v1 = vld [vmem:[#allocation5 + $0xea8] sm:$0xff]  ;;  %v8372_v4 = vcombine.low %v554_v56, %v562_v57  ;;  %v8387_v5 = vcombine.high %v569_v63, %v577_v0  ;;  %v8386_v12 = vcombine.low %v569_v63, %v577_v0  ;;  %v132_v47 = vld [vmem:[#allocation5 + $0xf8] sm:$0xff] }
 0x1bb   :  { %v578_v2 = vld [vmem:[#allocation5 + $0xee8] sm:$0xff]  ;;  %v8402_v26 = vcombine.low %v585_v7, %v593_v8  ;;  %v7928_v49 = vcombine.low %v108_v38, %v116_v39  ;;  %v140_v54 = vld [vmem:[#allocation5 + $0x138] sm:$0xff]  ;;  %v7944_v57 = vcombine.low %v124_v46, %v132_v47 }
 0x1bc   :  { %3659 = vmatpush1.bf16.msra.mxu0 %v8290_v17  ;;  %3745 = vmatpush1.bf16.msra.mxu1 %v8292_v20  ;;  %v8389_v6 = vcombine.high %v570_v1, %v578_v2  ;;  %v586_v9 = vld [vmem:[#allocation5 + $0xf28] sm:$0xff]  ;;  %v8388_v13 = vcombine.low %v570_v1, %v578_v2  ;;  %v8403_v17 = vcombine.high %v585_v7, %v593_v8  ;;  %v148_v55 = vld [vmem:[#allocation5 + $0x178] sm:$0xff] }
 0x1bd   :  { %3660 = vmatprep.subr.bf16.mxu0 %v8307_v21  ;;  %3746 = vmatprep.subr.bf16.mxu1 %v8309_v22  ;;  %v594_v11 = vld [vmem:[#allocation5 + $0xf68] sm:$0xff]  ;;  %v601_v21 = vld [vmem:[#allocation5 + $0xfa0] sm:$0xff]  ;;  %v156_v63 = vld [vmem:[#allocation5 + $0x1b8] sm:$0xff]  ;;  %v7960_v2 = vcombine.low %v140_v54, %v148_v55 }
 0x1be   :  { %v8405_v20 = vcombine.high %v586_v9, %v594_v11  ;;  %v609_v22 = vld [vmem:[#allocation5 + $0xfe0] sm:$0xff]  ;;  %v602_v23 = vld [vmem:[#allocation5 + $0xfa8] sm:$0xff]  ;;  %v8404_v27 = vcombine.low %v586_v9, %v594_v11  ;;  %v164_v0 = vld [vmem:[#allocation5 + $0x1f8] sm:$0xff] }
 0x1bf   :  { %v610_v24 = vld [vmem:[#allocation5 + $0xfe8] sm:$0xff]  ;;  %v8418_v40 = vcombine.low %v601_v21, %v609_v22  ;;  %v172_v7 = vld [vmem:[#allocation5 + $0x238] sm:$0xff]  ;;  %v7976_v11 = vcombine.low %v156_v63, %v164_v0 }
 0x1c0   :  { %3661 = vmatpush1.bf16.msra.mxu0 %v8306_v30  ;;  %3747 = vmatpush1.bf16.msra.mxu1 %v8308_v34  ;;  %v8419_v30 = vcombine.high %v601_v21, %v609_v22  ;;  %v8421_v34 = vcombine.high %v602_v23, %v610_v24  ;;  %v8420_v41 = vcombine.low %v602_v23, %v610_v24  ;;  %v180_v8 = vld [vmem:[#allocation5 + $0x278] sm:$0xff] }
 0x1c1   :  { %3662 = vmatprep.subr.bf16.mxu0 %v8323_v35  ;;  %3748 = vmatprep.subr.bf16.mxu1 %v8325_v36  ;;  %v107_v35 = vld [vmem:[#allocation5 + $0x30] sm:$0xff]  ;;  %v196_v21 = vld [vmem:[#allocation5 + $0x2f8] sm:$0xff]  ;;  %v7992_v23 = vcombine.low %v172_v7, %v180_v8 }
 0x1c2   :  { %v115_v36 = vld [vmem:[#allocation5 + $0x70] sm:$0xff] }
 0x1c3   :  { %v7926_v48 = vcombine.low %v107_v35, %v115_v36 }
 0x1c4   :  { %3663 = vmatpush1.bf16.msra.mxu0 %v8322_v42  ;;  %3749 = vmatpush1.bf16.msra.mxu1 %v8324_v43  ;;  %v7927_v42 = vcombine.high %v107_v35, %v115_v36  ;;  %v7929_v43 = vcombine.high %v108_v38, %v116_v39  ;;  %v212_v35 = vld [vmem:[#allocation5 + $0x378] sm:$0xff] }
 0x1c5   :  { %3664 = vmatprep.subr.bf16.mxu0 %v8339_v44  ;;  %3750 = vmatprep.subr.bf16.mxu1 %v8341_v45  ;;  %v123_v44 = vld [vmem:[#allocation5 + $0xb0] sm:$0xff] }
 0x1c6   :  { %v131_v45 = vld [vmem:[#allocation5 + $0xf0] sm:$0xff] }
 0x1c7   :  { %v7942_v56 = vcombine.low %v123_v44, %v131_v45 }
 0x1c8   :  { %3665 = vmatpush1.bf16.msra.mxu0 %v8338_v50  ;;  %3751 = vmatpush1.bf16.msra.mxu1 %v8340_v51  ;;  %v7943_v50 = vcombine.high %v123_v44, %v131_v45  ;;  %v7945_v51 = vcombine.high %v124_v46, %v132_v47  ;;  %v228_v44 = vld [vmem:[#allocation5 + $0x3f8] sm:$0xff] }
 0x1c9   :  { %3666 = vmatprep.subr.bf16.mxu0 %v8355_v52  ;;  %3752 = vmatprep.subr.bf16.mxu1 %v8357_v53  ;;  %v139_v52 = vld [vmem:[#allocation5 + $0x130] sm:$0xff] }
 0x1ca   :  { %v147_v53 = vld [vmem:[#allocation5 + $0x170] sm:$0xff] }
 0x1cb   :  { %v7958_v1 = vcombine.low %v139_v52, %v147_v53 }
 0x1cc   :  { %3667 = vmatpush1.bf16.msra.mxu0 %v8354_v59  ;;  %3753 = vmatpush1.bf16.msra.mxu1 %v8356_v60  ;;  %v7959_v59 = vcombine.high %v139_v52, %v147_v53  ;;  %v7961_v60 = vcombine.high %v140_v54, %v148_v55  ;;  %v244_v52 = vld [vmem:[#allocation5 + $0x478] sm:$0xff] }
 0x1cd   :  { %3668 = vmatprep.subr.bf16.mxu0 %v8371_v61  ;;  %3754 = vmatprep.subr.bf16.mxu1 %v8373_v62  ;;  %v155_v61 = vld [vmem:[#allocation5 + $0x1b0] sm:$0xff] }
 0x1ce   :  { %v163_v62 = vld [vmem:[#allocation5 + $0x1f0] sm:$0xff] }
 0x1cf   :  { %v7974_v9 = vcombine.low %v155_v61, %v163_v62 }
 0x1d0   :  { %3669 = vmatpush1.bf16.msra.mxu0 %v8370_v3  ;;  %3755 = vmatpush1.bf16.msra.mxu1 %v8372_v4  ;;  %v7975_v3 = vcombine.high %v155_v61, %v163_v62  ;;  %v7977_v4 = vcombine.high %v156_v63, %v164_v0  ;;  %v260_v61 = vld [vmem:[#allocation5 + $0x4f8] sm:$0xff] }
 0x1d1   :  { %3670 = vmatprep.subr.bf16.mxu0 %v8387_v5  ;;  %3756 = vmatprep.subr.bf16.mxu1 %v8389_v6  ;;  %v171_v5 = vld [vmem:[#allocation5 + $0x230] sm:$0xff] }
 0x1d2   :  { %v179_v6 = vld [vmem:[#allocation5 + $0x270] sm:$0xff] }
 0x1d3   :  { %v7990_v22 = vcombine.low %v171_v5, %v179_v6 }
 0x1d4   :  { %3671 = vmatpush1.bf16.msra.mxu0 %v8386_v12  ;;  %3757 = vmatpush1.bf16.msra.mxu1 %v8388_v13  ;;  %v7991_v12 = vcombine.high %v171_v5, %v179_v6  ;;  %v187_v13 = vld [vmem:[#allocation5 + $0x2b0] sm:$0xff]  ;;  %v276_v5 = vld [vmem:[#allocation5 + $0x578] sm:$0xff] }
 0x1d5   :  { %3672 = vmatprep.subr.bf16.mxu0 %v8403_v17  ;;  %3758 = vmatprep.subr.bf16.mxu1 %v8405_v20  ;;  %v195_v17 = vld [vmem:[#allocation5 + $0x2f0] sm:$0xff]  ;;  %v188_v20 = vld [vmem:[#allocation5 + $0x2b8] sm:$0xff] }
 0x1d6   :  { %v8007_v24 = vcombine.high %v187_v13, %v195_v17  ;;  %v8006_v36 = vcombine.low %v187_v13, %v195_v17  ;;  %v8008_v38 = vcombine.low %v188_v20, %v196_v21  ;;  %v292_v13 = vld [vmem:[#allocation5 + $0x5f8] sm:$0xff] }
 0x1d8   :  { %3673 = vmatpush1.bf16.msra.mxu0 %v8402_v26  ;;  %3759 = vmatpush1.bf16.msra.mxu1 %v8404_v27  ;;  %v8009_v26 = vcombine.high %v188_v20, %v196_v21  ;;  %v203_v27 = vld [vmem:[#allocation5 + $0x330] sm:$0xff] }
 0x1d9   :  { %3674 = vmatprep.subr.bf16.mxu0 %v8419_v30  ;;  %3760 = vmatprep.subr.bf16.mxu1 %v8421_v34  ;;  %v211_v30 = vld [vmem:[#allocation5 + $0x370] sm:$0xff]  ;;  %v204_v34 = vld [vmem:[#allocation5 + $0x338] sm:$0xff] }
 0x1da   :  { %v8023_v39 = vcombine.high %v203_v27, %v211_v30  ;;  %v8022_v45 = vcombine.low %v203_v27, %v211_v30  ;;  %v8024_v46 = vcombine.low %v204_v34, %v212_v35  ;;  %v308_v27 = vld [vmem:[#allocation5 + $0x678] sm:$0xff] }
 0x1dc   :  { %3675 = vmatpush1.bf16.msra.mxu0 %v8418_v40  ;;  %3761 = vmatpush1.bf16.msra.mxu1 %v8420_v41  ;;  %v8025_v40 = vcombine.high %v204_v34, %v212_v35  ;;  %v219_v41 = vld [vmem:[#allocation5 + $0x3b0] sm:$0xff] }
 0x1dd   :  { %3773 = vmatprep.subr.bf16.mxu0 %v7927_v42  ;;  %3859 = vmatprep.subr.bf16.mxu1 %v7929_v43  ;;  %v227_v42 = vld [vmem:[#allocation5 + $0x3f0] sm:$0xff]  ;;  %v220_v43 = vld [vmem:[#allocation5 + $0x3b8] sm:$0xff] }
 0x1de   :  { %v8039_v47 = vcombine.high %v219_v41, %v227_v42  ;;  %v8038_v53 = vcombine.low %v219_v41, %v227_v42  ;;  %v8040_v54 = vcombine.low %v220_v43, %v228_v44  ;;  %v324_v41 = vld [vmem:[#allocation5 + $0x6f8] sm:$0xff] }
 0x1df   :  { %3677 = vmatmul.mubr.bf16.vlgmr.msra.gmra.mrb[8].mxu0 %v10135_v28  ;;  %3763 = vmatmul.mubr.bf16.vlgmr.msra.gmra.mrb[8].mxu1 %v10135_v28 }
 0x1e0   :  { %3774 = vmatpush1.bf16.msra.mxu0 %v7926_v48  ;;  %3860 = vmatpush1.bf16.msra.mxu1 %v7928_v49  ;;  %v8041_v48 = vcombine.high %v220_v43, %v228_v44  ;;  %v235_v49 = vld [vmem:[#allocation5 + $0x430] sm:$0xff] }
 0x1e1   :  { %3775 = vmatprep.subr.bf16.mxu0 %v7943_v50  ;;  %3861 = vmatprep.subr.bf16.mxu1 %v7945_v51  ;;  %v243_v50 = vld [vmem:[#allocation5 + $0x470] sm:$0xff]  ;;  %v236_v51 = vld [vmem:[#allocation5 + $0x438] sm:$0xff] }
 0x1e2   :  { %3805 = vmatprep.mubr.bf16.mxu0 %v10123_v58  ;;  %3891 = vmatprep.mubr.bf16.mxu1 %v10123_v58  ;;  %v7993_v58 = vcombine.high %v172_v7, %v180_v8  ;;  %v8055_v55 = vcombine.high %v235_v49, %v243_v50  ;;  %v8054_v62 = vcombine.low %v235_v49, %v243_v50  ;;  %v340_v49 = vld [vmem:[#allocation5 + $0x778] sm:$0xff] }
 0x1e3   :  { %v8056_v63 = vcombine.low %v236_v51, %v244_v52 }
 0x1e4   :  { %3776 = vmatpush1.bf16.msra.mxu0 %v7942_v56  ;;  %3862 = vmatpush1.bf16.msra.mxu1 %v7944_v57  ;;  %v8057_v56 = vcombine.high %v236_v51, %v244_v52  ;;  %v251_v57 = vld [vmem:[#allocation5 + $0x4b0] sm:$0xff] }
 0x1e5   :  { %3777 = vmatprep.subr.bf16.mxu0 %v7959_v59  ;;  %3863 = vmatprep.subr.bf16.mxu1 %v7961_v60  ;;  %v259_v59 = vld [vmem:[#allocation5 + $0x4f0] sm:$0xff]  ;;  %v252_v60 = vld [vmem:[#allocation5 + $0x4b8] sm:$0xff] }
 0x1e6   :  { %v8071_v0 = vcombine.high %v251_v57, %v259_v59  ;;  %v8070_v6 = vcombine.low %v251_v57, %v259_v59  ;;  %v8072_v7 = vcombine.low %v252_v60, %v260_v61  ;;  %v356_v57 = vld [vmem:[#allocation5 + $0x7f8] sm:$0xff] }
 0x1e8   :  { %3778 = vmatpush1.bf16.msra.mxu0 %v7958_v1  ;;  %3864 = vmatpush1.bf16.msra.mxu1 %v7960_v2  ;;  %v8073_v1 = vcombine.high %v252_v60, %v260_v61  ;;  %v267_v2 = vld [vmem:[#allocation5 + $0x530] sm:$0xff] }
 0x1e9   :  { %3779 = vmatprep.subr.bf16.mxu0 %v7975_v3  ;;  %3865 = vmatprep.subr.bf16.mxu1 %v7977_v4  ;;  %v275_v3 = vld [vmem:[#allocation5 + $0x570] sm:$0xff]  ;;  %v268_v4 = vld [vmem:[#allocation5 + $0x538] sm:$0xff] }
 0x1ea   :  { %v8087_v8 = vcombine.high %v267_v2, %v275_v3  ;;  %v8086_v17 = vcombine.low %v267_v2, %v275_v3  ;;  %v8088_v20 = vcombine.low %v268_v4, %v276_v5  ;;  %v372_v2 = vld [vmem:[#allocation5 + $0x878] sm:$0xff] }
 0x1ec   :  { %3780 = vmatpush1.bf16.msra.mxu0 %v7974_v9  ;;  %3866 = vmatpush1.bf16.msra.mxu1 %v7976_v11  ;;  %v8089_v9 = vcombine.high %v268_v4, %v276_v5  ;;  %v283_v11 = vld [vmem:[#allocation5 + $0x5b0] sm:$0xff] }
 0x1ed   :  { %3781 = vmatprep.subr.bf16.mxu0 %v7991_v12  ;;  %3867 = vmatprep.subr.bf16.mxu1 %v7993_v58  ;;  %v291_v12 = vld [vmem:[#allocation5 + $0x5f0] sm:$0xff]  ;;  %v284_v58 = vld [vmem:[#allocation5 + $0x5b8] sm:$0xff] }
 0x1ee   :  { %v8103_v21 = vcombine.high %v283_v11, %v291_v12  ;;  %v8102_v30 = vcombine.low %v283_v11, %v291_v12  ;;  %v8104_v34 = vcombine.low %v284_v58, %v292_v13  ;;  %v388_v11 = vld [vmem:[#allocation5 + $0x8f8] sm:$0xff] }
 0x1f0   :  { %3782 = vmatpush1.bf16.msra.mxu0 %v7990_v22  ;;  %3868 = vmatpush1.bf16.msra.mxu1 %v7992_v23  ;;  %v8105_v22 = vcombine.high %v284_v58, %v292_v13  ;;  %v299_v23 = vld [vmem:[#allocation5 + $0x630] sm:$0xff] }
 0x1f1   :  { %3783 = vmatprep.subr.bf16.mxu0 %v8007_v24  ;;  %3869 = vmatprep.subr.bf16.mxu1 %v8009_v26  ;;  %v307_v24 = vld [vmem:[#allocation5 + $0x670] sm:$0xff]  ;;  %v300_v26 = vld [vmem:[#allocation5 + $0x638] sm:$0xff] }
 0x1f2   :  { %v8119_v35 = vcombine.high %v299_v23, %v307_v24  ;;  %v8118_v42 = vcombine.low %v299_v23, %v307_v24  ;;  %v8120_v43 = vcombine.low %v300_v26, %v308_v27  ;;  %v404_v23 = vld [vmem:[#allocation5 + $0x978] sm:$0xff] }
 0x1f4   :  { %3784 = vmatpush1.bf16.msra.mxu0 %v8006_v36  ;;  %3870 = vmatpush1.bf16.msra.mxu1 %v8008_v38  ;;  %v8121_v36 = vcombine.high %v300_v26, %v308_v27  ;;  %v315_v38 = vld [vmem:[#allocation5 + $0x6b0] sm:$0xff] }
 0x1f5   :  { %3785 = vmatprep.subr.bf16.mxu0 %v8023_v39  ;;  %3871 = vmatprep.subr.bf16.mxu1 %v8025_v40  ;;  %v323_v39 = vld [vmem:[#allocation5 + $0x6f0] sm:$0xff]  ;;  %v316_v40 = vld [vmem:[#allocation5 + $0x6b8] sm:$0xff] }
 0x1f6   :  { %v8135_v44 = vcombine.high %v315_v38, %v323_v39  ;;  %v8134_v50 = vcombine.low %v315_v38, %v323_v39  ;;  %v8136_v51 = vcombine.low %v316_v40, %v324_v41  ;;  %v420_v38 = vld [vmem:[#allocation5 + $0x9f8] sm:$0xff] }
 0x1f8   :  { %3786 = vmatpush1.bf16.msra.mxu0 %v8022_v45  ;;  %3872 = vmatpush1.bf16.msra.mxu1 %v8024_v46  ;;  %v8137_v45 = vcombine.high %v316_v40, %v324_v41  ;;  %v331_v46 = vld [vmem:[#allocation5 + $0x730] sm:$0xff] }
 0x1f9   :  { %3787 = vmatprep.subr.bf16.mxu0 %v8039_v47  ;;  %3873 = vmatprep.subr.bf16.mxu1 %v8041_v48  ;;  %v339_v47 = vld [vmem:[#allocation5 + $0x770] sm:$0xff]  ;;  %v332_v48 = vld [vmem:[#allocation5 + $0x738] sm:$0xff] }
 0x1fa   :  { %v8151_v52 = vcombine.high %v331_v46, %v339_v47  ;;  %v8150_v59 = vcombine.low %v331_v46, %v339_v47  ;;  %v8152_v60 = vcombine.low %v332_v48, %v340_v49 }
 0x1fc   :  { %3788 = vmatpush1.bf16.msra.mxu0 %v8038_v53  ;;  %3874 = vmatpush1.bf16.msra.mxu1 %v8040_v54  ;;  %v8153_v53 = vcombine.high %v332_v48, %v340_v49  ;;  %v347_v54 = vld [vmem:[#allocation5 + $0x7b0] sm:$0xff] }
 0x1fd   :  { %3789 = vmatprep.subr.bf16.mxu0 %v8055_v55  ;;  %3875 = vmatprep.subr.bf16.mxu1 %v8057_v56  ;;  %v355_v55 = vld [vmem:[#allocation5 + $0x7f0] sm:$0xff]  ;;  %v348_v56 = vld [vmem:[#allocation5 + $0x7b8] sm:$0xff] }
 0x1fe   :  { %v8167_v61 = vcombine.high %v347_v54, %v355_v55  ;;  %v8166_v3 = vcombine.low %v347_v54, %v355_v55  ;;  %v8168_v4 = vcombine.low %v348_v56, %v356_v57  ;;  %v443_v49 = vld [vmem:[#allocation5 + $0xab0] sm:$0xff]  ;;  %v635_v55 = vsub.s32 4, %v10153_v19 }
 0x200   :  { %3790 = vmatpush1.bf16.msra.mxu0 %v8054_v62  ;;  %3876 = vmatpush1.bf16.msra.mxu1 %v8056_v63  ;;  %v8169_v62 = vcombine.high %v348_v56, %v356_v57  ;;  %v363_v63 = vld [vmem:[#allocation5 + $0x830] sm:$0xff]  ;;  %v643_v57 = vsub.s32 6, %v10153_v19 }
 0x201   :  { %3791 = vmatprep.subr.bf16.mxu0 %v8071_v0  ;;  %3877 = vmatprep.subr.bf16.mxu1 %v8073_v1  ;;  %v371_v0 = vld [vmem:[#allocation5 + $0x870] sm:$0xff]  ;;  %v364_v1 = vld [vmem:[#allocation5 + $0x838] sm:$0xff] }
 0x202   :  { %v8183_v5 = vcombine.high %v363_v63, %v371_v0  ;;  %v8182_v12 = vcombine.low %v363_v63, %v371_v0  ;;  %v8184_v58 = vcombine.low %v364_v1, %v372_v2  ;;  %v647_v63 = vsub.s32 7, %v10153_v19  ;;  %v460_v0 = vld [vmem:[#allocation5 + $0xb38] sm:$0xff] }
 0x204   :  { %3792 = vmatpush1.bf16.msra.mxu0 %v8070_v6  ;;  %3878 = vmatpush1.bf16.msra.mxu1 %v8072_v7  ;;  %v8185_v6 = vcombine.high %v364_v1, %v372_v2  ;;  %v379_v7 = vld [vmem:[#allocation5 + $0x8b0] sm:$0xff]  ;;  %v468_v1 = vld [vmem:[#allocation5 + $0xb78] sm:$0xff] }
 0x205   :  { %3793 = vmatprep.subr.bf16.mxu0 %v8087_v8  ;;  %3879 = vmatprep.subr.bf16.mxu1 %v8089_v9  ;;  %v387_v8 = vld [vmem:[#allocation5 + $0x8f0] sm:$0xff]  ;;  %v380_v9 = vld [vmem:[#allocation5 + $0x8b8] sm:$0xff] }
 0x206   :  { %v8199_v13 = vcombine.high %v379_v7, %v387_v8  ;;  %v8198_v24 = vcombine.low %v379_v7, %v387_v8  ;;  %v8200_v26 = vcombine.low %v380_v9, %v388_v11  ;;  %v483_v7 = vld [vmem:[#allocation5 + $0xbf0] sm:$0xff] }
 0x208   :  { %3794 = vmatpush1.bf16.msra.mxu0 %v8086_v17  ;;  %3880 = vmatpush1.bf16.msra.mxu1 %v8088_v20  ;;  %v8201_v17 = vcombine.high %v380_v9, %v388_v11  ;;  %v395_v20 = vld [vmem:[#allocation5 + $0x930] sm:$0xff]  ;;  %v644_v9 = vrot.slane %v10158_v31, %v643_v57 }
 0x209   :  { %3795 = vmatprep.subr.bf16.mxu0 %v8103_v21  ;;  %3881 = vmatprep.subr.bf16.mxu1 %v8105_v22  ;;  %v403_v21 = vld [vmem:[#allocation5 + $0x970] sm:$0xff]  ;;  %v396_v22 = vld [vmem:[#allocation5 + $0x938] sm:$0xff] }
 0x20a   :  { %v8215_v27 = vcombine.high %v395_v20, %v403_v21  ;;  %v8214_v39 = vcombine.low %v395_v20, %v403_v21  ;;  %v648_v21 = vrot.slane %v10158_v31, %v647_v63 }
 0x20c   :  { %3796 = vmatpush1.bf16.msra.mxu0 %v8102_v30  ;;  %3882 = vmatpush1.bf16.msra.mxu1 %v8104_v34  ;;  %v8217_v30 = vcombine.high %v396_v22, %v404_v23  ;;  %v411_v34 = vld [vmem:[#allocation5 + $0x9b0] sm:$0xff] }
 0x20d   :  { %3797 = vmatprep.subr.bf16.mxu0 %v8119_v35  ;;  %3883 = vmatprep.subr.bf16.mxu1 %v8121_v36  ;;  %v419_v35 = vld [vmem:[#allocation5 + $0x9f0] sm:$0xff]  ;;  %v412_v36 = vld [vmem:[#allocation5 + $0x9b8] sm:$0xff] }
 0x20e   :  { %v8231_v40 = vcombine.high %v411_v34, %v419_v35  ;;  %v8233_v41 = vcombine.high %v412_v36, %v420_v38  ;;  %v8230_v46 = vcombine.low %v411_v34, %v419_v35  ;;  %v8232_v47 = vcombine.low %v412_v36, %v420_v38 }
 0x210   :  { %3798 = vmatpush1.bf16.msra.mxu0 %v8118_v42  ;;  %3884 = vmatpush1.bf16.msra.mxu1 %v8120_v43  ;;  %v427_v42 = vld [vmem:[#allocation5 + $0xa30] sm:$0xff] }
 0x211   :  { %3799 = vmatprep.subr.bf16.mxu0 %v8135_v44  ;;  %3885 = vmatprep.subr.bf16.mxu1 %v8137_v45  ;;  %v435_v43 = vld [vmem:[#allocation5 + $0xa70] sm:$0xff]  ;;  %v428_v44 = vld [vmem:[#allocation5 + $0xa38] sm:$0xff] }
 0x212   :  { %v436_v45 = vld [vmem:[#allocation5 + $0xa78] sm:$0xff]  ;;  %v8247_v48 = vcombine.high %v427_v42, %v435_v43 }
 0x213   :  { %v8248_v54 = vcombine.low %v428_v44, %v436_v45 }
 0x214   :  { %3800 = vmatpush1.bf16.msra.mxu0 %v8134_v50  ;;  %3886 = vmatpush1.bf16.msra.mxu1 %v8136_v51  ;;  %v451_v50 = vld [vmem:[#allocation5 + $0xaf0] sm:$0xff]  ;;  %v444_v51 = vld [vmem:[#allocation5 + $0xab8] sm:$0xff] }
 0x215   :  { %3801 = vmatprep.subr.bf16.mxu0 %v8151_v52  ;;  %3887 = vmatprep.subr.bf16.mxu1 %v8153_v53  ;;  %v452_v52 = vld [vmem:[#allocation5 + $0xaf8] sm:$0xff]  ;;  %v8246_v53 = vcombine.low %v427_v42, %v435_v43  ;;  %v8263_v56 = vcombine.high %v443_v49, %v451_v50  ;;  %v8262_v2 = vcombine.low %v443_v49, %v451_v50  ;;  %v491_v43 = vld [vmem:[#allocation5 + $0xc30] sm:$0xff] }
 0x218   :  { %3802 = vmatpush1.bf16.msra.mxu0 %v8150_v59  ;;  %3888 = vmatpush1.bf16.msra.mxu1 %v8152_v60  ;;  %v639_v59 = vsub.s32 5, %v10153_v19  ;;  %v8265_v60 = vcombine.high %v444_v51, %v452_v52 }
 0x219   :  { %3803 = vmatprep.subr.bf16.mxu0 %v8167_v61  ;;  %3889 = vmatprep.subr.bf16.mxu1 %v8169_v62  ;;  %v459_v61 = vld [vmem:[#allocation5 + $0xb30] sm:$0xff] }
 0x21a   :  { %v467_v62 = vld [vmem:[#allocation5 + $0xb70] sm:$0xff]  ;;  %v640_v11 = vrot.slane %v10158_v31, %v639_v59 }
 0x21c   :  { %3804 = vmatpush1.bf16.msra.mxu0 %v8166_v3  ;;  %3890 = vmatpush1.bf16.msra.mxu1 %v8168_v4  ;;  %v636_v3 = vrot.slane %v10158_v31, %v635_v55  ;;  %v8264_v4 = vcombine.low %v444_v51, %v452_v52 }
 0x21d   :  { %3816 = vmatprep.subr.bf16.mxu0 %v8183_v5  ;;  %3902 = vmatprep.subr.bf16.mxu1 %v8185_v6  ;;  %v8279_v5 = vcombine.high %v459_v61, %v467_v62  ;;  %v475_v6 = vld [vmem:[#allocation5 + $0xbb0] sm:$0xff] }
 0x21e   :  { %v8294_v51 = vcombine.low %v475_v6, %v483_v7 }
 0x21f   :  { %3806 = vmatmul.mubr.bf16.vlgmr.msra.gmra.mrb[12].mxu0 %v10127_v15  ;;  %3892 = vmatmul.mubr.bf16.vlgmr.msra.gmra.mrb[12].mxu1 %v10127_v15  ;;  %v8216_v15 = vcombine.low %v396_v22, %v404_v23  ;;  %v3962_v22 = vmul.bf16 %v10181_v16, %v10181_v16 }
 0x220   :  { %3817 = vmatpush1.bf16.msra.mxu0 %v8182_v12  ;;  %3903 = vmatpush1.bf16.msra.mxu1 %v8184_v58  ;;  %v8281_v12 = vcombine.high %v460_v0, %v468_v1  ;;  %v476_v58 = vld [vmem:[#allocation5 + $0xbb8] sm:$0xff] }
 0x221   :  { %3818 = vmatprep.subr.bf16.mxu0 %v8199_v13  ;;  %3904 = vmatprep.subr.bf16.mxu1 %v8201_v17  ;;  %v484_v13 = vld [vmem:[#allocation5 + $0xbf8] sm:$0xff] }
 0x222   :  { %3848 = vmatprep.mubr.bf16.mxu0 %v10129_v25  ;;  %3934 = vmatprep.mubr.bf16.mxu1 %v10129_v25  ;;  %v8249_v25 = vcombine.high %v428_v44, %v436_v45  ;;  %v499_v44 = vld [vmem:[#allocation5 + $0xc70] sm:$0xff]  ;;  %v8296_v52 = vcombine.low %v476_v58, %v484_v13 }
 0x224   :  { %3819 = vmatpush1.bf16.msra.mxu0 %v8198_v24  ;;  %3905 = vmatpush1.bf16.msra.mxu1 %v8200_v26  ;;  %v8278_v26 = vcombine.low %v459_v61, %v467_v62  ;;  %v507_v61 = vld [vmem:[#allocation5 + $0xcb0] sm:$0xff] }
 0x225   :  { %3820 = vmatprep.subr.bf16.mxu0 %v8215_v27  ;;  %3906 = vmatprep.subr.bf16.mxu1 %v8217_v30  ;;  %v8280_v27 = vcombine.low %v460_v0, %v468_v1  ;;  %v8295_v30 = vcombine.high %v475_v6, %v483_v7  ;;  %v515_v62 = vld [vmem:[#allocation5 + $0xcf0] sm:$0xff]  ;;  %v508_v0 = vld [vmem:[#allocation5 + $0xcb8] sm:$0xff] }
 0x226   :  { %v516_v1 = vld [vmem:[#allocation5 + $0xcf8] sm:$0xff]  ;;  %v523_v7 = vld [vmem:[#allocation5 + $0xd30] sm:$0xff] }
 0x227   :  { %v8329_v6 = vcombine.high %v508_v0, %v516_v1 }
 0x228   :  { %3821 = vmatpush1.bf16.msra.mxu0 %v8214_v39  ;;  %3907 = vmatpush1.bf16.msra.mxu1 %v8216_v15  ;;  %v8297_v39 = vcombine.high %v476_v58, %v484_v13  ;;  %v8328_v58 = vcombine.low %v508_v0, %v516_v1 }
 0x229   :  { %3822 = vmatprep.subr.bf16.mxu0 %v8231_v40  ;;  %3908 = vmatprep.subr.bf16.mxu1 %v8233_v41 }
 0x22c   :  { %3823 = vmatpush1.bf16.msra.mxu0 %v8230_v46  ;;  %3909 = vmatpush1.bf16.msra.mxu1 %v8232_v47 }
 0x22d   :  { %3824 = vmatprep.subr.bf16.mxu0 %v8247_v48  ;;  %3910 = vmatprep.subr.bf16.mxu1 %v8249_v25  ;;  %v492_v48 = vld [vmem:[#allocation5 + $0xc38] sm:$0xff] }
 0x22e   :  { %v500_v25 = vld [vmem:[#allocation5 + $0xc78] sm:$0xff] }
 0x230   :  { %3825 = vmatpush1.bf16.msra.mxu0 %v8246_v53  ;;  %3911 = vmatpush1.bf16.msra.mxu1 %v8248_v54  ;;  %v3978_v53 = vmul.bf16 %v3962_v22, %v10181_v16  ;;  %v547_v22 = vld [vmem:[#allocation5 + $0xdf0] sm:$0xff] }
 0x231   :  { %3826 = vmatprep.subr.bf16.mxu0 %v8263_v56  ;;  %3912 = vmatprep.subr.bf16.mxu1 %v8265_v60  ;;  %v8311_v56 = vcombine.high %v491_v43, %v499_v44  ;;  %v8313_v60 = vcombine.high %v492_v48, %v500_v25 }
 0x232   :  { %v3506_v8 = vpop.f32.mrb[4].mxu0  ;;  %v3592_v17 = vpop.f32.mrb[4].mxu1 }
 0x233   :  { %v3508_v20 = vpop.f32.mrb[5].mxu0  ;;  %v3594_v23 = vpop.f32.mrb[5].mxu1  ;;  %v8946_v34 = vadd.f32 %v3506_v8, %v636_v3  ;;  %v8950_v15 = vadd.f32 %v3592_v17, %v644_v9  ;;  %v531_v8 = vld [vmem:[#allocation5 + $0xd70] sm:$0xff] }
 0x234   :  { %v3510_v24 = vpop.f32.mrb[6].mxu0  ;;  %3827 = vmatpush1.bf16.msra.mxu0 %v8262_v2  ;;  %v3596_v36 = vpop.f32.mrb[6].mxu1  ;;  %3913 = vmatpush1.bf16.msra.mxu1 %v8264_v4  ;;  %v8947_v40 = vadd.f32 %v3508_v20, %v640_v11  ;;  %v8951_v45 = vadd.f32 %v3594_v23, %v648_v21  ;;  %v8310_v2 = vcombine.low %v491_v43, %v499_v44  ;;  %v540_v23 = vld [vmem:[#allocation5 + $0xdb8] sm:$0xff]  ;;  %v571_v43 = vld [vmem:[#allocation5 + $0xeb0] sm:$0xff] }
 0x235   :  { %v8948_v35 = vadd.f32 %v3510_v24, %v636_v3  ;;  %v3512_v38 = vpop.f32.mrb[7].mxu0  ;;  %3828 = vmatprep.subr.bf16.mxu0 %v8279_v5  ;;  %v8952_v41 = vadd.f32 %v3596_v36, %v644_v9  ;;  %v3598_v42 = vpop.f32.mrb[7].mxu1  ;;  %3914 = vmatprep.subr.bf16.mxu1 %v8281_v12  ;;  %v3994_v3 = vmul.bf16 1027030327, %v3978_v53  ;;  %v8312_v4 = vcombine.low %v492_v48, %v500_v25  ;;  %v524_v9 = vld [vmem:[#allocation5 + $0xd38] sm:$0xff]  ;;  %v555_v36 = vld [vmem:[#allocation5 + $0xe30] sm:$0xff] }
 0x236   :  { %v8949_v31 = vadd.f32 %v3512_v38, %v640_v11  ;;  %v8953_v47 = vadd.f32 %v3598_v42, %v648_v21  ;;  %v8327_v5 = vcombine.high %v507_v61, %v515_v62  ;;  %v532_v11 = vld [vmem:[#allocation5 + $0xd78] sm:$0xff]  ;;  %v8326_v12 = vcombine.low %v507_v61, %v515_v62  ;;  %v539_v21 = vld [vmem:[#allocation5 + $0xdb0] sm:$0xff] }
 0x237   :  { %v10211_v46 = vpack.c.bf16 %v8948_v35, %v8946_v34  ;;  %v10213_v49 = vpack.c.bf16 %v8952_v41, %v8950_v15  ;;  %v8343_v13 = vcombine.high %v523_v7, %v531_v8  ;;  %v4010_v17 = vadd.bf16 %v3994_v3, %v10181_v16  ;;  %v548_v24 = vld [vmem:[#allocation5 + $0xdf8] sm:$0xff]  ;;  %v563_v38 = vld [vmem:[#allocation5 + $0xe70] sm:$0xff] }
 0x238   :  { %v10215_v50 = vpack.c.bf16 %v8949_v31, %v8947_v40  ;;  %3829 = vmatpush1.bf16.msra.mxu0 %v8278_v26  ;;  %v10218_v54 = vpack.c.bf16 %v8953_v47, %v8951_v45  ;;  %3915 = vmatpush1.bf16.msra.mxu1 %v8280_v27  ;;  %v8345_v20 = vcombine.high %v524_v9, %v532_v11  ;;  %v564_v15 = vld [vmem:[#allocation5 + $0xe78] sm:$0xff]  ;;  %v579_v44 = vld [vmem:[#allocation5 + $0xef0] sm:$0xff] }
 0x239   :  { %3830 = vmatprep.subr.bf16.mxu0 %v8295_v30  ;;  %3916 = vmatprep.subr.bf16.mxu1 %v8297_v39  ;;  %v8342_v26 = vcombine.low %v523_v7, %v531_v8  ;;  %v8344_v27 = vcombine.low %v524_v9, %v532_v11  ;;  %v8359_v30 = vcombine.high %v539_v21, %v547_v22  ;;  %v4026_v34 = vmul.bf16 1061961548, %v4010_v17  ;;  %v556_v39 = vld [vmem:[#allocation5 + $0xe38] sm:$0xff]  ;;  %v587_v53 = vld [vmem:[#allocation5 + $0xf30] sm:$0xff] }
 0x23a   :  { %v8361_v35 = vcombine.high %v540_v23, %v548_v24  ;;  %v8358_v40 = vcombine.low %v539_v21, %v547_v22  ;;  %v8360_v41 = vcombine.low %v540_v23, %v548_v24  ;;  %v8375_v31 = vcombine.high %v555_v36, %v563_v38  ;;  %v572_v45 = vld [vmem:[#allocation5 + $0xeb8] sm:$0xff]  ;;  %v603_v3 = vld [vmem:[#allocation5 + $0xfb0] sm:$0xff] }
 0x23b   :  { %9846 = vtanh.bf16 %v4026_v34  ;;  %v8377_v42 = vcombine.high %v556_v39, %v564_v15  ;;  %v580_v47 = vld [vmem:[#allocation5 + $0xef8] sm:$0xff]  ;;  %v8374_v48 = vcombine.low %v555_v36, %v563_v38  ;;  %v8376_v25 = vcombine.low %v556_v39, %v564_v15  ;;  %v9078_v23 = vld [vmem:[#allocation8] ss:$16 sps:$4 sm:$0xff]   ;;  %v9092_v36 = vld [vmem:[#allocation8 + $0x44] ss:$16 sps:$4 sm:$0xff]  }
 0x23c   :  { %3831 = vmatpush1.bf16.msra.mxu0 %v8294_v51  ;;  %3917 = vmatpush1.bf16.msra.mxu1 %v8296_v52  ;;  %v8391_v51 = vcombine.high %v571_v43, %v579_v44  ;;  %v8393_v52 = vcombine.high %v572_v45, %v580_v47  ;;  %v596_v61 = vld [vmem:[#allocation5 + $0xf78] sm:$0xff]  ;;  %v8390_v62 = vcombine.low %v571_v43, %v579_v44  ;;  %v9084_v34 = vld [vmem:[#allocation8 + $0x20] ss:$16 sps:$4 sm:$0xff]  }
 0x23d   :  { %3832 = vmatprep.subr.bf16.mxu0 %v8311_v56  ;;  %3918 = vmatprep.subr.bf16.mxu1 %v8313_v60  ;;  %v595_v56 = vld [vmem:[#allocation5 + $0xf70] sm:$0xff]  ;;  %v588_v60 = vld [vmem:[#allocation5 + $0xf38] sm:$0xff]  ;;  %v8392_v0 = vcombine.low %v572_v45, %v580_v47 }
 0x23e   :  { %v8407_v1 = vcombine.high %v587_v53, %v595_v56  ;;  %v8406_v8 = vcombine.low %v587_v53, %v595_v56  ;;  %v8408_v9 = vcombine.low %v588_v60, %v596_v61  ;;  %v9083_v21 = vld [vmem:[#allocation8 + $0xc] ss:$16 sps:$4 sm:$0xff]   ;;  %v9081_v24 = vld [vmem:[#allocation8 + $0x8] ss:$16 sps:$4 sm:$0xff]   ;;  %v9090_v39 = vld [vmem:[#allocation8 + $0x40] ss:$16 sps:$4 sm:$0xff]   ;;  %v3961_v53 = vmul.bf16 %v10177_v10, %v10177_v10 }
 0x23f   :  { %v9095_v38 = vld [vmem:[#allocation8 + $0x4c] ss:$16 sps:$4 sm:$0xff]   ;;  %v9093_v15 = vld [vmem:[#allocation8 + $0x48] ss:$16 sps:$4 sm:$0xff]   ;;  %v9102_v43 = vld [vmem:[#allocation8 + $0x80] ss:$16 sps:$4 sm:$0xff]  }
 0x240   :  { %3833 = vmatpush1.bf16.msra.mxu0 %v8310_v2  ;;  %3919 = vmatpush1.bf16.msra.mxu1 %v8312_v4  ;;  %v8409_v2 = vcombine.high %v588_v60, %v596_v61  ;;  %v611_v4 = vld [vmem:[#allocation5 + $0xff0] sm:$0xff]  ;;  %v9105_v44 = vld [vmem:[#allocation8 + $0x88] ss:$16 sps:$4 sm:$0xff]   ;;  %v9113_v47 = vld [vmem:[#allocation8 + $0xac] ss:$16 sps:$4 sm:$0xff]   ;;  %v3964_v60 = vmul.bf16 %v10183_v18, %v10183_v18 }
 0x241   :  { %3834 = vmatprep.subr.bf16.mxu0 %v8327_v5  ;;  %3920 = vmatprep.subr.bf16.mxu1 %v8329_v6  ;;  %v604_v5 = vld [vmem:[#allocation5 + $0xfb8] sm:$0xff]  ;;  %v8423_v11 = vcombine.high %v603_v3, %v611_v4  ;;  %v9110_v45 = vld [vmem:[#allocation8 + $0xa4] ss:$16 sps:$4 sm:$0xff]   ;;  %v9114_v56 = vld [vmem:[#allocation8 + $0xc0] ss:$16 sps:$4 sm:$0xff]  }
 0x242   :  { %v612_v6 = vld [vmem:[#allocation5 + $0xff8] sm:$0xff] }
 0x243   :  { %v8424_v17 = vcombine.low %v604_v5, %v612_v6  ;;  %v9117_v61 = vld [vmem:[#allocation8 + $0xc8] ss:$16 sps:$4 sm:$0xff]  }
 0x244   :  { %3835 = vmatpush1.bf16.msra.mxu0 %v8326_v12  ;;  %3921 = vmatpush1.bf16.msra.mxu1 %v8328_v58  ;;  %v8425_v12 = vcombine.high %v604_v5, %v612_v6  ;;  %v9128_v5 = vld [vmem:[#allocation8 + $0x104] ss:$16 sps:$4 sm:$0xff]   ;;  %v9131_v6 = vld [vmem:[#allocation8 + $0x10c] ss:$16 sps:$4 sm:$0xff]  }
 0x245   :  { %3836 = vmatprep.subr.bf16.mxu0 %v8343_v13  ;;  %3922 = vmatprep.subr.bf16.mxu1 %v8345_v20  ;;  %v8422_v13 = vcombine.low %v603_v3, %v611_v4  ;;  %v9080_v20 = vld [vmem:[#allocation8 + $0x4] ss:$16 sps:$4 sm:$0xff]   ;;  %v3980_v3 = vmul.bf16 %v3964_v60, %v10183_v18  ;;  %v9123_v4 = vld [vmem:[#allocation8 + $0xe8] ss:$16 sps:$4 sm:$0xff]   ;;  %v9168_v60 = vld [vmem:[#allocation8 + $0x1e0] ss:$16 sps:$4 sm:$0xff]  }
 0x246   :  { %v9847_v7 = vpop.eup %9846 }
 0x247   :  { %v4058_v58 = vadd.bf16 1065369472, %v9847_v7 }
 0x248   :  { %3837 = vmatpush1.bf16.msra.mxu0 %v8342_v26  ;;  %3923 = vmatpush1.bf16.msra.mxu1 %v8344_v27  ;;  %v9086_v26 = vld [vmem:[#allocation8 + $0x24] ss:$16 sps:$4 sm:$0xff]  }
 0x249   :  { %3838 = vmatprep.subr.bf16.mxu0 %v8359_v30  ;;  %3924 = vmatprep.subr.bf16.mxu1 %v8361_v35  ;;  %v4074_v22 = vmul.bf16 1056980736, %v4058_v58  ;;  %v9089_v30 = vld [vmem:[#allocation8 + $0x2c] ss:$16 sps:$4 sm:$0xff]   ;;  %v9087_v35 = vld [vmem:[#allocation8 + $0x28] ss:$16 sps:$4 sm:$0xff]  }
 0x24a   :  { %v9137_v58 = vld [vmem:[#allocation8 + $0x12c] ss:$16 sps:$4 sm:$0xff]  }
 0x24b   :  { %v4090_v27 = vmul.bf16 %v4074_v22, %v10181_v16  ;;  %v9101_v16 = vld [vmem:[#allocation8 + $0x6c] ss:$16 sps:$4 sm:$0xff]  }
 0x24c   :  { %3839 = vmatpush1.bf16.msra.mxu0 %v8358_v40  ;;  %3925 = vmatpush1.bf16.msra.mxu1 %v8360_v41  ;;  %v9098_v40 = vld [vmem:[#allocation8 + $0x64] ss:$16 sps:$4 sm:$0xff]   ;;  %v9099_v41 = vld [vmem:[#allocation8 + $0x68] ss:$16 sps:$4 sm:$0xff]  }
 0x24d   :  { %3840 = vmatprep.subr.bf16.mxu0 %v8375_v31  ;;  %3926 = vmatprep.subr.bf16.mxu1 %v8377_v42  ;;  %v9104_v31 = vld [vmem:[#allocation8 + $0x84] ss:$16 sps:$4 sm:$0xff]   ;;  %v9107_v42 = vld [vmem:[#allocation8 + $0x8c] ss:$16 sps:$4 sm:$0xff]  }
 0x250   :  { %3841 = vmatpush1.bf16.msra.mxu0 %v8374_v48  ;;  %3927 = vmatpush1.bf16.msra.mxu1 %v8376_v25  ;;  %v9108_v48 = vld [vmem:[#allocation8 + $0xa0] ss:$16 sps:$4 sm:$0xff]   ;;  %v9111_v25 = vld [vmem:[#allocation8 + $0xa8] ss:$16 sps:$4 sm:$0xff]  }
 0x251   :  { %3842 = vmatprep.subr.bf16.mxu0 %v8391_v51  ;;  %3928 = vmatprep.subr.bf16.mxu1 %v8393_v52  ;;  %v9116_v51 = vld [vmem:[#allocation8 + $0xc4] ss:$16 sps:$4 sm:$0xff]   ;;  %v9119_v52 = vld [vmem:[#allocation8 + $0xcc] ss:$16 sps:$4 sm:$0xff]  }
 0x254   :  { %3843 = vmatpush1.bf16.msra.mxu0 %v8390_v62  ;;  %3929 = vmatpush1.bf16.msra.mxu1 %v8392_v0  ;;  %v9122_v62 = vld [vmem:[#allocation8 + $0xe4] ss:$16 sps:$4 sm:$0xff]   ;;  %v9125_v0 = vld [vmem:[#allocation8 + $0xec] ss:$16 sps:$4 sm:$0xff]  }
 0x255   :  { %3844 = vmatprep.subr.bf16.mxu0 %v8407_v1  ;;  %3930 = vmatprep.subr.bf16.mxu1 %v8409_v2  ;;  %v3977_v1 = vmul.bf16 %v3961_v53, %v10177_v10  ;;  %v9120_v2 = vld [vmem:[#allocation8 + $0xe0] ss:$16 sps:$4 sm:$0xff]   ;;  %v9173_v53 = vld [vmem:[#allocation8 + $0x1ec] ss:$16 sps:$4 sm:$0xff]  }
 0x257   :  { %v3993_v7 = vmul.bf16 1027030327, %v3977_v1  ;;  %v9179_v1 = vld [vmem:[#allocation8 + $0x20c] ss:$16 sps:$4 sm:$0xff]  }
 0x258   :  { %3845 = vmatpush1.bf16.msra.mxu0 %v8406_v8  ;;  %3931 = vmatpush1.bf16.msra.mxu1 %v8408_v9  ;;  %v9126_v8 = vld [vmem:[#allocation8 + $0x100] ss:$16 sps:$4 sm:$0xff]   ;;  %v3996_v9 = vmul.bf16 1027030327, %v3980_v3 }
 0x259   :  { %3846 = vmatprep.subr.bf16.mxu0 %v8423_v11  ;;  %3932 = vmatprep.subr.bf16.mxu1 %v8425_v12  ;;  %v9129_v11 = vld [vmem:[#allocation8 + $0x108] ss:$16 sps:$4 sm:$0xff]   ;;  %v9134_v12 = vld [vmem:[#allocation8 + $0x124] ss:$16 sps:$4 sm:$0xff]   ;;  %v9174_v3 = vld [vmem:[#allocation8 + $0x200] ss:$16 sps:$4 sm:$0xff]  }
 0x25a   :  { %v4012_v22 = vadd.bf16 %v3996_v9, %v10183_v18  ;;  %v9180_v9 = vld [vmem:[#allocation8 + $0x220] ss:$16 sps:$4 sm:$0xff]  }
 0x25c   :  { %3847 = vmatpush1.bf16.msra.mxu0 %v8422_v13  ;;  %3933 = vmatpush1.bf16.msra.mxu1 %v8424_v17  ;;  %v4009_v13 = vadd.bf16 %v3993_v7, %v10177_v10  ;;  %v9132_v17 = vld [vmem:[#allocation8 + $0x120] ss:$16 sps:$4 sm:$0xff]  }
 0x25d   :  { %7199 = vmatprep.subr.bf16.mxu0 %v9080_v20  ;;  %7543 = vmatprep.subr.bf16.mxu1 %v9083_v21  ;;  %v9135_v20 = vld [vmem:[#allocation8 + $0x128] ss:$16 sps:$4 sm:$0xff]   ;;  %v9140_v21 = vld [vmem:[#allocation8 + $0x144] ss:$16 sps:$4 sm:$0xff]  }
 0x25f   :  { %3849 = vmatmul.mubr.bf16.vlgmr.msra.gmra.mrb[12].mxu0 %v10135_v28  ;;  %3935 = vmatmul.mubr.bf16.vlgmr.msra.gmra.mrb[12].mxu1 %v10135_v28  ;;  %v9096_v28 = vld [vmem:[#allocation8 + $0x60] ss:$16 sps:$4 sm:$0xff]  }
 0x260   :  { %7200 = vmatpush1.bf16.msra.mxu0 %v9078_v23  ;;  %7231 = vmatprep.mubr.bf16.mxu0 %v4090_v27  ;;  %v9143_v23 = vld [vmem:[#allocation8 + $0x14c] ss:$16 sps:$4 sm:$0xff]  }
 0x261   :  { %7544 = vmatpush1.bf16.msra.mxu1 %v9081_v24  ;;  %7575 = vmatprep.mubr.bf16.mxu1 %v4090_v27  ;;  %v4025_v24 = vmul.bf16 1061961548, %v4009_v13  ;;  %v9141_v27 = vld [vmem:[#allocation8 + $0x148] ss:$16 sps:$4 sm:$0xff]  }
 0x262   :  { %7201 = vmatprep.subr.bf16.mxu0 %v9086_v26  ;;  %7545 = vmatprep.subr.bf16.mxu1 %v9089_v30  ;;  %v9138_v26 = vld [vmem:[#allocation8 + $0x140] ss:$16 sps:$4 sm:$0xff]   ;;  %v9146_v30 = vld [vmem:[#allocation8 + $0x164] ss:$16 sps:$4 sm:$0xff]   ;;  %v9189_v13 = vld [vmem:[#allocation8 + $0x248] ss:$16 sps:$4 sm:$0xff]  }
 0x263   :  { %9848 = vtanh.bf16 %v4025_v24  ;;  %v9198_v24 = vld [vmem:[#allocation8 + $0x280] ss:$16 sps:$4 sm:$0xff]  }
 0x264   :  { %7202 = vmatpush1.bf16.msra.mxu0 %v9084_v34  ;;  %v4028_v34 = vmul.bf16 1061961548, %v4012_v22  ;;  %v9200_v22 = vld [vmem:[#allocation8 + $0x284] ss:$16 sps:$4 sm:$0xff]  }
 0x265   :  { %7546 = vmatpush1.bf16.msra.mxu1 %v9087_v35  ;;  %7203 = vmatprep.subr.bf16.mxu0 %v9092_v36  ;;  %v9149_v35 = vld [vmem:[#allocation8 + $0x16c] ss:$16 sps:$4 sm:$0xff]   ;;  %v9144_v36 = vld [vmem:[#allocation8 + $0x160] ss:$16 sps:$4 sm:$0xff]  }
 0x266   :  { %7547 = vmatprep.subr.bf16.mxu1 %v9095_v38  ;;  %v9147_v38 = vld [vmem:[#allocation8 + $0x168] ss:$16 sps:$4 sm:$0xff]   ;;  %9850 = vtanh.bf16 %v4028_v34  ;;  %v9209_v34 = vld [vmem:[#allocation8 + $0x2ac] ss:$16 sps:$4 sm:$0xff]  }
 0x268   :  { %7204 = vmatpush1.bf16.msra.mxu0 %v9090_v39  ;;  %v9152_v39 = vld [vmem:[#allocation8 + $0x184] ss:$16 sps:$4 sm:$0xff]  }
 0x269   :  { %7548 = vmatpush1.bf16.msra.mxu1 %v9093_v15  ;;  %7205 = vmatprep.subr.bf16.mxu0 %v9098_v40  ;;  %v9155_v15 = vld [vmem:[#allocation8 + $0x18c] ss:$16 sps:$4 sm:$0xff]   ;;  %v9150_v40 = vld [vmem:[#allocation8 + $0x180] ss:$16 sps:$4 sm:$0xff]  }
 0x26a   :  { %7549 = vmatprep.subr.bf16.mxu1 %v9101_v16  ;;  %v9153_v16 = vld [vmem:[#allocation8 + $0x188] ss:$16 sps:$4 sm:$0xff]  }
 0x26c   :  { %7206 = vmatpush1.bf16.msra.mxu0 %v9096_v28  ;;  %v9158_v28 = vld [vmem:[#allocation8 + $0x1a4] ss:$16 sps:$4 sm:$0xff]  }
 0x26d   :  { %7550 = vmatpush1.bf16.msra.mxu1 %v9099_v41  ;;  %7207 = vmatprep.subr.bf16.mxu0 %v9104_v31  ;;  %v9161_v41 = vld [vmem:[#allocation8 + $0x1ac] ss:$16 sps:$4 sm:$0xff]   ;;  %v9156_v31 = vld [vmem:[#allocation8 + $0x1a0] ss:$16 sps:$4 sm:$0xff]  }
 0x26e   :  { %7551 = vmatprep.subr.bf16.mxu1 %v9107_v42  ;;  %v9159_v42 = vld [vmem:[#allocation8 + $0x1a8] ss:$16 sps:$4 sm:$0xff]  }
 0x270   :  { %7208 = vmatpush1.bf16.msra.mxu0 %v9102_v43  ;;  %v9164_v43 = vld [vmem:[#allocation8 + $0x1c4] ss:$16 sps:$4 sm:$0xff]  }
 0x271   :  { %7552 = vmatpush1.bf16.msra.mxu1 %v9105_v44  ;;  %7209 = vmatprep.subr.bf16.mxu0 %v9110_v45  ;;  %v9849_v44 = vpop.eup %9848  ;;  %v9167_v45 = vld [vmem:[#allocation8 + $0x1cc] ss:$16 sps:$4 sm:$0xff]  }
 0x272   :  { %7553 = vmatprep.subr.bf16.mxu1 %v9113_v47  ;;  %v9851_v47 = vpop.eup %9850 }
 0x274   :  { %7210 = vmatpush1.bf16.msra.mxu0 %v9108_v48  ;;  %v9162_v48 = vld [vmem:[#allocation8 + $0x1c0] ss:$16 sps:$4 sm:$0xff]  }
 0x275   :  { %7554 = vmatpush1.bf16.msra.mxu1 %v9111_v25  ;;  %7211 = vmatprep.subr.bf16.mxu0 %v9116_v51  ;;  %v9165_v25 = vld [vmem:[#allocation8 + $0x1c8] ss:$16 sps:$4 sm:$0xff]   ;;  %v9170_v51 = vld [vmem:[#allocation8 + $0x1e4] ss:$16 sps:$4 sm:$0xff]  }
 0x276   :  { %7555 = vmatprep.subr.bf16.mxu1 %v9119_v52  ;;  %v4057_v52 = vadd.bf16 1065369472, %v9849_v44 }
 0x278   :  { %7212 = vmatpush1.bf16.msra.mxu0 %v9114_v56  ;;  %v4060_v56 = vadd.bf16 1065369472, %v9851_v47  ;;  %v9210_v47 = vld [vmem:[#allocation8 + $0x2c0] ss:$16 sps:$4 sm:$0xff]  }
 0x279   :  { %7556 = vmatpush1.bf16.msra.mxu1 %v9117_v61  ;;  %7213 = vmatprep.subr.bf16.mxu0 %v9122_v62  ;;  %v9171_v61 = vld [vmem:[#allocation8 + $0x1e8] ss:$16 sps:$4 sm:$0xff]   ;;  %v4073_v62 = vmul.bf16 1056980736, %v4057_v52 }
 0x27a   :  { %7557 = vmatprep.subr.bf16.mxu1 %v9125_v0  ;;  %v9176_v0 = vld [vmem:[#allocation8 + $0x204] ss:$16 sps:$4 sm:$0xff]  }
 0x27c   :  { %7214 = vmatpush1.bf16.msra.mxu0 %v9120_v2  ;;  %v4076_v2 = vmul.bf16 1056980736, %v4060_v56  ;;  %v9213_v56 = vld [vmem:[#allocation8 + $0x2c8] ss:$16 sps:$4 sm:$0xff]  }
 0x27d   :  { %7558 = vmatpush1.bf16.msra.mxu1 %v9123_v4  ;;  %7215 = vmatprep.subr.bf16.mxu0 %v9128_v5  ;;  %v4089_v4 = vmul.bf16 %v4073_v62, %v10177_v10  ;;  %v9177_v5 = vld [vmem:[#allocation8 + $0x208] ss:$16 sps:$4 sm:$0xff]   ;;  %v9186_v10 = vld [vmem:[#allocation8 + $0x240] ss:$16 sps:$4 sm:$0xff]  }
 0x27e   :  { %7559 = vmatprep.subr.bf16.mxu1 %v9131_v6  ;;  %v9182_v6 = vld [vmem:[#allocation8 + $0x224] ss:$16 sps:$4 sm:$0xff]   ;;  %v4092_v7 = vmul.bf16 %v4076_v2, %v10183_v18  ;;  %v9197_v18 = vld [vmem:[#allocation8 + $0x26c] ss:$16 sps:$4 sm:$0xff]  }
 0x280   :  { %7216 = vmatpush1.bf16.msra.mxu0 %v9126_v8  ;;  %v9185_v8 = vld [vmem:[#allocation8 + $0x22c] ss:$16 sps:$4 sm:$0xff]  }
 0x281   :  { %7560 = vmatpush1.bf16.msra.mxu1 %v9129_v11  ;;  %7217 = vmatprep.subr.bf16.mxu0 %v9134_v12  ;;  %v9183_v11 = vld [vmem:[#allocation8 + $0x228] ss:$16 sps:$4 sm:$0xff]   ;;  %v9188_v12 = vld [vmem:[#allocation8 + $0x244] ss:$16 sps:$4 sm:$0xff]  }
 0x282   :  { %7561 = vmatprep.subr.bf16.mxu1 %v9137_v58  ;;  %v9191_v58 = vld [vmem:[#allocation8 + $0x24c] ss:$16 sps:$4 sm:$0xff]  }
 0x284   :  { %7218 = vmatpush1.bf16.msra.mxu0 %v9132_v17  ;;  %v9194_v17 = vld [vmem:[#allocation8 + $0x264] ss:$16 sps:$4 sm:$0xff]  }
 0x285   :  { %7562 = vmatpush1.bf16.msra.mxu1 %v9135_v20  ;;  %7219 = vmatprep.subr.bf16.mxu0 %v9140_v21  ;;  %v9192_v20 = vld [vmem:[#allocation8 + $0x260] ss:$16 sps:$4 sm:$0xff]   ;;  %v9195_v21 = vld [vmem:[#allocation8 + $0x268] ss:$16 sps:$4 sm:$0xff]  }
 0x286   :  { %7563 = vmatprep.subr.bf16.mxu1 %v9143_v23  ;;  %v9203_v23 = vld [vmem:[#allocation8 + $0x28c] ss:$16 sps:$4 sm:$0xff]  }
 0x288   :  { %7220 = vmatpush1.bf16.msra.mxu0 %v9138_v26  ;;  %v9201_v26 = vld [vmem:[#allocation8 + $0x288] ss:$16 sps:$4 sm:$0xff]  }
 0x289   :  { %7564 = vmatpush1.bf16.msra.mxu1 %v9141_v27  ;;  %7221 = vmatprep.subr.bf16.mxu0 %v9146_v30  ;;  %v9206_v27 = vld [vmem:[#allocation8 + $0x2a4] ss:$16 sps:$4 sm:$0xff]   ;;  %v10234_v30 = vld [vmem:[#allocation7 + $0x8] sm:$0xff] }
 0x28a   :  { %7565 = vmatprep.subr.bf16.mxu1 %v9149_v35  ;;  %v9204_v35 = vld [vmem:[#allocation8 + $0x2a0] ss:$16 sps:$4 sm:$0xff]  }
 0x28c   :  { %7222 = vmatpush1.bf16.msra.mxu0 %v9144_v36  ;;  %v652_v36 = vrot.slane %v10234_v30, %v10156_v29 }
 0x28d   :  { %7566 = vmatpush1.bf16.msra.mxu1 %v9147_v38  ;;  %7223 = vmatprep.subr.bf16.mxu0 %v9152_v39  ;;  %v9207_v38 = vld [vmem:[#allocation8 + $0x2a8] ss:$16 sps:$4 sm:$0xff]   ;;  %v9212_v39 = vld [vmem:[#allocation8 + $0x2c4] ss:$16 sps:$4 sm:$0xff]  }
 0x28e   :  { %7567 = vmatprep.subr.bf16.mxu1 %v9155_v15 }
 0x290   :  { %7224 = vmatpush1.bf16.msra.mxu0 %v9150_v40  ;;  %v660_v40 = vrot.slane %v10234_v30, %v10161_v32 }
 0x291   :  { %7568 = vmatpush1.bf16.msra.mxu1 %v9153_v16  ;;  %7225 = vmatprep.subr.bf16.mxu0 %v9158_v28  ;;  %v656_v16 = vrot.slane %v10234_v30, %v10164_v33  ;;  %v9215_v28 = vld [vmem:[#allocation8 + $0x2cc] ss:$16 sps:$4 sm:$0xff]  }
 0x292   :  { %7569 = vmatprep.subr.bf16.mxu1 %v9161_v41  ;;  %v3963_v41 = vmul.bf16 %v10179_v14, %v10179_v14 }
 0x294   :  { %7226 = vmatpush1.bf16.msra.mxu0 %v9156_v31 }
 0x295   :  { %7570 = vmatpush1.bf16.msra.mxu1 %v9159_v42  ;;  %7227 = vmatprep.subr.bf16.mxu0 %v9164_v43  ;;  %v664_v43 = vrot.slane %v10234_v30, %v10167_v37 }
 0x296   :  { %7571 = vmatprep.subr.bf16.mxu1 %v9167_v45 }
 0x298   :  { %7228 = vmatpush1.bf16.msra.mxu0 %v9162_v48  ;;  %v3966_v48 = vmul.bf16 %v10215_v50, %v10215_v50 }
 0x299   :  { %7572 = vmatpush1.bf16.msra.mxu1 %v9165_v25  ;;  %7229 = vmatprep.subr.bf16.mxu0 %v9170_v51 }
 0x29a   :  { %7573 = vmatprep.subr.bf16.mxu1 %v9173_v53 }
 0x29c   :  { %7230 = vmatpush1.bf16.msra.mxu0 %v9168_v60  ;;  %v9218_v60 = vld [vmem:[#allocation8 + $0x2e4] ss:$16 sps:$4 sm:$0xff]  }
 0x29d   :  { %7574 = vmatpush1.bf16.msra.mxu1 %v9171_v61  ;;  %7242 = vmatprep.subr.bf16.mxu0 %v9176_v0 }
 0x29e   :  { %7586 = vmatprep.subr.bf16.mxu1 %v9179_v1 }
 0x29f   :  { %7232 = vmatmul.mubr.bf16.vlgmr.msra.gmra.mrb[16].mxu0 %v4089_v4 }
 0x2a0   :  { %7576 = vmatmul.mubr.bf16.vlgmr.msra.gmra.mrb[16].mxu1 %v4089_v4  ;;  %7243 = vmatpush1.bf16.msra.mxu0 %v9174_v3  ;;  %v9221_v3 = vld [vmem:[#allocation8 + $0x2ec] ss:$16 sps:$4 sm:$0xff]   ;;  %v3979_v4 = vmul.bf16 %v3963_v41, %v10179_v14 }
 0x2a1   :  { %7274 = vmatprep.mubr.bf16.mxu0 %v4092_v7  ;;  %7587 = vmatpush1.bf16.msra.mxu1 %v9177_v5  ;;  %v9245_v41 = vld [vmem:[#allocation8 + $0x36c] ss:$16 sps:$4 sm:$0xff]  }
 0x2a2   :  { %7618 = vmatprep.mubr.bf16.mxu1 %v4092_v7  ;;  %7244 = vmatprep.subr.bf16.mxu0 %v9182_v6 }
 0x2a3   :  { %7588 = vmatprep.subr.bf16.mxu1 %v9185_v8 }
 0x2a4   :  { %7245 = vmatpush1.bf16.msra.mxu0 %v9180_v9 }
 0x2a5   :  { %7589 = vmatpush1.bf16.msra.mxu1 %v9183_v11  ;;  %7246 = vmatprep.subr.bf16.mxu0 %v9188_v12  ;;  %v9216_v11 = vld [vmem:[#allocation8 + $0x2e0] ss:$16 sps:$4 sm:$0xff]   ;;  %v3982_v12 = vmul.bf16 %v3966_v48, %v10215_v50  ;;  %v9254_v48 = vld [vmem:[#allocation8 + $0x3a4] ss:$16 sps:$4 sm:$0xff]  }
 0x2a6   :  { %7590 = vmatprep.subr.bf16.mxu1 %v9191_v58 }
 0x2a8   :  { %7247 = vmatpush1.bf16.msra.mxu0 %v9186_v10  ;;  %v9219_v10 = vld [vmem:[#allocation8 + $0x2e8] ss:$16 sps:$4 sm:$0xff]  }
 0x2a9   :  { %7591 = vmatpush1.bf16.msra.mxu1 %v9189_v13  ;;  %7248 = vmatprep.subr.bf16.mxu0 %v9194_v17  ;;  %v9224_v13 = vld [vmem:[#allocation8 + $0x304] ss:$16 sps:$4 sm:$0xff]   ;;  %v9227_v17 = vld [vmem:[#allocation8 + $0x30c] ss:$16 sps:$4 sm:$0xff]  }
 0x2aa   :  { %7592 = vmatprep.subr.bf16.mxu1 %v9197_v18  ;;  %v3995_v18 = vmul.bf16 1027030327, %v3979_v4 }
 0x2ac   :  { %7249 = vmatpush1.bf16.msra.mxu0 %v9192_v20  ;;  %v9222_v20 = vld [vmem:[#allocation8 + $0x300] ss:$16 sps:$4 sm:$0xff]  }
 0x2ad   :  { %7593 = vmatpush1.bf16.msra.mxu1 %v9195_v21  ;;  %7250 = vmatprep.subr.bf16.mxu0 %v9200_v22  ;;  %v3998_v21 = vmul.bf16 1027030327, %v3982_v12  ;;  %v9225_v22 = vld [vmem:[#allocation8 + $0x308] ss:$16 sps:$4 sm:$0xff]   ;;  %v9272_v12 = vld [vmem:[#allocation8 + $0x404] ss:$16 sps:$4 sm:$0xff]  }
 0x2ae   :  { %7594 = vmatprep.subr.bf16.mxu1 %v9203_v23  ;;  %v9230_v23 = vld [vmem:[#allocation8 + $0x324] ss:$16 sps:$4 sm:$0xff]  }
 0x2b0   :  { %7251 = vmatpush1.bf16.msra.mxu0 %v9198_v24  ;;  %v9233_v24 = vld [vmem:[#allocation8 + $0x32c] ss:$16 sps:$4 sm:$0xff]  }
 0x2b1   :  { %7595 = vmatpush1.bf16.msra.mxu1 %v9201_v26  ;;  %7252 = vmatprep.subr.bf16.mxu0 %v9206_v27  ;;  %v4011_v26 = vadd.bf16 %v3995_v18, %v10179_v14  ;;  %v9228_v27 = vld [vmem:[#allocation8 + $0x320] ss:$16 sps:$4 sm:$0xff]  }
 0x2b2   :  { %v3678_v15 = vpop.f32.mrb[8].mxu0  ;;  %7596 = vmatprep.subr.bf16.mxu1 %v9209_v34  ;;  %v3764_v31 = vpop.f32.mrb[8].mxu1  ;;  %v9231_v34 = vld [vmem:[#allocation8 + $0x328] ss:$16 sps:$4 sm:$0xff]  }
 0x2b3   :  { %v3680_v42 = vpop.f32.mrb[9].mxu0  ;;  %v3766_v44 = vpop.f32.mrb[9].mxu1  ;;  %v8954_v25 = vadd.f32 %v3678_v15, %v652_v36  ;;  %v8958_v61 = vadd.f32 %v3764_v31, %v660_v40  ;;  %v9234_v15 = vld [vmem:[#allocation8 + $0x340] ss:$16 sps:$4 sm:$0xff]  }
 0x2b4   :  { %v3682_v45 = vpop.f32.mrb[10].mxu0  ;;  %7253 = vmatpush1.bf16.msra.mxu0 %v9204_v35  ;;  %v3768_v52 = vpop.f32.mrb[10].mxu1  ;;  %v8955_v62 = vadd.f32 %v3680_v42, %v656_v16  ;;  %v8959_v5 = vadd.f32 %v3766_v44, %v664_v43  ;;  %v9236_v35 = vld [vmem:[#allocation8 + $0x344] ss:$16 sps:$4 sm:$0xff]   ;;  %v9240_v31 = vld [vmem:[#allocation8 + $0x360] ss:$16 sps:$4 sm:$0xff]  }
 0x2b5   :  { %v8956_v51 = vadd.f32 %v3682_v45, %v652_v36  ;;  %7597 = vmatpush1.bf16.msra.mxu1 %v9207_v38  ;;  %v3684_v53 = vpop.f32.mrb[11].mxu0  ;;  %7254 = vmatprep.subr.bf16.mxu0 %v9212_v39  ;;  %v8960_v0 = vadd.f32 %v3768_v52, %v660_v40  ;;  %v3770_v2 = vpop.f32.mrb[11].mxu1  ;;  %v4014_v36 = vadd.bf16 %v3998_v21, %v10215_v50  ;;  %v9239_v38 = vld [vmem:[#allocation8 + $0x34c] ss:$16 sps:$4 sm:$0xff]   ;;  %v4027_v39 = vmul.bf16 1061961548, %v4011_v26 }
 0x2b6   :  { %v8957_v1 = vadd.f32 %v3684_v53, %v656_v16  ;;  %7598 = vmatprep.subr.bf16.mxu1 %v9215_v28  ;;  %v8961_v7 = vadd.f32 %v3770_v2, %v664_v43  ;;  %v9237_v40 = vld [vmem:[#allocation8 + $0x348] ss:$16 sps:$4 sm:$0xff]   ;;  %v9242_v16 = vld [vmem:[#allocation8 + $0x364] ss:$16 sps:$4 sm:$0xff]   ;;  %v9251_v44 = vld [vmem:[#allocation8 + $0x38c] ss:$16 sps:$4 sm:$0xff]  }
 0x2b7   :  { %v10249_v6 = vpack.c.bf16 %v8956_v51, %v8954_v25  ;;  %v10251_v8 = vpack.c.bf16 %v8960_v0, %v8958_v61  ;;  %v4030_v28 = vmul.bf16 1061961548, %v4014_v36  ;;  %9852 = vtanh.bf16 %v4027_v39  ;;  %v9243_v42 = vld [vmem:[#allocation8 + $0x368] ss:$16 sps:$4 sm:$0xff]   ;;  %v9248_v43 = vld [vmem:[#allocation8 + $0x384] ss:$16 sps:$4 sm:$0xff]  }
 0x2b8   :  { %v10253_v9 = vpack.c.bf16 %v8957_v1, %v8955_v62  ;;  %7255 = vmatpush1.bf16.msra.mxu0 %v9210_v47  ;;  %v10256_v58 = vpack.c.bf16 %v8961_v7, %v8959_v5  ;;  %v9246_v45 = vld [vmem:[#allocation8 + $0x380] ss:$16 sps:$4 sm:$0xff]   ;;  %v9249_v47 = vld [vmem:[#allocation8 + $0x388] ss:$16 sps:$4 sm:$0xff]   ;;  %v9257_v25 = vld [vmem:[#allocation8 + $0x3ac] ss:$16 sps:$4 sm:$0xff]  }
 0x2b9   :  { %7599 = vmatpush1.bf16.msra.mxu1 %v9213_v56  ;;  %7256 = vmatprep.subr.bf16.mxu0 %v9218_v60  ;;  %9854 = vtanh.bf16 %v4030_v28  ;;  %v9252_v51 = vld [vmem:[#allocation8 + $0x3a0] ss:$16 sps:$4 sm:$0xff]   ;;  %v9255_v52 = vld [vmem:[#allocation8 + $0x3a8] ss:$16 sps:$4 sm:$0xff]   ;;  %v9260_v53 = vld [vmem:[#allocation8 + $0x3c4] ss:$16 sps:$4 sm:$0xff]  }
 0x2ba   :  { %7600 = vmatprep.subr.bf16.mxu1 %v9221_v3  ;;  %v9263_v60 = vld [vmem:[#allocation8 + $0x3cc] ss:$16 sps:$4 sm:$0xff]   ;;  %v9258_v62 = vld [vmem:[#allocation8 + $0x3c0] ss:$16 sps:$4 sm:$0xff]   ;;  %v9261_v0 = vld [vmem:[#allocation8 + $0x3c8] ss:$16 sps:$4 sm:$0xff]  }
 0x2bb   :  { %v9266_v1 = vld [vmem:[#allocation8 + $0x3e4] ss:$16 sps:$4 sm:$0xff]   ;;  %v9269_v3 = vld [vmem:[#allocation8 + $0x3ec] ss:$16 sps:$4 sm:$0xff]   ;;  %v9264_v5 = vld [vmem:[#allocation8 + $0x3e0] ss:$16 sps:$4 sm:$0xff]  }
 0x2bc   :  { %7257 = vmatpush1.bf16.msra.mxu0 %v9216_v11  ;;  %v9267_v7 = vld [vmem:[#allocation8 + $0x3e8] ss:$16 sps:$4 sm:$0xff]   ;;  %v9278_v21 = vld [vmem:[#allocation8 + $0x424] ss:$16 sps:$4 sm:$0xff]  }
 0x2bd   :  { %7601 = vmatpush1.bf16.msra.mxu1 %v9219_v10  ;;  %7258 = vmatprep.subr.bf16.mxu0 %v9224_v13  ;;  %v9275_v10 = vld [vmem:[#allocation8 + $0x40c] ss:$16 sps:$4 sm:$0xff]   ;;  %v9279_v26 = vld [vmem:[#allocation8 + $0x428] ss:$16 sps:$4 sm:$0xff]   ;;  %v9290_v36 = vld [vmem:[#allocation8 + $0x464] ss:$16 sps:$4 sm:$0xff]  }
 0x2be   :  { %7602 = vmatprep.subr.bf16.mxu1 %v9227_v17  ;;  %v9270_v17 = vld [vmem:[#allocation8 + $0x400] ss:$16 sps:$4 sm:$0xff]   ;;  %v9291_v39 = vld [vmem:[#allocation8 + $0x468] ss:$16 sps:$4 sm:$0xff]  }
 0x2bf   :  { %v9297_v28 = vld [vmem:[#allocation8 + $0x488] ss:$16 sps:$4 sm:$0xff]  }
 0x2c0   :  { %7259 = vmatpush1.bf16.msra.mxu0 %v9222_v20  ;;  %v9273_v20 = vld [vmem:[#allocation8 + $0x408] ss:$16 sps:$4 sm:$0xff]  }
 0x2c1   :  { %7603 = vmatpush1.bf16.msra.mxu1 %v9225_v22  ;;  %7260 = vmatprep.subr.bf16.mxu0 %v9230_v23  ;;  %v9281_v23 = vld [vmem:[#allocation8 + $0x42c] ss:$16 sps:$4 sm:$0xff]  }
 0x2c2   :  { %7604 = vmatprep.subr.bf16.mxu1 %v9233_v24  ;;  %v9853_v56 = vpop.eup %9852  ;;  %v9276_v24 = vld [vmem:[#allocation8 + $0x420] ss:$16 sps:$4 sm:$0xff]  }
 0x2c3   :  { %v4059_v2 = vadd.bf16 1065369472, %v9853_v56 }
 0x2c4   :  { %7261 = vmatpush1.bf16.msra.mxu0 %v9228_v27  ;;  %v9855_v61 = vpop.eup %9854  ;;  %v9284_v27 = vld [vmem:[#allocation8 + $0x444] ss:$16 sps:$4 sm:$0xff]  }
 0x2c5   :  { %7605 = vmatpush1.bf16.msra.mxu1 %v9231_v34  ;;  %7262 = vmatprep.subr.bf16.mxu0 %v9236_v35  ;;  %v4062_v4 = vadd.bf16 1065369472, %v9855_v61  ;;  %v4075_v11 = vmul.bf16 1056980736, %v4059_v2  ;;  %v9287_v34 = vld [vmem:[#allocation8 + $0x44c] ss:$16 sps:$4 sm:$0xff]  }
 0x2c6   :  { %7606 = vmatprep.subr.bf16.mxu1 %v9239_v38  ;;  %v9285_v35 = vld [vmem:[#allocation8 + $0x448] ss:$16 sps:$4 sm:$0xff]   ;;  %v9288_v38 = vld [vmem:[#allocation8 + $0x460] ss:$16 sps:$4 sm:$0xff]  }
 0x2c7   :  { %v4078_v13 = vmul.bf16 1056980736, %v4062_v4  ;;  %v4091_v18 = vmul.bf16 %v4075_v11, %v10179_v14  ;;  %v9282_v14 = vld [vmem:[#allocation8 + $0x440] ss:$16 sps:$4 sm:$0xff]   ;;  %v9329_v11 = vld [vmem:[#allocation8 + $0x52c] ss:$16 sps:$4 sm:$0xff]  }
 0x2c8   :  { %7263 = vmatpush1.bf16.msra.mxu0 %v9234_v15  ;;  %v9296_v15 = vld [vmem:[#allocation8 + $0x484] ss:$16 sps:$4 sm:$0xff]  }
 0x2c9   :  { %7607 = vmatpush1.bf16.msra.mxu1 %v9237_v40  ;;  %7264 = vmatprep.subr.bf16.mxu0 %v9242_v16  ;;  %v4094_v22 = vmul.bf16 %v4078_v13, %v10215_v50  ;;  %v9293_v50 = vld [vmem:[#allocation8 + $0x46c] ss:$16 sps:$4 sm:$0xff]   ;;  %v9294_v16 = vld [vmem:[#allocation8 + $0x480] ss:$16 sps:$4 sm:$0xff]   ;;  %v9327_v13 = vld [vmem:[#allocation8 + $0x528] ss:$16 sps:$4 sm:$0xff]  }
 0x2ca   :  { %7608 = vmatprep.subr.bf16.mxu1 %v9245_v41  ;;  %v9299_v40 = vld [vmem:[#allocation8 + $0x48c] ss:$16 sps:$4 sm:$0xff]   ;;  %v9302_v41 = vld [vmem:[#allocation8 + $0x4a4] ss:$16 sps:$4 sm:$0xff]  }
 0x2cc   :  { %7265 = vmatpush1.bf16.msra.mxu0 %v9240_v31  ;;  %v9305_v31 = vld [vmem:[#allocation8 + $0x4ac] ss:$16 sps:$4 sm:$0xff]  }
 0x2cd   :  { %7609 = vmatpush1.bf16.msra.mxu1 %v9243_v42  ;;  %7266 = vmatprep.subr.bf16.mxu0 %v9248_v43  ;;  %v9300_v42 = vld [vmem:[#allocation8 + $0x4a0] ss:$16 sps:$4 sm:$0xff]   ;;  %v9303_v43 = vld [vmem:[#allocation8 + $0x4a8] ss:$16 sps:$4 sm:$0xff]  }
 0x2ce   :  { %7610 = vmatprep.subr.bf16.mxu1 %v9251_v44  ;;  %v9308_v44 = vld [vmem:[#allocation8 + $0x4c4] ss:$16 sps:$4 sm:$0xff]  }
 0x2d0   :  { %7267 = vmatpush1.bf16.msra.mxu0 %v9246_v45  ;;  %v9311_v45 = vld [vmem:[#allocation8 + $0x4cc] ss:$16 sps:$4 sm:$0xff]  }
 0x2d1   :  { %7611 = vmatpush1.bf16.msra.mxu1 %v9249_v47  ;;  %7268 = vmatprep.subr.bf16.mxu0 %v9254_v48  ;;  %v3965_v47 = vmul.bf16 %v10211_v46, %v10211_v46  ;;  %v9306_v48 = vld [vmem:[#allocation8 + $0x4c0] ss:$16 sps:$4 sm:$0xff]  }
 0x2d2   :  { %7612 = vmatprep.subr.bf16.mxu1 %v9257_v25  ;;  %v3968_v25 = vmul.bf16 %v10218_v54, %v10218_v54 }
 0x2d3   :  { %v3981_v56 = vmul.bf16 %v3965_v47, %v10211_v46 }
 0x2d4   :  { %7269 = vmatpush1.bf16.msra.mxu0 %v9252_v51  ;;  %v9309_v51 = vld [vmem:[#allocation8 + $0x4c8] ss:$16 sps:$4 sm:$0xff]   ;;  %v3984_v61 = vmul.bf16 %v3968_v25, %v10218_v54 }
 0x2d5   :  { %7613 = vmatpush1.bf16.msra.mxu1 %v9255_v52  ;;  %7270 = vmatprep.subr.bf16.mxu0 %v9260_v53  ;;  %v9314_v52 = vld [vmem:[#allocation8 + $0x4e4] ss:$16 sps:$4 sm:$0xff]   ;;  %v9317_v53 = vld [vmem:[#allocation8 + $0x4ec] ss:$16 sps:$4 sm:$0xff]   ;;  %v3997_v2 = vmul.bf16 1027030327, %v3981_v56 }
 0x2d6   :  { %7614 = vmatprep.subr.bf16.mxu1 %v9263_v60  ;;  %v9312_v60 = vld [vmem:[#allocation8 + $0x4e0] ss:$16 sps:$4 sm:$0xff]   ;;  %v4000_v4 = vmul.bf16 1027030327, %v3984_v61  ;;  %v9368_v56 = vld [vmem:[#allocation8 + $0x604] ss:$16 sps:$4 sm:$0xff]  }
 0x2d8   :  { %7271 = vmatpush1.bf16.msra.mxu0 %v9258_v62  ;;  %v9315_v62 = vld [vmem:[#allocation8 + $0x4e8] ss:$16 sps:$4 sm:$0xff]  }
 0x2d9   :  { %7615 = vmatpush1.bf16.msra.mxu1 %v9261_v0  ;;  %7272 = vmatprep.subr.bf16.mxu0 %v9266_v1  ;;  %v9320_v0 = vld [vmem:[#allocation8 + $0x504] ss:$16 sps:$4 sm:$0xff]   ;;  %v9323_v1 = vld [vmem:[#allocation8 + $0x50c] ss:$16 sps:$4 sm:$0xff]  }
 0x2da   :  { %7616 = vmatprep.subr.bf16.mxu1 %v9269_v3  ;;  %v9318_v3 = vld [vmem:[#allocation8 + $0x500] ss:$16 sps:$4 sm:$0xff]  }
 0x2dc   :  { %7273 = vmatpush1.bf16.msra.mxu0 %v9264_v5  ;;  %v9321_v5 = vld [vmem:[#allocation8 + $0x508] ss:$16 sps:$4 sm:$0xff]  }
 0x2dd   :  { %7617 = vmatpush1.bf16.msra.mxu1 %v9267_v7  ;;  %7285 = vmatprep.subr.bf16.mxu0 %v9272_v12  ;;  %v9326_v7 = vld [vmem:[#allocation8 + $0x524] ss:$16 sps:$4 sm:$0xff]   ;;  %v4013_v12 = vadd.bf16 %v3997_v2, %v10211_v46 }
 0x2de   :  { %7629 = vmatprep.subr.bf16.mxu1 %v9275_v10  ;;  %v9324_v10 = vld [vmem:[#allocation8 + $0x520] ss:$16 sps:$4 sm:$0xff]   ;;  %v9374_v2 = vld [vmem:[#allocation8 + $0x624] ss:$16 sps:$4 sm:$0xff]  }
 0x2df   :  { %7275 = vmatmul.mubr.bf16.vlgmr.msra.gmra.mrb[16].mxu0 %v4091_v18 }
 0x2e0   :  { %7619 = vmatmul.mubr.bf16.vlgmr.msra.gmra.mrb[16].mxu1 %v4091_v18  ;;  %7286 = vmatpush1.bf16.msra.mxu0 %v9270_v17  ;;  %v9332_v17 = vld [vmem:[#allocation8 + $0x544] ss:$16 sps:$4 sm:$0xff]   ;;  %v4016_v18 = vadd.bf16 %v4000_v4, %v10218_v54  ;;  %v9377_v4 = vld [vmem:[#allocation8 + $0x62c] ss:$16 sps:$4 sm:$0xff]  }
 0x2e1   :  { %7317 = vmatprep.mubr.bf16.mxu0 %v4094_v22  ;;  %7630 = vmatpush1.bf16.msra.mxu1 %v9273_v20  ;;  %v9335_v20 = vld [vmem:[#allocation8 + $0x54c] ss:$16 sps:$4 sm:$0xff]  }
 0x2e2   :  { %7661 = vmatprep.mubr.bf16.mxu1 %v4094_v22  ;;  %7287 = vmatprep.subr.bf16.mxu0 %v9278_v21  ;;  %v4029_v21 = vmul.bf16 1061961548, %v4013_v12  ;;  %v9330_v22 = vld [vmem:[#allocation8 + $0x540] ss:$16 sps:$4 sm:$0xff]   ;;  %v9383_v12 = vld [vmem:[#allocation8 + $0x64c] ss:$16 sps:$4 sm:$0xff]  }
 0x2e3   :  { %7631 = vmatprep.subr.bf16.mxu1 %v9281_v23  ;;  %v9333_v23 = vld [vmem:[#allocation8 + $0x548] ss:$16 sps:$4 sm:$0xff]  }
 0x2e4   :  { %7288 = vmatpush1.bf16.msra.mxu0 %v9276_v24  ;;  %v9338_v24 = vld [vmem:[#allocation8 + $0x564] ss:$16 sps:$4 sm:$0xff]   ;;  %9856 = vtanh.bf16 %v4029_v21  ;;  %v9395_v21 = vld [vmem:[#allocation8 + $0x68c] ss:$16 sps:$4 sm:$0xff]  }
 0x2e5   :  { %7632 = vmatpush1.bf16.msra.mxu1 %v9279_v26  ;;  %7289 = vmatprep.subr.bf16.mxu0 %v9284_v27  ;;  %v4032_v26 = vmul.bf16 1061961548, %v4016_v18  ;;  %v9341_v27 = vld [vmem:[#allocation8 + $0x56c] ss:$16 sps:$4 sm:$0xff]   ;;  %v9387_v18 = vld [vmem:[#allocation8 + $0x668] ss:$16 sps:$4 sm:$0xff]  }
 0x2e6   :  { %7633 = vmatprep.subr.bf16.mxu1 %v9287_v34  ;;  %v9336_v34 = vld [vmem:[#allocation8 + $0x560] ss:$16 sps:$4 sm:$0xff]  }
 0x2e7   :  { %9858 = vtanh.bf16 %v4032_v26  ;;  %v9401_v26 = vld [vmem:[#allocation8 + $0x6ac] ss:$16 sps:$4 sm:$0xff]  }
 0x2e8   :  { %7290 = vmatpush1.bf16.msra.mxu0 %v9282_v14  ;;  %v9339_v14 = vld [vmem:[#allocation8 + $0x568] ss:$16 sps:$4 sm:$0xff]  }
 0x2e9   :  { %7634 = vmatpush1.bf16.msra.mxu1 %v9285_v35  ;;  %7291 = vmatprep.subr.bf16.mxu0 %v9290_v36  ;;  %v9344_v35 = vld [vmem:[#allocation8 + $0x584] ss:$16 sps:$4 sm:$0xff]   ;;  %v9347_v36 = vld [vmem:[#allocation8 + $0x58c] ss:$16 sps:$4 sm:$0xff]  }
 0x2ea   :  { %7635 = vmatprep.subr.bf16.mxu1 %v9293_v50  ;;  %v9342_v50 = vld [vmem:[#allocation8 + $0x580] ss:$16 sps:$4 sm:$0xff]  }
 0x2ec   :  { %7292 = vmatpush1.bf16.msra.mxu0 %v9288_v38  ;;  %v9345_v38 = vld [vmem:[#allocation8 + $0x588] ss:$16 sps:$4 sm:$0xff]  }
 0x2ed   :  { %7636 = vmatpush1.bf16.msra.mxu1 %v9291_v39  ;;  %7293 = vmatprep.subr.bf16.mxu0 %v9296_v15  ;;  %v9350_v39 = vld [vmem:[#allocation8 + $0x5a4] ss:$16 sps:$4 sm:$0xff]   ;;  %v9353_v15 = vld [vmem:[#allocation8 + $0x5ac] ss:$16 sps:$4 sm:$0xff]  }
 0x2ee   :  { %7637 = vmatprep.subr.bf16.mxu1 %v9299_v40  ;;  %v9348_v40 = vld [vmem:[#allocation8 + $0x5a0] ss:$16 sps:$4 sm:$0xff]  }
 0x2f0   :  { %7294 = vmatpush1.bf16.msra.mxu0 %v9294_v16  ;;  %v9351_v16 = vld [vmem:[#allocation8 + $0x5a8] ss:$16 sps:$4 sm:$0xff]  }
 0x2f1   :  { %7638 = vmatpush1.bf16.msra.mxu1 %v9297_v28  ;;  %7295 = vmatprep.subr.bf16.mxu0 %v9302_v41  ;;  %v9356_v28 = vld [vmem:[#allocation8 + $0x5c4] ss:$16 sps:$4 sm:$0xff]   ;;  %v9857_v41 = vpop.eup %9856 }
 0x2f2   :  { %7639 = vmatprep.subr.bf16.mxu1 %v9305_v31  ;;  %v9359_v31 = vld [vmem:[#allocation8 + $0x5cc] ss:$16 sps:$4 sm:$0xff]   ;;  %v4061_v47 = vadd.bf16 1065369472, %v9857_v41 }
 0x2f4   :  { %7296 = vmatpush1.bf16.msra.mxu0 %v9300_v42  ;;  %v9859_v42 = vpop.eup %9858 }
 0x2f5   :  { %7640 = vmatpush1.bf16.msra.mxu1 %v9303_v43  ;;  %7297 = vmatprep.subr.bf16.mxu0 %v9308_v44  ;;  %v9354_v43 = vld [vmem:[#allocation8 + $0x5c0] ss:$16 sps:$4 sm:$0xff]   ;;  %v9357_v44 = vld [vmem:[#allocation8 + $0x5c8] ss:$16 sps:$4 sm:$0xff]   ;;  %v4064_v25 = vadd.bf16 1065369472, %v9859_v42 }
 0x2f6   :  { %7641 = vmatprep.subr.bf16.mxu1 %v9311_v45  ;;  %v9362_v45 = vld [vmem:[#allocation8 + $0x5e4] ss:$16 sps:$4 sm:$0xff]  }
 0x2f7   :  { %v4080_v61 = vmul.bf16 1056980736, %v4064_v25 }
 0x2f8   :  { %7298 = vmatpush1.bf16.msra.mxu0 %v9306_v48  ;;  %v9365_v48 = vld [vmem:[#allocation8 + $0x5ec] ss:$16 sps:$4 sm:$0xff]  }
 0x2f9   :  { %7642 = vmatpush1.bf16.msra.mxu1 %v9309_v51  ;;  %7299 = vmatprep.subr.bf16.mxu0 %v9314_v52  ;;  %v9360_v51 = vld [vmem:[#allocation8 + $0x5e0] ss:$16 sps:$4 sm:$0xff]   ;;  %v9363_v52 = vld [vmem:[#allocation8 + $0x5e8] ss:$16 sps:$4 sm:$0xff]  }
 0x2fa   :  { %7643 = vmatprep.subr.bf16.mxu1 %v9317_v53  ;;  %v4077_v53 = vmul.bf16 1056980736, %v4061_v47  ;;  %v9410_v47 = vld [vmem:[#allocation8 + $0x6e4] ss:$16 sps:$4 sm:$0xff]  }
 0x2fc   :  { %7300 = vmatpush1.bf16.msra.mxu0 %v9312_v60  ;;  %v9371_v60 = vld [vmem:[#allocation8 + $0x60c] ss:$16 sps:$4 sm:$0xff]  }
 0x2fd   :  { %7644 = vmatpush1.bf16.msra.mxu1 %v9315_v62  ;;  %7301 = vmatprep.subr.bf16.mxu0 %v9320_v0  ;;  %v9366_v62 = vld [vmem:[#allocation8 + $0x600] ss:$16 sps:$4 sm:$0xff]   ;;  %v4093_v0 = vmul.bf16 %v4077_v53, %v10211_v46 }
 0x2fe   :  { %7645 = vmatprep.subr.bf16.mxu1 %v9323_v1  ;;  %v9369_v1 = vld [vmem:[#allocation8 + $0x608] ss:$16 sps:$4 sm:$0xff]   ;;  %v9378_v46 = vld [vmem:[#allocation8 + $0x640] ss:$16 sps:$4 sm:$0xff]  }
 0x300   :  { %7302 = vmatpush1.bf16.msra.mxu0 %v9318_v3  ;;  %v4096_v3 = vmul.bf16 %v4080_v61, %v10218_v54  ;;  %v9389_v54 = vld [vmem:[#allocation8 + $0x66c] ss:$16 sps:$4 sm:$0xff]  }
 0x301   :  { %7646 = vmatpush1.bf16.msra.mxu1 %v9321_v5  ;;  %7303 = vmatprep.subr.bf16.mxu0 %v9326_v7  ;;  %v9372_v5 = vld [vmem:[#allocation8 + $0x620] ss:$16 sps:$4 sm:$0xff]   ;;  %v9375_v7 = vld [vmem:[#allocation8 + $0x628] ss:$16 sps:$4 sm:$0xff]  }
 0x302   :  { %7647 = vmatprep.subr.bf16.mxu1 %v9329_v11  ;;  %v9380_v11 = vld [vmem:[#allocation8 + $0x644] ss:$16 sps:$4 sm:$0xff]  }
 0x304   :  { %7304 = vmatpush1.bf16.msra.mxu0 %v9324_v10  ;;  %v9381_v10 = vld [vmem:[#allocation8 + $0x648] ss:$16 sps:$4 sm:$0xff]  }
 0x305   :  { %7648 = vmatpush1.bf16.msra.mxu1 %v9327_v13  ;;  %7305 = vmatprep.subr.bf16.mxu0 %v9332_v17  ;;  %v9386_v13 = vld [vmem:[#allocation8 + $0x664] ss:$16 sps:$4 sm:$0xff]   ;;  %v9384_v17 = vld [vmem:[#allocation8 + $0x660] ss:$16 sps:$4 sm:$0xff]  }
 0x306   :  { %7649 = vmatprep.subr.bf16.mxu1 %v9335_v20  ;;  %v9392_v20 = vld [vmem:[#allocation8 + $0x684] ss:$16 sps:$4 sm:$0xff]  }
 0x308   :  { %7306 = vmatpush1.bf16.msra.mxu0 %v9330_v22  ;;  %v9390_v22 = vld [vmem:[#allocation8 + $0x680] ss:$16 sps:$4 sm:$0xff]  }
 0x309   :  { %7650 = vmatpush1.bf16.msra.mxu1 %v9333_v23  ;;  %7307 = vmatprep.subr.bf16.mxu0 %v9338_v24  ;;  %v9393_v23 = vld [vmem:[#allocation8 + $0x688] ss:$16 sps:$4 sm:$0xff]   ;;  %v9398_v24 = vld [vmem:[#allocation8 + $0x6a4] ss:$16 sps:$4 sm:$0xff]  }
 0x30a   :  { %7651 = vmatprep.subr.bf16.mxu1 %v9341_v27  ;;  %v9396_v27 = vld [vmem:[#allocation8 + $0x6a0] ss:$16 sps:$4 sm:$0xff]  }
 0x30c   :  { %7308 = vmatpush1.bf16.msra.mxu0 %v9336_v34  ;;  %v668_v34 = vrot.slane %v10234_v30, %v635_v55  ;;  %v680_v55 = vrot.slane %v10234_v30, %v647_v63 }
 0x30d   :  { %7652 = vmatpush1.bf16.msra.mxu1 %v9339_v14  ;;  %7309 = vmatprep.subr.bf16.mxu0 %v9344_v35  ;;  %v9399_v14 = vld [vmem:[#allocation8 + $0x6a8] ss:$16 sps:$4 sm:$0xff]   ;;  %v9404_v35 = vld [vmem:[#allocation8 + $0x6c4] ss:$16 sps:$4 sm:$0xff]  }
 0x30e   :  { %7653 = vmatprep.subr.bf16.mxu1 %v9347_v36 }
 0x310   :  { %7310 = vmatpush1.bf16.msra.mxu0 %v9342_v50  ;;  %v676_v50 = vrot.slane %v10234_v30, %v643_v57  ;;  %v3970_v57 = vmul.bf16 %v10253_v9, %v10253_v9 }
 0x311   :  { %7654 = vmatpush1.bf16.msra.mxu1 %v9345_v38  ;;  %7311 = vmatprep.subr.bf16.mxu0 %v9350_v39  ;;  %v672_v38 = vrot.slane %v10234_v30, %v639_v59  ;;  %v9407_v39 = vld [vmem:[#allocation8 + $0x6cc] ss:$16 sps:$4 sm:$0xff]  }
 0x312   :  { %7655 = vmatprep.subr.bf16.mxu1 %v9353_v15  ;;  %v3967_v15 = vmul.bf16 %v10213_v49, %v10213_v49  ;;  %v9413_v30 = vld [vmem:[#allocation8 + $0x6ec] ss:$16 sps:$4 sm:$0xff]  }
 0x314   :  { %7312 = vmatpush1.bf16.msra.mxu0 %v9348_v40 }
 0x315   :  { %7656 = vmatpush1.bf16.msra.mxu1 %v9351_v16  ;;  %7313 = vmatprep.subr.bf16.mxu0 %v9356_v28 }
 0x316   :  { %7657 = vmatprep.subr.bf16.mxu1 %v9359_v31  ;;  %v9402_v31 = vld [vmem:[#allocation8 + $0x6c0] ss:$16 sps:$4 sm:$0xff]  }
 0x318   :  { %7314 = vmatpush1.bf16.msra.mxu0 %v9354_v43 }
 0x319   :  { %7658 = vmatpush1.bf16.msra.mxu1 %v9357_v44  ;;  %7315 = vmatprep.subr.bf16.mxu0 %v9362_v45  ;;  %v9405_v45 = vld [vmem:[#allocation8 + $0x6c8] ss:$16 sps:$4 sm:$0xff]  }
 0x31a   :  { %7659 = vmatprep.subr.bf16.mxu1 %v9365_v48 }
 0x31c   :  { %7316 = vmatpush1.bf16.msra.mxu0 %v9360_v51 }
 0x31d   :  { %7660 = vmatpush1.bf16.msra.mxu1 %v9363_v52  ;;  %7328 = vmatprep.subr.bf16.mxu0 %v9368_v56  ;;  %v3983_v52 = vmul.bf16 %v3967_v15, %v10213_v49  ;;  %v9441_v15 = vld [vmem:[#allocation8 + $0x788] ss:$16 sps:$4 sm:$0xff]  }
 0x31e   :  { %7672 = vmatprep.subr.bf16.mxu1 %v9371_v60 }
 0x31f   :  { %7318 = vmatmul.mubr.bf16.vlgmr.msra.gmra.mrb[16].mxu0 %v4093_v0 }
 0x320   :  { %7662 = vmatmul.mubr.bf16.vlgmr.msra.gmra.mrb[16].mxu1 %v4093_v0  ;;  %7329 = vmatpush1.bf16.msra.mxu0 %v9366_v62  ;;  %v9408_v0 = vld [vmem:[#allocation8 + $0x6e0] ss:$16 sps:$4 sm:$0xff]  }
 0x321   :  { %7360 = vmatprep.mubr.bf16.mxu0 %v4096_v3  ;;  %7673 = vmatpush1.bf16.msra.mxu1 %v9369_v1  ;;  %v3986_v1 = vmul.bf16 %v3970_v57, %v10253_v9  ;;  %v9455_v57 = vld [vmem:[#allocation8 + $0x7cc] ss:$16 sps:$4 sm:$0xff]  }
 0x322   :  { %7704 = vmatprep.mubr.bf16.mxu1 %v4096_v3  ;;  %7330 = vmatprep.subr.bf16.mxu0 %v9374_v2  ;;  %v9411_v3 = vld [vmem:[#allocation8 + $0x6e8] ss:$16 sps:$4 sm:$0xff]  }
 0x323   :  { %7674 = vmatprep.subr.bf16.mxu1 %v9377_v4  ;;  %v9416_v4 = vld [vmem:[#allocation8 + $0x704] ss:$16 sps:$4 sm:$0xff]  }
 0x324   :  { %7331 = vmatpush1.bf16.msra.mxu0 %v9372_v5  ;;  %v9419_v5 = vld [vmem:[#allocation8 + $0x70c] ss:$16 sps:$4 sm:$0xff]  }
 0x325   :  { %7675 = vmatpush1.bf16.msra.mxu1 %v9375_v7  ;;  %7332 = vmatprep.subr.bf16.mxu0 %v9380_v11  ;;  %v3999_v7 = vmul.bf16 1027030327, %v3983_v52  ;;  %v9414_v11 = vld [vmem:[#allocation8 + $0x700] ss:$16 sps:$4 sm:$0xff]  }
 0x326   :  { %7676 = vmatprep.subr.bf16.mxu1 %v9383_v12  ;;  %v4002_v12 = vmul.bf16 1027030327, %v3986_v1  ;;  %v9470_v1 = vld [vmem:[#allocation8 + $0x824] ss:$16 sps:$4 sm:$0xff]  }
 0x328   :  { %7333 = vmatpush1.bf16.msra.mxu0 %v9378_v46  ;;  %v9417_v46 = vld [vmem:[#allocation8 + $0x708] ss:$16 sps:$4 sm:$0xff]  }
 0x329   :  { %7677 = vmatpush1.bf16.msra.mxu1 %v9381_v10  ;;  %7334 = vmatprep.subr.bf16.mxu0 %v9386_v13  ;;  %v9422_v10 = vld [vmem:[#allocation8 + $0x724] ss:$16 sps:$4 sm:$0xff]   ;;  %v9425_v13 = vld [vmem:[#allocation8 + $0x72c] ss:$16 sps:$4 sm:$0xff]  }
 0x32a   :  { %7678 = vmatprep.subr.bf16.mxu1 %v9389_v54  ;;  %v4015_v54 = vadd.bf16 %v3999_v7, %v10213_v49  ;;  %v9471_v7 = vld [vmem:[#allocation8 + $0x828] ss:$16 sps:$4 sm:$0xff]  }
 0x32c   :  { %7335 = vmatpush1.bf16.msra.mxu0 %v9384_v17  ;;  %v9420_v17 = vld [vmem:[#allocation8 + $0x720] ss:$16 sps:$4 sm:$0xff]  }
 0x32d   :  { %7679 = vmatpush1.bf16.msra.mxu1 %v9387_v18  ;;  %7336 = vmatprep.subr.bf16.mxu0 %v9392_v20  ;;  %v9423_v18 = vld [vmem:[#allocation8 + $0x728] ss:$16 sps:$4 sm:$0xff]   ;;  %v9428_v20 = vld [vmem:[#allocation8 + $0x744] ss:$16 sps:$4 sm:$0xff]  }
 0x32e   :  { %7680 = vmatprep.subr.bf16.mxu1 %v9395_v21  ;;  %v4018_v21 = vadd.bf16 %v4002_v12, %v10253_v9  ;;  %v9479_v12 = vld [vmem:[#allocation8 + $0x84c] ss:$16 sps:$4 sm:$0xff]  }
 0x330   :  { %7337 = vmatpush1.bf16.msra.mxu0 %v9390_v22  ;;  %v9431_v22 = vld [vmem:[#allocation8 + $0x74c] ss:$16 sps:$4 sm:$0xff]  }
 0x331   :  { %7681 = vmatpush1.bf16.msra.mxu1 %v9393_v23  ;;  %7338 = vmatprep.subr.bf16.mxu0 %v9398_v24  ;;  %v4031_v23 = vmul.bf16 1061961548, %v4015_v54  ;;  %v9426_v24 = vld [vmem:[#allocation8 + $0x740] ss:$16 sps:$4 sm:$0xff]   ;;  %v9483_v54 = vld [vmem:[#allocation8 + $0x868] ss:$16 sps:$4 sm:$0xff]  }
 0x332   :  { %v3850_v36 = vpop.f32.mrb[12].mxu0  ;;  %7682 = vmatprep.subr.bf16.mxu1 %v9401_v26  ;;  %v3936_v40 = vpop.f32.mrb[12].mxu1  ;;  %v9429_v26 = vld [vmem:[#allocation8 + $0x748] ss:$16 sps:$4 sm:$0xff]  }
 0x333   :  { %v3852_v16 = vpop.f32.mrb[13].mxu0  ;;  %v3938_v28 = vpop.f32.mrb[13].mxu1  ;;  %v8962_v42 = vadd.f32 %v3850_v36, %v668_v34  ;;  %v8966_v48 = vadd.f32 %v3936_v40, %v676_v50  ;;  %9860 = vtanh.bf16 %v4031_v23  ;;  %v9435_v36 = vld [vmem:[#allocation8 + $0x768] ss:$16 sps:$4 sm:$0xff]   ;;  %v9446_v40 = vld [vmem:[#allocation8 + $0x7a4] ss:$16 sps:$4 sm:$0xff]  }
 0x334   :  { %v3854_v41 = vpop.f32.mrb[14].mxu0  ;;  %7339 = vmatpush1.bf16.msra.mxu0 %v9396_v27  ;;  %v3940_v43 = vpop.f32.mrb[14].mxu1  ;;  %v8963_v25 = vadd.f32 %v3852_v16, %v672_v38  ;;  %v8967_v53 = vadd.f32 %v3938_v28, %v680_v55  ;;  %v9434_v27 = vld [vmem:[#allocation8 + $0x764] ss:$16 sps:$4 sm:$0xff]   ;;  %v9449_v16 = vld [vmem:[#allocation8 + $0x7ac] ss:$16 sps:$4 sm:$0xff]  }
 0x335   :  { %v8964_v59 = vadd.f32 %v3854_v41, %v668_v34  ;;  %7683 = vmatpush1.bf16.msra.mxu1 %v9399_v14  ;;  %v3856_v44 = vpop.f32.mrb[15].mxu0  ;;  %7340 = vmatprep.subr.bf16.mxu0 %v9404_v35  ;;  %v8968_v19 = vadd.f32 %v3940_v43, %v676_v50  ;;  %v3942_v63 = vpop.f32.mrb[15].mxu1  ;;  %v4034_v34 = vmul.bf16 1061961548, %v4018_v21  ;;  %v9437_v14 = vld [vmem:[#allocation8 + $0x76c] ss:$16 sps:$4 sm:$0xff]  }
 0x336   :  { %v8965_v51 = vadd.f32 %v3856_v44, %v672_v38  ;;  %7684 = vmatprep.subr.bf16.mxu1 %v9407_v39  ;;  %v8969_v60 = vadd.f32 %v3942_v63, %v680_v55  ;;  %v9432_v35 = vld [vmem:[#allocation8 + $0x760] ss:$16 sps:$4 sm:$0xff]   ;;  %v9440_v50 = vld [vmem:[#allocation8 + $0x784] ss:$16 sps:$4 sm:$0xff]   ;;  %v9443_v38 = vld [vmem:[#allocation8 + $0x78c] ss:$16 sps:$4 sm:$0xff]  }
 0x337   :  { %v10289_v56 = vpack.c.bf16 %v8964_v59, %v8962_v42  ;;  %v10291_v61 = vpack.c.bf16 %v8968_v19, %v8966_v48  ;;  %9862 = vtanh.bf16 %v4034_v34  ;;  %v9438_v39 = vld [vmem:[#allocation8 + $0x780] ss:$16 sps:$4 sm:$0xff]   ;;  %v9447_v28 = vld [vmem:[#allocation8 + $0x7a8] ss:$16 sps:$4 sm:$0xff]   ;;  %v9452_v41 = vld [vmem:[#allocation8 + $0x7c4] ss:$16 sps:$4 sm:$0xff]  }
 0x338   :  { %v10293_v62 = vpack.c.bf16 %v8965_v51, %v8963_v25  ;;  %7341 = vmatpush1.bf16.msra.mxu0 %v9402_v31  ;;  %v10296_v2 = vpack.c.bf16 %v8969_v60, %v8967_v53  ;;  %v9444_v55 = vld [vmem:[#allocation8 + $0x7a0] ss:$16 sps:$4 sm:$0xff]   ;;  %v9453_v43 = vld [vmem:[#allocation8 + $0x7c8] ss:$16 sps:$4 sm:$0xff]   ;;  %v9458_v44 = vld [vmem:[#allocation8 + $0x7e4] ss:$16 sps:$4 sm:$0xff]  }
 0x339   :  { %7685 = vmatpush1.bf16.msra.mxu1 %v9405_v45  ;;  %7342 = vmatprep.subr.bf16.mxu0 %v9410_v47  ;;  %v9450_v59 = vld [vmem:[#allocation8 + $0x7c0] ss:$16 sps:$4 sm:$0xff]   ;;  %v9461_v47 = vld [vmem:[#allocation8 + $0x7ec] ss:$16 sps:$4 sm:$0xff]   ;;  %v9459_v19 = vld [vmem:[#allocation8 + $0x7e8] ss:$16 sps:$4 sm:$0xff]  }
 0x33a   :  { %7686 = vmatprep.subr.bf16.mxu1 %v9413_v30  ;;  %v9456_v25 = vld [vmem:[#allocation8 + $0x7e0] ss:$16 sps:$4 sm:$0xff]   ;;  %v9464_v63 = vld [vmem:[#allocation8 + $0x804] ss:$16 sps:$4 sm:$0xff]   ;;  %v9467_v30 = vld [vmem:[#allocation8 + $0x80c] ss:$16 sps:$4 sm:$0xff]  }
 0x33b   :  { %v9462_v53 = vld [vmem:[#allocation8 + $0x800] ss:$16 sps:$4 sm:$0xff]   ;;  %v9489_v21 = vld [vmem:[#allocation8 + $0x888] ss:$16 sps:$4 sm:$0xff]   ;;  %v9497_v23 = vld [vmem:[#allocation8 + $0x8ac] ss:$16 sps:$4 sm:$0xff]  }
 0x33c   :  { %7343 = vmatpush1.bf16.msra.mxu0 %v9408_v0  ;;  %v9465_v0 = vld [vmem:[#allocation8 + $0x808] ss:$16 sps:$4 sm:$0xff]   ;;  %v9503_v34 = vld [vmem:[#allocation8 + $0x8cc] ss:$16 sps:$4 sm:$0xff]  }
 0x33d   :  { %7687 = vmatpush1.bf16.msra.mxu1 %v9411_v3  ;;  %7344 = vmatprep.subr.bf16.mxu0 %v9416_v4  ;;  %v9473_v4 = vld [vmem:[#allocation8 + $0x82c] ss:$16 sps:$4 sm:$0xff]  }
 0x33e   :  { %7688 = vmatprep.subr.bf16.mxu1 %v9419_v5  ;;  %v9861_v31 = vpop.eup %9860  ;;  %v9468_v5 = vld [vmem:[#allocation8 + $0x820] ss:$16 sps:$4 sm:$0xff]  }
 0x33f   :  { %v4063_v45 = vadd.bf16 1065369472, %v9861_v31 }
 0x340   :  { %7345 = vmatpush1.bf16.msra.mxu0 %v9414_v11  ;;  %v9476_v11 = vld [vmem:[#allocation8 + $0x844] ss:$16 sps:$4 sm:$0xff]  }
 0x341   :  { %7689 = vmatpush1.bf16.msra.mxu1 %v9417_v46  ;;  %7346 = vmatprep.subr.bf16.mxu0 %v9422_v10  ;;  %v4079_v51 = vmul.bf16 1056980736, %v4063_v45  ;;  %v9477_v46 = vld [vmem:[#allocation8 + $0x848] ss:$16 sps:$4 sm:$0xff]   ;;  %v9482_v10 = vld [vmem:[#allocation8 + $0x864] ss:$16 sps:$4 sm:$0xff]  }
 0x342   :  { %7690 = vmatprep.subr.bf16.mxu1 %v9425_v13  ;;  %v9863_v42 = vpop.eup %9862  ;;  %v9480_v13 = vld [vmem:[#allocation8 + $0x860] ss:$16 sps:$4 sm:$0xff]  }
 0x343   :  { %v4066_v48 = vadd.bf16 1065369472, %v9863_v42  ;;  %v4095_v60 = vmul.bf16 %v4079_v51, %v10213_v49  ;;  %v9474_v49 = vld [vmem:[#allocation8 + $0x840] ss:$16 sps:$4 sm:$0xff]   ;;  %v9527_v51 = vld [vmem:[#allocation8 + $0x94c] ss:$16 sps:$4 sm:$0xff]  }
 0x344   :  { %7347 = vmatpush1.bf16.msra.mxu0 %v9420_v17  ;;  %v9488_v17 = vld [vmem:[#allocation8 + $0x884] ss:$16 sps:$4 sm:$0xff]  }
 0x345   :  { %7691 = vmatpush1.bf16.msra.mxu1 %v9423_v18  ;;  %7348 = vmatprep.subr.bf16.mxu0 %v9428_v20  ;;  %v4082_v52 = vmul.bf16 1056980736, %v4066_v48  ;;  %v9491_v18 = vld [vmem:[#allocation8 + $0x88c] ss:$16 sps:$4 sm:$0xff]   ;;  %v9486_v20 = vld [vmem:[#allocation8 + $0x880] ss:$16 sps:$4 sm:$0xff]  }
 0x346   :  { %7692 = vmatprep.subr.bf16.mxu1 %v9431_v22  ;;  %v9494_v22 = vld [vmem:[#allocation8 + $0x8a4] ss:$16 sps:$4 sm:$0xff]   ;;  %v9519_v48 = vld [vmem:[#allocation8 + $0x928] ss:$16 sps:$4 sm:$0xff]  }
 0x347   :  { %v4098_v3 = vmul.bf16 %v4082_v52, %v10253_v9  ;;  %v9485_v9 = vld [vmem:[#allocation8 + $0x86c] ss:$16 sps:$4 sm:$0xff]   ;;  %v9525_v52 = vld [vmem:[#allocation8 + $0x948] ss:$16 sps:$4 sm:$0xff]  }
 0x348   :  { %7349 = vmatpush1.bf16.msra.mxu0 %v9426_v24  ;;  %v9492_v24 = vld [vmem:[#allocation8 + $0x8a0] ss:$16 sps:$4 sm:$0xff]  }
 0x349   :  { %7693 = vmatpush1.bf16.msra.mxu1 %v9429_v26  ;;  %7350 = vmatprep.subr.bf16.mxu0 %v9434_v27  ;;  %v9495_v26 = vld [vmem:[#allocation8 + $0x8a8] ss:$16 sps:$4 sm:$0xff]   ;;  %v9500_v27 = vld [vmem:[#allocation8 + $0x8c4] ss:$16 sps:$4 sm:$0xff]  }
 0x34a   :  { %7694 = vmatprep.subr.bf16.mxu1 %v9437_v14  ;;  %v3969_v14 = vmul.bf16 %v10249_v6, %v10249_v6 }
 0x34c   :  { %7351 = vmatpush1.bf16.msra.mxu0 %v9432_v35  ;;  %v9498_v35 = vld [vmem:[#allocation8 + $0x8c0] ss:$16 sps:$4 sm:$0xff]  }
 0x34d   :  { %7695 = vmatpush1.bf16.msra.mxu1 %v9435_v36  ;;  %7352 = vmatprep.subr.bf16.mxu0 %v9440_v50  ;;  %v3972_v36 = vmul.bf16 %v10256_v58, %v10256_v58  ;;  %v9501_v50 = vld [vmem:[#allocation8 + $0x8c8] ss:$16 sps:$4 sm:$0xff]  }
 0x34e   :  { %7696 = vmatprep.subr.bf16.mxu1 %v9443_v38  ;;  %v9506_v38 = vld [vmem:[#allocation8 + $0x8e4] ss:$16 sps:$4 sm:$0xff]  }
 0x350   :  { %7353 = vmatpush1.bf16.msra.mxu0 %v9438_v39  ;;  %v9509_v39 = vld [vmem:[#allocation8 + $0x8ec] ss:$16 sps:$4 sm:$0xff]  }
 0x351   :  { %7697 = vmatpush1.bf16.msra.mxu1 %v9441_v15  ;;  %7354 = vmatprep.subr.bf16.mxu0 %v9446_v40  ;;  %v3985_v15 = vmul.bf16 %v3969_v14, %v10249_v6  ;;  %v9504_v40 = vld [vmem:[#allocation8 + $0x8e0] ss:$16 sps:$4 sm:$0xff]   ;;  %v9560_v14 = vld [vmem:[#allocation8 + $0xa04] ss:$16 sps:$4 sm:$0xff]  }
 0x352   :  { %7698 = vmatprep.subr.bf16.mxu1 %v9449_v16  ;;  %v3988_v16 = vmul.bf16 %v3972_v36, %v10256_v58 }
 0x353   :  { %v4001_v31 = vmul.bf16 1027030327, %v3985_v15  ;;  %v9566_v15 = vld [vmem:[#allocation8 + $0xa24] ss:$16 sps:$4 sm:$0xff]  }
 0x354   :  { %7355 = vmatpush1.bf16.msra.mxu0 %v9444_v55  ;;  %v9507_v55 = vld [vmem:[#allocation8 + $0x8e8] ss:$16 sps:$4 sm:$0xff]   ;;  %v4004_v42 = vmul.bf16 1027030327, %v3988_v16  ;;  %v9569_v16 = vld [vmem:[#allocation8 + $0xa2c] ss:$16 sps:$4 sm:$0xff]  }
 0x355   :  { %7699 = vmatpush1.bf16.msra.mxu1 %v9447_v28  ;;  %7356 = vmatprep.subr.bf16.mxu0 %v9452_v41  ;;  %v9512_v28 = vld [vmem:[#allocation8 + $0x904] ss:$16 sps:$4 sm:$0xff]   ;;  %v9515_v41 = vld [vmem:[#allocation8 + $0x90c] ss:$16 sps:$4 sm:$0xff]   ;;  %v4017_v45 = vadd.bf16 %v4001_v31, %v10249_v6 }
 0x356   :  { %7700 = vmatprep.subr.bf16.mxu1 %v9455_v57  ;;  %v9510_v57 = vld [vmem:[#allocation8 + $0x900] ss:$16 sps:$4 sm:$0xff]   ;;  %v9575_v31 = vld [vmem:[#allocation8 + $0xa4c] ss:$16 sps:$4 sm:$0xff]  }
 0x358   :  { %7357 = vmatpush1.bf16.msra.mxu0 %v9450_v59  ;;  %v9513_v59 = vld [vmem:[#allocation8 + $0x908] ss:$16 sps:$4 sm:$0xff]  }
 0x359   :  { %7701 = vmatpush1.bf16.msra.mxu1 %v9453_v43  ;;  %7358 = vmatprep.subr.bf16.mxu0 %v9458_v44  ;;  %v9518_v43 = vld [vmem:[#allocation8 + $0x924] ss:$16 sps:$4 sm:$0xff]   ;;  %v9521_v44 = vld [vmem:[#allocation8 + $0x92c] ss:$16 sps:$4 sm:$0xff]  }
 0x35a   :  { %7702 = vmatprep.subr.bf16.mxu1 %v9461_v47  ;;  %v9516_v47 = vld [vmem:[#allocation8 + $0x920] ss:$16 sps:$4 sm:$0xff]  }
 0x35c   :  { %7359 = vmatpush1.bf16.msra.mxu0 %v9456_v25  ;;  %v9524_v25 = vld [vmem:[#allocation8 + $0x944] ss:$16 sps:$4 sm:$0xff]  }
 0x35d   :  { %7703 = vmatpush1.bf16.msra.mxu1 %v9459_v19  ;;  %7371 = vmatprep.subr.bf16.mxu0 %v9464_v63  ;;  %v4020_v19 = vadd.bf16 %v4004_v42, %v10256_v58  ;;  %v4033_v63 = vmul.bf16 1061961548, %v4017_v45  ;;  %v9578_v42 = vld [vmem:[#allocation8 + $0xa64] ss:$16 sps:$4 sm:$0xff]   ;;  %v9587_v45 = vld [vmem:[#allocation8 + $0xa8c] ss:$16 sps:$4 sm:$0xff]  }
 0x35e   :  { %7715 = vmatprep.subr.bf16.mxu1 %v9467_v30  ;;  %v9522_v30 = vld [vmem:[#allocation8 + $0x940] ss:$16 sps:$4 sm:$0xff]  }
 0x35f   :  { %7361 = vmatmul.mubr.bf16.vlgmr.msra.gmra.mrb[16].mxu0 %v4095_v60  ;;  %9864 = vtanh.bf16 %v4033_v63  ;;  %v9591_v63 = vld [vmem:[#allocation8 + $0xaa8] ss:$16 sps:$4 sm:$0xff]  }
 0x360   :  { %7705 = vmatmul.mubr.bf16.vlgmr.msra.gmra.mrb[16].mxu1 %v4095_v60  ;;  %7372 = vmatpush1.bf16.msra.mxu0 %v9462_v53  ;;  %v9530_v53 = vld [vmem:[#allocation8 + $0x964] ss:$16 sps:$4 sm:$0xff]   ;;  %v4036_v60 = vmul.bf16 1061961548, %v4020_v19  ;;  %v9593_v19 = vld [vmem:[#allocation8 + $0xaac] ss:$16 sps:$4 sm:$0xff]  }
 0x361   :  { %7403 = vmatprep.mubr.bf16.mxu0 %v4098_v3  ;;  %7716 = vmatpush1.bf16.msra.mxu1 %v9465_v0  ;;  %v9533_v0 = vld [vmem:[#allocation8 + $0x96c] ss:$16 sps:$4 sm:$0xff]  }
 0x362   :  { %7747 = vmatprep.mubr.bf16.mxu1 %v4098_v3  ;;  %7373 = vmatprep.subr.bf16.mxu0 %v9470_v1  ;;  %v9528_v1 = vld [vmem:[#allocation8 + $0x960] ss:$16 sps:$4 sm:$0xff]   ;;  %v9531_v3 = vld [vmem:[#allocation8 + $0x968] ss:$16 sps:$4 sm:$0xff]   ;;  %9866 = vtanh.bf16 %v4036_v60 }
 0x363   :  { %7717 = vmatprep.subr.bf16.mxu1 %v9473_v4  ;;  %v9536_v4 = vld [vmem:[#allocation8 + $0x984] ss:$16 sps:$4 sm:$0xff]   ;;  %v9594_v60 = vld [vmem:[#allocation8 + $0xac0] ss:$16 sps:$4 sm:$0xff]  }
 0x364   :  { %7374 = vmatpush1.bf16.msra.mxu0 %v9468_v5  ;;  %v9539_v5 = vld [vmem:[#allocation8 + $0x98c] ss:$16 sps:$4 sm:$0xff]  }
 0x365   :  { %7718 = vmatpush1.bf16.msra.mxu1 %v9471_v7  ;;  %7375 = vmatprep.subr.bf16.mxu0 %v9476_v11  ;;  %v9534_v7 = vld [vmem:[#allocation8 + $0x980] ss:$16 sps:$4 sm:$0xff]   ;;  %v9537_v11 = vld [vmem:[#allocation8 + $0x988] ss:$16 sps:$4 sm:$0xff]  }
 0x366   :  { %7719 = vmatprep.subr.bf16.mxu1 %v9479_v12  ;;  %v9542_v12 = vld [vmem:[#allocation8 + $0x9a4] ss:$16 sps:$4 sm:$0xff]  }
 0x368   :  { %7376 = vmatpush1.bf16.msra.mxu0 %v9474_v49  ;;  %v9545_v49 = vld [vmem:[#allocation8 + $0x9ac] ss:$16 sps:$4 sm:$0xff]  }
 0x369   :  { %7720 = vmatpush1.bf16.msra.mxu1 %v9477_v46  ;;  %7377 = vmatprep.subr.bf16.mxu0 %v9482_v10  ;;  %v9540_v46 = vld [vmem:[#allocation8 + $0x9a0] ss:$16 sps:$4 sm:$0xff]   ;;  %v9543_v10 = vld [vmem:[#allocation8 + $0x9a8] ss:$16 sps:$4 sm:$0xff]  }
 0x36a   :  { %7721 = vmatprep.subr.bf16.mxu1 %v9485_v9  ;;  %v9548_v9 = vld [vmem:[#allocation8 + $0x9c4] ss:$16 sps:$4 sm:$0xff]  }
 0x36c   :  { %7378 = vmatpush1.bf16.msra.mxu0 %v9480_v13  ;;  %v9865_v13 = vpop.eup %9864 }
 0x36d   :  { %7722 = vmatpush1.bf16.msra.mxu1 %v9483_v54  ;;  %7379 = vmatprep.subr.bf16.mxu0 %v9488_v17  ;;  %v9551_v54 = vld [vmem:[#allocation8 + $0x9cc] ss:$16 sps:$4 sm:$0xff]   ;;  %v9867_v17 = vpop.eup %9866 }
 0x36e   :  { %7723 = vmatprep.subr.bf16.mxu1 %v9491_v18  ;;  %v9546_v18 = vld [vmem:[#allocation8 + $0x9c0] ss:$16 sps:$4 sm:$0xff]  }
 0x370   :  { %7380 = vmatpush1.bf16.msra.mxu0 %v9486_v20  ;;  %v9549_v20 = vld [vmem:[#allocation8 + $0x9c8] ss:$16 sps:$4 sm:$0xff]  }
 0x371   :  { %7724 = vmatpush1.bf16.msra.mxu1 %v9489_v21  ;;  %7381 = vmatprep.subr.bf16.mxu0 %v9494_v22  ;;  %v9554_v21 = vld [vmem:[#allocation8 + $0x9e4] ss:$16 sps:$4 sm:$0xff]   ;;  %v4065_v22 = vadd.bf16 1065369472, %v9865_v13 }
 0x372   :  { %7725 = vmatprep.subr.bf16.mxu1 %v9497_v23  ;;  %v9557_v23 = vld [vmem:[#allocation8 + $0x9ec] ss:$16 sps:$4 sm:$0xff]  }
 0x374   :  { %7382 = vmatpush1.bf16.msra.mxu0 %v9492_v24  ;;  %v4068_v24 = vadd.bf16 1065369472, %v9867_v17  ;;  %v9614_v17 = vld [vmem:[#allocation8 + $0xb24] ss:$16 sps:$4 sm:$0xff]  }
 0x375   :  { %7726 = vmatpush1.bf16.msra.mxu1 %v9495_v26  ;;  %7383 = vmatprep.subr.bf16.mxu0 %v9500_v27  ;;  %v9552_v26 = vld [vmem:[#allocation8 + $0x9e0] ss:$16 sps:$4 sm:$0xff]   ;;  %v9555_v27 = vld [vmem:[#allocation8 + $0x9e8] ss:$16 sps:$4 sm:$0xff]  }
 0x376   :  { %7727 = vmatprep.subr.bf16.mxu1 %v9503_v34  ;;  %v4081_v34 = vmul.bf16 1056980736, %v4065_v22  ;;  %v4084_v36 = vmul.bf16 1056980736, %v4068_v24  ;;  %v9615_v22 = vld [vmem:[#allocation8 + $0xb28] ss:$16 sps:$4 sm:$0xff]  }
 0x378   :  { %7384 = vmatpush1.bf16.msra.mxu0 %v9498_v35  ;;  %v9563_v35 = vld [vmem:[#allocation8 + $0xa0c] ss:$16 sps:$4 sm:$0xff]  }
 0x379   :  { %7728 = vmatpush1.bf16.msra.mxu1 %v9501_v50  ;;  %7385 = vmatprep.subr.bf16.mxu0 %v9506_v38  ;;  %v9558_v50 = vld [vmem:[#allocation8 + $0xa00] ss:$16 sps:$4 sm:$0xff]   ;;  %v4097_v38 = vmul.bf16 %v4081_v34, %v10249_v6 }
 0x37a   :  { %7729 = vmatprep.subr.bf16.mxu1 %v9509_v39  ;;  %v9561_v39 = vld [vmem:[#allocation8 + $0xa08] ss:$16 sps:$4 sm:$0xff]   ;;  %v9570_v6 = vld [vmem:[#allocation8 + $0xa40] ss:$16 sps:$4 sm:$0xff]  }
 0x37b   :  { %v9618_v34 = vld [vmem:[#allocation8 + $0xb40] ss:$16 sps:$4 sm:$0xff]  }
 0x37c   :  { %7386 = vmatpush1.bf16.msra.mxu0 %v9504_v40  ;;  %v4100_v40 = vmul.bf16 %v4084_v36, %v10256_v58  ;;  %v9581_v58 = vld [vmem:[#allocation8 + $0xa6c] ss:$16 sps:$4 sm:$0xff]  }
 0x37d   :  { %7730 = vmatpush1.bf16.msra.mxu1 %v9507_v55  ;;  %7387 = vmatprep.subr.bf16.mxu0 %v9512_v28  ;;  %v9564_v55 = vld [vmem:[#allocation8 + $0xa20] ss:$16 sps:$4 sm:$0xff]   ;;  %v9567_v28 = vld [vmem:[#allocation8 + $0xa28] ss:$16 sps:$4 sm:$0xff]  }
 0x37e   :  { %7731 = vmatprep.subr.bf16.mxu1 %v9515_v41  ;;  %v9572_v41 = vld [vmem:[#allocation8 + $0xa44] ss:$16 sps:$4 sm:$0xff]  }
 0x380   :  { %7388 = vmatpush1.bf16.msra.mxu0 %v9510_v57  ;;  %v9573_v57 = vld [vmem:[#allocation8 + $0xa48] ss:$16 sps:$4 sm:$0xff]  }
 0x381   :  { %7732 = vmatpush1.bf16.msra.mxu1 %v9513_v59  ;;  %7389 = vmatprep.subr.bf16.mxu0 %v9518_v43  ;;  %v9576_v59 = vld [vmem:[#allocation8 + $0xa60] ss:$16 sps:$4 sm:$0xff]   ;;  %v9579_v43 = vld [vmem:[#allocation8 + $0xa68] ss:$16 sps:$4 sm:$0xff]  }
 0x382   :  { %7733 = vmatprep.subr.bf16.mxu1 %v9521_v44  ;;  %v9584_v44 = vld [vmem:[#allocation8 + $0xa84] ss:$16 sps:$4 sm:$0xff]  }
 0x384   :  { %7390 = vmatpush1.bf16.msra.mxu0 %v9516_v47  ;;  %v9582_v47 = vld [vmem:[#allocation8 + $0xa80] ss:$16 sps:$4 sm:$0xff]  }
 0x385   :  { %7734 = vmatpush1.bf16.msra.mxu1 %v9519_v48  ;;  %7391 = vmatprep.subr.bf16.mxu0 %v9524_v25  ;;  %v9585_v48 = vld [vmem:[#allocation8 + $0xa88] ss:$16 sps:$4 sm:$0xff]   ;;  %v9590_v25 = vld [vmem:[#allocation8 + $0xaa4] ss:$16 sps:$4 sm:$0xff]  }
 0x386   :  { %7735 = vmatprep.subr.bf16.mxu1 %v9527_v51  ;;  %v9588_v51 = vld [vmem:[#allocation8 + $0xaa0] ss:$16 sps:$4 sm:$0xff]  }
 0x388   :  { %7392 = vmatpush1.bf16.msra.mxu0 %v9522_v30  ;;  %v9596_v30 = vld [vmem:[#allocation8 + $0xac4] ss:$16 sps:$4 sm:$0xff]  }
 0x389   :  { %7736 = vmatpush1.bf16.msra.mxu1 %v9525_v52  ;;  %7393 = vmatprep.subr.bf16.mxu0 %v9530_v53  ;;  %v9599_v52 = vld [vmem:[#allocation8 + $0xacc] ss:$16 sps:$4 sm:$0xff]   ;;  %v3971_v53 = vmul.bf16 %v10251_v8, %v10251_v8 }
 0x38a   :  { %7737 = vmatprep.subr.bf16.mxu1 %v9533_v0  ;;  %v3974_v0 = vmul.bf16 %v10293_v62, %v10293_v62 }
 0x38c   :  { %7394 = vmatpush1.bf16.msra.mxu0 %v9528_v1  ;;  %v9597_v1 = vld [vmem:[#allocation8 + $0xac8] ss:$16 sps:$4 sm:$0xff]  }
 0x38d   :  { %7738 = vmatpush1.bf16.msra.mxu1 %v9531_v3  ;;  %7395 = vmatprep.subr.bf16.mxu0 %v9536_v4  ;;  %v9602_v3 = vld [vmem:[#allocation8 + $0xae4] ss:$16 sps:$4 sm:$0xff]   ;;  %v9605_v4 = vld [vmem:[#allocation8 + $0xaec] ss:$16 sps:$4 sm:$0xff]  }
 0x38e   :  { %7739 = vmatprep.subr.bf16.mxu1 %v9539_v5  ;;  %v3987_v5 = vmul.bf16 %v3971_v53, %v10251_v8 }
 0x390   :  { %7396 = vmatpush1.bf16.msra.mxu0 %v9534_v7  ;;  %v9600_v7 = vld [vmem:[#allocation8 + $0xae0] ss:$16 sps:$4 sm:$0xff]  }
 0x391   :  { %7740 = vmatpush1.bf16.msra.mxu1 %v9537_v11  ;;  %7397 = vmatprep.subr.bf16.mxu0 %v9542_v12  ;;  %v3990_v11 = vmul.bf16 %v3974_v0, %v10293_v62  ;;  %v9603_v12 = vld [vmem:[#allocation8 + $0xae8] ss:$16 sps:$4 sm:$0xff]  }
 0x392   :  { %7741 = vmatprep.subr.bf16.mxu1 %v9545_v49  ;;  %v9608_v49 = vld [vmem:[#allocation8 + $0xb04] ss:$16 sps:$4 sm:$0xff]  }
 0x393   :  { %v4006_v13 = vmul.bf16 1027030327, %v3990_v11  ;;  %v9663_v11 = vld [vmem:[#allocation8 + $0xc28] ss:$16 sps:$4 sm:$0xff]  }
 0x394   :  { %7398 = vmatpush1.bf16.msra.mxu0 %v9540_v46  ;;  %v9611_v46 = vld [vmem:[#allocation8 + $0xb0c] ss:$16 sps:$4 sm:$0xff]  }
 0x395   :  { %7742 = vmatpush1.bf16.msra.mxu1 %v9543_v10  ;;  %7399 = vmatprep.subr.bf16.mxu0 %v9548_v9  ;;  %v4003_v10 = vmul.bf16 1027030327, %v3987_v5  ;;  %v9606_v9 = vld [vmem:[#allocation8 + $0xb00] ss:$16 sps:$4 sm:$0xff]   ;;  %v4022_v24 = vadd.bf16 %v4006_v13, %v10293_v62  ;;  %v9665_v5 = vld [vmem:[#allocation8 + $0xc2c] ss:$16 sps:$4 sm:$0xff]  }
 0x396   :  { %7743 = vmatprep.subr.bf16.mxu1 %v9551_v54  ;;  %v9609_v54 = vld [vmem:[#allocation8 + $0xb08] ss:$16 sps:$4 sm:$0xff]  }
 0x397   :  { %v4038_v36 = vmul.bf16 1061961548, %v4022_v24  ;;  %v9675_v13 = vld [vmem:[#allocation8 + $0xc68] ss:$16 sps:$4 sm:$0xff]  }
 0x398   :  { %7400 = vmatpush1.bf16.msra.mxu0 %v9546_v18  ;;  %v9617_v18 = vld [vmem:[#allocation8 + $0xb2c] ss:$16 sps:$4 sm:$0xff]   ;;  %v9687_v24 = vld [vmem:[#allocation8 + $0xca8] ss:$16 sps:$4 sm:$0xff]  }
 0x399   :  { %7744 = vmatpush1.bf16.msra.mxu1 %v9549_v20  ;;  %7401 = vmatprep.subr.bf16.mxu0 %v9554_v21  ;;  %v4019_v20 = vadd.bf16 %v4003_v10, %v10251_v8  ;;  %v9612_v21 = vld [vmem:[#allocation8 + $0xb20] ss:$16 sps:$4 sm:$0xff]   ;;  %v9674_v10 = vld [vmem:[#allocation8 + $0xc64] ss:$16 sps:$4 sm:$0xff]  }
 0x39a   :  { %7745 = vmatprep.subr.bf16.mxu1 %v9557_v23  ;;  %v9620_v23 = vld [vmem:[#allocation8 + $0xb44] ss:$16 sps:$4 sm:$0xff]  }
 0x39c   :  { %7402 = vmatpush1.bf16.msra.mxu0 %v9552_v26  ;;  %v9623_v26 = vld [vmem:[#allocation8 + $0xb4c] ss:$16 sps:$4 sm:$0xff]  }
 0x39d   :  { %7746 = vmatpush1.bf16.msra.mxu1 %v9555_v27  ;;  %7414 = vmatprep.subr.bf16.mxu0 %v9560_v14  ;;  %v4035_v27 = vmul.bf16 1061961548, %v4019_v20  ;;  %v9621_v14 = vld [vmem:[#allocation8 + $0xb48] ss:$16 sps:$4 sm:$0xff]  }
 0x39e   :  { %7758 = vmatprep.subr.bf16.mxu1 %v9563_v35  ;;  %v9626_v35 = vld [vmem:[#allocation8 + $0xb64] ss:$16 sps:$4 sm:$0xff]   ;;  %v9681_v20 = vld [vmem:[#allocation8 + $0xc88] ss:$16 sps:$4 sm:$0xff]  }
 0x39f   :  { %7404 = vmatmul.mubr.bf16.vlgmr.msra.gmra.mrb[16].mxu0 %v4097_v38  ;;  %9868 = vtanh.bf16 %v4035_v27  ;;  %v9695_v27 = vld [vmem:[#allocation8 + $0xccc] ss:$16 sps:$4 sm:$0xff]  }
 0x3a0   :  { %7748 = vmatmul.mubr.bf16.vlgmr.msra.gmra.mrb[16].mxu1 %v4097_v38  ;;  %7415 = vmatpush1.bf16.msra.mxu0 %v9558_v50  ;;  %v9629_v50 = vld [vmem:[#allocation8 + $0xb6c] ss:$16 sps:$4 sm:$0xff]   ;;  %v9624_v38 = vld [vmem:[#allocation8 + $0xb60] ss:$16 sps:$4 sm:$0xff]   ;;  %9870 = vtanh.bf16 %v4038_v36  ;;  %v9693_v36 = vld [vmem:[#allocation8 + $0xcc8] ss:$16 sps:$4 sm:$0xff]  }
 0x3a1   :  { %7446 = vmatprep.mubr.bf16.mxu0 %v4100_v40  ;;  %7759 = vmatpush1.bf16.msra.mxu1 %v9561_v39  ;;  %v9627_v39 = vld [vmem:[#allocation8 + $0xb68] ss:$16 sps:$4 sm:$0xff]  }
 0x3a2   :  { %7790 = vmatprep.mubr.bf16.mxu1 %v4100_v40  ;;  %7416 = vmatprep.subr.bf16.mxu0 %v9566_v15  ;;  %v9632_v15 = vld [vmem:[#allocation8 + $0xb84] ss:$16 sps:$4 sm:$0xff]   ;;  %v9635_v40 = vld [vmem:[#allocation8 + $0xb8c] ss:$16 sps:$4 sm:$0xff]  }
 0x3a3   :  { %7760 = vmatprep.subr.bf16.mxu1 %v9569_v16  ;;  %v9630_v16 = vld [vmem:[#allocation8 + $0xb80] ss:$16 sps:$4 sm:$0xff]  }
 0x3a4   :  { %7417 = vmatpush1.bf16.msra.mxu0 %v9564_v55  ;;  %v9633_v55 = vld [vmem:[#allocation8 + $0xb88] ss:$16 sps:$4 sm:$0xff]  }
 0x3a5   :  { %7761 = vmatpush1.bf16.msra.mxu1 %v9567_v28  ;;  %7418 = vmatprep.subr.bf16.mxu0 %v9572_v41  ;;  %v9638_v28 = vld [vmem:[#allocation8 + $0xba4] ss:$16 sps:$4 sm:$0xff]   ;;  %v9641_v41 = vld [vmem:[#allocation8 + $0xbac] ss:$16 sps:$4 sm:$0xff]  }
 0x3a6   :  { %7762 = vmatprep.subr.bf16.mxu1 %v9575_v31  ;;  %v9636_v31 = vld [vmem:[#allocation8 + $0xba0] ss:$16 sps:$4 sm:$0xff]  }
 0x3a8   :  { %7419 = vmatpush1.bf16.msra.mxu0 %v9570_v6  ;;  %v9639_v6 = vld [vmem:[#allocation8 + $0xba8] ss:$16 sps:$4 sm:$0xff]  }
 0x3a9   :  { %7763 = vmatpush1.bf16.msra.mxu1 %v9573_v57  ;;  %7420 = vmatprep.subr.bf16.mxu0 %v9578_v42  ;;  %v9644_v57 = vld [vmem:[#allocation8 + $0xbc4] ss:$16 sps:$4 sm:$0xff]  }
 0x3aa   :  { %7764 = vmatprep.subr.bf16.mxu1 %v9581_v58  ;;  %v9869_v42 = vpop.eup %9868  ;;  %v9647_v58 = vld [vmem:[#allocation8 + $0xbcc] ss:$16 sps:$4 sm:$0xff]  }
 0x3ac   :  { %7421 = vmatpush1.bf16.msra.mxu0 %v9576_v59  ;;  %v9871_v59 = vpop.eup %9870 }
 0x3ad   :  { %7765 = vmatpush1.bf16.msra.mxu1 %v9579_v43  ;;  %7422 = vmatprep.subr.bf16.mxu0 %v9584_v44  ;;  %v9642_v43 = vld [vmem:[#allocation8 + $0xbc0] ss:$16 sps:$4 sm:$0xff]   ;;  %v9645_v44 = vld [vmem:[#allocation8 + $0xbc8] ss:$16 sps:$4 sm:$0xff]  }
 0x3ae   :  { %7766 = vmatprep.subr.bf16.mxu1 %v9587_v45  ;;  %v9650_v45 = vld [vmem:[#allocation8 + $0xbe4] ss:$16 sps:$4 sm:$0xff]  }
 0x3b0   :  { %7423 = vmatpush1.bf16.msra.mxu0 %v9582_v47  ;;  %v4067_v47 = vadd.bf16 1065369472, %v9869_v42  ;;  %v9710_v42 = vld [vmem:[#allocation8 + $0xd24] ss:$16 sps:$4 sm:$0xff]  }
 0x3b1   :  { %7767 = vmatpush1.bf16.msra.mxu1 %v9585_v48  ;;  %7424 = vmatprep.subr.bf16.mxu0 %v9590_v25  ;;  %v9653_v48 = vld [vmem:[#allocation8 + $0xbec] ss:$16 sps:$4 sm:$0xff]   ;;  %v4070_v25 = vadd.bf16 1065369472, %v9871_v59 }
 0x3b2   :  { %7768 = vmatprep.subr.bf16.mxu1 %v9593_v19  ;;  %v9648_v19 = vld [vmem:[#allocation8 + $0xbe0] ss:$16 sps:$4 sm:$0xff]  }
 0x3b3   :  { %v4086_v53 = vmul.bf16 1056980736, %v4070_v25 }
 0x3b4   :  { %7425 = vmatpush1.bf16.msra.mxu0 %v9588_v51  ;;  %v9651_v51 = vld [vmem:[#allocation8 + $0xbe8] ss:$16 sps:$4 sm:$0xff]  }
 0x3b5   :  { %7769 = vmatpush1.bf16.msra.mxu1 %v9591_v63  ;;  %7426 = vmatprep.subr.bf16.mxu0 %v9596_v30  ;;  %v4083_v63 = vmul.bf16 1056980736, %v4067_v47  ;;  %v9656_v30 = vld [vmem:[#allocation8 + $0xc04] ss:$16 sps:$4 sm:$0xff]  }
 0x3b6   :  { %7770 = vmatprep.subr.bf16.mxu1 %v9599_v52  ;;  %v9659_v52 = vld [vmem:[#allocation8 + $0xc0c] ss:$16 sps:$4 sm:$0xff]  }
 0x3b7   :  { %v4099_v0 = vmul.bf16 %v4083_v63, %v10251_v8  ;;  %v9666_v8 = vld [vmem:[#allocation8 + $0xc40] ss:$16 sps:$4 sm:$0xff]   ;;  %v9722_v63 = vld [vmem:[#allocation8 + $0xd64] ss:$16 sps:$4 sm:$0xff]  }
 0x3b8   :  { %7427 = vmatpush1.bf16.msra.mxu0 %v9594_v60  ;;  %v9654_v60 = vld [vmem:[#allocation8 + $0xc00] ss:$16 sps:$4 sm:$0xff]  }
 0x3b9   :  { %7771 = vmatpush1.bf16.msra.mxu1 %v9597_v1  ;;  %7428 = vmatprep.subr.bf16.mxu0 %v9602_v3  ;;  %v9657_v1 = vld [vmem:[#allocation8 + $0xc08] ss:$16 sps:$4 sm:$0xff]   ;;  %v9662_v3 = vld [vmem:[#allocation8 + $0xc24] ss:$16 sps:$4 sm:$0xff]  }
 0x3ba   :  { %7772 = vmatprep.subr.bf16.mxu1 %v9605_v4  ;;  %v4102_v4 = vmul.bf16 %v4086_v53, %v10293_v62  ;;  %v9677_v62 = vld [vmem:[#allocation8 + $0xc6c] ss:$16 sps:$4 sm:$0xff]   ;;  %v9720_v53 = vld [vmem:[#allocation8 + $0xd60] ss:$16 sps:$4 sm:$0xff]  }
 0x3bc   :  { %7429 = vmatpush1.bf16.msra.mxu0 %v9600_v7  ;;  %v9660_v7 = vld [vmem:[#allocation8 + $0xc20] ss:$16 sps:$4 sm:$0xff]  }
 0x3bd   :  { %7773 = vmatpush1.bf16.msra.mxu1 %v9603_v12  ;;  %7430 = vmatprep.subr.bf16.mxu0 %v9608_v49  ;;  %v9668_v12 = vld [vmem:[#allocation8 + $0xc44] ss:$16 sps:$4 sm:$0xff]   ;;  %v9671_v49 = vld [vmem:[#allocation8 + $0xc4c] ss:$16 sps:$4 sm:$0xff]  }
 0x3be   :  { %7774 = vmatprep.subr.bf16.mxu1 %v9611_v46  ;;  %v9669_v46 = vld [vmem:[#allocation8 + $0xc48] ss:$16 sps:$4 sm:$0xff]  }
 0x3c0   :  { %7431 = vmatpush1.bf16.msra.mxu0 %v9606_v9  ;;  %v9672_v9 = vld [vmem:[#allocation8 + $0xc60] ss:$16 sps:$4 sm:$0xff]  }
 0x3c1   :  { %7775 = vmatpush1.bf16.msra.mxu1 %v9609_v54  ;;  %7432 = vmatprep.subr.bf16.mxu0 %v9614_v17  ;;  %v9680_v54 = vld [vmem:[#allocation8 + $0xc84] ss:$16 sps:$4 sm:$0xff]   ;;  %v9683_v17 = vld [vmem:[#allocation8 + $0xc8c] ss:$16 sps:$4 sm:$0xff]  }
 0x3c2   :  { %7776 = vmatprep.subr.bf16.mxu1 %v9617_v18  ;;  %v9678_v18 = vld [vmem:[#allocation8 + $0xc80] ss:$16 sps:$4 sm:$0xff]  }
 0x3c4   :  { %7433 = vmatpush1.bf16.msra.mxu0 %v9612_v21  ;;  %v9686_v21 = vld [vmem:[#allocation8 + $0xca4] ss:$16 sps:$4 sm:$0xff]  }
 0x3c5   :  { %7777 = vmatpush1.bf16.msra.mxu1 %v9615_v22  ;;  %7434 = vmatprep.subr.bf16.mxu0 %v9620_v23  ;;  %v9689_v22 = vld [vmem:[#allocation8 + $0xcac] ss:$16 sps:$4 sm:$0xff]   ;;  %v9684_v23 = vld [vmem:[#allocation8 + $0xca0] ss:$16 sps:$4 sm:$0xff]  }
 0x3c6   :  { %7778 = vmatprep.subr.bf16.mxu1 %v9623_v26  ;;  %v9692_v26 = vld [vmem:[#allocation8 + $0xcc4] ss:$16 sps:$4 sm:$0xff]  }
 0x3c8   :  { %7435 = vmatpush1.bf16.msra.mxu0 %v9618_v34  ;;  %v3973_v34 = vmul.bf16 %v10289_v56, %v10289_v56 }
 0x3c9   :  { %7779 = vmatpush1.bf16.msra.mxu1 %v9621_v14  ;;  %7436 = vmatprep.subr.bf16.mxu0 %v9626_v35  ;;  %v9690_v14 = vld [vmem:[#allocation8 + $0xcc0] ss:$16 sps:$4 sm:$0xff]   ;;  %v3976_v35 = vmul.bf16 %v10296_v2, %v10296_v2 }
 0x3ca   :  { %7780 = vmatprep.subr.bf16.mxu1 %v9629_v50  ;;  %v9698_v50 = vld [vmem:[#allocation8 + $0xce4] ss:$16 sps:$4 sm:$0xff]  }
 0x3cc   :  { %7437 = vmatpush1.bf16.msra.mxu0 %v9624_v38  ;;  %v9701_v38 = vld [vmem:[#allocation8 + $0xcec] ss:$16 sps:$4 sm:$0xff]  }
 0x3cd   :  { %7781 = vmatpush1.bf16.msra.mxu1 %v9627_v39  ;;  %7438 = vmatprep.subr.bf16.mxu0 %v9632_v15  ;;  %v3989_v39 = vmul.bf16 %v3973_v34, %v10289_v56  ;;  %v9696_v15 = vld [vmem:[#allocation8 + $0xce0] ss:$16 sps:$4 sm:$0xff]  }
 0x3ce   :  { %7782 = vmatprep.subr.bf16.mxu1 %v9635_v40  ;;  %v3992_v40 = vmul.bf16 %v3976_v35, %v10296_v2  ;;  %v9758_v35 = vld [vmem:[#allocation8 + $0xe24] ss:$16 sps:$4 sm:$0xff]  }
 0x3d0   :  { %7439 = vmatpush1.bf16.msra.mxu0 %v9630_v16  ;;  %v9699_v16 = vld [vmem:[#allocation8 + $0xce8] ss:$16 sps:$4 sm:$0xff]  }
 0x3d1   :  { %7783 = vmatpush1.bf16.msra.mxu1 %v9633_v55  ;;  %7440 = vmatprep.subr.bf16.mxu0 %v9638_v28  ;;  %v9704_v55 = vld [vmem:[#allocation8 + $0xd04] ss:$16 sps:$4 sm:$0xff]   ;;  %v9707_v28 = vld [vmem:[#allocation8 + $0xd0c] ss:$16 sps:$4 sm:$0xff]  }
 0x3d2   :  { %7784 = vmatprep.subr.bf16.mxu1 %v9641_v41  ;;  %v4005_v41 = vmul.bf16 1027030327, %v3989_v39  ;;  %v9759_v39 = vld [vmem:[#allocation8 + $0xe28] ss:$16 sps:$4 sm:$0xff]  }
 0x3d4   :  { %7441 = vmatpush1.bf16.msra.mxu0 %v9636_v31  ;;  %v9702_v31 = vld [vmem:[#allocation8 + $0xd00] ss:$16 sps:$4 sm:$0xff]   ;;  %v4021_v59 = vadd.bf16 %v4005_v41, %v10289_v56  ;;  %v9771_v41 = vld [vmem:[#allocation8 + $0xe68] ss:$16 sps:$4 sm:$0xff]  }
 0x3d5   :  { %7785 = vmatpush1.bf16.msra.mxu1 %v9639_v6  ;;  %7442 = vmatprep.subr.bf16.mxu0 %v9644_v57  ;;  %v4008_v6 = vmul.bf16 1027030327, %v3992_v40  ;;  %v9705_v57 = vld [vmem:[#allocation8 + $0xd08] ss:$16 sps:$4 sm:$0xff]   ;;  %v9767_v40 = vld [vmem:[#allocation8 + $0xe4c] ss:$16 sps:$4 sm:$0xff]  }
 0x3d6   :  { %7786 = vmatprep.subr.bf16.mxu1 %v9647_v58  ;;  %v9713_v58 = vld [vmem:[#allocation8 + $0xd2c] ss:$16 sps:$4 sm:$0xff]   ;;  %v4037_v25 = vmul.bf16 1061961548, %v4021_v59 }
 0x3d7   :  { %v4024_v47 = vadd.bf16 %v4008_v6, %v10296_v2  ;;  %v9779_v6 = vld [vmem:[#allocation8 + $0xe8c] ss:$16 sps:$4 sm:$0xff]  }
 0x3d8   :  { %7443 = vmatpush1.bf16.msra.mxu0 %v9642_v43  ;;  %v9708_v43 = vld [vmem:[#allocation8 + $0xd20] ss:$16 sps:$4 sm:$0xff]   ;;  %9872 = vtanh.bf16 %v4037_v25  ;;  %v9785_v59 = vld [vmem:[#allocation8 + $0xeac] ss:$16 sps:$4 sm:$0xff]  }
 0x3d9   :  { %7787 = vmatpush1.bf16.msra.mxu1 %v9645_v44  ;;  %7444 = vmatprep.subr.bf16.mxu0 %v9650_v45  ;;  %v9711_v44 = vld [vmem:[#allocation8 + $0xd28] ss:$16 sps:$4 sm:$0xff]   ;;  %v9716_v45 = vld [vmem:[#allocation8 + $0xd44] ss:$16 sps:$4 sm:$0xff]   ;;  %v9786_v25 = vld [vmem:[#allocation8 + $0xec0] ss:$16 sps:$4 sm:$0xff]  }
 0x3da   :  { %7788 = vmatprep.subr.bf16.mxu1 %v9653_v48  ;;  %v9719_v48 = vld [vmem:[#allocation8 + $0xd4c] ss:$16 sps:$4 sm:$0xff]  }
 0x3dc   :  { %7445 = vmatpush1.bf16.msra.mxu0 %v9648_v19  ;;  %v9714_v19 = vld [vmem:[#allocation8 + $0xd40] ss:$16 sps:$4 sm:$0xff]  }
 0x3dd   :  { %7789 = vmatpush1.bf16.msra.mxu1 %v9651_v51  ;;  %7457 = vmatprep.subr.bf16.mxu0 %v9656_v30  ;;  %v9717_v51 = vld [vmem:[#allocation8 + $0xd48] ss:$16 sps:$4 sm:$0xff]   ;;  %v4040_v30 = vmul.bf16 1061961548, %v4024_v47  ;;  %v9791_v47 = vld [vmem:[#allocation8 + $0xecc] ss:$16 sps:$4 sm:$0xff]  }
 0x3de   :  { %7801 = vmatprep.subr.bf16.mxu1 %v9659_v52  ;;  %v9725_v52 = vld [vmem:[#allocation8 + $0xd6c] ss:$16 sps:$4 sm:$0xff]  }
 0x3df   :  { %7447 = vmatmul.mubr.bf16.vlgmr.msra.gmra.mrb[16].mxu0 %v4099_v0  ;;  %9874 = vtanh.bf16 %v4040_v30 }
 0x3e0   :  { %7791 = vmatmul.mubr.bf16.vlgmr.msra.gmra.mrb[16].mxu1 %v4099_v0  ;;  %7458 = vmatpush1.bf16.msra.mxu0 %v9654_v60  ;;  %v9723_v60 = vld [vmem:[#allocation8 + $0xd68] ss:$16 sps:$4 sm:$0xff]   ;;  %v9728_v0 = vld [vmem:[#allocation8 + $0xd84] ss:$16 sps:$4 sm:$0xff]  }
 0x3e1   :  { %7489 = vmatprep.mubr.bf16.mxu0 %v4102_v4  ;;  %7802 = vmatpush1.bf16.msra.mxu1 %v9657_v1  ;;  %v9731_v1 = vld [vmem:[#allocation8 + $0xd8c] ss:$16 sps:$4 sm:$0xff]  }
 0x3e2   :  { %7833 = vmatprep.mubr.bf16.mxu1 %v4102_v4  ;;  %7459 = vmatprep.subr.bf16.mxu0 %v9662_v3  ;;  %v9726_v3 = vld [vmem:[#allocation8 + $0xd80] ss:$16 sps:$4 sm:$0xff]   ;;  %v9729_v4 = vld [vmem:[#allocation8 + $0xd88] ss:$16 sps:$4 sm:$0xff]  }
 0x3e3   :  { %7803 = vmatprep.subr.bf16.mxu1 %v9665_v5  ;;  %v9734_v5 = vld [vmem:[#allocation8 + $0xda4] ss:$16 sps:$4 sm:$0xff]  }
 0x3e4   :  { %7460 = vmatpush1.bf16.msra.mxu0 %v9660_v7  ;;  %v9737_v7 = vld [vmem:[#allocation8 + $0xdac] ss:$16 sps:$4 sm:$0xff]  }
 0x3e5   :  { %7804 = vmatpush1.bf16.msra.mxu1 %v9663_v11  ;;  %7461 = vmatprep.subr.bf16.mxu0 %v9668_v12  ;;  %v9732_v11 = vld [vmem:[#allocation8 + $0xda0] ss:$16 sps:$4 sm:$0xff]   ;;  %v9735_v12 = vld [vmem:[#allocation8 + $0xda8] ss:$16 sps:$4 sm:$0xff]  }
 0x3e6   :  { %7805 = vmatprep.subr.bf16.mxu1 %v9671_v49  ;;  %v9740_v49 = vld [vmem:[#allocation8 + $0xdc4] ss:$16 sps:$4 sm:$0xff]  }
 0x3e8   :  { %7462 = vmatpush1.bf16.msra.mxu0 %v9666_v8  ;;  %v9873_v8 = vpop.eup %9872 }
 0x3e9   :  { %7806 = vmatpush1.bf16.msra.mxu1 %v9669_v46  ;;  %7463 = vmatprep.subr.bf16.mxu0 %v9674_v10  ;;  %v9743_v46 = vld [vmem:[#allocation8 + $0xdcc] ss:$16 sps:$4 sm:$0xff]  }
 0x3ea   :  { %7807 = vmatprep.subr.bf16.mxu1 %v9677_v62  ;;  %v9875_v10 = vpop.eup %9874  ;;  %v9738_v62 = vld [vmem:[#allocation8 + $0xdc0] ss:$16 sps:$4 sm:$0xff]  }
 0x3ec   :  { %7464 = vmatpush1.bf16.msra.mxu0 %v9672_v9  ;;  %v9741_v9 = vld [vmem:[#allocation8 + $0xdc8] ss:$16 sps:$4 sm:$0xff]  }
 0x3ed   :  { %7808 = vmatpush1.bf16.msra.mxu1 %v9675_v13  ;;  %7465 = vmatprep.subr.bf16.mxu0 %v9680_v54  ;;  %v9746_v13 = vld [vmem:[#allocation8 + $0xde4] ss:$16 sps:$4 sm:$0xff]   ;;  %v4069_v54 = vadd.bf16 1065369472, %v9873_v8 }
 0x3ee   :  { %7809 = vmatprep.subr.bf16.mxu1 %v9683_v17  ;;  %v9749_v17 = vld [vmem:[#allocation8 + $0xdec] ss:$16 sps:$4 sm:$0xff]   ;;  %v9812_v8 = vld [vmem:[#allocation8 + $0xf44] ss:$16 sps:$4 sm:$0xff]  }
 0x3f0   :  { %7466 = vmatpush1.bf16.msra.mxu0 %v9678_v18  ;;  %v4072_v18 = vadd.bf16 1065369472, %v9875_v10 }
 0x3f1   :  { %7810 = vmatpush1.bf16.msra.mxu1 %v9681_v20  ;;  %7467 = vmatprep.subr.bf16.mxu0 %v9686_v21  ;;  %v9744_v20 = vld [vmem:[#allocation8 + $0xde0] ss:$16 sps:$4 sm:$0xff]   ;;  %v9747_v21 = vld [vmem:[#allocation8 + $0xde8] ss:$16 sps:$4 sm:$0xff]  }
 0x3f2   :  { %7811 = vmatprep.subr.bf16.mxu1 %v9689_v22  ;;  %v4085_v22 = vmul.bf16 1056980736, %v4069_v54  ;;  %v9821_v54 = vld [vmem:[#allocation8 + $0xf6c] ss:$16 sps:$4 sm:$0xff]  }
 0x3f4   :  { %7468 = vmatpush1.bf16.msra.mxu0 %v9684_v23  ;;  %v9752_v23 = vld [vmem:[#allocation8 + $0xe04] ss:$16 sps:$4 sm:$0xff]   ;;  %v4101_v34 = vmul.bf16 %v4085_v22, %v10289_v56  ;;  %v9762_v56 = vld [vmem:[#allocation8 + $0xe40] ss:$16 sps:$4 sm:$0xff]  }
 0x3f5   :  { %7812 = vmatpush1.bf16.msra.mxu1 %v9687_v24  ;;  %7469 = vmatprep.subr.bf16.mxu0 %v9692_v26  ;;  %v9755_v24 = vld [vmem:[#allocation8 + $0xe0c] ss:$16 sps:$4 sm:$0xff]   ;;  %v4088_v26 = vmul.bf16 1056980736, %v4072_v18  ;;  %v9819_v18 = vld [vmem:[#allocation8 + $0xf68] ss:$16 sps:$4 sm:$0xff]  }
 0x3f6   :  { %7813 = vmatprep.subr.bf16.mxu1 %v9695_v27  ;;  %v9750_v27 = vld [vmem:[#allocation8 + $0xe00] ss:$16 sps:$4 sm:$0xff]  }
 0x3f7   :  { %v9822_v22 = vld [vmem:[#allocation8 + $0xf80] ss:$16 sps:$4 sm:$0xff]  }
 0x3f8   :  { %7470 = vmatpush1.bf16.msra.mxu0 %v9690_v14  ;;  %v9753_v14 = vld [vmem:[#allocation8 + $0xe08] ss:$16 sps:$4 sm:$0xff]  }
 0x3f9   :  { %7814 = vmatpush1.bf16.msra.mxu1 %v9693_v36  ;;  %7471 = vmatprep.subr.bf16.mxu0 %v9698_v50  ;;  %v4104_v36 = vmul.bf16 %v4088_v26, %v10296_v2  ;;  %v9761_v50 = vld [vmem:[#allocation8 + $0xe2c] ss:$16 sps:$4 sm:$0xff]  }
 0x3fa   :  { %7815 = vmatprep.subr.bf16.mxu1 %v9701_v38  ;;  %v9756_v38 = vld [vmem:[#allocation8 + $0xe20] ss:$16 sps:$4 sm:$0xff]   ;;  %v9773_v2 = vld [vmem:[#allocation8 + $0xe6c] ss:$16 sps:$4 sm:$0xff]  }
 0x3fb   :  { %v9833_v26 = vld [vmem:[#allocation8 + $0xfac] ss:$16 sps:$4 sm:$0xff]  }
 0x3fc   :  { %7472 = vmatpush1.bf16.msra.mxu0 %v9696_v15  ;;  %v9764_v15 = vld [vmem:[#allocation8 + $0xe44] ss:$16 sps:$4 sm:$0xff]  }
 0x3fd   :  { %7816 = vmatpush1.bf16.msra.mxu1 %v9699_v16  ;;  %7473 = vmatprep.subr.bf16.mxu0 %v9704_v55  ;;  %v9765_v16 = vld [vmem:[#allocation8 + $0xe48] ss:$16 sps:$4 sm:$0xff]   ;;  %v9770_v55 = vld [vmem:[#allocation8 + $0xe64] ss:$16 sps:$4 sm:$0xff]  }
 0x3fe   :  { %7817 = vmatprep.subr.bf16.mxu1 %v9707_v28  ;;  %v9768_v28 = vld [vmem:[#allocation8 + $0xe60] ss:$16 sps:$4 sm:$0xff]  }
 0x400   :  { %7474 = vmatpush1.bf16.msra.mxu0 %v9702_v31  ;;  %v9776_v31 = vld [vmem:[#allocation8 + $0xe84] ss:$16 sps:$4 sm:$0xff]  }
 0x401   :  { %7818 = vmatpush1.bf16.msra.mxu1 %v9705_v57  ;;  %7475 = vmatprep.subr.bf16.mxu0 %v9710_v42  ;;  %v9774_v57 = vld [vmem:[#allocation8 + $0xe80] ss:$16 sps:$4 sm:$0xff]   ;;  %v9777_v42 = vld [vmem:[#allocation8 + $0xe88] ss:$16 sps:$4 sm:$0xff]  }
 0x402   :  { %7819 = vmatprep.subr.bf16.mxu1 %v9713_v58  ;;  %v9782_v58 = vld [vmem:[#allocation8 + $0xea4] ss:$16 sps:$4 sm:$0xff]  }
 0x404   :  { %7476 = vmatpush1.bf16.msra.mxu0 %v9708_v43  ;;  %v9780_v43 = vld [vmem:[#allocation8 + $0xea0] ss:$16 sps:$4 sm:$0xff]  }
 0x405   :  { %7820 = vmatpush1.bf16.msra.mxu1 %v9711_v44  ;;  %7477 = vmatprep.subr.bf16.mxu0 %v9716_v45  ;;  %v9783_v44 = vld [vmem:[#allocation8 + $0xea8] ss:$16 sps:$4 sm:$0xff]   ;;  %v9788_v45 = vld [vmem:[#allocation8 + $0xec4] ss:$16 sps:$4 sm:$0xff]  }
 0x406   :  { %7821 = vmatprep.subr.bf16.mxu1 %v9719_v48  ;;  %v3975_v48 = vmul.bf16 %v10291_v61, %v10291_v61 }
 0x408   :  { %7478 = vmatpush1.bf16.msra.mxu0 %v9714_v19  ;;  %v9789_v19 = vld [vmem:[#allocation8 + $0xec8] ss:$16 sps:$4 sm:$0xff]   ;;  %v3991_v30 = vmul.bf16 %v3975_v48, %v10291_v61 }
 0x409   :  { %7822 = vmatpush1.bf16.msra.mxu1 %v9717_v51  ;;  %7479 = vmatprep.subr.bf16.mxu0 %v9722_v63  ;;  %v9794_v51 = vld [vmem:[#allocation8 + $0xee4] ss:$16 sps:$4 sm:$0xff]   ;;  %v9797_v63 = vld [vmem:[#allocation8 + $0xeec] ss:$16 sps:$4 sm:$0xff]  }
 0x40a   :  { %7823 = vmatprep.subr.bf16.mxu1 %v9725_v52  ;;  %v9792_v52 = vld [vmem:[#allocation8 + $0xee0] ss:$16 sps:$4 sm:$0xff]  }
 0x40c   :  { %7480 = vmatpush1.bf16.msra.mxu0 %v9720_v53  ;;  %v9795_v53 = vld [vmem:[#allocation8 + $0xee8] ss:$16 sps:$4 sm:$0xff]  }
 0x40d   :  { %7824 = vmatpush1.bf16.msra.mxu1 %v9723_v60  ;;  %7481 = vmatprep.subr.bf16.mxu0 %v9728_v0  ;;  %v9800_v60 = vld [vmem:[#allocation8 + $0xf04] ss:$16 sps:$4 sm:$0xff]   ;;  %v9803_v0 = vld [vmem:[#allocation8 + $0xf0c] ss:$16 sps:$4 sm:$0xff]  }
 0x40e   :  { %7825 = vmatprep.subr.bf16.mxu1 %v9731_v1  ;;  %v4007_v1 = vmul.bf16 1027030327, %v3991_v30 }
 0x410   :  { %7482 = vmatpush1.bf16.msra.mxu0 %v9726_v3  ;;  %v9798_v3 = vld [vmem:[#allocation8 + $0xf00] ss:$16 sps:$4 sm:$0xff]  }
 0x411   :  { %7826 = vmatpush1.bf16.msra.mxu1 %v9729_v4  ;;  %7483 = vmatprep.subr.bf16.mxu0 %v9734_v5  ;;  %v9801_v4 = vld [vmem:[#allocation8 + $0xf08] ss:$16 sps:$4 sm:$0xff]   ;;  %v9806_v5 = vld [vmem:[#allocation8 + $0xf24] ss:$16 sps:$4 sm:$0xff]  }
 0x412   :  { %7827 = vmatprep.subr.bf16.mxu1 %v9737_v7  ;;  %v9809_v7 = vld [vmem:[#allocation8 + $0xf2c] ss:$16 sps:$4 sm:$0xff]  }
 0x414   :  { %7484 = vmatpush1.bf16.msra.mxu0 %v9732_v11  ;;  %v4023_v11 = vadd.bf16 %v4007_v1, %v10291_v61 }
 0x415   :  { %7828 = vmatpush1.bf16.msra.mxu1 %v9735_v12  ;;  %7485 = vmatprep.subr.bf16.mxu0 %v9740_v49  ;;  %v9804_v12 = vld [vmem:[#allocation8 + $0xf20] ss:$16 sps:$4 sm:$0xff]   ;;  %v9807_v49 = vld [vmem:[#allocation8 + $0xf28] ss:$16 sps:$4 sm:$0xff]  }
 0x416   :  { %7829 = vmatprep.subr.bf16.mxu1 %v9743_v46  ;;  %v9815_v46 = vld [vmem:[#allocation8 + $0xf4c] ss:$16 sps:$4 sm:$0xff]   ;;  %v4039_v10 = vmul.bf16 1061961548, %v4023_v11 }
 0x418   :  { %7486 = vmatpush1.bf16.msra.mxu0 %v9738_v62  ;;  %v9810_v62 = vld [vmem:[#allocation8 + $0xf40] ss:$16 sps:$4 sm:$0xff]   ;;  %9876 = vtanh.bf16 %v4039_v10 }
 0x419   :  { %7830 = vmatpush1.bf16.msra.mxu1 %v9741_v9  ;;  %7487 = vmatprep.subr.bf16.mxu0 %v9746_v13  ;;  %v9813_v9 = vld [vmem:[#allocation8 + $0xf48] ss:$16 sps:$4 sm:$0xff]   ;;  %v9818_v13 = vld [vmem:[#allocation8 + $0xf64] ss:$16 sps:$4 sm:$0xff]  }
 0x41a   :  { %7831 = vmatprep.subr.bf16.mxu1 %v9749_v17  ;;  %v9816_v17 = vld [vmem:[#allocation8 + $0xf60] ss:$16 sps:$4 sm:$0xff]  }
 0x41c   :  { %7488 = vmatpush1.bf16.msra.mxu0 %v9744_v20  ;;  %v9824_v20 = vld [vmem:[#allocation8 + $0xf84] ss:$16 sps:$4 sm:$0xff]  }
 0x41d   :  { %7832 = vmatpush1.bf16.msra.mxu1 %v9747_v21  ;;  %7500 = vmatprep.subr.bf16.mxu0 %v9752_v23  ;;  %v9827_v21 = vld [vmem:[#allocation8 + $0xf8c] ss:$16 sps:$4 sm:$0xff]   ;;  %v9825_v23 = vld [vmem:[#allocation8 + $0xf88] ss:$16 sps:$4 sm:$0xff]  }
 0x41e   :  { %7844 = vmatprep.subr.bf16.mxu1 %v9755_v24  ;;  %v9830_v24 = vld [vmem:[#allocation8 + $0xfa4] ss:$16 sps:$4 sm:$0xff]  }
 0x41f   :  { %7490 = vmatmul.mubr.bf16.vlgmr.msra.gmra.mrb[16].mxu0 %v4101_v34 }
 0x420   :  { %7834 = vmatmul.mubr.bf16.vlgmr.msra.gmra.mrb[16].mxu1 %v4101_v34  ;;  %7501 = vmatpush1.bf16.msra.mxu0 %v9750_v27  ;;  %v9828_v27 = vld [vmem:[#allocation8 + $0xfa0] ss:$16 sps:$4 sm:$0xff]   ;;  %v9831_v34 = vld [vmem:[#allocation8 + $0xfa8] ss:$16 sps:$4 sm:$0xff]  }
 0x421   :  { %7532 = vmatprep.mubr.bf16.mxu0 %v4104_v36  ;;  %7845 = vmatpush1.bf16.msra.mxu1 %v9753_v14  ;;  %v9836_v14 = vld [vmem:[#allocation8 + $0xfc4] ss:$16 sps:$4 sm:$0xff]  }
 0x422   :  { %7876 = vmatprep.mubr.bf16.mxu1 %v4104_v36  ;;  %7502 = vmatprep.subr.bf16.mxu0 %v9758_v35  ;;  %v9839_v36 = vld [vmem:[#allocation8 + $0xfcc] ss:$16 sps:$4 sm:$0xff]  }
 0x423   :  { %7846 = vmatprep.subr.bf16.mxu1 %v9761_v50  ;;  %v9877_v35 = vpop.eup %9876  ;;  %v9834_v50 = vld [vmem:[#allocation8 + $0xfc0] ss:$16 sps:$4 sm:$0xff]  }
 0x424   :  { %7503 = vmatpush1.bf16.msra.mxu0 %v9756_v38  ;;  %v9837_v38 = vld [vmem:[#allocation8 + $0xfc8] ss:$16 sps:$4 sm:$0xff]  }
 0x425   :  { %7847 = vmatpush1.bf16.msra.mxu1 %v9759_v39  ;;  %7504 = vmatprep.subr.bf16.mxu0 %v9764_v15  ;;  %v9842_v39 = vld [vmem:[#allocation8 + $0xfe4] ss:$16 sps:$4 sm:$0xff]   ;;  %v4071_v15 = vadd.bf16 1065369472, %v9877_v35 }
 0x426   :  { %7848 = vmatprep.subr.bf16.mxu1 %v9767_v40  ;;  %v9845_v40 = vld [vmem:[#allocation8 + $0xfec] ss:$16 sps:$4 sm:$0xff]  }
 0x428   :  { %7505 = vmatpush1.bf16.msra.mxu0 %v9762_v56  ;;  %v9840_v56 = vld [vmem:[#allocation8 + $0xfe0] ss:$16 sps:$4 sm:$0xff]  }
 0x429   :  { %7849 = vmatpush1.bf16.msra.mxu1 %v9765_v16  ;;  %7506 = vmatprep.subr.bf16.mxu0 %v9770_v55  ;;  %v9843_v16 = vld [vmem:[#allocation8 + $0xfe8] ss:$16 sps:$4 sm:$0xff]   ;;  %v4087_v55 = vmul.bf16 1056980736, %v4071_v15 }
 0x42a   :  { %7850 = vmatprep.subr.bf16.mxu1 %v9773_v2 }
 0x42b   :  { %v4103_v2 = vmul.bf16 %v4087_v55, %v10291_v61 }
 0x42c   :  { %7507 = vmatpush1.bf16.msra.mxu0 %v9768_v28  ;;  %v4617_v28 = vld [vmem:[#allocation10] sm:$0xf] }
 0x42d   :  { %7851 = vmatpush1.bf16.msra.mxu1 %v9771_v41  ;;  %7508 = vmatprep.subr.bf16.mxu0 %v9776_v31  ;;  %v4622_v41 = vrot.slane %v4617_v28, %v10156_v29  ;;  %v4630_v31 = vrot.slane %v4617_v28, %v10161_v32 }
 0x42e   :  { %7852 = vmatprep.subr.bf16.mxu1 %v9779_v6  ;;  %v4626_v6 = vrot.slane %v4617_v28, %v10164_v33 }
 0x430   :  { %7509 = vmatpush1.bf16.msra.mxu0 %v9774_v57  ;;  %v4634_v57 = vrot.slane %v4617_v28, %v10167_v37 }
 0x431   :  { %7853 = vmatpush1.bf16.msra.mxu1 %v9777_v42  ;;  %7510 = vmatprep.subr.bf16.mxu0 %v9782_v58 }
 0x432   :  { %7854 = vmatprep.subr.bf16.mxu1 %v9785_v59 }
 0x434   :  { %7511 = vmatpush1.bf16.msra.mxu0 %v9780_v43 }
 0x435   :  { %7855 = vmatpush1.bf16.msra.mxu1 %v9783_v44  ;;  %7512 = vmatprep.subr.bf16.mxu0 %v9788_v45 }
 0x436   :  { %7856 = vmatprep.subr.bf16.mxu1 %v9791_v47 }
 0x438   :  { %7513 = vmatpush1.bf16.msra.mxu0 %v9786_v25 }
 0x439   :  { %7857 = vmatpush1.bf16.msra.mxu1 %v9789_v19  ;;  %7514 = vmatprep.subr.bf16.mxu0 %v9794_v51 }
 0x43a   :  { %7858 = vmatprep.subr.bf16.mxu1 %v9797_v63 }
 0x43c   :  { %7515 = vmatpush1.bf16.msra.mxu0 %v9792_v52 }
 0x43d   :  { %7859 = vmatpush1.bf16.msra.mxu1 %v9795_v53  ;;  %7516 = vmatprep.subr.bf16.mxu0 %v9800_v60 }
 0x43e   :  { %7860 = vmatprep.subr.bf16.mxu1 %v9803_v0 }
 0x440   :  { %7517 = vmatpush1.bf16.msra.mxu0 %v9798_v3 }
 0x441   :  { %7861 = vmatpush1.bf16.msra.mxu1 %v9801_v4  ;;  %7518 = vmatprep.subr.bf16.mxu0 %v9806_v5 }
 0x442   :  { %7862 = vmatprep.subr.bf16.mxu1 %v9809_v7 }
 0x444   :  { %7519 = vmatpush1.bf16.msra.mxu0 %v9804_v12 }
 0x445   :  { %7863 = vmatpush1.bf16.msra.mxu1 %v9807_v49  ;;  %7520 = vmatprep.subr.bf16.mxu0 %v9812_v8 }
 0x446   :  { %7864 = vmatprep.subr.bf16.mxu1 %v9815_v46 }
 0x448   :  { %7521 = vmatpush1.bf16.msra.mxu0 %v9810_v62 }
 0x449   :  { %7865 = vmatpush1.bf16.msra.mxu1 %v9813_v9  ;;  %7522 = vmatprep.subr.bf16.mxu0 %v9818_v13 }
 0x44a   :  { %7866 = vmatprep.subr.bf16.mxu1 %v9821_v54 }
 0x44c   :  { %7523 = vmatpush1.bf16.msra.mxu0 %v9816_v17 }
 0x44d   :  { %7867 = vmatpush1.bf16.msra.mxu1 %v9819_v18  ;;  %7524 = vmatprep.subr.bf16.mxu0 %v9824_v20 }
 0x44e   :  { %7868 = vmatprep.subr.bf16.mxu1 %v9827_v21 }
 0x450   :  { %7525 = vmatpush1.bf16.msra.mxu0 %v9822_v22 }
 0x451   :  { %7869 = vmatpush1.bf16.msra.mxu1 %v9825_v23  ;;  %7526 = vmatprep.subr.bf16.mxu0 %v9830_v24 }
 0x452   :  { %7870 = vmatprep.subr.bf16.mxu1 %v9833_v26 }
 0x454   :  { %7527 = vmatpush1.bf16.msra.mxu0 %v9828_v27 }
 0x455   :  { %7871 = vmatpush1.bf16.msra.mxu1 %v9831_v34  ;;  %7528 = vmatprep.subr.bf16.mxu0 %v9836_v14 }
 0x456   :  { %7872 = vmatprep.subr.bf16.mxu1 %v9839_v36 }
 0x458   :  { %7529 = vmatpush1.bf16.msra.mxu0 %v9834_v50 }
 0x459   :  { %7873 = vmatpush1.bf16.msra.mxu1 %v9837_v38  ;;  %7530 = vmatprep.subr.bf16.mxu0 %v9842_v39 }
 0x45a   :  { %7874 = vmatprep.subr.bf16.mxu1 %v9845_v40 }
 0x45c   :  { %7531 = vmatpush1.bf16.msra.mxu0 %v9840_v56 }
 0x45d   :  { %7875 = vmatpush1.bf16.msra.mxu1 %v9843_v16 }
 0x45f   :  { %7533 = vmatmul.mubr.bf16.vlgmr.msra.gmra.mrb[16].mxu0 %v4103_v2 }
 0x460   :  { %7877 = vmatmul.mubr.bf16.vlgmr.msra.gmra.mrb[16].mxu1 %v4103_v2 }
 0x532   :  { %v7534_v42 = vpop.f32.mrb[16].mxu0 }
 0x533   :  { %v8970_v58 = vadd.f32 %v7534_v42, %v4622_v41  ;;  %v7878_v59 = vpop.f32.mrb[16].mxu1  ;;  %v7536_v43 = vpop.f32.mrb[17].mxu0 }
 0x534   :  { %v8974_v44 = vadd.f32 %v7878_v59, %v4630_v31  ;;  %v8971_v45 = vadd.f32 %v7536_v43, %v4626_v6  ;;  %v7880_v47 = vpop.f32.mrb[17].mxu1  ;;  %v7538_v48 = vpop.f32.mrb[18].mxu0 }
 0x535   :  { %7887 = vst [vmem:[#allocation11] sm:$0xff] %v8970_v58  ;;  %v8975_v61 = vadd.f32 %v7880_v47, %v4634_v57  ;;  %v8972_v25 = vadd.f32 %v7538_v48, %v4622_v41  ;;  %v7882_v29 = vpop.f32.mrb[18].mxu1  ;;  %v7540_v19 = vpop.f32.mrb[19].mxu0 }
 0x536   :  { %7889 = vst [vmem:[#allocation11 + $0x10] sm:$0xff] %v8974_v44  ;;  %7888 = vst [vmem:[#allocation11 + $0x8] sm:$0xff] %v8971_v45  ;;  %v8976_v32 = vadd.f32 %v7882_v29, %v4630_v31  ;;  %v8973_v33 = vadd.f32 %v7540_v19, %v4626_v6  ;;  %v7884_v37 = vpop.f32.mrb[19].mxu1 }
 0x537   :  { %7890 = vst [vmem:[#allocation11 + $0x18] sm:$0xff] %v8975_v61  ;;  %7891 = vst [vmem:[#allocation11 + $0x20] sm:$0xff] %v8972_v25  ;;  %v8977_v51 = vadd.f32 %v7884_v37, %v4634_v57 }
 0x538   :  { %7893 = vst [vmem:[#allocation11 + $0x30] sm:$0xff] %v8976_v32  ;;  %7892 = vst [vmem:[#allocation11 + $0x28] sm:$0xff] %v8973_v33 }
 0x539   :  { %7894 = vst [vmem:[#allocation11 + $0x38] sm:$0xff] %v8977_v51 }
 0x53a   :  { %9999 = shalt.err (!%p9996_p2)
}
 0x53b   :  { %s10000_s9 = scalar_lea.hbm %s10361_s5, 1024 }
 0x53c   :  { %p10001_p3 = scmp.ne.s32.totalorder %s10361_s5, %s10000_s9  ;;  %p10004_p4 = scmp.lt.u32.totalorder %s10000_s9, %s10361_s5 }
 0x53e   :  { %p10006_p5 = pnand %p10004_p4, %p10001_p3 }
 0x540   :  { %10009 = shalt.err (!%p10006_p5)
}
 0x541   :  { %7906 = dma.vmem_to_hbm [thread:$0]  %s7901_s29, 1024, %s10361_s5, [#allocation4], %s10025_s3, %s10025_s3, %s10026_s30  }
 0x542   :  { %10016 = dma.done.wait [#allocation4], 1024  }
 0x543   :  { %10017 = vsyncadd [#allocation4], 4294966272 }
 0x544   :  { %7910 = vsyncpa [#allocation3], 1 }
 0x545   :  { %7911 = vsyncpa [#allocation6], 1 }
 0x546   :  { %7912 = vsyncpa [#allocation9], 1 }
 0x547   :  { %7913 = vsyncpa [#allocation4], 1 }

</bundles_post_ra>
